<compile_context>
chip_gen: v7x
topology: tpu7x:2x2x1
jax: 0.10.0
libtpu: 0.0.40
codegen_flags: <defaults>
</compile_context>

<pallas_src>
import functools
import math

import jax
import jax.numpy as jnp
from jax.experimental import pallas as pl
from jax.experimental.pallas import tpu as pltpu

NC = 1
NDF = 64
LRELU_SLOPE = 0.2
BN_EPS = 1e-5

_MAX_TILE = 1024                       # cap on the M-axis row tile
_VMEM_TILE_BUDGET = 10 * 1024 * 1024   # double-buffered working set; fits v5e's 16 MiB default
_HEAD_FUSE_PATCH_BYTES = 6 * 1024 * 1024


def _leaky(x):
    return jnp.where(x > 0, x, LRELU_SLOPE * x)


def _sigmoid(x):
    # Numerically stable sigmoid in f32; result stays exactly inside [0, 1].
    return jnp.where(x >= 0,
                     1.0 / (1.0 + jnp.exp(-x)),
                     jnp.exp(x) / (1.0 + jnp.exp(x)))


def _tile_bytes(t, k, c):
    # bf16 patch + weight input blocks (double buffered), bf16 y output
    # (double buffered), tiny f32 stat blocks.
    return 2 * 2 * (t * k + k * c + t * c) + 2 * 4 * 2 * c


def _pick_tile(m, k, c):
    """Largest power-of-two divisor of m, <= _MAX_TILE, fitting the VMEM budget.

    M = N*Ho*Wo and Ho*Wo is a power of two >= 16, so the returned tile always
    divides M exactly (no row padding / output slicing) and is a multiple of 16.
    The tile is halved when it would otherwise equal M so every layer runs a
    >=2-step parallel grid (keeps both v7x TensorCores busy).
    """
    t = math.gcd(m, _MAX_TILE)
    while t > 16 and _tile_bytes(t, k, c) > _VMEM_TILE_BUDGET:
        t //= 2
    if t == m and m >= 32:
        t //= 2
    return t


# ---------------------------------------------------------------------------
# Kernels
# ---------------------------------------------------------------------------
def _conv_lrelu_kernel(p_ref, w_ref, o_ref):
    """One M-tile of (patches @ W) + LeakyReLU (no BatchNorm)."""
    y = jnp.dot(p_ref[...], w_ref[...], preferred_element_type=jnp.float32)
    o_ref[...] = _leaky(y).astype(o_ref.dtype)


def _conv_stats_kernel(p_ref, w_ref, y_ref, su_ref, sq_ref):
    """Tiled-BN pass 1: conv tile (bf16 store) + per-tile f32 sum / sum-of-squares."""
    y = jnp.dot(p_ref[...], w_ref[...], preferred_element_type=jnp.float32)
    y_ref[...] = y.astype(y_ref.dtype)
    c = y.shape[1]
    su_ref[...] = jnp.sum(y, axis=0).reshape(1, 1, c)
    sq_ref[...] = jnp.sum(y * y, axis=0).reshape(1, 1, c)


def _bn_lrelu_kernel(y_ref, scale_ref, shift_ref, o_ref):
    """Tiled-BN pass 2: y * scale + shift, then LeakyReLU (bf16 in / bf16 out)."""
    y = y_ref[...].astype(jnp.float32)
    o_ref[...] = _leaky(y * scale_ref[...] + shift_ref[...]).astype(o_ref.dtype)


def _conv_bn_head_kernel(p_ref, w_ref, g_ref, b_ref, w5_ref, o_ref, *, n):
    """Fused tail: conv4 + BN + LeakyReLU + full-map 4x4 conv5 + sigmoid."""
    y = jnp.dot(p_ref[...], w_ref[...], preferred_element_type=jnp.float32)  # [16n, C4]
    mean = jnp.mean(y, axis=0, keepdims=True)
    var = jnp.mean(jnp.square(y - mean), axis=0, keepdims=True)
    y = (y - mean) * jax.lax.rsqrt(var + BN_EPS)
    y = _leaky(y * g_ref[...] + b_ref[...])
    c4 = y.shape[1]
    w5 = w5_ref[...].astype(jnp.float32)                 # [16, C4]
    prod = y.reshape(n, 16, c4) * w5[None, :, :]         # leading-dim split only
    s = jnp.sum(jnp.sum(prod, axis=2), axis=1, keepdims=True)   # [n, 1]
    o_ref[...] = _sigmoid(s)


def _head_kernel(y_ref, w5_ref, o_ref, *, n):
    """Non-fused tail: full-map 4x4 conv5 + sigmoid on the conv4 activation."""
    y = y_ref[...].astype(jnp.float32)                   # [16n, C4]
    w5 = w5_ref[...].astype(jnp.float32)                 # [16, C4]
    c4 = y.shape[1]
    prod = y.reshape(n, 16, c4) * w5[None, :, :]
    s = jnp.sum(jnp.sum(prod, axis=2), axis=1, keepdims=True)
    o_ref[...] = _sigmoid(s)


# ---------------------------------------------------------------------------
# Wrappers (grids / BlockSpecs)
# ---------------------------------------------------------------------------
def conv_lrelu_tiled(patches, w):
    m, k = patches.shape
    c = w.shape[1]
    t = _pick_tile(m, k, c)
    nt = m // t
    return pl.pallas_call(
        _conv_lrelu_kernel,
        out_shape=jax.ShapeDtypeStruct((m, c), jnp.bfloat16),
        grid=(nt,),
        in_specs=[pl.BlockSpec((t, k), lambda i: (i, 0)),
                  pl.BlockSpec((k, c), lambda i: (0, 0))],
        out_specs=pl.BlockSpec((t, c), lambda i: (i, 0)),
        compiler_params=pltpu.CompilerParams(dimension_semantics=("parallel",)),
        cost_estimate=pl.CostEstimate(
            flops=2 * m * k * c, transcendentals=0,
            bytes_accessed=2 * (m * k + k * c + m * c)),
    )(patches, w)


def conv_bn_lrelu(patches, w, gamma, beta):
    """Conv + BatchNorm (current-batch stats) + LeakyReLU, tiled two-pass BN."""
    m, k = patches.shape
    c = w.shape[1]
    t = _pick_tile(m, k, c)
    nt = m // t

    # Pass 1: conv tiles (stored bf16) + exact f32 per-tile sums.
    y, ssum, ssq = pl.pallas_call(
        _conv_stats_kernel,
        out_shape=(jax.ShapeDtypeStruct((m, c), jnp.bfloat16),
                   jax.ShapeDtypeStruct((nt, 1, c), jnp.float32),
                   jax.ShapeDtypeStruct((nt, 1, c), jnp.float32)),
        grid=(nt,),
        in_specs=[pl.BlockSpec((t, k), lambda i: (i, 0)),
                  pl.BlockSpec((k, c), lambda i: (0, 0))],
        out_specs=(pl.BlockSpec((t, c), lambda i: (i, 0)),
                   pl.BlockSpec((1, 1, c), lambda i: (i, 0, 0)),
                   pl.BlockSpec((1, 1, c), lambda i: (i, 0, 0))),
        compiler_params=pltpu.CompilerParams(dimension_semantics=("parallel",)),
        cost_estimate=pl.CostEstimate(
            flops=2 * m * k * c + 3 * m * c, transcendentals=0,
            bytes_accessed=2 * (m * k + k * c + m * c) + 8 * nt * c),
    )(patches, w)

    # Tiny XLA reduce over per-tile statistics (exact, f32).
    mean = jnp.sum(ssum[:, 0, :], axis=0) / m
    var = jnp.maximum(jnp.sum(ssq[:, 0, :], axis=0) / m - mean * mean, 0.0)
    scale = gamma[0] * jax.lax.rsqrt(var + BN_EPS)
    shift = beta[0] - mean * scale

    # Pass 2: normalize + LeakyReLU (bf16 in / bf16 out).
    return pl.pallas_call(
        _bn_lrelu_kernel,
        out_shape=jax.ShapeDtypeStruct((m, c), jnp.bfloat16),
        grid=(nt,),
        in_specs=[pl.BlockSpec((t, c), lambda i: (i, 0)),
                  pl.BlockSpec((1, c), lambda i: (0, 0)),
                  pl.BlockSpec((1, c), lambda i: (0, 0))],
        out_specs=pl.BlockSpec((t, c), lambda i: (i, 0)),
        compiler_params=pltpu.CompilerParams(dimension_semantics=("parallel",)),
        cost_estimate=pl.CostEstimate(
            flops=3 * m * c, transcendentals=0,
            bytes_accessed=4 * m * c + 8 * c),
    )(y, scale[None, :], shift[None, :])


def conv_bn_head_fused(patches, w4, gamma, beta, w5r, n):
    # Single launch; only used when the whole tail fits a conservative VMEM
    # budget (it is then too small for a multi-step grid to matter).
    return pl.pallas_call(
        functools.partial(_conv_bn_head_kernel, n=n),
        out_shape=jax.ShapeDtypeStruct((n, 1), jnp.float32),
        in_specs=[pl.BlockSpec(memory_space=pltpu.MemorySpace.VMEM)] * 5,
        out_specs=pl.BlockSpec(memory_space=pltpu.MemorySpace.VMEM),
    )(patches, w4, gamma, beta, w5r)


def head_sigmoid(y4, w5r, n):
    # TODO(synk): tile over the batch for very large N (single VMEM call is
    # fine up to a few hundred samples).
    return pl.pallas_call(
        functools.partial(_head_kernel, n=n),
        out_shape=jax.ShapeDtypeStruct((n, 1), jnp.float32),
        in_specs=[pl.BlockSpec(memory_space=pltpu.MemorySpace.VMEM)] * 2,
        out_specs=pl.BlockSpec(memory_space=pltpu.MemorySpace.VMEM),
    )(y4, w5r)


# ---------------------------------------------------------------------------
# XLA glue: NHWC im2col with (kh, kw, c_in) feature ordering, bf16 patches.
# ---------------------------------------------------------------------------
def im2col_nhwc(x, k, stride, pad, c_keep=None):
    n, h, w, c = x.shape
    if c_keep is not None and c_keep != c:
        x = x[..., :c_keep]            # fuses with the pad/stack below (drops lane padding)
        c = c_keep
    x = x.astype(jnp.bfloat16)
    xp = jnp.pad(x, ((0, 0), (pad, pad), (pad, pad), (0, 0)))
    ho = (h + 2 * pad - k) // stride + 1
    wo = (w + 2 * pad - k) // stride + 1
    cols = []
    for i in range(k):
        for j in range(k):
            cols.append(xp[:, i:i + stride * ho:stride, j:j + stride * wo:stride, :])
    patches = jnp.stack(cols, axis=3)                   # [N, Ho, Wo, k*k, C]
    patches = patches.reshape(n * ho * wo, k * k * c)   # (kh, kw, c_in) ordering
    return patches, ho, wo


# ---------------------------------------------------------------------------
# Parameters (DCGAN-style synthetic init; weights stored bf16 for the MXU).
# ---------------------------------------------------------------------------
def make_params(key):
    cfgs = [(NC, NDF), (NDF, NDF * 2), (NDF * 2, NDF * 4), (NDF * 4, NDF * 8), (NDF * 8, 1)]
    params = []
    for idx, (cin, cout) in enumerate(cfgs):
        key, wk = jax.random.split(key)
        # PyTorch layout (C_out, C_in, 4, 4) -> [kh*kw*C_in, C_out] to match NHWC im2col.
        w = 0.02 * jax.random.normal(wk, (cout, cin, 4, 4), dtype=jnp.float32)
        w2d = w.transpose(2, 3, 1, 0).reshape(16 * cin, cout)
        d = dict(cin=cin, cout=cout)
        if idx == 0:
            w2d = jnp.pad(w2d, ((0, 0), (0, 128 - cout)))   # lane-dense layer-1 output
        if idx == 4:
            d["w5r"] = w2d.reshape(16, cin).astype(jnp.bfloat16)   # [kh*kw, C_in]
        else:
            d["w"] = w2d.astype(jnp.bfloat16)
        if idx in (1, 2, 3):
            d["gamma"] = jnp.ones((1, cout), jnp.float32)
            d["beta"] = jnp.zeros((1, cout), jnp.float32)
        params.append(d)
    return params


# ---------------------------------------------------------------------------
# Full forward: NCHW input -> (N, 1, 1, 1) sigmoid scores.
# ---------------------------------------------------------------------------
def discriminator_forward(x_nchw, params):
    n = x_nchw.shape[0]
    h = jnp.transpose(x_nchw, (0, 2, 3, 1))          # NCHW -> NHWC once, up front

    # Layer 1: Conv(1->64, 4, s2, p1) + LeakyReLU (no BN); C_out lane-padded to 128.
    p, ho, wo = im2col_nhwc(h, 4, 2, 1)
    y = conv_lrelu_tiled(p, params[0]["w"])          # [n*1024, 128] bf16
    h = y.reshape(n, ho, wo, y.shape[1])             # keep 128-wide; pad channels are zero

    # Layers 2-3: Conv + BatchNorm (training-mode batch stats) + LeakyReLU.
    for li in (1, 2):
        p, ho, wo = im2col_nhwc(h, 4, 2, 1, c_keep=params[li]["cin"])
        y = conv_bn_lrelu(p, params[li]["w"], params[li]["gamma"], params[li]["beta"])
        h = y.reshape(n, ho, wo, params[li]["cout"])

    # Layers 4 + 5: Conv+BN+LeakyReLU then Conv(4, s1, p0)+Sigmoid.
    p, ho, wo = im2col_nhwc(h, 4, 2, 1, c_keep=params[3]["cin"])   # [n*16, 4096] bf16
    if p.shape[0] * p.shape[1] * 2 <= _HEAD_FUSE_PATCH_BYTES:
        out = conv_bn_head_fused(p, params[3]["w"], params[3]["gamma"],
                                 params[3]["beta"], params[4]["w5r"], n)      # [n, 1]
    else:
        y4 = conv_bn_lrelu(p, params[3]["w"], params[3]["gamma"], params[3]["beta"])
        # conv5 is a full-map 4x4/s1/p0 conv: its single im2col patch is the flat
        # (kh,kw,c) feature map, i.e. y4 itself (no extra im2col / patch blow-up).
        out = head_sigmoid(y4, params[4]["w5r"], n)                           # [n, 1]
    return out.reshape(n, 1, 1, 1)


if __name__ == "__main__":
    key = jax.random.PRNGKey(0)
    pkey, xkey = jax.random.split(key)
    params = make_params(pkey)
    # 64x64 input is required so the final 4x4/stride-1/no-pad conv yields 1x1.
    x = jax.random.normal(xkey, (2, NC, 64, 64), dtype=jnp.float32)

    fwd = jax.jit(lambda inp: discriminator_forward(inp, params))
    out = jax.block_until_ready(fwd(x))

    assert out.shape == (2, 1, 1, 1), out.shape
    assert bool(jnp.all((out >= 0.0) & (out <= 1.0)))  # sigmoid range
    print("KERNEL_OK")
</pallas_src>

<mosaic_0001>
module attributes {stable_mosaic.version = 11 : i64} {
  func.func @_conv_lrelu_kernel(%arg0: i32, %arg1: memref<1024x16xbf16, #tpu.memory_space<vmem>>, %arg2: memref<16x128xbf16, #tpu.memory_space<vmem>>, %arg3: memref<1024x128xbf16, #tpu.memory_space<vmem>>) attributes {dimension_semantics = [#tpu.dimension_semantics<parallel>], iteration_bounds = array<i64: 2>, scalar_prefetch = 0 : i64, scratch_operands = 0 : i64, tpu.core_type = #tpu.core_type<tc>, window_params = [{transform_indices = @transform_0, window_bounds = array<i64: 1024, 16>}, {pipeline_mode = #tpu.pipeline_mode<synchronous>, transform_indices = @transform_1, window_bounds = array<i64: 16, 128>}, {transform_indices = @transform_2, window_bounds = array<i64: 1024, 128>}]} {
    %c0 = arith.constant 0 : index
    %c0_0 = arith.constant 0 : index
    %0 = vector.load %arg1[%c0, %c0_0] : memref<1024x16xbf16, #tpu.memory_space<vmem>>, vector<1024x16xbf16>
    %c0_1 = arith.constant 0 : index
    %c0_2 = arith.constant 0 : index
    %1 = vector.load %arg2[%c0_1, %c0_2] : memref<16x128xbf16, #tpu.memory_space<vmem>>, vector<16x128xbf16>
    %cst = arith.constant dense<0.000000e+00> : vector<1024x128xf32>
    %2 = tpu.matmul %0, %1, %cst {dimension_numbers = #tpu.dot_dimension_numbers<[1], [0], [0], [1], [0, 0, 1, 1], [], []>} : vector<1024x16xbf16>, vector<16x128xbf16>, vector<1024x128xf32> -> vector<1024x128xf32>
    %cst_3 = arith.constant 0.000000e+00 : f32
    %3 = vector.broadcast %cst_3 : f32 to vector<1024x128xf32>
    %4 = arith.cmpf ogt, %2, %3 : vector<1024x128xf32>
    %cst_4 = arith.constant 2.000000e-01 : f32
    %5 = vector.broadcast %cst_4 : f32 to vector<1024x128xf32>
    %6 = arith.mulf %5, %2 : vector<1024x128xf32>
    %7 = arith.select %4, %2, %6 : vector<1024x128xi1>, vector<1024x128xf32>
    %8 = arith.truncf %7 : vector<1024x128xf32> to vector<1024x128xbf16>
    %c0_5 = arith.constant 0 : index
    %c0_6 = arith.constant 0 : index
    %9 = vector.load %arg3[%c0_5, %c0_6] : memref<1024x128xbf16, #tpu.memory_space<vmem>>, vector<1024x128xbf16>
    tpu.vector_store %arg3[%c0_5, %c0_6], %8 {strides = array<i32>} : memref<1024x128xbf16, #tpu.memory_space<vmem>>, vector<1024x128xbf16>,
    return
  }
  func.func @transform_0(%arg0: i32) -> (i32, i32) {
    %c0_i32 = arith.constant 0 : i32
    %c0_i32_0 = arith.constant 0 : i32
    return %arg0, %c0_i32 : i32, i32
  }
  func.func @transform_1(%arg0: i32) -> (i32, i32) {
    %c0_i32 = arith.constant 0 : i32
    %c0_i32_0 = arith.constant 0 : i32
    %c0_i32_1 = arith.constant 0 : i32
    return %c0_i32, %c0_i32_0 : i32, i32
  }
  func.func @transform_2(%arg0: i32) -> (i32, i32) {
    %c0_i32 = arith.constant 0 : i32
    %c0_i32_0 = arith.constant 0 : i32
    return %arg0, %c0_i32 : i32, i32
  }
}

module attributes {stable_mosaic.version = 11 : i64} {
  func.func @_conv_stats_kernel(%arg0: i32, %arg1: memref<256x1024xbf16, #tpu.memory_space<vmem>>, %arg2: memref<1024x128xbf16, #tpu.memory_space<vmem>>, %arg3: memref<256x128xbf16, #tpu.memory_space<vmem>>, %arg4: memref<1x1x128xf32, #tpu.memory_space<vmem>>, %arg5: memref<1x1x128xf32, #tpu.memory_space<vmem>>) attributes {dimension_semantics = [#tpu.dimension_semantics<parallel>], iteration_bounds = array<i64: 2>, scalar_prefetch = 0 : i64, scratch_operands = 0 : i64, tpu.core_type = #tpu.core_type<tc>, window_params = [{transform_indices = @transform_0, window_bounds = array<i64: 256, 1024>}, {pipeline_mode = #tpu.pipeline_mode<synchronous>, transform_indices = @transform_1, window_bounds = array<i64: 1024, 128>}, {transform_indices = @transform_2, window_bounds = array<i64: 256, 128>}, {transform_indices = @transform_3, window_bounds = array<i64: 1, 1, 128>}, {transform_indices = @transform_4, window_bounds = array<i64: 1, 1, 128>}]} {
    %c0 = arith.constant 0 : index
    %c0_0 = arith.constant 0 : index
    %0 = vector.load %arg1[%c0, %c0_0] : memref<256x1024xbf16, #tpu.memory_space<vmem>>, vector<256x1024xbf16>
    %c0_1 = arith.constant 0 : index
    %c0_2 = arith.constant 0 : index
    %1 = vector.load %arg2[%c0_1, %c0_2] : memref<1024x128xbf16, #tpu.memory_space<vmem>>, vector<1024x128xbf16>
    %cst = arith.constant dense<0.000000e+00> : vector<256x128xf32>
    %2 = tpu.matmul %0, %1, %cst {dimension_numbers = #tpu.dot_dimension_numbers<[1], [0], [0], [1], [0, 0, 1, 1], [], []>} : vector<256x1024xbf16>, vector<1024x128xbf16>, vector<256x128xf32> -> vector<256x128xf32>
    %3 = arith.truncf %2 : vector<256x128xf32> to vector<256x128xbf16>
    %c0_3 = arith.constant 0 : index
    %c0_4 = arith.constant 0 : index
    %4 = vector.load %arg3[%c0_3, %c0_4] : memref<256x128xbf16, #tpu.memory_space<vmem>>, vector<256x128xbf16>
    tpu.vector_store %arg3[%c0_3, %c0_4], %3 {strides = array<i32>} : memref<256x128xbf16, #tpu.memory_space<vmem>>, vector<256x128xbf16>,
    %cst_5 = arith.constant dense<0.000000e+00> : vector<128xf32>
    %5 = vector.multi_reduction <add>, %2, %cst_5 [0] : vector<256x128xf32> to vector<128xf32>
    %6 = vector.shape_cast %5 : vector<128xf32> to vector<1x1x128xf32>
    %c0_6 = arith.constant 0 : index
    %c0_7 = arith.constant 0 : index
    %c0_8 = arith.constant 0 : index
    %7 = vector.load %arg4[%c0_6, %c0_7, %c0_8] : memref<1x1x128xf32, #tpu.memory_space<vmem>>, vector<1x1x128xf32>
    tpu.vector_store %arg4[%c0_6, %c0_7, %c0_8], %6 {strides = array<i32>} : memref<1x1x128xf32, #tpu.memory_space<vmem>>, vector<1x1x128xf32>,
    %8 = arith.mulf %2, %2 : vector<256x128xf32>
    %cst_9 = arith.constant dense<0.000000e+00> : vector<128xf32>
    %9 = vector.multi_reduction <add>, %8, %cst_9 [0] : vector<256x128xf32> to vector<128xf32>
    %10 = vector.shape_cast %9 : vector<128xf32> to vector<1x1x128xf32>
    %c0_10 = arith.constant 0 : index
    %c0_11 = arith.constant 0 : index
    %c0_12 = arith.constant 0 : index
    %11 = vector.load %arg5[%c0_10, %c0_11, %c0_12] : memref<1x1x128xf32, #tpu.memory_space<vmem>>, vector<1x1x128xf32>
    tpu.vector_store %arg5[%c0_10, %c0_11, %c0_12], %10 {strides = array<i32>} : memref<1x1x128xf32, #tpu.memory_space<vmem>>, vector<1x1x128xf32>,
    return
  }
  func.func @transform_0(%arg0: i32) -> (i32, i32) {
    %c0_i32 = arith.constant 0 : i32
    %c0_i32_0 = arith.constant 0 : i32
    return %arg0, %c0_i32 : i32, i32
  }
  func.func @transform_1(%arg0: i32) -> (i32, i32) {
    %c0_i32 = arith.constant 0 : i32
    %c0_i32_0 = arith.constant 0 : i32
    %c0_i32_1 = arith.constant 0 : i32
    return %c0_i32, %c0_i32_0 : i32, i32
  }
  func.func @transform_2(%arg0: i32) -> (i32, i32) {
    %c0_i32 = arith.constant 0 : i32
    %c0_i32_0 = arith.constant 0 : i32
    return %arg0, %c0_i32 : i32, i32
  }
  func.func @transform_3(%arg0: i32) -> (i32, i32, i32) {
    %c0_i32 = arith.constant 0 : i32
    %c0_i32_0 = arith.constant 0 : i32
    %c0_i32_1 = arith.constant 0 : i32
    return %arg0, %c0_i32, %c0_i32_0 : i32, i32, i32
  }
  func.func @transform_4(%arg0: i32) -> (i32, i32, i32) {
    %c0_i32 = arith.constant 0 : i32
    %c0_i32_0 = arith.constant 0 : i32
    %c0_i32_1 = arith.constant 0 : i32
    return %arg0, %c0_i32, %c0_i32_0 : i32, i32, i32
  }
}

module attributes {stable_mosaic.version = 11 : i64} {
  func.func @_bn_lrelu_kernel(%arg0: i32, %arg1: memref<256x128xbf16, #tpu.memory_space<vmem>>, %arg2: memref<1x128xf32, #tpu.memory_space<vmem>>, %arg3: memref<1x128xf32, #tpu.memory_space<vmem>>, %arg4: memref<256x128xbf16, #tpu.memory_space<vmem>>) attributes {dimension_semantics = [#tpu.dimension_semantics<parallel>], iteration_bounds = array<i64: 2>, scalar_prefetch = 0 : i64, scratch_operands = 0 : i64, tpu.core_type = #tpu.core_type<tc>, window_params = [{transform_indices = @transform_0, window_bounds = array<i64: 256, 128>}, {pipeline_mode = #tpu.pipeline_mode<synchronous>, transform_indices = @transform_1, window_bounds = array<i64: 1, 128>}, {pipeline_mode = #tpu.pipeline_mode<synchronous>, transform_indices = @transform_2, window_bounds = array<i64: 1, 128>}, {transform_indices = @transform_3, window_bounds = array<i64: 256, 128>}]} {
    %c0 = arith.constant 0 : index
    %c0_0 = arith.constant 0 : index
    %0 = vector.load %arg1[%c0, %c0_0] : memref<256x128xbf16, #tpu.memory_space<vmem>>, vector<256x128xbf16>
    %1 = arith.extf %0 : vector<256x128xbf16> to vector<256x128xf32>
    %c0_1 = arith.constant 0 : index
    %c0_2 = arith.constant 0 : index
    %2 = vector.load %arg2[%c0_1, %c0_2] : memref<1x128xf32, #tpu.memory_space<vmem>>, vector<1x128xf32>
    %3 = vector.broadcast %2 : vector<1x128xf32> to vector<256x128xf32>
    %4 = arith.mulf %1, %3 : vector<256x128xf32>
    %c0_3 = arith.constant 0 : index
    %c0_4 = arith.constant 0 : index
    %5 = vector.load %arg3[%c0_3, %c0_4] : memref<1x128xf32, #tpu.memory_space<vmem>>, vector<1x128xf32>
    %6 = vector.broadcast %5 : vector<1x128xf32> to vector<256x128xf32>
    %7 = arith.addf %4, %6 : vector<256x128xf32>
    %cst = arith.constant 0.000000e+00 : f32
    %8 = vector.broadcast %cst : f32 to vector<256x128xf32>
    %9 = arith.cmpf ogt, %7, %8 : vector<256x128xf32>
    %cst_5 = arith.constant 2.000000e-01 : f32
    %10 = vector.broadcast %cst_5 : f32 to vector<256x128xf32>
    %11 = arith.mulf %10, %7 : vector<256x128xf32>
    %12 = arith.select %9, %7, %11 : vector<256x128xi1>, vector<256x128xf32>
    %13 = arith.truncf %12 : vector<256x128xf32> to vector<256x128xbf16>
    %c0_6 = arith.constant 0 : index
    %c0_7 = arith.constant 0 : index
    %14 = vector.load %arg4[%c0_6, %c0_7] : memref<256x128xbf16, #tpu.memory_space<vmem>>, vector<256x128xbf16>
    tpu.vector_store %arg4[%c0_6, %c0_7], %13 {strides = array<i32>} : memref<256x128xbf16, #tpu.memory_space<vmem>>, vector<256x128xbf16>,
    return
  }
  func.func @transform_0(%arg0: i32) -> (i32, i32) {
    %c0_i32 = arith.constant 0 : i32
    %c0_i32_0 = arith.constant 0 : i32
    return %arg0, %c0_i32 : i32, i32
  }
  func.func @transform_1(%arg0: i32) -> (i32, i32) {
    %c0_i32 = arith.constant 0 : i32
    %c0_i32_0 = arith.constant 0 : i32
    %c0_i32_1 = arith.constant 0 : i32
    return %c0_i32, %c0_i32_0 : i32, i32
  }
  func.func @transform_2(%arg0: i32) -> (i32, i32) {
    %c0_i32 = arith.constant 0 : i32
    %c0_i32_0 = arith.constant 0 : i32
    %c0_i32_1 = arith.constant 0 : i32
    return %c0_i32, %c0_i32_0 : i32, i32
  }
  func.func @transform_3(%arg0: i32) -> (i32, i32) {
    %c0_i32 = arith.constant 0 : i32
    %c0_i32_0 = arith.constant 0 : i32
    return %arg0, %c0_i32 : i32, i32
  }
}

module attributes {stable_mosaic.version = 11 : i64} {
  func.func @_conv_stats_kernel(%arg0: i32, %arg1: memref<64x2048xbf16, #tpu.memory_space<vmem>>, %arg2: memref<2048x256xbf16, #tpu.memory_space<vmem>>, %arg3: memref<64x256xbf16, #tpu.memory_space<vmem>>, %arg4: memref<1x1x256xf32, #tpu.memory_space<vmem>>, %arg5: memref<1x1x256xf32, #tpu.memory_space<vmem>>) attributes {dimension_semantics = [#tpu.dimension_semantics<parallel>], iteration_bounds = array<i64: 2>, scalar_prefetch = 0 : i64, scratch_operands = 0 : i64, tpu.core_type = #tpu.core_type<tc>, window_params = [{transform_indices = @transform_0, window_bounds = array<i64: 64, 2048>}, {pipeline_mode = #tpu.pipeline_mode<synchronous>, transform_indices = @transform_1, window_bounds = array<i64: 2048, 256>}, {transform_indices = @transform_2, window_bounds = array<i64: 64, 256>}, {transform_indices = @transform_3, window_bounds = array<i64: 1, 1, 256>}, {transform_indices = @transform_4, window_bounds = array<i64: 1, 1, 256>}]} {
    %c0 = arith.constant 0 : index
    %c0_0 = arith.constant 0 : index
    %0 = vector.load %arg1[%c0, %c0_0] : memref<64x2048xbf16, #tpu.memory_space<vmem>>, vector<64x2048xbf16>
    %c0_1 = arith.constant 0 : index
    %c0_2 = arith.constant 0 : index
    %1 = vector.load %arg2[%c0_1, %c0_2] : memref<2048x256xbf16, #tpu.memory_space<vmem>>, vector<2048x256xbf16>
    %cst = arith.constant dense<0.000000e+00> : vector<64x256xf32>
    %2 = tpu.matmul %0, %1, %cst {dimension_numbers = #tpu.dot_dimension_numbers<[1], [0], [0], [1], [0, 0, 1, 1], [], []>} : vector<64x2048xbf16>, vector<2048x256xbf16>, vector<64x256xf32> -> vector<64x256xf32>
    %3 = arith.truncf %2 : vector<64x256xf32> to vector<64x256xbf16>
    %c0_3 = arith.constant 0 : index
    %c0_4 = arith.constant 0 : index
    %4 = vector.load %arg3[%c0_3, %c0_4] : memref<64x256xbf16, #tpu.memory_space<vmem>>, vector<64x256xbf16>
    tpu.vector_store %arg3[%c0_3, %c0_4], %3 {strides = array<i32>} : memref<64x256xbf16, #tpu.memory_space<vmem>>, vector<64x256xbf16>,
    %cst_5 = arith.constant dense<0.000000e+00> : vector<256xf32>
    %5 = vector.multi_reduction <add>, %2, %cst_5 [0] : vector<64x256xf32> to vector<256xf32>
    %6 = vector.shape_cast %5 : vector<256xf32> to vector<1x1x256xf32>
    %c0_6 = arith.constant 0 : index
    %c0_7 = arith.constant 0 : index
    %c0_8 = arith.constant 0 : index
    %7 = vector.load %arg4[%c0_6, %c0_7, %c0_8] : memref<1x1x256xf32, #tpu.memory_space<vmem>>, vector<1x1x256xf32>
    tpu.vector_store %arg4[%c0_6, %c0_7, %c0_8], %6 {strides = array<i32>} : memref<1x1x256xf32, #tpu.memory_space<vmem>>, vector<1x1x256xf32>,
    %8 = arith.mulf %2, %2 : vector<64x256xf32>
    %cst_9 = arith.constant dense<0.000000e+00> : vector<256xf32>
    %9 = vector.multi_reduction <add>, %8, %cst_9 [0] : vector<64x256xf32> to vector<256xf32>
    %10 = vector.shape_cast %9 : vector<256xf32> to vector<1x1x256xf32>
    %c0_10 = arith.constant 0 : index
    %c0_11 = arith.constant 0 : index
    %c0_12 = arith.constant 0 : index
    %11 = vector.load %arg5[%c0_10, %c0_11, %c0_12] : memref<1x1x256xf32, #tpu.memory_space<vmem>>, vector<1x1x256xf32>
    tpu.vector_store %arg5[%c0_10, %c0_11, %c0_12], %10 {strides = array<i32>} : memref<1x1x256xf32, #tpu.memory_space<vmem>>, vector<1x1x256xf32>,
    return
  }
  func.func @transform_0(%arg0: i32) -> (i32, i32) {
    %c0_i32 = arith.constant 0 : i32
    %c0_i32_0 = arith.constant 0 : i32
    return %arg0, %c0_i32 : i32, i32
  }
  func.func @transform_1(%arg0: i32) -> (i32, i32) {
    %c0_i32 = arith.constant 0 : i32
    %c0_i32_0 = arith.constant 0 : i32
    %c0_i32_1 = arith.constant 0 : i32
    return %c0_i32, %c0_i32_0 : i32, i32
  }
  func.func @transform_2(%arg0: i32) -> (i32, i32) {
    %c0_i32 = arith.constant 0 : i32
    %c0_i32_0 = arith.constant 0 : i32
    return %arg0, %c0_i32 : i32, i32
  }
  func.func @transform_3(%arg0: i32) -> (i32, i32, i32) {
    %c0_i32 = arith.constant 0 : i32
    %c0_i32_0 = arith.constant 0 : i32
    %c0_i32_1 = arith.constant 0 : i32
    return %arg0, %c0_i32, %c0_i32_0 : i32, i32, i32
  }
  func.func @transform_4(%arg0: i32) -> (i32, i32, i32) {
    %c0_i32 = arith.constant 0 : i32
    %c0_i32_0 = arith.constant 0 : i32
    %c0_i32_1 = arith.constant 0 : i32
    return %arg0, %c0_i32, %c0_i32_0 : i32, i32, i32
  }
}

module attributes {stable_mosaic.version = 11 : i64} {
  func.func @_bn_lrelu_kernel(%arg0: i32, %arg1: memref<64x256xbf16, #tpu.memory_space<vmem>>, %arg2: memref<1x256xf32, #tpu.memory_space<vmem>>, %arg3: memref<1x256xf32, #tpu.memory_space<vmem>>, %arg4: memref<64x256xbf16, #tpu.memory_space<vmem>>) attributes {dimension_semantics = [#tpu.dimension_semantics<parallel>], iteration_bounds = array<i64: 2>, scalar_prefetch = 0 : i64, scratch_operands = 0 : i64, tpu.core_type = #tpu.core_type<tc>, window_params = [{transform_indices = @transform_0, window_bounds = array<i64: 64, 256>}, {pipeline_mode = #tpu.pipeline_mode<synchronous>, transform_indices = @transform_1, window_bounds = array<i64: 1, 256>}, {pipeline_mode = #tpu.pipeline_mode<synchronous>, transform_indices = @transform_2, window_bounds = array<i64: 1, 256>}, {transform_indices = @transform_3, window_bounds = array<i64: 64, 256>}]} {
    %c0 = arith.constant 0 : index
    %c0_0 = arith.constant 0 : index
    %0 = vector.load %arg1[%c0, %c0_0] : memref<64x256xbf16, #tpu.memory_space<vmem>>, vector<64x256xbf16>
    %1 = arith.extf %0 : vector<64x256xbf16> to vector<64x256xf32>
    %c0_1 = arith.constant 0 : index
    %c0_2 = arith.constant 0 : index
    %2 = vector.load %arg2[%c0_1, %c0_2] : memref<1x256xf32, #tpu.memory_space<vmem>>, vector<1x256xf32>
    %3 = vector.broadcast %2 : vector<1x256xf32> to vector<64x256xf32>
    %4 = arith.mulf %1, %3 : vector<64x256xf32>
    %c0_3 = arith.constant 0 : index
    %c0_4 = arith.constant 0 : index
    %5 = vector.load %arg3[%c0_3, %c0_4] : memref<1x256xf32, #tpu.memory_space<vmem>>, vector<1x256xf32>
    %6 = vector.broadcast %5 : vector<1x256xf32> to vector<64x256xf32>
    %7 = arith.addf %4, %6 : vector<64x256xf32>
    %cst = arith.constant 0.000000e+00 : f32
    %8 = vector.broadcast %cst : f32 to vector<64x256xf32>
    %9 = arith.cmpf ogt, %7, %8 : vector<64x256xf32>
    %cst_5 = arith.constant 2.000000e-01 : f32
    %10 = vector.broadcast %cst_5 : f32 to vector<64x256xf32>
    %11 = arith.mulf %10, %7 : vector<64x256xf32>
    %12 = arith.select %9, %7, %11 : vector<64x256xi1>, vector<64x256xf32>
    %13 = arith.truncf %12 : vector<64x256xf32> to vector<64x256xbf16>
    %c0_6 = arith.constant 0 : index
    %c0_7 = arith.constant 0 : index
    %14 = vector.load %arg4[%c0_6, %c0_7] : memref<64x256xbf16, #tpu.memory_space<vmem>>, vector<64x256xbf16>
    tpu.vector_store %arg4[%c0_6, %c0_7], %13 {strides = array<i32>} : memref<64x256xbf16, #tpu.memory_space<vmem>>, vector<64x256xbf16>,
    return
  }
  func.func @transform_0(%arg0: i32) -> (i32, i32) {
    %c0_i32 = arith.constant 0 : i32
    %c0_i32_0 = arith.constant 0 : i32
    return %arg0, %c0_i32 : i32, i32
  }
  func.func @transform_1(%arg0: i32) -> (i32, i32) {
    %c0_i32 = arith.constant 0 : i32
    %c0_i32_0 = arith.constant 0 : i32
    %c0_i32_1 = arith.constant 0 : i32
    return %c0_i32, %c0_i32_0 : i32, i32
  }
  func.func @transform_2(%arg0: i32) -> (i32, i32) {
    %c0_i32 = arith.constant 0 : i32
    %c0_i32_0 = arith.constant 0 : i32
    %c0_i32_1 = arith.constant 0 : i32
    return %c0_i32, %c0_i32_0 : i32, i32
  }
  func.func @transform_3(%arg0: i32) -> (i32, i32) {
    %c0_i32 = arith.constant 0 : i32
    %c0_i32_0 = arith.constant 0 : i32
    return %arg0, %c0_i32 : i32, i32
  }
}

module attributes {stable_mosaic.version = 11 : i64} {
  func.func @_conv_bn_head_kernel(%arg0: memref<32x4096xbf16, #tpu.memory_space<vmem>>, %arg1: memref<4096x512xbf16, #tpu.memory_space<vmem>>, %arg2: memref<1x512xf32, #tpu.memory_space<vmem>>, %arg3: memref<1x512xf32, #tpu.memory_space<vmem>>, %arg4: memref<16x512xbf16, #tpu.memory_space<vmem>>, %arg5: memref<2x1xf32, #tpu.memory_space<vmem>>) attributes {dimension_semantics = [], scalar_prefetch = 0 : i64, scratch_operands = 0 : i64, tpu.core_type = #tpu.core_type<tc>} {
    %c0 = arith.constant 0 : index
    %c0_0 = arith.constant 0 : index
    %0 = vector.load %arg0[%c0, %c0_0] : memref<32x4096xbf16, #tpu.memory_space<vmem>>, vector<32x4096xbf16>
    %c0_1 = arith.constant 0 : index
    %c0_2 = arith.constant 0 : index
    %1 = vector.load %arg1[%c0_1, %c0_2] : memref<4096x512xbf16, #tpu.memory_space<vmem>>, vector<4096x512xbf16>
    %cst = arith.constant dense<0.000000e+00> : vector<32x512xf32>
    %2 = tpu.matmul %0, %1, %cst {dimension_numbers = #tpu.dot_dimension_numbers<[1], [0], [0], [1], [0, 0, 1, 1], [], []>} : vector<32x4096xbf16>, vector<4096x512xbf16>, vector<32x512xf32> -> vector<32x512xf32>
    %cst_3 = arith.constant dense<0.000000e+00> : vector<512xf32>
    %3 = vector.multi_reduction <add>, %2, %cst_3 [0] : vector<32x512xf32> to vector<512xf32>
    %4 = vector.shape_cast %3 : vector<512xf32> to vector<1x512xf32>
    %cst_4 = arith.constant 3.200000e+01 : f32
    %5 = vector.broadcast %cst_4 : f32 to vector<1x512xf32>
    %6 = arith.divf %4, %5 : vector<1x512xf32>
    %7 = vector.broadcast %6 : vector<1x512xf32> to vector<32x512xf32>
    %8 = arith.subf %2, %7 : vector<32x512xf32>
    %9 = arith.mulf %8, %8 : vector<32x512xf32>
    %cst_5 = arith.constant dense<0.000000e+00> : vector<512xf32>
    %10 = vector.multi_reduction <add>, %9, %cst_5 [0] : vector<32x512xf32> to vector<512xf32>
    %11 = vector.shape_cast %10 : vector<512xf32> to vector<1x512xf32>
    %cst_6 = arith.constant 3.200000e+01 : f32
    %12 = vector.broadcast %cst_6 : f32 to vector<1x512xf32>
    %13 = arith.divf %11, %12 : vector<1x512xf32>
    %14 = vector.broadcast %6 : vector<1x512xf32> to vector<32x512xf32>
    %15 = arith.subf %2, %14 : vector<32x512xf32>
    %cst_7 = arith.constant 9.99999974E-6 : f32
    %16 = vector.broadcast %cst_7 : f32 to vector<1x512xf32>
    %17 = arith.addf %13, %16 : vector<1x512xf32>
    %18 = math.rsqrt %17 : vector<1x512xf32>
    %19 = vector.broadcast %18 : vector<1x512xf32> to vector<32x512xf32>
    %20 = arith.mulf %15, %19 : vector<32x512xf32>
    %c0_8 = arith.constant 0 : index
    %c0_9 = arith.constant 0 : index
    %21 = vector.load %arg2[%c0_8, %c0_9] : memref<1x512xf32, #tpu.memory_space<vmem>>, vector<1x512xf32>
    %22 = vector.broadcast %21 : vector<1x512xf32> to vector<32x512xf32>
    %23 = arith.mulf %20, %22 : vector<32x512xf32>
    %c0_10 = arith.constant 0 : index
    %c0_11 = arith.constant 0 : index
    %24 = vector.load %arg3[%c0_10, %c0_11] : memref<1x512xf32, #tpu.memory_space<vmem>>, vector<1x512xf32>
    %25 = vector.broadcast %24 : vector<1x512xf32> to vector<32x512xf32>
    %26 = arith.addf %23, %25 : vector<32x512xf32>
    %cst_12 = arith.constant 0.000000e+00 : f32
    %27 = vector.broadcast %cst_12 : f32 to vector<32x512xf32>
    %28 = arith.cmpf ogt, %26, %27 : vector<32x512xf32>
    %cst_13 = arith.constant 2.000000e-01 : f32
    %29 = vector.broadcast %cst_13 : f32 to vector<32x512xf32>
    %30 = arith.mulf %29, %26 : vector<32x512xf32>
    %31 = arith.select %28, %26, %30 : vector<32x512xi1>, vector<32x512xf32>
    %c0_14 = arith.constant 0 : index
    %c0_15 = arith.constant 0 : index
    %32 = vector.load %arg4[%c0_14, %c0_15] : memref<16x512xbf16, #tpu.memory_space<vmem>>, vector<16x512xbf16>
    %33 = arith.extf %32 : vector<16x512xbf16> to vector<16x512xf32>
    %34 = vector.shape_cast %31 : vector<32x512xf32> to vector<2x16x512xf32>
    %35 = vector.shape_cast %33 : vector<16x512xf32> to vector<1x16x512xf32>
    %36 = vector.broadcast %35 : vector<1x16x512xf32> to vector<2x16x512xf32>
    %37 = arith.mulf %34, %36 : vector<2x16x512xf32>
    %cst_16 = arith.constant dense<0.000000e+00> : vector<2x16xf32>
    %38 = vector.multi_reduction <add>, %37, %cst_16 [2] : vector<2x16x512xf32> to vector<2x16xf32>
    %cst_17 = arith.constant dense<0.000000e+00> : vector<2xf32>
    %39 = vector.multi_reduction <add>, %38, %cst_17 [1] : vector<2x16xf32> to vector<2xf32>
    %40 = vector.shape_cast %39 : vector<2xf32> to vector<2x1xf32>
    %cst_18 = arith.constant 0.000000e+00 : f32
    %41 = vector.broadcast %cst_18 : f32 to vector<2x1xf32>
    %42 = arith.cmpf oge, %40, %41 : vector<2x1xf32>
    %cst_19 = arith.constant 0.000000e+00 : f32
    %43 = vector.broadcast %cst_19 : f32 to vector<2x1xf32>
    %44 = arith.subf %43, %40 : vector<2x1xf32>
    %45 = math.exp %44 : vector<2x1xf32>
    %cst_20 = arith.constant 1.000000e+00 : f32
    %46 = vector.broadcast %cst_20 : f32 to vector<2x1xf32>
    %47 = arith.addf %46, %45 : vector<2x1xf32>
    %cst_21 = arith.constant 1.000000e+00 : f32
    %48 = vector.broadcast %cst_21 : f32 to vector<2x1xf32>
    %49 = arith.divf %48, %47 : vector<2x1xf32>
    %50 = math.exp %40 : vector<2x1xf32>
    %51 = math.exp %40 : vector<2x1xf32>
    %cst_22 = arith.constant 1.000000e+00 : f32
    %52 = vector.broadcast %cst_22 : f32 to vector<2x1xf32>
    %53 = arith.addf %52, %51 : vector<2x1xf32>
    %54 = arith.divf %50, %53 : vector<2x1xf32>
    %55 = arith.select %42, %49, %54 : vector<2x1xi1>, vector<2x1xf32>
    %c0_23 = arith.constant 0 : index
    %c0_24 = arith.constant 0 : index
    %56 = vector.load %arg5[%c0_23, %c0_24] : memref<2x1xf32, #tpu.memory_space<vmem>>, vector<2x1xf32>
    tpu.vector_store %arg5[%c0_23, %c0_24], %55 {strides = array<i32>} : memref<2x1xf32, #tpu.memory_space<vmem>>, vector<2x1xf32>,
    return
  }
}

</mosaic_0001>

<bundles_post_ra>
// kernel: _lambda_.6
= control target key start
LH: loop header
LB: loop body
LE: loop exit
PB: predicated region body
PF: predicated region fallthrough
CT: control target
= control target key end

     0   :  { %7 = vsyncpa [#allocation3], 0  ;;  %s3571_s9 = smov 0   ;;  %s3848_s0 = inlined_call_operand.vmem [shape: bf16[2048,16], index: 0, kind: input, shape index: {}]   ;;  %s3849_s1 = inlined_call_operand.hbm [shape: bf16[16,128], index: 1, kind: input, shape index: {}]   ;;  %s3850_s2 = inlined_call_operand.vmem [shape: bf16[2048,128], index: 2, kind: output, shape index: {}]  }
   0x1 LB: > { %s2449_s10 = sadd.s32 4294967295, %s3551_s9   ;;  %p2451_p0 = scmp.ge.s32.totalorder %s3551_s9, 1  ;;  %s3551_s9 = sphi %s3571_s9, %s13_s9  }
   0x2   : > { %p91_p1 = scmp.lt.s32.totalorder %s3551_s9, 3  ;;  %s3553_s11 = smov [#allocation2]  }
   0x3   : > { %s103_s12 = sshll.u32 %s3553_s11, 4  ;;  %p3585_p3 = scmp.eq.s32.totalorder %s2449_s10, 0  ;;  %s104_s12 = int_to_ptr.vmem [resolvable:$true] %s103_s12 }
   0x4   : > { %p3579_p2 = pnand %p2451_p0, %p91_p1  ;;  %s3513_s18 = scalar_lea.hbm %s3849_s1, 128 }
   0x5   : > { %s3855_s14 = scalar_select %p3585_p3, 1, 0 }
   0x6   : > { %s3854_s13 = scalar_select %p3579_p2, 1, 0 }
   0x7   : > { %p3431_p4 = pneg %p3579_p2  ;;  %p3514_p6 = scmp.ne.s32.totalorder %s3849_s1, %s3513_s18 }
   0x8   : > { %p3520_p10 = scmp.lt.u32.totalorder %s3513_s18, %s3849_s1 }
   0x9   : > { %p3593_p5 = pnand %p3585_p3, %p3431_p4 }
   0xb   : > { %p3515_p7 = pneg %p3593_p5 }
   0xd   : > { %p3516_p8 = pnand %p3515_p7, %p3514_p6 }
   0xf   : > { %p3517_p9 = pneg %p3516_p8 }
  0x11   : > { %p3522_p11 = pnand %p3520_p10, %p3517_p9 }
  0x13   : > { %3525 = shalt.err (!%p3522_p11)
}
  0x14   : > { %s3526_s23 = scalar_lea.vmem %s104_s12, 128  ;;  %p3534_p1 = scmp.lt.s32.totalorder %s104_s12, %s104_s12 }
  0x15   : > { %p3527_p12 = scmp.ne.s32.totalorder %s104_s12, %s3526_s23  ;;  %p3535_p4 = scmp.lt.s32.totalorder %s3526_s23, %s3526_s23 }
  0x17   : > { %p3529_p13 = pnand %p3527_p12, %p3515_p7  ;;  %p3536_p3 = por %p3535_p4, %p3534_p1 }
  0x19   : > { %p3530_p0 = pneg %p3529_p13 }
  0x1b   : > { %p3537_p2 = pnand %p3536_p3, %p3530_p0 }
  0x1d   : > { %3540 = shalt.err (!%p3537_p2)
}
  0x1e   : > { %s3554_s24 = smov 64   ;;  %s3555_s25 = smov 4  }
  0x1f   : > { %3434 = dma.hbm_to_vmem [thread:$0]  (!%p3593_p5), %s3849_s1, 128, %s104_s12, [#allocation3], %s3554_s24, %s3554_s24, %s3555_s25  }
  0x20   : > { %p3857_p6 = scmp.ne.s32.totalorder %s3854_s13, 0 }
  0x21   : > { %p3858_p8 = scmp.ne.s32.totalorder (!%p3857_p6), %s3855_s14, 0 }
  0x22   : > { %128 = sbr.rel (%p3857_p6) target bundleno = 393 (0x189), region = 28 }
  0x29   : > { %3546 = dma.done.wait (%p3858_p8), [#allocation3], 128  }
  0x2a   : > { %3548 = vsyncadd (%p3858_p8), [#allocation3], 4294967168  ;;  %s2456_s28 = sshll.u32 %s2449_s10, 7  ;;  %v3448_v0 = vld [vmem:[#allocation2] sm:$0xff]   ;;  %vm619_vm0 = vcmask 130048  }
  0x2b   : > { %p151_p2 = scmp.lt.s32.totalorder %s2456_s28, 255  ;;  %3295 = vmatprep.subr.bf16.mxu0 %v3448_v0  ;;  %3425 = vmatprep.subr.bf16.mxu1 %v3448_v0 }
  0x2c   : > { %3296 = vmatpush3.bf16.msra.mxu0 %v3448_v0  ;;  %3426 = vmatpush3.bf16.msra.mxu1 %v3448_v0 }
  0x2d   : > { %s3860_s28 = smov (!%p151_p2, %s2456_s28), 255 }
  0x2e   : > { %s2457_s29 = sshll.u32 %s3860_s28, 2 }
  0x2f   : > { %s3629_s4 = scalar_lea.vmem %s3848_s0, %s2457_s29  ;;  %s3764_s7 = scalar_lea.vmem %s3850_s2, %s2457_s29 }
  0x30   : > { %v3449_v1 = vld [vmem:[%s3629_s4] sm:$0xff]   ;;  %v3451_v3 = vld [vmem:[%s3629_s4 + $0x8] sm:$0xff]   ;;  %v3453_v5 = vld [vmem:[%s3629_s4 + $0x10] sm:$0xff]  }
  0x31   : > { %v3450_v2 = vld [vmem:[%s3629_s4 + $0x100] sm:$0xff]   ;;  %3297 = vmatprep.mubr.msk.bf16.mxu0 %vm619_vm0, %v3449_v1  ;;  %v3452_v4 = vld [vmem:[%s3629_s4 + $0x108] sm:$0xff]   ;;  %v3454_v6 = vld [vmem:[%s3629_s4 + $0x110] sm:$0xff]  }
  0x32   : > { %3361 = vmatprep.mubr.msk.bf16.mxu1 %vm619_vm0, %v3450_v2  ;;  %3298 = vmatmul.mubr.msk.bf16.vlgmr.msra.gmra.mrb[0].mxu0 %vm619_vm0, %v3451_v3  ;;  %v3455_v7 = vld [vmem:[%s3629_s4 + $0x18] sm:$0xff]   ;;  %v3457_v9 = vld [vmem:[%s3629_s4 + $0x20] sm:$0xff]   ;;  %v3459_v11 = vld [vmem:[%s3629_s4 + $0x28] sm:$0xff]  }
  0x33   : > { %3362 = vmatmul.mubr.msk.bf16.vlgmr.msra.gmra.mrb[0].mxu1 %vm619_vm0, %v3452_v4  ;;  %3301 = vmatprep.mubr.msk.bf16.mxu0 %vm619_vm0, %v3453_v5  ;;  %v3456_v8 = vld [vmem:[%s3629_s4 + $0x118] sm:$0xff]   ;;  %v3458_v10 = vld [vmem:[%s3629_s4 + $0x120] sm:$0xff]   ;;  %v3460_v12 = vld [vmem:[%s3629_s4 + $0x128] sm:$0xff]  }
  0x34   : > { %3365 = vmatprep.mubr.msk.bf16.mxu1 %vm619_vm0, %v3454_v6  ;;  %v3461_v13 = vld [vmem:[%s3629_s4 + $0x30] sm:$0xff]   ;;  %v3463_v15 = vld [vmem:[%s3629_s4 + $0x38] sm:$0xff]   ;;  %v3465_v17 = vld [vmem:[%s3629_s4 + $0x40] sm:$0xff]  }
  0x35   : > { %v3462_v14 = vld [vmem:[%s3629_s4 + $0x130] sm:$0xff]   ;;  %v3464_v16 = vld [vmem:[%s3629_s4 + $0x138] sm:$0xff]   ;;  %v3466_v18 = vld [vmem:[%s3629_s4 + $0x140] sm:$0xff]  }
  0x36   : > { %v3467_v19 = vld [vmem:[%s3629_s4 + $0x48] sm:$0xff]   ;;  %v3469_v21 = vld [vmem:[%s3629_s4 + $0x50] sm:$0xff]   ;;  %v3471_v23 = vld [vmem:[%s3629_s4 + $0x58] sm:$0xff]  }
  0x37   : > { %v3468_v20 = vld [vmem:[%s3629_s4 + $0x148] sm:$0xff]   ;;  %v3470_v22 = vld [vmem:[%s3629_s4 + $0x150] sm:$0xff]   ;;  %v3472_v24 = vld [vmem:[%s3629_s4 + $0x158] sm:$0xff]  }
  0x38   : > { %v3473_v25 = vld [vmem:[%s3629_s4 + $0x60] sm:$0xff]   ;;  %v3475_v27 = vld [vmem:[%s3629_s4 + $0x68] sm:$0xff]   ;;  %v3477_v29 = vld [vmem:[%s3629_s4 + $0x70] sm:$0xff]  }
  0x39   : > { %v3474_v26 = vld [vmem:[%s3629_s4 + $0x160] sm:$0xff]   ;;  %v3476_v28 = vld [vmem:[%s3629_s4 + $0x168] sm:$0xff]   ;;  %v3478_v30 = vld [vmem:[%s3629_s4 + $0x170] sm:$0xff]  }
  0x3a   : > { %3302 = vmatmul.mubr.msk.bf16.gmra.mrb[4].mxu0 %vm619_vm0, %v3455_v7  ;;  %v3479_v31 = vld [vmem:[%s3629_s4 + $0x78] sm:$0xff]   ;;  %v3481_v33 = vld [vmem:[%s3629_s4 + $0x80] sm:$0xff]   ;;  %v3483_v35 = vld [vmem:[%s3629_s4 + $0x88] sm:$0xff]  }
  0x3b   : > { %3366 = vmatmul.mubr.msk.bf16.gmra.mrb[4].mxu1 %vm619_vm0, %v3456_v8  ;;  %3305 = vmatprep.mubr.msk.bf16.mxu0 %vm619_vm0, %v3457_v9  ;;  %v3480_v32 = vld [vmem:[%s3629_s4 + $0x178] sm:$0xff]   ;;  %v3482_v34 = vld [vmem:[%s3629_s4 + $0x180] sm:$0xff]   ;;  %v3484_v36 = vld [vmem:[%s3629_s4 + $0x188] sm:$0xff]  }
  0x3c   : > { %3369 = vmatprep.mubr.msk.bf16.mxu1 %vm619_vm0, %v3458_v10  ;;  %v3485_v37 = vld [vmem:[%s3629_s4 + $0x90] sm:$0xff]   ;;  %v3487_v39 = vld [vmem:[%s3629_s4 + $0x98] sm:$0xff]   ;;  %v3489_v41 = vld [vmem:[%s3629_s4 + $0xa0] sm:$0xff]  }
  0x3d   : > { %v3486_v38 = vld [vmem:[%s3629_s4 + $0x190] sm:$0xff]   ;;  %v3488_v40 = vld [vmem:[%s3629_s4 + $0x198] sm:$0xff]   ;;  %v3490_v42 = vld [vmem:[%s3629_s4 + $0x1a0] sm:$0xff]  }
  0x3e   : > { %v3491_v43 = vld [vmem:[%s3629_s4 + $0xa8] sm:$0xff]   ;;  %v3493_v45 = vld [vmem:[%s3629_s4 + $0xb0] sm:$0xff]   ;;  %v3495_v47 = vld [vmem:[%s3629_s4 + $0xb8] sm:$0xff]  }
  0x3f   : > { %v3492_v44 = vld [vmem:[%s3629_s4 + $0x1a8] sm:$0xff]   ;;  %v3494_v46 = vld [vmem:[%s3629_s4 + $0x1b0] sm:$0xff]   ;;  %v3496_v48 = vld [vmem:[%s3629_s4 + $0x1b8] sm:$0xff]  }
  0x40   : > { %v3497_v49 = vld [vmem:[%s3629_s4 + $0xc0] sm:$0xff]   ;;  %v3499_v51 = vld [vmem:[%s3629_s4 + $0xc8] sm:$0xff]   ;;  %v3501_v53 = vld [vmem:[%s3629_s4 + $0xd0] sm:$0xff]  }
  0x41   : > { %v3498_v50 = vld [vmem:[%s3629_s4 + $0x1c0] sm:$0xff]   ;;  %v3500_v52 = vld [vmem:[%s3629_s4 + $0x1c8] sm:$0xff]   ;;  %v3502_v54 = vld [vmem:[%s3629_s4 + $0x1d0] sm:$0xff]  }
  0x42   : > { %3306 = vmatmul.mubr.msk.bf16.gmra.mrb[8].mxu0 %vm619_vm0, %v3459_v11  ;;  %v3503_v55 = vld [vmem:[%s3629_s4 + $0xd8] sm:$0xff]   ;;  %v3505_v57 = vld [vmem:[%s3629_s4 + $0xe0] sm:$0xff]   ;;  %v3507_v59 = vld [vmem:[%s3629_s4 + $0xe8] sm:$0xff]  }
  0x43   : > { %3370 = vmatmul.mubr.msk.bf16.gmra.mrb[8].mxu1 %vm619_vm0, %v3460_v12  ;;  %3309 = vmatprep.mubr.msk.bf16.mxu0 %vm619_vm0, %v3461_v13  ;;  %v3504_v56 = vld [vmem:[%s3629_s4 + $0x1d8] sm:$0xff]   ;;  %v3506_v58 = vld [vmem:[%s3629_s4 + $0x1e0] sm:$0xff]   ;;  %v3508_v60 = vld [vmem:[%s3629_s4 + $0x1e8] sm:$0xff]  }
  0x44   : > { %3373 = vmatprep.mubr.msk.bf16.mxu1 %vm619_vm0, %v3462_v14  ;;  %v3509_v61 = vld [vmem:[%s3629_s4 + $0xf0] sm:$0xff]   ;;  %v3511_v63 = vld [vmem:[%s3629_s4 + $0xf8] sm:$0xff]  }
  0x45   : > { %v3510_v62 = vld [vmem:[%s3629_s4 + $0x1f0] sm:$0xff]   ;;  %v3512_v0 = vld [vmem:[%s3629_s4 + $0x1f8] sm:$0xff]  }
  0x4a   : > { %3310 = vmatmul.mubr.msk.bf16.gmra.mrb[12].mxu0 %vm619_vm0, %v3463_v15 }
  0x4b   : > { %3374 = vmatmul.mubr.msk.bf16.gmra.mrb[12].mxu1 %vm619_vm0, %v3464_v16  ;;  %3313 = vmatprep.mubr.msk.bf16.mxu0 %vm619_vm0, %v3465_v17 }
  0x4c   : > { %3377 = vmatprep.mubr.msk.bf16.mxu1 %vm619_vm0, %v3466_v18 }
  0x52   : > { %3314 = vmatmul.mubr.msk.bf16.gmra.mrb[16].mxu0 %vm619_vm0, %v3467_v19 }
  0x53   : > { %3378 = vmatmul.mubr.msk.bf16.gmra.mrb[16].mxu1 %vm619_vm0, %v3468_v20  ;;  %3317 = vmatprep.mubr.msk.bf16.mxu0 %vm619_vm0, %v3469_v21 }
  0x54   : > { %3381 = vmatprep.mubr.msk.bf16.mxu1 %vm619_vm0, %v3470_v22 }
  0x5a   : > { %3318 = vmatmul.mubr.msk.bf16.gmra.mrb[20].mxu0 %vm619_vm0, %v3471_v23 }
  0x5b   : > { %3382 = vmatmul.mubr.msk.bf16.gmra.mrb[20].mxu1 %vm619_vm0, %v3472_v24  ;;  %3321 = vmatprep.mubr.msk.bf16.mxu0 %vm619_vm0, %v3473_v25 }
  0x5c   : > { %3385 = vmatprep.mubr.msk.bf16.mxu1 %vm619_vm0, %v3474_v26 }
  0x62   : > { %3322 = vmatmul.mubr.msk.bf16.gmra.mrb[24].mxu0 %vm619_vm0, %v3475_v27 }
  0x63   : > { %3386 = vmatmul.mubr.msk.bf16.gmra.mrb[24].mxu1 %vm619_vm0, %v3476_v28  ;;  %3325 = vmatprep.mubr.msk.bf16.mxu0 %vm619_vm0, %v3477_v29 }
  0x64   : > { %3389 = vmatprep.mubr.msk.bf16.mxu1 %vm619_vm0, %v3478_v30 }
  0x6a   : > { %3326 = vmatmul.mubr.msk.bf16.gmra.mrb[28].mxu0 %vm619_vm0, %v3479_v31 }
  0x6b   : > { %3390 = vmatmul.mubr.msk.bf16.gmra.mrb[28].mxu1 %vm619_vm0, %v3480_v32  ;;  %3329 = vmatprep.mubr.msk.bf16.mxu0 %vm619_vm0, %v3481_v33 }
  0x6c   : > { %3393 = vmatprep.mubr.msk.bf16.mxu1 %vm619_vm0, %v3482_v34 }
  0x72   : > { %3330 = vmatmul.mubr.msk.bf16.gmra.mrb[32].mxu0 %vm619_vm0, %v3483_v35 }
  0x73   : > { %3394 = vmatmul.mubr.msk.bf16.gmra.mrb[32].mxu1 %vm619_vm0, %v3484_v36  ;;  %3333 = vmatprep.mubr.msk.bf16.mxu0 %vm619_vm0, %v3485_v37 }
  0x74   : > { %3397 = vmatprep.mubr.msk.bf16.mxu1 %vm619_vm0, %v3486_v38 }
  0x7a   : > { %3334 = vmatmul.mubr.msk.bf16.gmra.mrb[36].mxu0 %vm619_vm0, %v3487_v39 }
  0x7b   : > { %3398 = vmatmul.mubr.msk.bf16.gmra.mrb[36].mxu1 %vm619_vm0, %v3488_v40  ;;  %3337 = vmatprep.mubr.msk.bf16.mxu0 %vm619_vm0, %v3489_v41 }
  0x7c   : > { %3401 = vmatprep.mubr.msk.bf16.mxu1 %vm619_vm0, %v3490_v42 }
  0x82   : > { %3338 = vmatmul.mubr.msk.bf16.gmra.mrb[40].mxu0 %vm619_vm0, %v3491_v43 }
  0x83   : > { %3402 = vmatmul.mubr.msk.bf16.gmra.mrb[40].mxu1 %vm619_vm0, %v3492_v44  ;;  %3341 = vmatprep.mubr.msk.bf16.mxu0 %vm619_vm0, %v3493_v45 }
  0x84   : > { %3405 = vmatprep.mubr.msk.bf16.mxu1 %vm619_vm0, %v3494_v46 }
  0x8a   : > { %3342 = vmatmul.mubr.msk.bf16.gmra.mrb[44].mxu0 %vm619_vm0, %v3495_v47 }
  0x8b   : > { %3406 = vmatmul.mubr.msk.bf16.gmra.mrb[44].mxu1 %vm619_vm0, %v3496_v48  ;;  %3345 = vmatprep.mubr.msk.bf16.mxu0 %vm619_vm0, %v3497_v49 }
  0x8c   : > { %3409 = vmatprep.mubr.msk.bf16.mxu1 %vm619_vm0, %v3498_v50 }
  0x92   : > { %3346 = vmatmul.mubr.msk.bf16.gmra.mrb[48].mxu0 %vm619_vm0, %v3499_v51 }
  0x93   : > { %3410 = vmatmul.mubr.msk.bf16.gmra.mrb[48].mxu1 %vm619_vm0, %v3500_v52  ;;  %3349 = vmatprep.mubr.msk.bf16.mxu0 %vm619_vm0, %v3501_v53 }
  0x94   : > { %3413 = vmatprep.mubr.msk.bf16.mxu1 %vm619_vm0, %v3502_v54 }
  0x9a   : > { %3350 = vmatmul.mubr.msk.bf16.gmra.mrb[52].mxu0 %vm619_vm0, %v3503_v55 }
  0x9b   : > { %3414 = vmatmul.mubr.msk.bf16.gmra.mrb[52].mxu1 %vm619_vm0, %v3504_v56  ;;  %3353 = vmatprep.mubr.msk.bf16.mxu0 %vm619_vm0, %v3505_v57 }
  0x9c   : > { %3417 = vmatprep.mubr.msk.bf16.mxu1 %vm619_vm0, %v3506_v58 }
  0xa2   : > { %3354 = vmatmul.mubr.msk.bf16.gmra.mrb[56].mxu0 %vm619_vm0, %v3507_v59 }
  0xa3   : > { %3418 = vmatmul.mubr.msk.bf16.gmra.mrb[56].mxu1 %vm619_vm0, %v3508_v60  ;;  %3357 = vmatprep.mubr.msk.bf16.mxu0 %vm619_vm0, %v3509_v61 }
  0xa4   : > { %3421 = vmatprep.mubr.msk.bf16.mxu1 %vm619_vm0, %v3510_v62 }
  0xaa   : > { %3358 = vmatmul.mubr.msk.bf16.gmra.mrb[60].mxu0 %vm619_vm0, %v3511_v63 }
  0xab   : > { %3422 = vmatmul.mubr.msk.bf16.gmra.mrb[60].mxu1 %vm619_vm0, %v3512_v0 }
 0x105   : > { %v3299_v1 = vpop.f32.mrb[0].mxu0 }
 0x106   : > { %v3363_v2 = vpop.f32.mrb[0].mxu1  ;;  %vm1359_vm1 = vcmp.gt.f32.partialorder %v3299_v1, 0.0  ;;  %v1487_v3 = vmul.f32 0.2, %v3299_v1  ;;  %v846_v5 = vpop.f32.mrb[1].mxu0 }
 0x107   : > { %v1551_v4 = vmul.f32 0.2, %v3363_v2  ;;  %vm1423_vm2 = vcmp.gt.f32.partialorder %v3363_v2, 0.0  ;;  %v1102_v6 = vpop.f32.mrb[1].mxu1  ;;  %v1485_v7 = vmul.f32 0.2, %v846_v5 }
 0x108   : > { %v3300_v8 = vpop.f32.mrb[2].mxu0  ;;  %v3364_v9 = vpop.f32.mrb[2].mxu1  ;;  %v1615_v10 = vsel %vm1359_vm1, %v3299_v1, %v1487_v3  ;;  %v1549_v11 = vmul.f32 0.2, %v1102_v6  ;;  %vm1357_vm4 = vcmp.gt.f32.partialorder %v846_v5, 0.0  ;;  %vm1421_vm6 = vcmp.gt.f32.partialorder %v1102_v6, 0.0 }
 0x109   : > { %vm1360_vm3 = vcmp.gt.f32.partialorder %v3300_v8, 0.0  ;;  %v1488_v12 = vmul.f32 0.2, %v3300_v8  ;;  %v1679_v13 = vsel %vm1423_vm2, %v3363_v2, %v1551_v4  ;;  %vm1424_vm5 = vcmp.gt.f32.partialorder %v3364_v9, 0.0  ;;  %v849_v15 = vpop.f32.mrb[3].mxu0  ;;  %v1105_v16 = vpop.f32.mrb[3].mxu1 }
 0x10a   : > { %v1552_v14 = vmul.f32 0.2, %v3364_v9  ;;  %vm1358_vm7 = vcmp.gt.f32.partialorder %v849_v15, 0.0  ;;  %v1486_v18 = vmul.f32 0.2, %v849_v15  ;;  %vm1422_vm8 = vcmp.gt.f32.partialorder %v1105_v16, 0.0 }
 0x10b   : > { %v1616_v17 = vsel %vm1360_vm3, %v3300_v8, %v1488_v12  ;;  %v1550_v21 = vmul.f32 0.2, %v1105_v16  ;;  %v1613_v22 = vsel %vm1357_vm4, %v846_v5, %v1485_v7  ;;  %v1677_v27 = vsel %vm1421_vm6, %v1102_v6, %v1549_v11 }
 0x10c   : > { %v2855_v19 = vpack.c.bf16 %v1616_v17, %v1615_v10  ;;  %v1680_v20 = vsel %vm1424_vm5, %v3364_v9, %v1552_v14  ;;  %v1614_v24 = vsel %vm1358_vm7, %v849_v15, %v1486_v18 }
 0x10d   : > { %v3015_v23 = vpack.c.bf16 %v1680_v20, %v1679_v13  ;;  %v3303_v25 = vpop.f32.mrb[4].mxu0  ;;  %v2850_v28 = vpack.c.bf16 %v1614_v24, %v1613_v22  ;;  %v1678_v29 = vsel %vm1422_vm8, %v1105_v16, %v1550_v21 }
 0x10e   : > { %v3367_v26 = vpop.f32.mrb[4].mxu1  ;;  %3167 = vst [vmem:[%s3764_s7 + $0x8] sm:$0xff] %v2855_v19   ;;  %v1491_v30 = vmul.f32 0.2, %v3303_v25  ;;  %v862_v31 = vpop.f32.mrb[5].mxu0  ;;  %v3010_v33 = vpack.c.bf16 %v1678_v29, %v1677_v27  ;;  %vm1363_vm9 = vcmp.gt.f32.partialorder %v3303_v25, 0.0 }
 0x10f   : > { %v1118_v32 = vpop.f32.mrb[5].mxu1  ;;  %3199 = vst [vmem:[%s3764_s7 + $0x108] sm:$0xff] %v3015_v23   ;;  %v1555_v34 = vmul.f32 0.2, %v3367_v26  ;;  %v3304_v35 = vpop.f32.mrb[6].mxu0  ;;  %2851 = vst [vmem:[%s3764_s7] sm:$0xff] %v2850_v28   ;;  %vm1427_vm10 = vcmp.gt.f32.partialorder %v3367_v26, 0.0 }
 0x110   : > { %v3368_v36 = vpop.f32.mrb[6].mxu1  ;;  %v1489_v37 = vmul.f32 0.2, %v862_v31  ;;  %v1553_v38 = vmul.f32 0.2, %v1118_v32  ;;  %v865_v39 = vpop.f32.mrb[7].mxu0  ;;  %v1619_v42 = vsel %vm1363_vm9, %v3303_v25, %v1491_v30 }
 0x111   : > { %3198 = vst [vmem:[%s3764_s7 + $0x100] sm:$0xff] %v3010_v33   ;;  %vm1361_vm11 = vcmp.gt.f32.partialorder %v862_v31, 0.0  ;;  %vm1364_vm12 = vcmp.gt.f32.partialorder %v3304_v35, 0.0  ;;  %v1492_v40 = vmul.f32 0.2, %v3304_v35  ;;  %vm1428_vm13 = vcmp.gt.f32.partialorder %v3368_v36, 0.0 }
 0x112   : > { %v1121_v41 = vpop.f32.mrb[7].mxu1  ;;  %vm1425_vm14 = vcmp.gt.f32.partialorder %v1118_v32, 0.0  ;;  %v1556_v43 = vmul.f32 0.2, %v3368_v36  ;;  %vm1362_vm15 = vcmp.gt.f32.partialorder %v865_v39, 0.0  ;;  %v1683_v47 = vsel %vm1427_vm10, %v3367_v26, %v1555_v34 }
 0x113   : > { %v1620_v44 = vsel %vm1364_vm12, %v3304_v35, %v1492_v40  ;;  %v1490_v45 = vmul.f32 0.2, %v865_v39  ;;  %vm1426_vm0 = vcmp.gt.f32.partialorder %v1121_v41, 0.0  ;;  %v1554_v46 = vmul.f32 0.2, %v1121_v41 }
 0x114   : > { %v1617_v48 = vsel %vm1361_vm11, %v862_v31, %v1489_v37  ;;  %v2865_v49 = vpack.c.bf16 %v1620_v44, %v1619_v42  ;;  %v1684_v50 = vsel %vm1428_vm13, %v3368_v36, %v1556_v43  ;;  %v1681_v51 = vsel %vm1425_vm14, %v1118_v32, %v1553_v38 }
 0x115   : > { %v3025_v52 = vpack.c.bf16 %v1684_v50, %v1683_v47  ;;  %v1618_v53 = vsel %vm1362_vm15, %v865_v39, %v1490_v45  ;;  %v1682_v54 = vsel %vm1426_vm0, %v1121_v41, %v1554_v46  ;;  %v3307_v55 = vpop.f32.mrb[8].mxu0 }
 0x116   : > { %v3371_v56 = vpop.f32.mrb[8].mxu1  ;;  %3169 = vst [vmem:[%s3764_s7 + $0x18] sm:$0xff] %v2865_v49   ;;  %v2860_v57 = vpack.c.bf16 %v1618_v53, %v1617_v48  ;;  %v3020_v58 = vpack.c.bf16 %v1682_v54, %v1681_v51  ;;  %vm1367_vm1 = vcmp.gt.f32.partialorder %v3307_v55, 0.0  ;;  %v1495_v59 = vmul.f32 0.2, %v3307_v55  ;;  %v878_v60 = vpop.f32.mrb[9].mxu0 }
 0x117   : > { %v1134_v61 = vpop.f32.mrb[9].mxu1  ;;  %3201 = vst [vmem:[%s3764_s7 + $0x118] sm:$0xff] %v3025_v52   ;;  %vm1431_vm2 = vcmp.gt.f32.partialorder %v3371_v56, 0.0  ;;  %v1559_v62 = vmul.f32 0.2, %v3371_v56  ;;  %v3308_v1 = vpop.f32.mrb[10].mxu0 }
 0x118   : > { %3168 = vst [vmem:[%s3764_s7 + $0x10] sm:$0xff] %v2860_v57   ;;  %3200 = vst [vmem:[%s3764_s7 + $0x110] sm:$0xff] %v3020_v58   ;;  %v1493_v63 = vmul.f32 0.2, %v878_v60  ;;  %v1557_v0 = vmul.f32 0.2, %v1134_v61  ;;  %v1623_v3 = vsel %vm1367_vm1, %v3307_v55, %v1495_v59 }
 0x119   : > { %v3372_v2 = vpop.f32.mrb[10].mxu1  ;;  %vm1365_vm3 = vcmp.gt.f32.partialorder %v878_v60, 0.0  ;;  %vm1368_vm4 = vcmp.gt.f32.partialorder %v3308_v1, 0.0  ;;  %v1496_v4 = vmul.f32 0.2, %v3308_v1  ;;  %v881_v5 = vpop.f32.mrb[11].mxu0  ;;  %v1687_v11 = vsel %vm1431_vm2, %v3371_v56, %v1559_v62 }
 0x11a   : > { %v1137_v6 = vpop.f32.mrb[11].mxu1  ;;  %vm1429_vm5 = vcmp.gt.f32.partialorder %v1134_v61, 0.0  ;;  %vm1432_vm6 = vcmp.gt.f32.partialorder %v3372_v2, 0.0  ;;  %v1560_v7 = vmul.f32 0.2, %v3372_v2  ;;  %vm1366_vm7 = vcmp.gt.f32.partialorder %v881_v5, 0.0 }
 0x11b   : > { %v1624_v8 = vsel %vm1368_vm4, %v3308_v1, %v1496_v4  ;;  %v1494_v9 = vmul.f32 0.2, %v881_v5  ;;  %vm1430_vm8 = vcmp.gt.f32.partialorder %v1137_v6, 0.0  ;;  %v1558_v10 = vmul.f32 0.2, %v1137_v6 }
 0x11c   : > { %v1621_v12 = vsel %vm1365_vm3, %v878_v60, %v1493_v63  ;;  %v2875_v13 = vpack.c.bf16 %v1624_v8, %v1623_v3  ;;  %v1688_v14 = vsel %vm1432_vm6, %v3372_v2, %v1560_v7  ;;  %v1685_v15 = vsel %vm1429_vm5, %v1134_v61, %v1557_v0 }
 0x11d   : > { %v3035_v16 = vpack.c.bf16 %v1688_v14, %v1687_v11  ;;  %v1622_v17 = vsel %vm1366_vm7, %v881_v5, %v1494_v9  ;;  %v1686_v18 = vsel %vm1430_vm8, %v1137_v6, %v1558_v10  ;;  %v3311_v19 = vpop.f32.mrb[12].mxu0 }
 0x11e   : > { %v3375_v20 = vpop.f32.mrb[12].mxu1  ;;  %3171 = vst [vmem:[%s3764_s7 + $0x28] sm:$0xff] %v2875_v13   ;;  %v2870_v21 = vpack.c.bf16 %v1622_v17, %v1621_v12  ;;  %v3030_v22 = vpack.c.bf16 %v1686_v18, %v1685_v15  ;;  %vm1371_vm9 = vcmp.gt.f32.partialorder %v3311_v19, 0.0  ;;  %v1499_v23 = vmul.f32 0.2, %v3311_v19  ;;  %v894_v24 = vpop.f32.mrb[13].mxu0 }
 0x11f   : > { %v1150_v25 = vpop.f32.mrb[13].mxu1  ;;  %3203 = vst [vmem:[%s3764_s7 + $0x128] sm:$0xff] %v3035_v16   ;;  %vm1435_vm10 = vcmp.gt.f32.partialorder %v3375_v20, 0.0  ;;  %v1563_v26 = vmul.f32 0.2, %v3375_v20  ;;  %v3312_v29 = vpop.f32.mrb[14].mxu0 }
 0x120   : > { %3170 = vst [vmem:[%s3764_s7 + $0x20] sm:$0xff] %v2870_v21   ;;  %3202 = vst [vmem:[%s3764_s7 + $0x120] sm:$0xff] %v3030_v22   ;;  %v1497_v27 = vmul.f32 0.2, %v894_v24  ;;  %v1561_v28 = vmul.f32 0.2, %v1150_v25  ;;  %v1627_v31 = vsel %vm1371_vm9, %v3311_v19, %v1499_v23 }
 0x121   : > { %v3376_v30 = vpop.f32.mrb[14].mxu1  ;;  %vm1369_vm11 = vcmp.gt.f32.partialorder %v894_v24, 0.0  ;;  %vm1372_vm12 = vcmp.gt.f32.partialorder %v3312_v29, 0.0  ;;  %v1500_v32 = vmul.f32 0.2, %v3312_v29  ;;  %v897_v33 = vpop.f32.mrb[15].mxu0  ;;  %v1691_v39 = vsel %vm1435_vm10, %v3375_v20, %v1563_v26 }
 0x122   : > { %v1153_v34 = vpop.f32.mrb[15].mxu1  ;;  %vm1433_vm13 = vcmp.gt.f32.partialorder %v1150_v25, 0.0  ;;  %vm1436_vm14 = vcmp.gt.f32.partialorder %v3376_v30, 0.0  ;;  %v1564_v35 = vmul.f32 0.2, %v3376_v30  ;;  %vm1370_vm15 = vcmp.gt.f32.partialorder %v897_v33, 0.0 }
 0x123   : > { %v1628_v36 = vsel %vm1372_vm12, %v3312_v29, %v1500_v32  ;;  %v1498_v37 = vmul.f32 0.2, %v897_v33  ;;  %vm1434_vm0 = vcmp.gt.f32.partialorder %v1153_v34, 0.0  ;;  %v1562_v38 = vmul.f32 0.2, %v1153_v34 }
 0x124   : > { %v1625_v40 = vsel %vm1369_vm11, %v894_v24, %v1497_v27  ;;  %v2885_v41 = vpack.c.bf16 %v1628_v36, %v1627_v31  ;;  %v1692_v42 = vsel %vm1436_vm14, %v3376_v30, %v1564_v35  ;;  %v1689_v43 = vsel %vm1433_vm13, %v1150_v25, %v1561_v28 }
 0x125   : > { %v3045_v44 = vpack.c.bf16 %v1692_v42, %v1691_v39  ;;  %v1626_v45 = vsel %vm1370_vm15, %v897_v33, %v1498_v37  ;;  %v1690_v46 = vsel %vm1434_vm0, %v1153_v34, %v1562_v38  ;;  %v3315_v47 = vpop.f32.mrb[16].mxu0 }
 0x126   : > { %v3379_v48 = vpop.f32.mrb[16].mxu1  ;;  %3173 = vst [vmem:[%s3764_s7 + $0x38] sm:$0xff] %v2885_v41   ;;  %v2880_v49 = vpack.c.bf16 %v1626_v45, %v1625_v40  ;;  %v3040_v50 = vpack.c.bf16 %v1690_v46, %v1689_v43  ;;  %vm1375_vm1 = vcmp.gt.f32.partialorder %v3315_v47, 0.0  ;;  %v1503_v51 = vmul.f32 0.2, %v3315_v47  ;;  %v910_v52 = vpop.f32.mrb[17].mxu0 }
 0x127   : > { %v1166_v53 = vpop.f32.mrb[17].mxu1  ;;  %3205 = vst [vmem:[%s3764_s7 + $0x138] sm:$0xff] %v3045_v44   ;;  %vm1439_vm2 = vcmp.gt.f32.partialorder %v3379_v48, 0.0  ;;  %v1567_v54 = vmul.f32 0.2, %v3379_v48  ;;  %v3316_v57 = vpop.f32.mrb[18].mxu0 }
 0x128   : > { %3172 = vst [vmem:[%s3764_s7 + $0x30] sm:$0xff] %v2880_v49   ;;  %3204 = vst [vmem:[%s3764_s7 + $0x130] sm:$0xff] %v3040_v50   ;;  %v1501_v55 = vmul.f32 0.2, %v910_v52  ;;  %v1565_v56 = vmul.f32 0.2, %v1166_v53  ;;  %v1631_v59 = vsel %vm1375_vm1, %v3315_v47, %v1503_v51 }
 0x129   : > { %v3380_v58 = vpop.f32.mrb[18].mxu1  ;;  %vm1373_vm3 = vcmp.gt.f32.partialorder %v910_v52, 0.0  ;;  %vm1376_vm4 = vcmp.gt.f32.partialorder %v3316_v57, 0.0  ;;  %v1504_v60 = vmul.f32 0.2, %v3316_v57  ;;  %v913_v61 = vpop.f32.mrb[19].mxu0  ;;  %v1695_v3 = vsel %vm1439_vm2, %v3379_v48, %v1567_v54 }
 0x12a   : > { %v1169_v62 = vpop.f32.mrb[19].mxu1  ;;  %vm1437_vm5 = vcmp.gt.f32.partialorder %v1166_v53, 0.0  ;;  %vm1440_vm6 = vcmp.gt.f32.partialorder %v3380_v58, 0.0  ;;  %v1568_v63 = vmul.f32 0.2, %v3380_v58  ;;  %vm1374_vm7 = vcmp.gt.f32.partialorder %v913_v61, 0.0 }
 0x12b   : > { %v1632_v0 = vsel %vm1376_vm4, %v3316_v57, %v1504_v60  ;;  %v1502_v1 = vmul.f32 0.2, %v913_v61  ;;  %vm1438_vm8 = vcmp.gt.f32.partialorder %v1169_v62, 0.0  ;;  %v1566_v2 = vmul.f32 0.2, %v1169_v62 }
 0x12c   : > { %v1629_v4 = vsel %vm1373_vm3, %v910_v52, %v1501_v55  ;;  %v2895_v5 = vpack.c.bf16 %v1632_v0, %v1631_v59  ;;  %v1696_v6 = vsel %vm1440_vm6, %v3380_v58, %v1568_v63  ;;  %v1693_v7 = vsel %vm1437_vm5, %v1166_v53, %v1565_v56 }
 0x12d   : > { %v3055_v8 = vpack.c.bf16 %v1696_v6, %v1695_v3  ;;  %v1630_v9 = vsel %vm1374_vm7, %v913_v61, %v1502_v1  ;;  %v1694_v10 = vsel %vm1438_vm8, %v1169_v62, %v1566_v2  ;;  %v3319_v11 = vpop.f32.mrb[20].mxu0 }
 0x12e   : > { %v3383_v12 = vpop.f32.mrb[20].mxu1  ;;  %3175 = vst [vmem:[%s3764_s7 + $0x48] sm:$0xff] %v2895_v5   ;;  %v2890_v13 = vpack.c.bf16 %v1630_v9, %v1629_v4  ;;  %v3050_v14 = vpack.c.bf16 %v1694_v10, %v1693_v7  ;;  %vm1379_vm9 = vcmp.gt.f32.partialorder %v3319_v11, 0.0  ;;  %v1507_v15 = vmul.f32 0.2, %v3319_v11  ;;  %v926_v16 = vpop.f32.mrb[21].mxu0 }
 0x12f   : > { %v1182_v17 = vpop.f32.mrb[21].mxu1  ;;  %3207 = vst [vmem:[%s3764_s7 + $0x148] sm:$0xff] %v3055_v8   ;;  %vm1443_vm10 = vcmp.gt.f32.partialorder %v3383_v12, 0.0  ;;  %v1571_v18 = vmul.f32 0.2, %v3383_v12  ;;  %v3320_v21 = vpop.f32.mrb[22].mxu0 }
 0x130   : > { %3174 = vst [vmem:[%s3764_s7 + $0x40] sm:$0xff] %v2890_v13   ;;  %3206 = vst [vmem:[%s3764_s7 + $0x140] sm:$0xff] %v3050_v14   ;;  %v1505_v19 = vmul.f32 0.2, %v926_v16  ;;  %v1569_v20 = vmul.f32 0.2, %v1182_v17  ;;  %v1635_v23 = vsel %vm1379_vm9, %v3319_v11, %v1507_v15 }
 0x131   : > { %v3384_v22 = vpop.f32.mrb[22].mxu1  ;;  %vm1377_vm11 = vcmp.gt.f32.partialorder %v926_v16, 0.0  ;;  %vm1380_vm12 = vcmp.gt.f32.partialorder %v3320_v21, 0.0  ;;  %v1508_v24 = vmul.f32 0.2, %v3320_v21  ;;  %v929_v25 = vpop.f32.mrb[23].mxu0  ;;  %v1699_v31 = vsel %vm1443_vm10, %v3383_v12, %v1571_v18 }
 0x132   : > { %v1185_v26 = vpop.f32.mrb[23].mxu1  ;;  %vm1441_vm13 = vcmp.gt.f32.partialorder %v1182_v17, 0.0  ;;  %vm1444_vm14 = vcmp.gt.f32.partialorder %v3384_v22, 0.0  ;;  %v1572_v27 = vmul.f32 0.2, %v3384_v22  ;;  %vm1378_vm15 = vcmp.gt.f32.partialorder %v929_v25, 0.0 }
 0x133   : > { %v1636_v28 = vsel %vm1380_vm12, %v3320_v21, %v1508_v24  ;;  %v1506_v29 = vmul.f32 0.2, %v929_v25  ;;  %vm1442_vm0 = vcmp.gt.f32.partialorder %v1185_v26, 0.0  ;;  %v1570_v30 = vmul.f32 0.2, %v1185_v26 }
 0x134   : > { %v1633_v32 = vsel %vm1377_vm11, %v926_v16, %v1505_v19  ;;  %v2905_v33 = vpack.c.bf16 %v1636_v28, %v1635_v23  ;;  %v1700_v34 = vsel %vm1444_vm14, %v3384_v22, %v1572_v27  ;;  %v1697_v35 = vsel %vm1441_vm13, %v1182_v17, %v1569_v20 }
 0x135   : > { %v3065_v36 = vpack.c.bf16 %v1700_v34, %v1699_v31  ;;  %v1634_v37 = vsel %vm1378_vm15, %v929_v25, %v1506_v29  ;;  %v1698_v38 = vsel %vm1442_vm0, %v1185_v26, %v1570_v30  ;;  %v3323_v39 = vpop.f32.mrb[24].mxu0 }
 0x136   : > { %v3387_v40 = vpop.f32.mrb[24].mxu1  ;;  %3177 = vst [vmem:[%s3764_s7 + $0x58] sm:$0xff] %v2905_v33   ;;  %v2900_v41 = vpack.c.bf16 %v1634_v37, %v1633_v32  ;;  %v3060_v42 = vpack.c.bf16 %v1698_v38, %v1697_v35  ;;  %vm1383_vm1 = vcmp.gt.f32.partialorder %v3323_v39, 0.0  ;;  %v1511_v43 = vmul.f32 0.2, %v3323_v39  ;;  %v942_v44 = vpop.f32.mrb[25].mxu0 }
 0x137   : > { %v1198_v45 = vpop.f32.mrb[25].mxu1  ;;  %3209 = vst [vmem:[%s3764_s7 + $0x158] sm:$0xff] %v3065_v36   ;;  %vm1447_vm2 = vcmp.gt.f32.partialorder %v3387_v40, 0.0  ;;  %v1575_v46 = vmul.f32 0.2, %v3387_v40  ;;  %v3324_v49 = vpop.f32.mrb[26].mxu0 }
 0x138   : > { %3176 = vst [vmem:[%s3764_s7 + $0x50] sm:$0xff] %v2900_v41   ;;  %3208 = vst [vmem:[%s3764_s7 + $0x150] sm:$0xff] %v3060_v42   ;;  %v1509_v47 = vmul.f32 0.2, %v942_v44  ;;  %v1573_v48 = vmul.f32 0.2, %v1198_v45  ;;  %v1639_v51 = vsel %vm1383_vm1, %v3323_v39, %v1511_v43 }
 0x139   : > { %v3388_v50 = vpop.f32.mrb[26].mxu1  ;;  %vm1381_vm3 = vcmp.gt.f32.partialorder %v942_v44, 0.0  ;;  %vm1384_vm4 = vcmp.gt.f32.partialorder %v3324_v49, 0.0  ;;  %v1512_v52 = vmul.f32 0.2, %v3324_v49  ;;  %v945_v53 = vpop.f32.mrb[27].mxu0  ;;  %v1703_v59 = vsel %vm1447_vm2, %v3387_v40, %v1575_v46 }
 0x13a   : > { %v1201_v54 = vpop.f32.mrb[27].mxu1  ;;  %vm1445_vm5 = vcmp.gt.f32.partialorder %v1198_v45, 0.0  ;;  %vm1448_vm6 = vcmp.gt.f32.partialorder %v3388_v50, 0.0  ;;  %v1576_v55 = vmul.f32 0.2, %v3388_v50  ;;  %vm1382_vm7 = vcmp.gt.f32.partialorder %v945_v53, 0.0 }
 0x13b   : > { %v1640_v56 = vsel %vm1384_vm4, %v3324_v49, %v1512_v52  ;;  %v1510_v57 = vmul.f32 0.2, %v945_v53  ;;  %vm1446_vm8 = vcmp.gt.f32.partialorder %v1201_v54, 0.0  ;;  %v1574_v58 = vmul.f32 0.2, %v1201_v54 }
 0x13c   : > { %v1637_v60 = vsel %vm1381_vm3, %v942_v44, %v1509_v47  ;;  %v2915_v61 = vpack.c.bf16 %v1640_v56, %v1639_v51  ;;  %v1704_v62 = vsel %vm1448_vm6, %v3388_v50, %v1576_v55  ;;  %v1701_v63 = vsel %vm1445_vm5, %v1198_v45, %v1573_v48 }
 0x13d   : > { %v3075_v0 = vpack.c.bf16 %v1704_v62, %v1703_v59  ;;  %v1638_v1 = vsel %vm1382_vm7, %v945_v53, %v1510_v57  ;;  %v1702_v2 = vsel %vm1446_vm8, %v1201_v54, %v1574_v58  ;;  %v3327_v3 = vpop.f32.mrb[28].mxu0 }
 0x13e   : > { %v3391_v4 = vpop.f32.mrb[28].mxu1  ;;  %3179 = vst [vmem:[%s3764_s7 + $0x68] sm:$0xff] %v2915_v61   ;;  %v2910_v5 = vpack.c.bf16 %v1638_v1, %v1637_v60  ;;  %v3070_v6 = vpack.c.bf16 %v1702_v2, %v1701_v63  ;;  %vm1387_vm9 = vcmp.gt.f32.partialorder %v3327_v3, 0.0  ;;  %v1515_v7 = vmul.f32 0.2, %v3327_v3  ;;  %v958_v8 = vpop.f32.mrb[29].mxu0 }
 0x13f   : > { %v1214_v9 = vpop.f32.mrb[29].mxu1  ;;  %3211 = vst [vmem:[%s3764_s7 + $0x168] sm:$0xff] %v3075_v0   ;;  %vm1451_vm10 = vcmp.gt.f32.partialorder %v3391_v4, 0.0  ;;  %v1579_v10 = vmul.f32 0.2, %v3391_v4  ;;  %v3328_v13 = vpop.f32.mrb[30].mxu0 }
 0x140   : > { %3178 = vst [vmem:[%s3764_s7 + $0x60] sm:$0xff] %v2910_v5   ;;  %3210 = vst [vmem:[%s3764_s7 + $0x160] sm:$0xff] %v3070_v6   ;;  %v1513_v11 = vmul.f32 0.2, %v958_v8  ;;  %v1577_v12 = vmul.f32 0.2, %v1214_v9  ;;  %v1643_v15 = vsel %vm1387_vm9, %v3327_v3, %v1515_v7 }
 0x141   : > { %v3392_v14 = vpop.f32.mrb[30].mxu1  ;;  %vm1385_vm11 = vcmp.gt.f32.partialorder %v958_v8, 0.0  ;;  %vm1388_vm12 = vcmp.gt.f32.partialorder %v3328_v13, 0.0  ;;  %v1516_v16 = vmul.f32 0.2, %v3328_v13  ;;  %v961_v17 = vpop.f32.mrb[31].mxu0  ;;  %v1707_v23 = vsel %vm1451_vm10, %v3391_v4, %v1579_v10 }
 0x142   : > { %v1217_v18 = vpop.f32.mrb[31].mxu1  ;;  %vm1449_vm13 = vcmp.gt.f32.partialorder %v1214_v9, 0.0  ;;  %vm1452_vm14 = vcmp.gt.f32.partialorder %v3392_v14, 0.0  ;;  %v1580_v19 = vmul.f32 0.2, %v3392_v14  ;;  %vm1386_vm15 = vcmp.gt.f32.partialorder %v961_v17, 0.0 }
 0x143   : > { %v1644_v20 = vsel %vm1388_vm12, %v3328_v13, %v1516_v16  ;;  %v1514_v21 = vmul.f32 0.2, %v961_v17  ;;  %vm1450_vm0 = vcmp.gt.f32.partialorder %v1217_v18, 0.0  ;;  %v1578_v22 = vmul.f32 0.2, %v1217_v18 }
 0x144   : > { %v1641_v24 = vsel %vm1385_vm11, %v958_v8, %v1513_v11  ;;  %v2925_v25 = vpack.c.bf16 %v1644_v20, %v1643_v15  ;;  %v1708_v26 = vsel %vm1452_vm14, %v3392_v14, %v1580_v19  ;;  %v1705_v27 = vsel %vm1449_vm13, %v1214_v9, %v1577_v12 }
 0x145   : > { %v3085_v28 = vpack.c.bf16 %v1708_v26, %v1707_v23  ;;  %v1642_v29 = vsel %vm1386_vm15, %v961_v17, %v1514_v21  ;;  %v1706_v30 = vsel %vm1450_vm0, %v1217_v18, %v1578_v22  ;;  %v3331_v31 = vpop.f32.mrb[32].mxu0 }
 0x146   : > { %v3395_v32 = vpop.f32.mrb[32].mxu1  ;;  %3181 = vst [vmem:[%s3764_s7 + $0x78] sm:$0xff] %v2925_v25   ;;  %v2920_v33 = vpack.c.bf16 %v1642_v29, %v1641_v24  ;;  %v3080_v34 = vpack.c.bf16 %v1706_v30, %v1705_v27  ;;  %vm1391_vm1 = vcmp.gt.f32.partialorder %v3331_v31, 0.0  ;;  %v1519_v35 = vmul.f32 0.2, %v3331_v31  ;;  %v974_v36 = vpop.f32.mrb[33].mxu0 }
 0x147   : > { %v1230_v37 = vpop.f32.mrb[33].mxu1  ;;  %3213 = vst [vmem:[%s3764_s7 + $0x178] sm:$0xff] %v3085_v28   ;;  %vm1455_vm2 = vcmp.gt.f32.partialorder %v3395_v32, 0.0  ;;  %v1583_v38 = vmul.f32 0.2, %v3395_v32  ;;  %v3332_v41 = vpop.f32.mrb[34].mxu0 }
 0x148   : > { %3180 = vst [vmem:[%s3764_s7 + $0x70] sm:$0xff] %v2920_v33   ;;  %3212 = vst [vmem:[%s3764_s7 + $0x170] sm:$0xff] %v3080_v34   ;;  %v1517_v39 = vmul.f32 0.2, %v974_v36  ;;  %v1581_v40 = vmul.f32 0.2, %v1230_v37  ;;  %v1647_v43 = vsel %vm1391_vm1, %v3331_v31, %v1519_v35 }
 0x149   : > { %v3396_v42 = vpop.f32.mrb[34].mxu1  ;;  %vm1389_vm3 = vcmp.gt.f32.partialorder %v974_v36, 0.0  ;;  %vm1392_vm4 = vcmp.gt.f32.partialorder %v3332_v41, 0.0  ;;  %v1520_v44 = vmul.f32 0.2, %v3332_v41  ;;  %v977_v45 = vpop.f32.mrb[35].mxu0  ;;  %v1711_v51 = vsel %vm1455_vm2, %v3395_v32, %v1583_v38 }
 0x14a   : > { %v1233_v46 = vpop.f32.mrb[35].mxu1  ;;  %vm1453_vm5 = vcmp.gt.f32.partialorder %v1230_v37, 0.0  ;;  %vm1456_vm6 = vcmp.gt.f32.partialorder %v3396_v42, 0.0  ;;  %v1584_v47 = vmul.f32 0.2, %v3396_v42  ;;  %vm1390_vm7 = vcmp.gt.f32.partialorder %v977_v45, 0.0 }
 0x14b   : > { %v1648_v48 = vsel %vm1392_vm4, %v3332_v41, %v1520_v44  ;;  %v1518_v49 = vmul.f32 0.2, %v977_v45  ;;  %vm1454_vm8 = vcmp.gt.f32.partialorder %v1233_v46, 0.0  ;;  %v1582_v50 = vmul.f32 0.2, %v1233_v46 }
 0x14c   : > { %v1645_v52 = vsel %vm1389_vm3, %v974_v36, %v1517_v39  ;;  %v2935_v53 = vpack.c.bf16 %v1648_v48, %v1647_v43  ;;  %v1712_v54 = vsel %vm1456_vm6, %v3396_v42, %v1584_v47  ;;  %v1709_v55 = vsel %vm1453_vm5, %v1230_v37, %v1581_v40 }
 0x14d   : > { %v3095_v56 = vpack.c.bf16 %v1712_v54, %v1711_v51  ;;  %v1646_v57 = vsel %vm1390_vm7, %v977_v45, %v1518_v49  ;;  %v1710_v58 = vsel %vm1454_vm8, %v1233_v46, %v1582_v50  ;;  %v3335_v59 = vpop.f32.mrb[36].mxu0 }
 0x14e   : > { %v3399_v60 = vpop.f32.mrb[36].mxu1  ;;  %3183 = vst [vmem:[%s3764_s7 + $0x88] sm:$0xff] %v2935_v53   ;;  %v2930_v61 = vpack.c.bf16 %v1646_v57, %v1645_v52  ;;  %v3090_v62 = vpack.c.bf16 %v1710_v58, %v1709_v55  ;;  %vm1395_vm9 = vcmp.gt.f32.partialorder %v3335_v59, 0.0  ;;  %v1523_v63 = vmul.f32 0.2, %v3335_v59  ;;  %v990_v0 = vpop.f32.mrb[37].mxu0 }
 0x14f   : > { %v1246_v1 = vpop.f32.mrb[37].mxu1  ;;  %3215 = vst [vmem:[%s3764_s7 + $0x188] sm:$0xff] %v3095_v56   ;;  %vm1459_vm10 = vcmp.gt.f32.partialorder %v3399_v60, 0.0  ;;  %v1587_v2 = vmul.f32 0.2, %v3399_v60  ;;  %v3336_v5 = vpop.f32.mrb[38].mxu0 }
 0x150   : > { %3182 = vst [vmem:[%s3764_s7 + $0x80] sm:$0xff] %v2930_v61   ;;  %3214 = vst [vmem:[%s3764_s7 + $0x180] sm:$0xff] %v3090_v62   ;;  %v1521_v3 = vmul.f32 0.2, %v990_v0  ;;  %v1585_v4 = vmul.f32 0.2, %v1246_v1  ;;  %v1651_v7 = vsel %vm1395_vm9, %v3335_v59, %v1523_v63 }
 0x151   : > { %v3400_v6 = vpop.f32.mrb[38].mxu1  ;;  %vm1393_vm11 = vcmp.gt.f32.partialorder %v990_v0, 0.0  ;;  %vm1396_vm12 = vcmp.gt.f32.partialorder %v3336_v5, 0.0  ;;  %v1524_v8 = vmul.f32 0.2, %v3336_v5  ;;  %v993_v9 = vpop.f32.mrb[39].mxu0  ;;  %v1715_v15 = vsel %vm1459_vm10, %v3399_v60, %v1587_v2 }
 0x152   : > { %v1249_v10 = vpop.f32.mrb[39].mxu1  ;;  %vm1457_vm13 = vcmp.gt.f32.partialorder %v1246_v1, 0.0  ;;  %vm1460_vm14 = vcmp.gt.f32.partialorder %v3400_v6, 0.0  ;;  %v1588_v11 = vmul.f32 0.2, %v3400_v6  ;;  %vm1394_vm15 = vcmp.gt.f32.partialorder %v993_v9, 0.0 }
 0x153   : > { %v1652_v12 = vsel %vm1396_vm12, %v3336_v5, %v1524_v8  ;;  %v1522_v13 = vmul.f32 0.2, %v993_v9  ;;  %vm1458_vm0 = vcmp.gt.f32.partialorder %v1249_v10, 0.0  ;;  %v1586_v14 = vmul.f32 0.2, %v1249_v10 }
 0x154   : > { %v1649_v16 = vsel %vm1393_vm11, %v990_v0, %v1521_v3  ;;  %v2945_v17 = vpack.c.bf16 %v1652_v12, %v1651_v7  ;;  %v1716_v18 = vsel %vm1460_vm14, %v3400_v6, %v1588_v11  ;;  %v1713_v19 = vsel %vm1457_vm13, %v1246_v1, %v1585_v4 }
 0x155   : > { %v3105_v20 = vpack.c.bf16 %v1716_v18, %v1715_v15  ;;  %v1650_v21 = vsel %vm1394_vm15, %v993_v9, %v1522_v13  ;;  %v1714_v22 = vsel %vm1458_vm0, %v1249_v10, %v1586_v14  ;;  %v3339_v23 = vpop.f32.mrb[40].mxu0 }
 0x156   : > { %v3403_v24 = vpop.f32.mrb[40].mxu1  ;;  %3185 = vst [vmem:[%s3764_s7 + $0x98] sm:$0xff] %v2945_v17   ;;  %v2940_v25 = vpack.c.bf16 %v1650_v21, %v1649_v16  ;;  %v3100_v26 = vpack.c.bf16 %v1714_v22, %v1713_v19  ;;  %vm1399_vm1 = vcmp.gt.f32.partialorder %v3339_v23, 0.0  ;;  %v1527_v27 = vmul.f32 0.2, %v3339_v23  ;;  %v1006_v28 = vpop.f32.mrb[41].mxu0 }
 0x157   : > { %v1262_v29 = vpop.f32.mrb[41].mxu1  ;;  %3217 = vst [vmem:[%s3764_s7 + $0x198] sm:$0xff] %v3105_v20   ;;  %vm1463_vm2 = vcmp.gt.f32.partialorder %v3403_v24, 0.0  ;;  %v1591_v30 = vmul.f32 0.2, %v3403_v24  ;;  %v3340_v33 = vpop.f32.mrb[42].mxu0 }
 0x158   : > { %3184 = vst [vmem:[%s3764_s7 + $0x90] sm:$0xff] %v2940_v25   ;;  %3216 = vst [vmem:[%s3764_s7 + $0x190] sm:$0xff] %v3100_v26   ;;  %v1525_v31 = vmul.f32 0.2, %v1006_v28  ;;  %v1589_v32 = vmul.f32 0.2, %v1262_v29  ;;  %v1655_v35 = vsel %vm1399_vm1, %v3339_v23, %v1527_v27 }
 0x159   : > { %v3404_v34 = vpop.f32.mrb[42].mxu1  ;;  %vm1397_vm3 = vcmp.gt.f32.partialorder %v1006_v28, 0.0  ;;  %vm1400_vm4 = vcmp.gt.f32.partialorder %v3340_v33, 0.0  ;;  %v1528_v36 = vmul.f32 0.2, %v3340_v33  ;;  %v1009_v37 = vpop.f32.mrb[43].mxu0  ;;  %v1719_v43 = vsel %vm1463_vm2, %v3403_v24, %v1591_v30 }
 0x15a   : > { %v1265_v38 = vpop.f32.mrb[43].mxu1  ;;  %vm1461_vm5 = vcmp.gt.f32.partialorder %v1262_v29, 0.0  ;;  %vm1464_vm6 = vcmp.gt.f32.partialorder %v3404_v34, 0.0  ;;  %v1592_v39 = vmul.f32 0.2, %v3404_v34  ;;  %vm1398_vm7 = vcmp.gt.f32.partialorder %v1009_v37, 0.0 }
 0x15b   : > { %v1656_v40 = vsel %vm1400_vm4, %v3340_v33, %v1528_v36  ;;  %v1526_v41 = vmul.f32 0.2, %v1009_v37  ;;  %vm1462_vm8 = vcmp.gt.f32.partialorder %v1265_v38, 0.0  ;;  %v1590_v42 = vmul.f32 0.2, %v1265_v38 }
 0x15c   : > { %v1653_v44 = vsel %vm1397_vm3, %v1006_v28, %v1525_v31  ;;  %v2955_v45 = vpack.c.bf16 %v1656_v40, %v1655_v35  ;;  %v1720_v46 = vsel %vm1464_vm6, %v3404_v34, %v1592_v39  ;;  %v1717_v47 = vsel %vm1461_vm5, %v1262_v29, %v1589_v32 }
 0x15d   : > { %v3115_v48 = vpack.c.bf16 %v1720_v46, %v1719_v43  ;;  %v1654_v49 = vsel %vm1398_vm7, %v1009_v37, %v1526_v41  ;;  %v1718_v50 = vsel %vm1462_vm8, %v1265_v38, %v1590_v42  ;;  %v3343_v51 = vpop.f32.mrb[44].mxu0 }
 0x15e   : > { %v3407_v52 = vpop.f32.mrb[44].mxu1  ;;  %3187 = vst [vmem:[%s3764_s7 + $0xa8] sm:$0xff] %v2955_v45   ;;  %v2950_v53 = vpack.c.bf16 %v1654_v49, %v1653_v44  ;;  %v3110_v54 = vpack.c.bf16 %v1718_v50, %v1717_v47  ;;  %vm1403_vm9 = vcmp.gt.f32.partialorder %v3343_v51, 0.0  ;;  %v1531_v55 = vmul.f32 0.2, %v3343_v51  ;;  %v1022_v56 = vpop.f32.mrb[45].mxu0 }
 0x15f   : > { %v1278_v57 = vpop.f32.mrb[45].mxu1  ;;  %3219 = vst [vmem:[%s3764_s7 + $0x1a8] sm:$0xff] %v3115_v48   ;;  %vm1467_vm10 = vcmp.gt.f32.partialorder %v3407_v52, 0.0  ;;  %v1595_v58 = vmul.f32 0.2, %v3407_v52  ;;  %v3344_v61 = vpop.f32.mrb[46].mxu0 }
 0x160   : > { %3186 = vst [vmem:[%s3764_s7 + $0xa0] sm:$0xff] %v2950_v53   ;;  %3218 = vst [vmem:[%s3764_s7 + $0x1a0] sm:$0xff] %v3110_v54   ;;  %v1529_v59 = vmul.f32 0.2, %v1022_v56  ;;  %v1593_v60 = vmul.f32 0.2, %v1278_v57  ;;  %v1659_v63 = vsel %vm1403_vm9, %v3343_v51, %v1531_v55 }
 0x161   : > { %v3408_v62 = vpop.f32.mrb[46].mxu1  ;;  %vm1401_vm11 = vcmp.gt.f32.partialorder %v1022_v56, 0.0  ;;  %vm1404_vm12 = vcmp.gt.f32.partialorder %v3344_v61, 0.0  ;;  %v1532_v0 = vmul.f32 0.2, %v3344_v61  ;;  %v1025_v1 = vpop.f32.mrb[47].mxu0  ;;  %v1723_v7 = vsel %vm1467_vm10, %v3407_v52, %v1595_v58 }
 0x162   : > { %v1281_v2 = vpop.f32.mrb[47].mxu1  ;;  %vm1465_vm13 = vcmp.gt.f32.partialorder %v1278_v57, 0.0  ;;  %vm1468_vm14 = vcmp.gt.f32.partialorder %v3408_v62, 0.0  ;;  %v1596_v3 = vmul.f32 0.2, %v3408_v62  ;;  %vm1402_vm15 = vcmp.gt.f32.partialorder %v1025_v1, 0.0 }
 0x163   : > { %v1660_v4 = vsel %vm1404_vm12, %v3344_v61, %v1532_v0  ;;  %v1530_v5 = vmul.f32 0.2, %v1025_v1  ;;  %vm1466_vm0 = vcmp.gt.f32.partialorder %v1281_v2, 0.0  ;;  %v1594_v6 = vmul.f32 0.2, %v1281_v2 }
 0x164   : > { %v1657_v8 = vsel %vm1401_vm11, %v1022_v56, %v1529_v59  ;;  %v2965_v9 = vpack.c.bf16 %v1660_v4, %v1659_v63  ;;  %v1724_v10 = vsel %vm1468_vm14, %v3408_v62, %v1596_v3  ;;  %v1721_v11 = vsel %vm1465_vm13, %v1278_v57, %v1593_v60 }
 0x165   : > { %v3125_v12 = vpack.c.bf16 %v1724_v10, %v1723_v7  ;;  %v1658_v13 = vsel %vm1402_vm15, %v1025_v1, %v1530_v5  ;;  %v1722_v14 = vsel %vm1466_vm0, %v1281_v2, %v1594_v6  ;;  %v3347_v15 = vpop.f32.mrb[48].mxu0 }
 0x166   : > { %v3411_v16 = vpop.f32.mrb[48].mxu1  ;;  %3189 = vst [vmem:[%s3764_s7 + $0xb8] sm:$0xff] %v2965_v9   ;;  %v2960_v17 = vpack.c.bf16 %v1658_v13, %v1657_v8  ;;  %v3120_v18 = vpack.c.bf16 %v1722_v14, %v1721_v11  ;;  %vm1407_vm1 = vcmp.gt.f32.partialorder %v3347_v15, 0.0  ;;  %v1535_v19 = vmul.f32 0.2, %v3347_v15  ;;  %v1038_v20 = vpop.f32.mrb[49].mxu0 }
 0x167   : > { %v1294_v21 = vpop.f32.mrb[49].mxu1  ;;  %3221 = vst [vmem:[%s3764_s7 + $0x1b8] sm:$0xff] %v3125_v12   ;;  %vm1471_vm2 = vcmp.gt.f32.partialorder %v3411_v16, 0.0  ;;  %v1599_v22 = vmul.f32 0.2, %v3411_v16  ;;  %v3348_v25 = vpop.f32.mrb[50].mxu0 }
 0x168   : > { %3188 = vst [vmem:[%s3764_s7 + $0xb0] sm:$0xff] %v2960_v17   ;;  %3220 = vst [vmem:[%s3764_s7 + $0x1b0] sm:$0xff] %v3120_v18   ;;  %v1533_v23 = vmul.f32 0.2, %v1038_v20  ;;  %v1597_v24 = vmul.f32 0.2, %v1294_v21  ;;  %v1663_v27 = vsel %vm1407_vm1, %v3347_v15, %v1535_v19 }
 0x169   : > { %v3412_v26 = vpop.f32.mrb[50].mxu1  ;;  %vm1405_vm3 = vcmp.gt.f32.partialorder %v1038_v20, 0.0  ;;  %vm1408_vm4 = vcmp.gt.f32.partialorder %v3348_v25, 0.0  ;;  %v1536_v28 = vmul.f32 0.2, %v3348_v25  ;;  %v1041_v29 = vpop.f32.mrb[51].mxu0  ;;  %v1727_v35 = vsel %vm1471_vm2, %v3411_v16, %v1599_v22 }
 0x16a   : > { %v1297_v30 = vpop.f32.mrb[51].mxu1  ;;  %vm1469_vm5 = vcmp.gt.f32.partialorder %v1294_v21, 0.0  ;;  %vm1472_vm6 = vcmp.gt.f32.partialorder %v3412_v26, 0.0  ;;  %v1600_v31 = vmul.f32 0.2, %v3412_v26  ;;  %vm1406_vm7 = vcmp.gt.f32.partialorder %v1041_v29, 0.0 }
 0x16b   : > { %v1664_v32 = vsel %vm1408_vm4, %v3348_v25, %v1536_v28  ;;  %v1534_v33 = vmul.f32 0.2, %v1041_v29  ;;  %vm1470_vm8 = vcmp.gt.f32.partialorder %v1297_v30, 0.0  ;;  %v1598_v34 = vmul.f32 0.2, %v1297_v30 }
 0x16c   : > { %v1661_v36 = vsel %vm1405_vm3, %v1038_v20, %v1533_v23  ;;  %v2975_v37 = vpack.c.bf16 %v1664_v32, %v1663_v27  ;;  %v1728_v38 = vsel %vm1472_vm6, %v3412_v26, %v1600_v31  ;;  %v1725_v39 = vsel %vm1469_vm5, %v1294_v21, %v1597_v24 }
 0x16d   : > { %v3135_v40 = vpack.c.bf16 %v1728_v38, %v1727_v35  ;;  %v1662_v41 = vsel %vm1406_vm7, %v1041_v29, %v1534_v33  ;;  %v1726_v42 = vsel %vm1470_vm8, %v1297_v30, %v1598_v34  ;;  %v3351_v43 = vpop.f32.mrb[52].mxu0 }
 0x16e   : > { %v3415_v44 = vpop.f32.mrb[52].mxu1  ;;  %3191 = vst [vmem:[%s3764_s7 + $0xc8] sm:$0xff] %v2975_v37   ;;  %v2970_v45 = vpack.c.bf16 %v1662_v41, %v1661_v36  ;;  %v3130_v46 = vpack.c.bf16 %v1726_v42, %v1725_v39  ;;  %vm1411_vm9 = vcmp.gt.f32.partialorder %v3351_v43, 0.0  ;;  %v1539_v47 = vmul.f32 0.2, %v3351_v43  ;;  %v1054_v48 = vpop.f32.mrb[53].mxu0 }
 0x16f   : > { %v1310_v49 = vpop.f32.mrb[53].mxu1  ;;  %3223 = vst [vmem:[%s3764_s7 + $0x1c8] sm:$0xff] %v3135_v40   ;;  %vm1475_vm10 = vcmp.gt.f32.partialorder %v3415_v44, 0.0  ;;  %v1603_v50 = vmul.f32 0.2, %v3415_v44  ;;  %v3352_v53 = vpop.f32.mrb[54].mxu0 }
 0x170   : > { %3190 = vst [vmem:[%s3764_s7 + $0xc0] sm:$0xff] %v2970_v45   ;;  %3222 = vst [vmem:[%s3764_s7 + $0x1c0] sm:$0xff] %v3130_v46   ;;  %v1537_v51 = vmul.f32 0.2, %v1054_v48  ;;  %v1601_v52 = vmul.f32 0.2, %v1310_v49  ;;  %v1667_v55 = vsel %vm1411_vm9, %v3351_v43, %v1539_v47 }
 0x171   : > { %v3416_v54 = vpop.f32.mrb[54].mxu1  ;;  %vm1409_vm11 = vcmp.gt.f32.partialorder %v1054_v48, 0.0  ;;  %vm1412_vm12 = vcmp.gt.f32.partialorder %v3352_v53, 0.0  ;;  %v1540_v56 = vmul.f32 0.2, %v3352_v53  ;;  %v1057_v57 = vpop.f32.mrb[55].mxu0  ;;  %v1731_v63 = vsel %vm1475_vm10, %v3415_v44, %v1603_v50 }
 0x172   : > { %v1313_v58 = vpop.f32.mrb[55].mxu1  ;;  %vm1473_vm13 = vcmp.gt.f32.partialorder %v1310_v49, 0.0  ;;  %vm1476_vm14 = vcmp.gt.f32.partialorder %v3416_v54, 0.0  ;;  %v1604_v59 = vmul.f32 0.2, %v3416_v54  ;;  %vm1410_vm15 = vcmp.gt.f32.partialorder %v1057_v57, 0.0 }
 0x173   : > { %v1668_v60 = vsel %vm1412_vm12, %v3352_v53, %v1540_v56  ;;  %v1538_v61 = vmul.f32 0.2, %v1057_v57  ;;  %vm1474_vm0 = vcmp.gt.f32.partialorder %v1313_v58, 0.0  ;;  %v1602_v62 = vmul.f32 0.2, %v1313_v58 }
 0x174   : > { %v1665_v0 = vsel %vm1409_vm11, %v1054_v48, %v1537_v51  ;;  %v2985_v1 = vpack.c.bf16 %v1668_v60, %v1667_v55  ;;  %v1732_v2 = vsel %vm1476_vm14, %v3416_v54, %v1604_v59  ;;  %v1729_v3 = vsel %vm1473_vm13, %v1310_v49, %v1601_v52 }
 0x175   : > { %v3145_v4 = vpack.c.bf16 %v1732_v2, %v1731_v63  ;;  %v1666_v5 = vsel %vm1410_vm15, %v1057_v57, %v1538_v61  ;;  %v1730_v6 = vsel %vm1474_vm0, %v1313_v58, %v1602_v62  ;;  %v3355_v7 = vpop.f32.mrb[56].mxu0 }
 0x176   : > { %v3419_v8 = vpop.f32.mrb[56].mxu1  ;;  %3193 = vst [vmem:[%s3764_s7 + $0xd8] sm:$0xff] %v2985_v1   ;;  %v2980_v9 = vpack.c.bf16 %v1666_v5, %v1665_v0  ;;  %v3140_v10 = vpack.c.bf16 %v1730_v6, %v1729_v3  ;;  %vm1415_vm1 = vcmp.gt.f32.partialorder %v3355_v7, 0.0  ;;  %v1543_v11 = vmul.f32 0.2, %v3355_v7  ;;  %v1070_v12 = vpop.f32.mrb[57].mxu0 }
 0x177   : > { %v1326_v13 = vpop.f32.mrb[57].mxu1  ;;  %3225 = vst [vmem:[%s3764_s7 + $0x1d8] sm:$0xff] %v3145_v4   ;;  %vm1479_vm2 = vcmp.gt.f32.partialorder %v3419_v8, 0.0  ;;  %v1607_v14 = vmul.f32 0.2, %v3419_v8  ;;  %v3356_v17 = vpop.f32.mrb[58].mxu0 }
 0x178   : > { %3192 = vst [vmem:[%s3764_s7 + $0xd0] sm:$0xff] %v2980_v9   ;;  %3224 = vst [vmem:[%s3764_s7 + $0x1d0] sm:$0xff] %v3140_v10   ;;  %v1541_v15 = vmul.f32 0.2, %v1070_v12  ;;  %v1605_v16 = vmul.f32 0.2, %v1326_v13  ;;  %v1671_v19 = vsel %vm1415_vm1, %v3355_v7, %v1543_v11 }
 0x179   : > { %v3420_v18 = vpop.f32.mrb[58].mxu1  ;;  %vm1413_vm3 = vcmp.gt.f32.partialorder %v1070_v12, 0.0  ;;  %vm1416_vm4 = vcmp.gt.f32.partialorder %v3356_v17, 0.0  ;;  %v1544_v20 = vmul.f32 0.2, %v3356_v17  ;;  %v1073_v21 = vpop.f32.mrb[59].mxu0  ;;  %v1735_v27 = vsel %vm1479_vm2, %v3419_v8, %v1607_v14 }
 0x17a   : > { %v1329_v22 = vpop.f32.mrb[59].mxu1  ;;  %vm1477_vm5 = vcmp.gt.f32.partialorder %v1326_v13, 0.0  ;;  %vm1480_vm6 = vcmp.gt.f32.partialorder %v3420_v18, 0.0  ;;  %v1608_v23 = vmul.f32 0.2, %v3420_v18  ;;  %vm1414_vm7 = vcmp.gt.f32.partialorder %v1073_v21, 0.0 }
 0x17b   : > { %v1672_v24 = vsel %vm1416_vm4, %v3356_v17, %v1544_v20  ;;  %v1542_v25 = vmul.f32 0.2, %v1073_v21  ;;  %vm1478_vm8 = vcmp.gt.f32.partialorder %v1329_v22, 0.0  ;;  %v1606_v26 = vmul.f32 0.2, %v1329_v22 }
 0x17c   : > { %v1669_v28 = vsel %vm1413_vm3, %v1070_v12, %v1541_v15  ;;  %v2995_v29 = vpack.c.bf16 %v1672_v24, %v1671_v19  ;;  %v1736_v30 = vsel %vm1480_vm6, %v3420_v18, %v1608_v23  ;;  %v1733_v31 = vsel %vm1477_vm5, %v1326_v13, %v1605_v16 }
 0x17d   : > { %v3155_v32 = vpack.c.bf16 %v1736_v30, %v1735_v27  ;;  %v1670_v33 = vsel %vm1414_vm7, %v1073_v21, %v1542_v25  ;;  %v1734_v34 = vsel %vm1478_vm8, %v1329_v22, %v1606_v26  ;;  %v3359_v35 = vpop.f32.mrb[60].mxu0 }
 0x17e   : > { %v3423_v36 = vpop.f32.mrb[60].mxu1  ;;  %3195 = vst [vmem:[%s3764_s7 + $0xe8] sm:$0xff] %v2995_v29   ;;  %v2990_v37 = vpack.c.bf16 %v1670_v33, %v1669_v28  ;;  %v3150_v38 = vpack.c.bf16 %v1734_v34, %v1733_v31  ;;  %vm1419_vm9 = vcmp.gt.f32.partialorder %v3359_v35, 0.0  ;;  %v1547_v39 = vmul.f32 0.2, %v3359_v35  ;;  %v1086_v40 = vpop.f32.mrb[61].mxu0 }
 0x17f   : > { %v1342_v41 = vpop.f32.mrb[61].mxu1  ;;  %3227 = vst [vmem:[%s3764_s7 + $0x1e8] sm:$0xff] %v3155_v32   ;;  %vm1483_vm10 = vcmp.gt.f32.partialorder %v3423_v36, 0.0  ;;  %v1611_v42 = vmul.f32 0.2, %v3423_v36  ;;  %v3360_v45 = vpop.f32.mrb[62].mxu0 }
 0x180   : > { %3194 = vst [vmem:[%s3764_s7 + $0xe0] sm:$0xff] %v2990_v37   ;;  %3226 = vst [vmem:[%s3764_s7 + $0x1e0] sm:$0xff] %v3150_v38   ;;  %v1545_v43 = vmul.f32 0.2, %v1086_v40  ;;  %v1609_v44 = vmul.f32 0.2, %v1342_v41  ;;  %v1675_v47 = vsel %vm1419_vm9, %v3359_v35, %v1547_v39 }
 0x181   : > { %v3424_v46 = vpop.f32.mrb[62].mxu1  ;;  %vm1417_vm11 = vcmp.gt.f32.partialorder %v1086_v40, 0.0  ;;  %vm1420_vm12 = vcmp.gt.f32.partialorder %v3360_v45, 0.0  ;;  %v1548_v48 = vmul.f32 0.2, %v3360_v45  ;;  %v1089_v49 = vpop.f32.mrb[63].mxu0  ;;  %v1739_v55 = vsel %vm1483_vm10, %v3423_v36, %v1611_v42 }
 0x182   : > { %v1345_v50 = vpop.f32.mrb[63].mxu1  ;;  %vm1481_vm13 = vcmp.gt.f32.partialorder %v1342_v41, 0.0  ;;  %vm1484_vm14 = vcmp.gt.f32.partialorder %v3424_v46, 0.0  ;;  %v1612_v51 = vmul.f32 0.2, %v3424_v46  ;;  %vm1418_vm15 = vcmp.gt.f32.partialorder %v1089_v49, 0.0 }
 0x183   : > { %v1676_v52 = vsel %vm1420_vm12, %v3360_v45, %v1548_v48  ;;  %v1546_v53 = vmul.f32 0.2, %v1089_v49  ;;  %vm1482_vm0 = vcmp.gt.f32.partialorder %v1345_v50, 0.0  ;;  %v1610_v54 = vmul.f32 0.2, %v1345_v50 }
 0x184   : > { %v1673_v56 = vsel %vm1417_vm11, %v1086_v40, %v1545_v43  ;;  %v3005_v57 = vpack.c.bf16 %v1676_v52, %v1675_v47  ;;  %v1740_v58 = vsel %vm1484_vm14, %v3424_v46, %v1612_v51  ;;  %v1737_v59 = vsel %vm1481_vm13, %v1342_v41, %v1609_v44 }
 0x185   : > { %v3165_v60 = vpack.c.bf16 %v1740_v58, %v1739_v55  ;;  %v1674_v61 = vsel %vm1418_vm15, %v1089_v49, %v1546_v53  ;;  %v1738_v62 = vsel %vm1482_vm0, %v1345_v50, %v1610_v54 }
 0x186   : > { %3197 = vst [vmem:[%s3764_s7 + $0xf8] sm:$0xff] %v3005_v57   ;;  %v3000_v63 = vpack.c.bf16 %v1674_v61, %v1673_v56  ;;  %v3160_v0 = vpack.c.bf16 %v1738_v62, %v1737_v59 }
 0x187   : > { %3229 = vst [vmem:[%s3764_s7 + $0x1f8] sm:$0xff] %v3165_v60  }
 0x188   : > { %3196 = vst [vmem:[%s3764_s7 + $0xf0] sm:$0xff] %v3000_v63   ;;  %3228 = vst [vmem:[%s3764_s7 + $0x1f0] sm:$0xff] %v3160_v0  }
 0x189 PF: > { %s13_s9 = sadd.s32 1, %s3551_s9  }
 0x18a   : > { %p10_p3 = scmp.ge.s32.totalorder %s13_s9, 4  }
 0x18c   :  { %12 = sbr.rel (!%p10_p3) target bundleno = 1 (0x1), region = 63 }
 0x193   :  { %2403 = vsyncpa [#allocation3], 1 }
 0x194   :  { %2405 = vsyncpa [#allocation3 + $0x1], 1 }

// kernel: _lambda_.8
= control target key start
LH: loop header
LB: loop body
LE: loop exit
PB: predicated region body
PF: predicated region fallthrough
CT: control target
= control target key end

     0   :  { %s915_s12 = smov 0   ;;  %s1050_s0 = inlined_call_operand.vmem [shape: bf16[512,128], index: 0, kind: input, shape index: {}]   ;;  %s1051_s1 = inlined_call_operand.vmem [shape: f32[1,128], index: 1, kind: input, shape index: {}]   ;;  %s1052_s2 = inlined_call_operand.vmem [shape: f32[1,128], index: 2, kind: input, shape index: {}]   ;;  %s1053_s3 = inlined_call_operand.vmem [shape: bf16[512,128], index: 3, kind: output, shape index: {}]  }
   0x1 LB: > { %s628_s13 = sadd.s32 4294967295, %s893_s12   ;;  %p632_p0 = scmp.ge.s32.totalorder %s893_s12, 1  ;;  %s893_s12 = sphi %s915_s12, %s13_s12  }
   0x2   : > { %p138_p1 = scmp.lt.s32.totalorder %s893_s12, 3 }
   0x4   : > { %p139_p2 = pnand %p632_p0, %p138_p1 }
   0x5   : > { %s633_s14 = sshll.u32 (!%p139_p2), %s628_s13, 5  ;;  %v936_v0 = vld [vmem:[%s1051_s1] ss:$0 sm:$0xff] (!%p139_p2) }
   0x6   : > { %142 = sbr.rel (%p139_p2) target bundleno = 76 (0x4c), region = 32  ;;  %p163_p3 = scmp.lt.s32.totalorder (!%p139_p2), %s633_s14, 63  ;;  %v945_v9 = vld [vmem:[%s1052_s2] ss:$0 sm:$0xff] (!%p139_p2) }
   0xd   : > { %s1055_s14 = smov (!%p163_p3, %s633_s14), 63 }
   0xe   : > { %s634_s15 = sshll.u32 %s1055_s14, 2 }
   0xf   : > { %s931_s18 = scalar_lea.vmem %s1050_s0, %s634_s15  ;;  %s968_s25 = scalar_lea.vmem %s1053_s3, %s634_s15 }
  0x10   : > { %v706_v1 = vld [vmem:[%s931_s18] sm:$0xff]   ;;  %v849_v2 = vld [vmem:[%s931_s18 + $0x8] sm:$0xff]   ;;  %v850_v3 = vld [vmem:[%s931_s18 + $0x10] sm:$0xff]  }
  0x11   : > { %v707_v4 = vunpack.c.l.bf16 %v706_v1  ;;  %v708_v5 = vunpack.c.h.bf16 %v706_v1  ;;  %v711_v6 = vunpack.c.l.bf16 %v849_v2  ;;  %v712_v7 = vunpack.c.h.bf16 %v849_v2  ;;  %v851_v8 = vld [vmem:[%s931_s18 + $0x18] sm:$0xff]   ;;  %v852_v36 = vld [vmem:[%s931_s18 + $0x20] sm:$0xff]   ;;  %v853_v41 = vld [vmem:[%s931_s18 + $0x28] sm:$0xff]  }
  0x12   : > { %v715_v10 = vunpack.c.l.bf16 %v850_v3  ;;  %v716_v11 = vunpack.c.h.bf16 %v850_v3  ;;  %v719_v12 = vunpack.c.l.bf16 %v851_v8  ;;  %v720_v13 = vunpack.c.h.bf16 %v851_v8  ;;  %v854_v52 = vld [vmem:[%s931_s18 + $0x30] sm:$0xff]   ;;  %v855_v53 = vld [vmem:[%s931_s18 + $0x38] sm:$0xff]  }
  0x13   : > { %v245_v14 = vmul.f32 %v707_v4, %v936_v0  ;;  %v246_v15 = vmul.f32 %v708_v5, %v936_v0  ;;  %v247_v16 = vmul.f32 %v711_v6, %v936_v0  ;;  %v248_v17 = vmul.f32 %v712_v7, %v936_v0 }
  0x14   : > { %v249_v18 = vmul.f32 %v715_v10, %v936_v0  ;;  %v250_v19 = vmul.f32 %v716_v11, %v936_v0  ;;  %v251_v20 = vmul.f32 %v719_v12, %v936_v0  ;;  %v252_v21 = vmul.f32 %v720_v13, %v936_v0 }
  0x15   : > { %v284_v22 = vadd.f32 %v945_v9, %v245_v14  ;;  %v285_v23 = vadd.f32 %v945_v9, %v246_v15  ;;  %v286_v24 = vadd.f32 %v945_v9, %v247_v16  ;;  %v287_v25 = vadd.f32 %v945_v9, %v248_v17 }
  0x16   : > { %v288_v26 = vadd.f32 %v945_v9, %v249_v18  ;;  %v289_v27 = vadd.f32 %v945_v9, %v250_v19  ;;  %v290_v28 = vadd.f32 %v945_v9, %v251_v20  ;;  %v291_v29 = vadd.f32 %v945_v9, %v252_v21  ;;  %v856_v20 = vld [vmem:[%s931_s18 + $0x40] sm:$0xff]  }
  0x17   : > { %vm316_vm0 = vcmp.gt.f32.partialorder %v284_v22, 0.0  ;;  %vm317_vm1 = vcmp.gt.f32.partialorder %v285_v23, 0.0  ;;  %v348_v30 = vmul.f32 0.2, %v284_v22  ;;  %v349_v31 = vmul.f32 0.2, %v285_v23 }
  0x18   : > { %vm318_vm2 = vcmp.gt.f32.partialorder %v286_v24, 0.0  ;;  %vm319_vm3 = vcmp.gt.f32.partialorder %v287_v25, 0.0  ;;  %v350_v32 = vmul.f32 0.2, %v286_v24  ;;  %v351_v33 = vmul.f32 0.2, %v287_v25 }
  0x19   : > { %v380_v34 = vsel %vm316_vm0, %v284_v22, %v348_v30  ;;  %v381_v35 = vsel %vm317_vm1, %v285_v23, %v349_v31  ;;  %vm320_vm4 = vcmp.gt.f32.partialorder %v288_v26, 0.0  ;;  %vm321_vm5 = vcmp.gt.f32.partialorder %v289_v27, 0.0 }
  0x1a   : > { %v772_v37 = vpack.c.bf16 %v381_v35, %v380_v34  ;;  %v382_v38 = vsel %vm318_vm2, %v286_v24, %v350_v32  ;;  %v383_v39 = vsel %vm319_vm3, %v287_v25, %v351_v33  ;;  %v352_v40 = vmul.f32 0.2, %v288_v26  ;;  %v857_v24 = vld [vmem:[%s931_s18 + $0x48] sm:$0xff]  }
  0x1b   : > { %v777_v42 = vpack.c.bf16 %v383_v39, %v382_v38  ;;  %v353_v43 = vmul.f32 0.2, %v289_v27  ;;  %vm322_vm6 = vcmp.gt.f32.partialorder %v290_v28, 0.0  ;;  %vm323_vm7 = vcmp.gt.f32.partialorder %v291_v29, 0.0 }
  0x1c   : > { %773 = vst [vmem:[%s968_s25] sm:$0xff] %v772_v37   ;;  %v384_v44 = vsel %vm320_vm4, %v288_v26, %v352_v40  ;;  %v354_v45 = vmul.f32 0.2, %v290_v28  ;;  %v355_v46 = vmul.f32 0.2, %v291_v29  ;;  %v723_v47 = vunpack.c.l.bf16 %v852_v36 }
  0x1d   : > { %864 = vst [vmem:[%s968_s25 + $0x8] sm:$0xff] %v777_v42   ;;  %v385_v48 = vsel %vm321_vm5, %v289_v27, %v353_v43  ;;  %v724_v49 = vunpack.c.h.bf16 %v852_v36  ;;  %v727_v50 = vunpack.c.l.bf16 %v853_v41  ;;  %v728_v51 = vunpack.c.h.bf16 %v853_v41  ;;  %v858_v36 = vld [vmem:[%s931_s18 + $0x50] sm:$0xff]  }
  0x1e   : > { %v782_v54 = vpack.c.bf16 %v385_v48, %v384_v44  ;;  %v386_v55 = vsel %vm322_vm6, %v290_v28, %v354_v45  ;;  %v387_v56 = vsel %vm323_vm7, %v291_v29, %v355_v46  ;;  %v253_v57 = vmul.f32 %v723_v47, %v936_v0 }
  0x1f   : > { %v787_v58 = vpack.c.bf16 %v387_v56, %v386_v55  ;;  %v254_v59 = vmul.f32 %v724_v49, %v936_v0  ;;  %v255_v60 = vmul.f32 %v727_v50, %v936_v0  ;;  %v256_v61 = vmul.f32 %v728_v51, %v936_v0  ;;  %v859_v55 = vld [vmem:[%s931_s18 + $0x58] sm:$0xff]  }
  0x20   : > { %865 = vst [vmem:[%s968_s25 + $0x10] sm:$0xff] %v782_v54   ;;  %v292_v62 = vadd.f32 %v945_v9, %v253_v57  ;;  %v731_v63 = vunpack.c.l.bf16 %v854_v52  ;;  %v732_v1 = vunpack.c.h.bf16 %v854_v52  ;;  %v735_v2 = vunpack.c.l.bf16 %v855_v53 }
  0x21   : > { %866 = vst [vmem:[%s968_s25 + $0x18] sm:$0xff] %v787_v58   ;;  %v293_v3 = vadd.f32 %v945_v9, %v254_v59  ;;  %v294_v4 = vadd.f32 %v945_v9, %v255_v60  ;;  %v295_v5 = vadd.f32 %v945_v9, %v256_v61  ;;  %v736_v6 = vunpack.c.h.bf16 %v855_v53 }
  0x22   : > { %vm324_vm8 = vcmp.gt.f32.partialorder %v292_v62, 0.0  ;;  %v356_v7 = vmul.f32 0.2, %v292_v62  ;;  %v257_v8 = vmul.f32 %v731_v63, %v936_v0  ;;  %v258_v10 = vmul.f32 %v732_v1, %v936_v0  ;;  %v860_v1 = vld [vmem:[%s931_s18 + $0x60] sm:$0xff]  }
  0x23   : > { %vm325_vm9 = vcmp.gt.f32.partialorder %v293_v3, 0.0  ;;  %v357_v11 = vmul.f32 0.2, %v293_v3  ;;  %vm326_vm10 = vcmp.gt.f32.partialorder %v294_v4, 0.0  ;;  %vm327_vm11 = vcmp.gt.f32.partialorder %v295_v5, 0.0 }
  0x24   : > { %v388_v12 = vsel %vm324_vm8, %v292_v62, %v356_v7  ;;  %v358_v13 = vmul.f32 0.2, %v294_v4  ;;  %v359_v14 = vmul.f32 0.2, %v295_v5  ;;  %v296_v15 = vadd.f32 %v945_v9, %v257_v8 }
  0x25   : > { %v389_v16 = vsel %vm325_vm9, %v293_v3, %v357_v11  ;;  %v297_v17 = vadd.f32 %v945_v9, %v258_v10  ;;  %v259_v18 = vmul.f32 %v735_v2, %v936_v0  ;;  %v260_v19 = vmul.f32 %v736_v6, %v936_v0  ;;  %v861_v6 = vld [vmem:[%s931_s18 + $0x68] sm:$0xff]  }
  0x26   : > { %v792_v21 = vpack.c.bf16 %v389_v16, %v388_v12  ;;  %v390_v22 = vsel %vm326_vm10, %v294_v4, %v358_v13  ;;  %v391_v23 = vsel %vm327_vm11, %v295_v5, %v359_v14  ;;  %vm328_vm12 = vcmp.gt.f32.partialorder %v296_v15, 0.0 }
  0x27   : > { %v797_v25 = vpack.c.bf16 %v391_v23, %v390_v22  ;;  %vm329_vm13 = vcmp.gt.f32.partialorder %v297_v17, 0.0  ;;  %v360_v26 = vmul.f32 0.2, %v296_v15  ;;  %v361_v27 = vmul.f32 0.2, %v297_v17  ;;  %v862_v22 = vld [vmem:[%s931_s18 + $0x70] sm:$0xff]  }
  0x28   : > { %867 = vst [vmem:[%s968_s25 + $0x20] sm:$0xff] %v792_v21   ;;  %v298_v28 = vadd.f32 %v945_v9, %v259_v18  ;;  %v299_v29 = vadd.f32 %v945_v9, %v260_v19  ;;  %v739_v30 = vunpack.c.l.bf16 %v856_v20  ;;  %v740_v31 = vunpack.c.h.bf16 %v856_v20 }
  0x29   : > { %868 = vst [vmem:[%s968_s25 + $0x28] sm:$0xff] %v797_v25   ;;  %v392_v32 = vsel %vm328_vm12, %v296_v15, %v360_v26  ;;  %v393_v33 = vsel %vm329_vm13, %v297_v17, %v361_v27  ;;  %v743_v34 = vunpack.c.l.bf16 %v857_v24  ;;  %v744_v35 = vunpack.c.h.bf16 %v857_v24 }
  0x2a   : > { %v802_v37 = vpack.c.bf16 %v393_v33, %v392_v32  ;;  %vm330_vm14 = vcmp.gt.f32.partialorder %v298_v28, 0.0  ;;  %vm331_vm15 = vcmp.gt.f32.partialorder %v299_v29, 0.0  ;;  %v362_v38 = vmul.f32 0.2, %v298_v28 }
  0x2b   : > { %v363_v39 = vmul.f32 0.2, %v299_v29  ;;  %v261_v40 = vmul.f32 %v739_v30, %v936_v0  ;;  %v262_v41 = vmul.f32 %v740_v31, %v936_v0  ;;  %v263_v42 = vmul.f32 %v743_v34, %v936_v0 }
  0x2c   : > { %869 = vst [vmem:[%s968_s25 + $0x30] sm:$0xff] %v802_v37   ;;  %v394_v43 = vsel %vm330_vm14, %v298_v28, %v362_v38  ;;  %v264_v44 = vmul.f32 %v744_v35, %v936_v0  ;;  %v747_v45 = vunpack.c.l.bf16 %v858_v36  ;;  %v748_v46 = vunpack.c.h.bf16 %v858_v36 }
  0x2d   : > { %v395_v47 = vsel %vm331_vm15, %v299_v29, %v363_v39  ;;  %v300_v48 = vadd.f32 %v945_v9, %v261_v40  ;;  %v301_v49 = vadd.f32 %v945_v9, %v262_v41  ;;  %v302_v50 = vadd.f32 %v945_v9, %v263_v42  ;;  %v863_v41 = vld [vmem:[%s931_s18 + $0x78] sm:$0xff]  }
  0x2e   : > { %v807_v51 = vpack.c.bf16 %v395_v47, %v394_v43  ;;  %v303_v52 = vadd.f32 %v945_v9, %v264_v44  ;;  %v265_v53 = vmul.f32 %v747_v45, %v936_v0  ;;  %v266_v54 = vmul.f32 %v748_v46, %v936_v0 }
  0x2f   : > { %vm332_vm0 = vcmp.gt.f32.partialorder %v300_v48, 0.0  ;;  %vm333_vm1 = vcmp.gt.f32.partialorder %v301_v49, 0.0  ;;  %v364_v56 = vmul.f32 0.2, %v300_v48  ;;  %v365_v57 = vmul.f32 0.2, %v301_v49 }
  0x30   : > { %870 = vst [vmem:[%s968_s25 + $0x38] sm:$0xff] %v807_v51   ;;  %vm334_vm2 = vcmp.gt.f32.partialorder %v302_v50, 0.0  ;;  %vm335_vm3 = vcmp.gt.f32.partialorder %v303_v52, 0.0  ;;  %v366_v58 = vmul.f32 0.2, %v302_v50  ;;  %v304_v62 = vadd.f32 %v945_v9, %v265_v53 }
  0x31   : > { %v367_v59 = vmul.f32 0.2, %v303_v52  ;;  %v396_v60 = vsel %vm332_vm0, %v300_v48, %v364_v56  ;;  %v397_v61 = vsel %vm333_vm1, %v301_v49, %v365_v57  ;;  %v305_v63 = vadd.f32 %v945_v9, %v266_v54 }
  0x32   : > { %v812_v2 = vpack.c.bf16 %v397_v61, %v396_v60  ;;  %v398_v3 = vsel %vm334_vm2, %v302_v50, %v366_v58  ;;  %v751_v5 = vunpack.c.l.bf16 %v859_v55  ;;  %vm336_vm4 = vcmp.gt.f32.partialorder %v304_v62, 0.0 }
  0x33   : > { %v399_v4 = vsel %vm335_vm3, %v303_v52, %v367_v59  ;;  %vm337_vm5 = vcmp.gt.f32.partialorder %v305_v63, 0.0  ;;  %v368_v8 = vmul.f32 0.2, %v304_v62  ;;  %v369_v10 = vmul.f32 0.2, %v305_v63 }
  0x34   : > { %v817_v7 = vpack.c.bf16 %v399_v4, %v398_v3  ;;  %871 = vst [vmem:[%s968_s25 + $0x40] sm:$0xff] %v812_v2   ;;  %v752_v11 = vunpack.c.h.bf16 %v859_v55  ;;  %v267_v12 = vmul.f32 %v751_v5, %v936_v0  ;;  %v755_v13 = vunpack.c.l.bf16 %v860_v1 }
  0x35   : > { %v400_v14 = vsel %vm336_vm4, %v304_v62, %v368_v8  ;;  %v756_v15 = vunpack.c.h.bf16 %v860_v1  ;;  %v759_v16 = vunpack.c.l.bf16 %v861_v6  ;;  %v760_v17 = vunpack.c.h.bf16 %v861_v6 }
  0x36   : > { %872 = vst [vmem:[%s968_s25 + $0x48] sm:$0xff] %v817_v7   ;;  %v401_v18 = vsel %vm337_vm5, %v305_v63, %v369_v10  ;;  %v268_v19 = vmul.f32 %v752_v11, %v936_v0  ;;  %v306_v20 = vadd.f32 %v945_v9, %v267_v12  ;;  %v269_v21 = vmul.f32 %v755_v13, %v936_v0 }
  0x37   : > { %v822_v23 = vpack.c.bf16 %v401_v18, %v400_v14  ;;  %v270_v24 = vmul.f32 %v756_v15, %v936_v0  ;;  %v271_v25 = vmul.f32 %v759_v16, %v936_v0  ;;  %v272_v26 = vmul.f32 %v760_v17, %v936_v0 }
  0x38   : > { %v307_v27 = vadd.f32 %v945_v9, %v268_v19  ;;  %vm338_vm6 = vcmp.gt.f32.partialorder %v306_v20, 0.0  ;;  %v370_v28 = vmul.f32 0.2, %v306_v20  ;;  %v308_v29 = vadd.f32 %v945_v9, %v269_v21 }
  0x39   : > { %873 = vst [vmem:[%s968_s25 + $0x50] sm:$0xff] %v822_v23   ;;  %v309_v30 = vadd.f32 %v945_v9, %v270_v24  ;;  %v310_v31 = vadd.f32 %v945_v9, %v271_v25  ;;  %v311_v32 = vadd.f32 %v945_v9, %v272_v26  ;;  %v763_v33 = vunpack.c.l.bf16 %v862_v22 }
  0x3a   : > { %vm339_vm7 = vcmp.gt.f32.partialorder %v307_v27, 0.0  ;;  %v371_v34 = vmul.f32 0.2, %v307_v27  ;;  %v402_v35 = vsel %vm338_vm6, %v306_v20, %v370_v28  ;;  %vm340_vm8 = vcmp.gt.f32.partialorder %v308_v29, 0.0 }
  0x3b   : > { %vm341_vm9 = vcmp.gt.f32.partialorder %v309_v30, 0.0  ;;  %v372_v36 = vmul.f32 0.2, %v308_v29  ;;  %v373_v37 = vmul.f32 0.2, %v309_v30  ;;  %vm342_vm10 = vcmp.gt.f32.partialorder %v310_v31, 0.0 }
  0x3c   : > { %v403_v38 = vsel %vm339_vm7, %v307_v27, %v371_v34  ;;  %vm343_vm11 = vcmp.gt.f32.partialorder %v311_v32, 0.0  ;;  %v374_v39 = vmul.f32 0.2, %v310_v31  ;;  %v375_v40 = vmul.f32 0.2, %v311_v32 }
  0x3d   : > { %v827_v42 = vpack.c.bf16 %v403_v38, %v402_v35  ;;  %v404_v43 = vsel %vm340_vm8, %v308_v29, %v372_v36  ;;  %v405_v44 = vsel %vm341_vm9, %v309_v30, %v373_v37  ;;  %v764_v45 = vunpack.c.h.bf16 %v862_v22 }
  0x3e   : > { %v832_v46 = vpack.c.bf16 %v405_v44, %v404_v43  ;;  %v406_v47 = vsel %vm342_vm10, %v310_v31, %v374_v39  ;;  %v407_v48 = vsel %vm343_vm11, %v311_v32, %v375_v40  ;;  %v273_v49 = vmul.f32 %v763_v33, %v936_v0 }
  0x3f   : > { %874 = vst [vmem:[%s968_s25 + $0x58] sm:$0xff] %v827_v42   ;;  %v837_v50 = vpack.c.bf16 %v407_v48, %v406_v47  ;;  %v274_v51 = vmul.f32 %v764_v45, %v936_v0  ;;  %v767_v52 = vunpack.c.l.bf16 %v863_v41  ;;  %v768_v53 = vunpack.c.h.bf16 %v863_v41 }
  0x40   : > { %875 = vst [vmem:[%s968_s25 + $0x60] sm:$0xff] %v832_v46   ;;  %v312_v54 = vadd.f32 %v945_v9, %v273_v49 }
  0x41   : > { %876 = vst [vmem:[%s968_s25 + $0x68] sm:$0xff] %v837_v50   ;;  %v313_v55 = vadd.f32 %v945_v9, %v274_v51  ;;  %v275_v56 = vmul.f32 %v767_v52, %v936_v0  ;;  %v276_v57 = vmul.f32 %v768_v53, %v936_v0 }
  0x42   : > { %vm344_vm12 = vcmp.gt.f32.partialorder %v312_v54, 0.0  ;;  %v376_v58 = vmul.f32 0.2, %v312_v54 }
  0x43   : > { %vm345_vm13 = vcmp.gt.f32.partialorder %v313_v55, 0.0  ;;  %v377_v59 = vmul.f32 0.2, %v313_v55  ;;  %v314_v60 = vadd.f32 %v945_v9, %v275_v56  ;;  %v315_v61 = vadd.f32 %v945_v9, %v276_v57 }
  0x44   : > { %v408_v62 = vsel %vm344_vm12, %v312_v54, %v376_v58 }
  0x45   : > { %v409_v63 = vsel %vm345_vm13, %v313_v55, %v377_v59  ;;  %vm346_vm14 = vcmp.gt.f32.partialorder %v314_v60, 0.0  ;;  %vm347_vm15 = vcmp.gt.f32.partialorder %v315_v61, 0.0  ;;  %v378_v1 = vmul.f32 0.2, %v314_v60 }
  0x46   : > { %v842_v2 = vpack.c.bf16 %v409_v63, %v408_v62  ;;  %v379_v3 = vmul.f32 0.2, %v315_v61 }
  0x47   : > { %v410_v4 = vsel %vm346_vm14, %v314_v60, %v378_v1 }
  0x48   : > { %877 = vst [vmem:[%s968_s25 + $0x70] sm:$0xff] %v842_v2   ;;  %v411_v5 = vsel %vm347_vm15, %v315_v61, %v379_v3 }
  0x49   : > { %v847_v0 = vpack.c.bf16 %v411_v5, %v410_v4 }
  0x4b   : > { %878 = vst [vmem:[%s968_s25 + $0x78] sm:$0xff] %v847_v0  }
  0x4c PF: > { %s13_s12 = sadd.s32 1, %s893_s12  }
  0x4d   : > { %p10_p4 = scmp.ge.s32.totalorder %s13_s12, 4  }
  0x4f   :  { %12 = sbr.rel (!%p10_p4) target bundleno = 1 (0x1), region = 62 }

// kernel: _lambda_.7
= control target key start
LH: loop header
LB: loop body
LE: loop exit
PB: predicated region body
PF: predicated region fallthrough
CT: control target
= control target key end

     0   :  { %s3437_s15 = smov 0   ;;  %s3905_s0 = inlined_call_operand.vmem [shape: bf16[512,1024], index: 0, kind: input, shape index: {}]   ;;  %s3906_s1 = inlined_call_operand.vmem [shape: bf16[1024,128], index: 1, kind: input, shape index: {}]   ;;  %s3907_s2 = inlined_call_operand.vmem [shape: bf16[512,128], index: 2, kind: output, shape index: {0}]   ;;  %s3908_s3 = inlined_call_operand.vmem [shape: f32[2,1,128], index: 3, kind: output, shape index: {1}]   ;;  %s3909_s4 = inlined_call_operand.vmem [shape: f32[2,1,128], index: 4, kind: output, shape index: {2}]  }
   0x1 LB: > { %s3443_s16 = sadd.s32 4294967295, %s3410_s15   ;;  %p2524_p0 = scmp.ge.s32.totalorder %s3410_s15, 1  ;;  %s3410_s15 = sphi %s3437_s15, %s15_s15  }
   0x2   : > { %p169_p1 = scmp.lt.s32.totalorder %s3410_s15, 3 }
   0x4   : > { %p170_p2 = pnand %p2524_p0, %p169_p1 }
   0x5   : > { %v3340_v0 = vld [vmem:[%s3906_s1 + $0x40] sm:$0xff] (!%p170_p2)   ;;  %v3344_v4 = vld [vmem:[%s3906_s1 + $0x48] sm:$0xff] (!%p170_p2)   ;;  %v3348_v8 = vld [vmem:[%s3906_s1 + $0x50] sm:$0xff] (!%p170_p2)   ;;  %s2525_s25 = sshll.u32 (!%p170_p2), %s3443_s16, 5  ;;  %p215_p4 = scmp.lt.s32.totalorder (!%p170_p2), %s3443_s16, 1 }
   0x6   : > { %173 = sbr.rel (%p170_p2) target bundleno = 525 (0x20d), region = 28  ;;  %v3341_v1 = vld [vmem:[%s3906_s1 + $0xc0] sm:$0xff] (!%p170_p2)   ;;  %2884 = vmatprep.subr.bf16.mxu0 (!%p170_p2), %v3340_v0  ;;  %v3345_v5 = vld [vmem:[%s3906_s1 + $0xc8] sm:$0xff] (!%p170_p2)   ;;  %v3349_v9 = vld [vmem:[%s3906_s1 + $0xd0] sm:$0xff] (!%p170_p2)   ;;  %p203_p3 = scmp.lt.s32.totalorder (!%p170_p2), %s2525_s25, 63 }
   0x7   : > { %v3342_v2 = vld [vmem:[%s3906_s1] sm:$0xff] (!%p170_p2)   ;;  %2996 = vmatprep.subr.bf16.mxu1 (!%p170_p2), %v3341_v1  ;;  %v3346_v6 = vld [vmem:[%s3906_s1 + $0x8] sm:$0xff] (!%p170_p2)   ;;  %v3350_v10 = vld [vmem:[%s3906_s1 + $0x10] sm:$0xff] (!%p170_p2)  }
   0x8   : > { %v3343_v3 = vld [vmem:[%s3906_s1 + $0x80] sm:$0xff] (!%p170_p2)   ;;  %2885 = vmatpush3.bf16.msra.mxu0 (!%p170_p2), %v3342_v2  ;;  %v3347_v7 = vld [vmem:[%s3906_s1 + $0x88] sm:$0xff] (!%p170_p2)   ;;  %v3351_v11 = vld [vmem:[%s3906_s1 + $0x90] sm:$0xff] (!%p170_p2)  }
   0x9   : > { %2997 = vmatpush3.bf16.msra.mxu1 (!%p170_p2), %v3343_v3  ;;  %2886 = vmatprep.subr.bf16.mxu0 (!%p170_p2), %v3344_v4  ;;  %v3352_v12 = vld [vmem:[%s3906_s1 + $0x58] sm:$0xff] (!%p170_p2)   ;;  %v3356_v16 = vld [vmem:[%s3906_s1 + $0x60] sm:$0xff] (!%p170_p2)   ;;  %v3360_v20 = vld [vmem:[%s3906_s1 + $0x68] sm:$0xff] (!%p170_p2)  }
   0xa   : > { %2998 = vmatprep.subr.bf16.mxu1 (!%p170_p2), %v3345_v5  ;;  %v3353_v13 = vld [vmem:[%s3906_s1 + $0xd8] sm:$0xff] (!%p170_p2)   ;;  %v3357_v17 = vld [vmem:[%s3906_s1 + $0xe0] sm:$0xff] (!%p170_p2)   ;;  %v3361_v21 = vld [vmem:[%s3906_s1 + $0xe8] sm:$0xff] (!%p170_p2)  }
   0xb   : > { %v3354_v14 = vld [vmem:[%s3906_s1 + $0x18] sm:$0xff] (!%p170_p2)   ;;  %v3358_v18 = vld [vmem:[%s3906_s1 + $0x20] sm:$0xff] (!%p170_p2)   ;;  %v3362_v22 = vld [vmem:[%s3906_s1 + $0x28] sm:$0xff] (!%p170_p2)  }
   0xc   : > { %2887 = vmatpush3.bf16.msra.mxu0 (!%p170_p2), %v3346_v6  ;;  %v3355_v15 = vld [vmem:[%s3906_s1 + $0x98] sm:$0xff] (!%p170_p2)   ;;  %v3359_v19 = vld [vmem:[%s3906_s1 + $0xa0] sm:$0xff] (!%p170_p2)   ;;  %v3363_v23 = vld [vmem:[%s3906_s1 + $0xa8] sm:$0xff] (!%p170_p2)  }
   0xd   : > { %2999 = vmatpush3.bf16.msra.mxu1 %v3347_v7  ;;  %2888 = vmatprep.subr.bf16.mxu0 %v3348_v8  ;;  %s3911_s25 = smov (!%p203_p3, %s2525_s25), 63  ;;  %v3364_v24 = vld [vmem:[%s3906_s1 + $0x70] sm:$0xff]   ;;  %v3368_v28 = vld [vmem:[%s3906_s1 + $0x78] sm:$0xff]   ;;  %v3372_v40 = vld [vmem:[%s3906_s1 + $0x140] sm:$0xff]   ;;  %s3913_s16 = smov (!%p215_p4, %s3443_s16), 1 }
   0xe   : > { %3000 = vmatprep.subr.bf16.mxu1 %v3349_v9  ;;  %v3365_v25 = vld [vmem:[%s3906_s1 + $0xf0] sm:$0xff]   ;;  %s2756_s24 = sshll.u32 %s3911_s25, 5  ;;  %v3369_v29 = vld [vmem:[%s3906_s1 + $0xf8] sm:$0xff]   ;;  %v3373_v41 = vld [vmem:[%s3906_s1 + $0x100] sm:$0xff]   ;;  %s217_s17 = scalar_lea.vmem %s3908_s3, %s3913_s16 }
   0xf   : > { %v3366_v26 = vld [vmem:[%s3906_s1 + $0x30] sm:$0xff]   ;;  %s3544_s8 = scalar_lea.vmem %s3905_s0, %s2756_s24  ;;  %v3370_v30 = vld [vmem:[%s3906_s1 + $0x38] sm:$0xff]   ;;  %v3374_v42 = vld [vmem:[%s3906_s1 + $0x1c0] sm:$0xff]   ;;  %s220_s20 = scalar_lea.vmem %s3909_s4, %s3913_s16 }
  0x10   : > { %2889 = vmatpush3.bf16.msra.mxu0 %v3350_v10  ;;  %v3367_v27 = vld [vmem:[%s3906_s1 + $0xb0] sm:$0xff]   ;;  %v3371_v31 = vld [vmem:[%s3906_s1 + $0xb8] sm:$0xff]   ;;  %v222_v32 = vld [vmem:[%s3544_s8] sm:$0xff] }
  0x11   : > { %3001 = vmatpush3.bf16.msra.mxu1 %v3351_v11  ;;  %2890 = vmatprep.subr.bf16.mxu0 %v3352_v12  ;;  %v226_v33 = vld [vmem:[%s3544_s8 + $0x20] sm:$0xff]  ;;  %v223_v34 = vld [vmem:[%s3544_s8 + $0x8] sm:$0xff]  ;;  %v3380_v2 = vld [vmem:[%s3906_s1 + $0x150] sm:$0xff]  }
  0x12   : > { %3002 = vmatprep.subr.bf16.mxu1 %v3353_v13  ;;  %v2530_v35 = vcombine.low %v222_v32, %v226_v33  ;;  %v2531_v36 = vcombine.high %v222_v32, %v226_v33  ;;  %v227_v37 = vld [vmem:[%s3544_s8 + $0x28] sm:$0xff]  ;;  %v3375_v43 = vld [vmem:[%s3906_s1 + $0x180] sm:$0xff]   ;;  %v3381_v4 = vld [vmem:[%s3906_s1 + $0x110] sm:$0xff]  }
  0x13   : > { %v2532_v38 = vcombine.low %v223_v34, %v227_v37  ;;  %v2533_v39 = vcombine.high %v223_v34, %v227_v37  ;;  %v230_v44 = vld [vmem:[%s3544_s8 + $0x40] sm:$0xff]  ;;  %v231_v47 = vld [vmem:[%s3544_s8 + $0x48] sm:$0xff]  ;;  %v3382_v7 = vld [vmem:[%s3906_s1 + $0x1d0] sm:$0xff]  }
  0x14   : > { %2891 = vmatpush3.bf16.msra.mxu0 %v3354_v14  ;;  %1534 = vmatprep.mubr.bf16.mxu0 %v2531_v36  ;;  %v234_v45 = vld [vmem:[%s3544_s8 + $0x60] sm:$0xff]  ;;  %v235_v48 = vld [vmem:[%s3544_s8 + $0x68] sm:$0xff]  ;;  %v3383_v9 = vld [vmem:[%s3906_s1 + $0x190] sm:$0xff]  }
  0x15   : > { %3003 = vmatpush3.bf16.msra.mxu1 %v3355_v15  ;;  %2892 = vmatprep.subr.bf16.mxu0 %v3356_v16  ;;  %v2539_v46 = vcombine.high %v230_v44, %v234_v45  ;;  %v238_v49 = vld [vmem:[%s3544_s8 + $0x80] sm:$0xff]  ;;  %v2541_v50 = vcombine.high %v231_v47, %v235_v48  ;;  %v239_v52 = vld [vmem:[%s3544_s8 + $0x88] sm:$0xff]  ;;  %v2538_v54 = vcombine.low %v230_v44, %v234_v45  ;;  %v3384_v14 = vld [vmem:[%s3906_s1 + $0x158] sm:$0xff]  }
  0x16   : > { %3004 = vmatprep.subr.bf16.mxu1 %v3357_v17  ;;  %1695 = vmatprep.mubr.bf16.mxu1 %v2533_v39  ;;  %v242_v51 = vld [vmem:[%s3544_s8 + $0xa0] sm:$0xff]  ;;  %v243_v53 = vld [vmem:[%s3544_s8 + $0xa8] sm:$0xff]  ;;  %v2540_v56 = vcombine.low %v231_v47, %v235_v48  ;;  %v3385_v15 = vld [vmem:[%s3906_s1 + $0x118] sm:$0xff]  }
  0x17   : > { %v3376_v55 = vld [vmem:[%s3906_s1 + $0x148] sm:$0xff]   ;;  %v2547_v57 = vcombine.high %v238_v49, %v242_v51  ;;  %v2549_v59 = vcombine.high %v239_v52, %v243_v53  ;;  %v246_v62 = vld [vmem:[%s3544_s8 + $0xc0] sm:$0xff]  ;;  %v2546_v3 = vcombine.low %v238_v49, %v242_v51  ;;  %v2548_v5 = vcombine.low %v239_v52, %v243_v53  ;;  %v3386_v17 = vld [vmem:[%s3906_s1 + $0x1d8] sm:$0xff]  }
  0x18   : > { %2893 = vmatpush3.bf16.msra.mxu0 %v3358_v18  ;;  %v3377_v58 = vld [vmem:[%s3906_s1 + $0x108] sm:$0xff]   ;;  %v250_v63 = vld [vmem:[%s3544_s8 + $0xe0] sm:$0xff]  ;;  %v3397_v47 = vld [vmem:[%s3906_s1 + $0x130] sm:$0xff]  }
  0x19   : > { %3005 = vmatpush3.bf16.msra.mxu1 %v3359_v19  ;;  %2894 = vmatprep.subr.bf16.mxu0 %v3360_v20  ;;  %v3378_v60 = vld [vmem:[%s3906_s1 + $0x1c8] sm:$0xff]   ;;  %v2555_v6 = vcombine.high %v246_v62, %v250_v63  ;;  %v254_v10 = vld [vmem:[%s3544_s8 + $0x100] sm:$0xff]  ;;  %v2554_v16 = vcombine.low %v246_v62, %v250_v63  ;;  %v3387_v20 = vld [vmem:[%s3906_s1 + $0x198] sm:$0xff]  }
  0x1a   : > { %3006 = vmatprep.subr.bf16.mxu1 %v3361_v21  ;;  %v3379_v61 = vld [vmem:[%s3906_s1 + $0x188] sm:$0xff]   ;;  %v258_v11 = vld [vmem:[%s3544_s8 + $0x120] sm:$0xff]  ;;  %v3398_v48 = vld [vmem:[%s3906_s1 + $0x1f0] sm:$0xff]  }
  0x1b   : > { %v247_v0 = vld [vmem:[%s3544_s8 + $0xc8] sm:$0xff]  ;;  %v2563_v19 = vcombine.high %v254_v10, %v258_v11  ;;  %v3399_v49 = vld [vmem:[%s3906_s1 + $0x1b0] sm:$0xff]   ;;  %v282_v51 = vld [vmem:[%s3544_s8 + $0x1e0] sm:$0xff] }
  0x1c   : > { %2895 = vmatpush3.bf16.msra.mxu0 %v3362_v22  ;;  %v251_v1 = vld [vmem:[%s3544_s8 + $0xe8] sm:$0xff]  ;;  %v262_v22 = vld [vmem:[%s3544_s8 + $0x140] sm:$0xff] }
  0x1d   : > { %3007 = vmatpush3.bf16.msra.mxu1 %v3363_v23  ;;  %2896 = vmatprep.subr.bf16.mxu0 %v3364_v24  ;;  %v2557_v8 = vcombine.high %v247_v0, %v251_v1  ;;  %v255_v12 = vld [vmem:[%s3544_s8 + $0x108] sm:$0xff]  ;;  %v2556_v18 = vcombine.low %v247_v0, %v251_v1  ;;  %v266_v23 = vld [vmem:[%s3544_s8 + $0x160] sm:$0xff] }
  0x1e   : > { %3008 = vmatprep.subr.bf16.mxu1 %v3365_v25  ;;  %v259_v13 = vld [vmem:[%s3544_s8 + $0x128] sm:$0xff]  ;;  %v3388_v24 = vld [vmem:[%s3906_s1 + $0x160] sm:$0xff]   ;;  %v2571_v32 = vcombine.high %v262_v22, %v266_v23 }
  0x1f   : > { %v2565_v21 = vcombine.high %v255_v12, %v259_v13  ;;  %v263_v25 = vld [vmem:[%s3544_s8 + $0x148] sm:$0xff]  ;;  %v286_v62 = vld [vmem:[%s3544_s8 + $0x200] sm:$0xff] }
  0x20   : > { %2897 = vmatpush3.bf16.msra.mxu0 %v3366_v26  ;;  %v267_v26 = vld [vmem:[%s3544_s8 + $0x168] sm:$0xff]  ;;  %v290_v63 = vld [vmem:[%s3544_s8 + $0x220] sm:$0xff] }
  0x21   : > { %3009 = vmatpush3.bf16.msra.mxu1 %v3367_v27  ;;  %2898 = vmatprep.subr.bf16.mxu0 %v3368_v28  ;;  %v3389_v27 = vld [vmem:[%s3906_s1 + $0x120] sm:$0xff]   ;;  %v2573_v33 = vcombine.high %v263_v25, %v267_v26  ;;  %v3392_v34 = vld [vmem:[%s3906_s1 + $0x168] sm:$0xff]  }
  0x22   : > { %3010 = vmatprep.subr.bf16.mxu1 %v3369_v29  ;;  %v3390_v28 = vld [vmem:[%s3906_s1 + $0x1e0] sm:$0xff]   ;;  %v3393_v36 = vld [vmem:[%s3906_s1 + $0x128] sm:$0xff]  }
  0x23   : > { %v3391_v29 = vld [vmem:[%s3906_s1 + $0x1a0] sm:$0xff]   ;;  %v3394_v37 = vld [vmem:[%s3906_s1 + $0x1e8] sm:$0xff]  }
  0x24   : > { %2899 = vmatpush3.bf16.msra.mxu0 %v3370_v30  ;;  %v2562_v30 = vcombine.low %v254_v10, %v258_v11  ;;  %v3395_v39 = vld [vmem:[%s3906_s1 + $0x1a8] sm:$0xff]   ;;  %v2594_v10 = vcombine.low %v286_v62, %v290_v63 }
  0x25   : > { %3011 = vmatpush3.bf16.msra.mxu1 %v3371_v31  ;;  %3108 = vmatprep.subr.bf16.mxu0 %v3372_v40  ;;  %v2564_v31 = vcombine.low %v255_v12, %v259_v13  ;;  %v271_v40 = vld [vmem:[%s3544_s8 + $0x188] sm:$0xff] }
  0x26   : > { %3220 = vmatprep.subr.bf16.mxu1 %v3374_v42  ;;  %v2570_v42 = vcombine.low %v262_v22, %v266_v23  ;;  %v279_v52 = vld [vmem:[%s3544_s8 + $0x1c8] sm:$0xff]  ;;  %v310_v22 = vld [vmem:[%s3544_s8 + $0x2c0] sm:$0xff] }
  0x27   : > { %1535 = vmatmul.mubr.bf16.vlgmr.msra.gmra.mrb[0].mxu0 %v2530_v35  ;;  %v270_v35 = vld [vmem:[%s3544_s8 + $0x180] sm:$0xff]  ;;  %v283_v53 = vld [vmem:[%s3544_s8 + $0x1e8] sm:$0xff] }
  0x28   : > { %1696 = vmatmul.mubr.bf16.vlgmr.msra.gmra.mrb[0].mxu1 %v2532_v38  ;;  %3109 = vmatpush3.bf16.msra.mxu0 %v3373_v41  ;;  %v274_v38 = vld [vmem:[%s3544_s8 + $0x1a0] sm:$0xff]  ;;  %v275_v41 = vld [vmem:[%s3544_s8 + $0x1a8] sm:$0xff] }
  0x29   : > { %3221 = vmatpush3.bf16.msra.mxu1 %v3375_v43  ;;  %1542 = vmatprep.mubr.bf16.mxu0 %v2539_v46  ;;  %v2572_v43 = vcombine.low %v263_v25, %v267_v26  ;;  %v2579_v44 = vcombine.high %v270_v35, %v274_v38  ;;  %v2581_v45 = vcombine.high %v271_v40, %v275_v41  ;;  %v3396_v46 = vld [vmem:[%s3906_s1 + $0x170] sm:$0xff]   ;;  %v287_v0 = vld [vmem:[%s3544_s8 + $0x208] sm:$0xff]  ;;  %v314_v23 = vld [vmem:[%s3544_s8 + $0x2e0] sm:$0xff] }
  0x2a   : > { %1703 = vmatprep.mubr.bf16.mxu1 %v2541_v50  ;;  %3110 = vmatprep.subr.bf16.mxu0 %v3376_v55  ;;  %v278_v50 = vld [vmem:[%s3544_s8 + $0x1c0] sm:$0xff]  ;;  %v3400_v55 = vld [vmem:[%s3906_s1 + $0x178] sm:$0xff]   ;;  %v291_v1 = vld [vmem:[%s3544_s8 + $0x228] sm:$0xff] }
  0x2b   : > { %3222 = vmatprep.subr.bf16.mxu1 %v3378_v60  ;;  %v3402_v60 = vld [vmem:[%s3906_s1 + $0x1f8] sm:$0xff]   ;;  %v2596_v11 = vcombine.low %v287_v0, %v291_v1  ;;  %v315_v25 = vld [vmem:[%s3544_s8 + $0x2e8] sm:$0xff] }
  0x2c   : > { %3111 = vmatpush3.bf16.msra.mxu0 %v3377_v58  ;;  %v3401_v58 = vld [vmem:[%s3906_s1 + $0x138] sm:$0xff]  }
  0x2d   : > { %3223 = vmatpush3.bf16.msra.mxu1 %v3379_v61  ;;  %3112 = vmatprep.subr.bf16.mxu0 %v3380_v2  ;;  %v3403_v61 = vld [vmem:[%s3906_s1 + $0x1b8] sm:$0xff]   ;;  %v2586_v2 = vcombine.low %v278_v50, %v282_v51 }
  0x2e   : > { %3224 = vmatprep.subr.bf16.mxu1 %v3382_v7  ;;  %v298_v7 = vld [vmem:[%s3544_s8 + $0x260] sm:$0xff] }
  0x2f   : > { %1543 = vmatmul.mubr.bf16.gmra.mrb[4].mxu0 %v2538_v54  ;;  %v2578_v54 = vcombine.low %v270_v35, %v274_v38  ;;  %v326_v38 = vld [vmem:[%s3544_s8 + $0x340] sm:$0xff] }
  0x30   : > { %1704 = vmatmul.mubr.bf16.gmra.mrb[4].mxu1 %v2540_v56  ;;  %1550 = vmatprep.mubr.bf16.mxu0 %v2547_v57  ;;  %v2580_v56 = vcombine.low %v271_v40, %v275_v41  ;;  %v2587_v57 = vcombine.high %v278_v50, %v282_v51  ;;  %v327_v40 = vld [vmem:[%s3544_s8 + $0x348] sm:$0xff] }
  0x31   : > { %1711 = vmatprep.mubr.bf16.mxu1 %v2549_v59  ;;  %3113 = vmatpush3.bf16.msra.mxu0 %v3381_v4  ;;  %v2589_v59 = vcombine.high %v279_v52, %v283_v53  ;;  %v2595_v4 = vcombine.high %v286_v62, %v290_v63  ;;  %v331_v41 = vld [vmem:[%s3544_s8 + $0x368] sm:$0xff]  ;;  %v224_v62 = vld [vmem:[%s3544_s8 + $0x10] sm:$0xff] }
  0x32   : > { %3225 = vmatpush3.bf16.msra.mxu1 %v3383_v9  ;;  %3114 = vmatprep.subr.bf16.mxu0 %v3384_v14  ;;  %v299_v9 = vld [vmem:[%s3544_s8 + $0x268] sm:$0xff]  ;;  %v302_v14 = vld [vmem:[%s3544_s8 + $0x280] sm:$0xff]  ;;  %v2636_v51 = vcombine.low %v327_v40, %v331_v41  ;;  %v228_v63 = vld [vmem:[%s3544_s8 + $0x30] sm:$0xff] }
  0x33   : > { %3226 = vmatprep.subr.bf16.mxu1 %v3386_v17  ;;  %v307_v17 = vld [vmem:[%s3544_s8 + $0x2a8] sm:$0xff] }
  0x35   : > { %3115 = vmatpush3.bf16.msra.mxu0 %v3385_v15  ;;  %v306_v15 = vld [vmem:[%s3544_s8 + $0x2a0] sm:$0xff] }
  0x36   : > { %3227 = vmatpush3.bf16.msra.mxu1 %v3387_v20  ;;  %3116 = vmatprep.subr.bf16.mxu0 %v3388_v24  ;;  %v2611_v20 = vcombine.high %v302_v14, %v306_v15  ;;  %v311_v24 = vld [vmem:[%s3544_s8 + $0x2c8] sm:$0xff]  ;;  %v2610_v26 = vcombine.low %v302_v14, %v306_v15  ;;  %v240_v14 = vld [vmem:[%s3544_s8 + $0x90] sm:$0xff] }
  0x37   : > { %1551 = vmatmul.mubr.bf16.gmra.mrb[8].mxu0 %v2546_v3  ;;  %3228 = vmatprep.subr.bf16.mxu1 %v3390_v28  ;;  %v2588_v3 = vcombine.low %v279_v52, %v283_v53  ;;  %v2619_v28 = vcombine.high %v310_v22, %v314_v23  ;;  %v2620_v35 = vcombine.low %v311_v24, %v315_v25  ;;  %v244_v15 = vld [vmem:[%s3544_s8 + $0xb0] sm:$0xff] }
  0x38   : > { %1712 = vmatmul.mubr.bf16.gmra.mrb[8].mxu1 %v2548_v5  ;;  %1558 = vmatprep.mubr.bf16.mxu0 %v2555_v6  ;;  %v2597_v5 = vcombine.high %v287_v0, %v291_v1  ;;  %v294_v6 = vld [vmem:[%s3544_s8 + $0x240] sm:$0xff]  ;;  %v225_v0 = vld [vmem:[%s3544_s8 + $0x18] sm:$0xff] }
  0x39   : > { %1719 = vmatprep.mubr.bf16.mxu1 %v2557_v8  ;;  %3117 = vmatpush3.bf16.msra.mxu0 %v3389_v27  ;;  %v295_v8 = vld [vmem:[%s3544_s8 + $0x248] sm:$0xff]  ;;  %v2603_v12 = vcombine.high %v294_v6, %v298_v7  ;;  %v229_v1 = vld [vmem:[%s3544_s8 + $0x38] sm:$0xff] }
  0x3a   : > { %3229 = vmatpush3.bf16.msra.mxu1 %v3391_v29  ;;  %3118 = vmatprep.subr.bf16.mxu0 %v3392_v34  ;;  %v2605_v13 = vcombine.high %v295_v8, %v299_v9  ;;  %v2621_v29 = vcombine.high %v311_v24, %v315_v25  ;;  %v2618_v34 = vcombine.low %v310_v22, %v314_v23  ;;  %v248_v22 = vld [vmem:[%s3544_s8 + $0xd0] sm:$0xff]  ;;  %v249_v24 = vld [vmem:[%s3544_s8 + $0xd8] sm:$0xff] }
  0x3b   : > { %3230 = vmatprep.subr.bf16.mxu1 %v3394_v37  ;;  %v252_v23 = vld [vmem:[%s3544_s8 + $0xf0] sm:$0xff]  ;;  %v253_v25 = vld [vmem:[%s3544_s8 + $0xf8] sm:$0xff] }
  0x3d   : > { %3119 = vmatpush3.bf16.msra.mxu0 %v3393_v36 }
  0x3e   : > { %3231 = vmatpush3.bf16.msra.mxu1 %v3395_v39  ;;  %3120 = vmatprep.subr.bf16.mxu0 %v3396_v46  ;;  %v330_v39 = vld [vmem:[%s3544_s8 + $0x360] sm:$0xff] }
  0x3f   : > { %1559 = vmatmul.mubr.bf16.gmra.mrb[12].mxu0 %v2554_v16  ;;  %3232 = vmatprep.subr.bf16.mxu1 %v3398_v48  ;;  %v303_v16 = vld [vmem:[%s3544_s8 + $0x288] sm:$0xff]  ;;  %v334_v46 = vld [vmem:[%s3544_s8 + $0x380] sm:$0xff]  ;;  %v2634_v50 = vcombine.low %v326_v38, %v330_v39 }
  0x40   : > { %1720 = vmatmul.mubr.bf16.gmra.mrb[12].mxu1 %v2556_v18  ;;  %1566 = vmatprep.mubr.bf16.mxu0 %v2563_v19  ;;  %v2602_v18 = vcombine.low %v294_v6, %v298_v7  ;;  %v2604_v19 = vcombine.low %v295_v8, %v299_v9  ;;  %v2612_v27 = vcombine.low %v303_v16, %v307_v17  ;;  %v335_v48 = vld [vmem:[%s3544_s8 + $0x388] sm:$0xff]  ;;  %v232_v6 = vld [vmem:[%s3544_s8 + $0x50] sm:$0xff]  ;;  %v233_v8 = vld [vmem:[%s3544_s8 + $0x58] sm:$0xff] }
  0x41   : > { %1727 = vmatprep.mubr.bf16.mxu1 %v2565_v21  ;;  %3121 = vmatpush3.bf16.msra.mxu0 %v3397_v47  ;;  %v2613_v21 = vcombine.high %v303_v16, %v307_v17  ;;  %v338_v47 = vld [vmem:[%s3544_s8 + $0x3a0] sm:$0xff]  ;;  %v236_v7 = vld [vmem:[%s3544_s8 + $0x70] sm:$0xff]  ;;  %v237_v9 = vld [vmem:[%s3544_s8 + $0x78] sm:$0xff] }
  0x42   : > { %3233 = vmatpush3.bf16.msra.mxu1 %v3399_v49  ;;  %3122 = vmatprep.subr.bf16.mxu0 %v3400_v55  ;;  %v339_v49 = vld [vmem:[%s3544_s8 + $0x3a8] sm:$0xff]  ;;  %v2643_v52 = vcombine.high %v334_v46, %v338_v47  ;;  %v346_v55 = vld [vmem:[%s3544_s8 + $0x3e0] sm:$0xff]  ;;  %v241_v16 = vld [vmem:[%s3544_s8 + $0x98] sm:$0xff] }
  0x43   : > { %3234 = vmatprep.subr.bf16.mxu1 %v3402_v60  ;;  %v2645_v53 = vcombine.high %v335_v48, %v339_v49  ;;  %v245_v17 = vld [vmem:[%s3544_s8 + $0xb8] sm:$0xff] }
  0x45   : > { %3123 = vmatpush3.bf16.msra.mxu0 %v3401_v58  ;;  %v2642_v58 = vcombine.low %v334_v46, %v338_v47  ;;  %v272_v46 = vld [vmem:[%s3544_s8 + $0x190] sm:$0xff] }
  0x46   : > { %3235 = vmatpush3.bf16.msra.mxu1 %v3403_v61  ;;  %v276_v47 = vld [vmem:[%s3544_s8 + $0x1b0] sm:$0xff] }
  0x47   : > { %1567 = vmatmul.mubr.bf16.gmra.mrb[16].mxu0 %v2562_v30  ;;  %v318_v30 = vld [vmem:[%s3544_s8 + $0x300] sm:$0xff] }
  0x48   : > { %1728 = vmatmul.mubr.bf16.gmra.mrb[16].mxu1 %v2564_v31  ;;  %1574 = vmatprep.mubr.bf16.mxu0 %v2571_v32  ;;  %v322_v31 = vld [vmem:[%s3544_s8 + $0x320] sm:$0xff]  ;;  %v319_v32 = vld [vmem:[%s3544_s8 + $0x308] sm:$0xff] }
  0x49   : > { %1735 = vmatprep.mubr.bf16.mxu1 %v2573_v33  ;;  %v323_v33 = vld [vmem:[%s3544_s8 + $0x328] sm:$0xff]  ;;  %v2627_v36 = vcombine.high %v318_v30, %v322_v31 }
  0x4a   : > { %v2629_v37 = vcombine.high %v319_v32, %v323_v33 }
  0x4f   : > { %1575 = vmatmul.mubr.bf16.gmra.mrb[20].mxu0 %v2570_v42  ;;  %v2626_v42 = vcombine.low %v318_v30, %v322_v31  ;;  %v256_v30 = vld [vmem:[%s3544_s8 + $0x110] sm:$0xff] }
  0x50   : > { %1736 = vmatmul.mubr.bf16.gmra.mrb[20].mxu1 %v2572_v43  ;;  %1582 = vmatprep.mubr.bf16.mxu0 %v2579_v44  ;;  %v2628_v43 = vcombine.low %v319_v32, %v323_v33  ;;  %v2635_v44 = vcombine.high %v326_v38, %v330_v39  ;;  %v260_v31 = vld [vmem:[%s3544_s8 + $0x130] sm:$0xff]  ;;  %v257_v32 = vld [vmem:[%s3544_s8 + $0x118] sm:$0xff] }
  0x51   : > { %1743 = vmatprep.mubr.bf16.mxu1 %v2581_v45  ;;  %v2637_v45 = vcombine.high %v327_v40, %v331_v41  ;;  %v261_v33 = vld [vmem:[%s3544_s8 + $0x138] sm:$0xff]  ;;  %v264_v38 = vld [vmem:[%s3544_s8 + $0x150] sm:$0xff] }
  0x52   : > { %v268_v39 = vld [vmem:[%s3544_s8 + $0x170] sm:$0xff]  ;;  %v265_v40 = vld [vmem:[%s3544_s8 + $0x158] sm:$0xff] }
  0x53   : > { %v269_v41 = vld [vmem:[%s3544_s8 + $0x178] sm:$0xff] }
  0x57   : > { %1583 = vmatmul.mubr.bf16.gmra.mrb[24].mxu0 %v2578_v54  ;;  %v342_v54 = vld [vmem:[%s3544_s8 + $0x3c0] sm:$0xff] }
  0x58   : > { %1744 = vmatmul.mubr.bf16.gmra.mrb[24].mxu1 %v2580_v56  ;;  %1590 = vmatprep.mubr.bf16.mxu0 %v2587_v57  ;;  %v343_v56 = vld [vmem:[%s3544_s8 + $0x3c8] sm:$0xff]  ;;  %v2651_v60 = vcombine.high %v342_v54, %v346_v55 }
  0x59   : > { %1751 = vmatprep.mubr.bf16.mxu1 %v2589_v59  ;;  %v347_v57 = vld [vmem:[%s3544_s8 + $0x3e8] sm:$0xff]  ;;  %v2644_v59 = vcombine.low %v335_v48, %v339_v49  ;;  %v273_v48 = vld [vmem:[%s3544_s8 + $0x198] sm:$0xff] }
  0x5a   : > { %v2653_v61 = vcombine.high %v343_v56, %v347_v57  ;;  %v277_v49 = vld [vmem:[%s3544_s8 + $0x1b8] sm:$0xff] }
  0x5f   : > { %1591 = vmatmul.mubr.bf16.gmra.mrb[28].mxu0 %v2586_v2  ;;  %v2650_v2 = vcombine.low %v342_v54, %v346_v55  ;;  %v280_v54 = vld [vmem:[%s3544_s8 + $0x1d0] sm:$0xff] }
  0x60   : > { %1752 = vmatmul.mubr.bf16.gmra.mrb[28].mxu1 %v2588_v3  ;;  %1598 = vmatprep.mubr.bf16.mxu0 %v2595_v4  ;;  %v2652_v3 = vcombine.low %v343_v56, %v347_v57  ;;  %v2535_v4 = vcombine.high %v224_v62, %v228_v63  ;;  %v284_v55 = vld [vmem:[%s3544_s8 + $0x1f0] sm:$0xff]  ;;  %v281_v56 = vld [vmem:[%s3544_s8 + $0x1d8] sm:$0xff] }
  0x61   : > { %1759 = vmatprep.mubr.bf16.mxu1 %v2597_v5  ;;  %v2537_v5 = vcombine.high %v225_v0, %v229_v1  ;;  %v285_v57 = vld [vmem:[%s3544_s8 + $0x1f8] sm:$0xff] }
  0x67   : > { %1599 = vmatmul.mubr.bf16.gmra.mrb[32].mxu0 %v2594_v10  ;;  %v2534_v10 = vcombine.low %v224_v62, %v228_v63  ;;  %v288_v62 = vld [vmem:[%s3544_s8 + $0x210] sm:$0xff] }
  0x68   : > { %1760 = vmatmul.mubr.bf16.gmra.mrb[32].mxu1 %v2596_v11  ;;  %1606 = vmatprep.mubr.bf16.mxu0 %v2603_v12  ;;  %v2536_v11 = vcombine.low %v225_v0, %v229_v1  ;;  %v2543_v12 = vcombine.high %v232_v6, %v236_v7  ;;  %v292_v63 = vld [vmem:[%s3544_s8 + $0x230] sm:$0xff]  ;;  %v289_v0 = vld [vmem:[%s3544_s8 + $0x218] sm:$0xff] }
  0x69   : > { %1767 = vmatprep.mubr.bf16.mxu1 %v2605_v13  ;;  %v2545_v13 = vcombine.high %v233_v8, %v237_v9  ;;  %v293_v1 = vld [vmem:[%s3544_s8 + $0x238] sm:$0xff] }
  0x6f   : > { %1607 = vmatmul.mubr.bf16.gmra.mrb[36].mxu0 %v2602_v18  ;;  %v2542_v18 = vcombine.low %v232_v6, %v236_v7  ;;  %v296_v6 = vld [vmem:[%s3544_s8 + $0x250] sm:$0xff] }
  0x70   : > { %1768 = vmatmul.mubr.bf16.gmra.mrb[36].mxu1 %v2604_v19  ;;  %1614 = vmatprep.mubr.bf16.mxu0 %v2611_v20  ;;  %v2544_v19 = vcombine.low %v233_v8, %v237_v9  ;;  %v2551_v20 = vcombine.high %v240_v14, %v244_v15  ;;  %v300_v7 = vld [vmem:[%s3544_s8 + $0x270] sm:$0xff]  ;;  %v297_v8 = vld [vmem:[%s3544_s8 + $0x258] sm:$0xff] }
  0x71   : > { %1775 = vmatprep.mubr.bf16.mxu1 %v2613_v21  ;;  %v2553_v21 = vcombine.high %v241_v16, %v245_v17  ;;  %v301_v9 = vld [vmem:[%s3544_s8 + $0x278] sm:$0xff] }
  0x77   : > { %1615 = vmatmul.mubr.bf16.gmra.mrb[40].mxu0 %v2610_v26  ;;  %v2550_v26 = vcombine.low %v240_v14, %v244_v15  ;;  %v304_v14 = vld [vmem:[%s3544_s8 + $0x290] sm:$0xff] }
  0x78   : > { %1776 = vmatmul.mubr.bf16.gmra.mrb[40].mxu1 %v2612_v27  ;;  %1622 = vmatprep.mubr.bf16.mxu0 %v2619_v28  ;;  %v2552_v27 = vcombine.low %v241_v16, %v245_v17  ;;  %v2559_v28 = vcombine.high %v248_v22, %v252_v23  ;;  %v308_v15 = vld [vmem:[%s3544_s8 + $0x2b0] sm:$0xff]  ;;  %v305_v16 = vld [vmem:[%s3544_s8 + $0x298] sm:$0xff] }
  0x79   : > { %1783 = vmatprep.mubr.bf16.mxu1 %v2621_v29  ;;  %v2561_v29 = vcombine.high %v249_v24, %v253_v25  ;;  %v309_v17 = vld [vmem:[%s3544_s8 + $0x2b8] sm:$0xff] }
  0x7f   : > { %1623 = vmatmul.mubr.bf16.gmra.mrb[44].mxu0 %v2618_v34  ;;  %v2558_v34 = vcombine.low %v248_v22, %v252_v23  ;;  %v312_v22 = vld [vmem:[%s3544_s8 + $0x2d0] sm:$0xff] }
  0x80   : > { %1784 = vmatmul.mubr.bf16.gmra.mrb[44].mxu1 %v2620_v35  ;;  %1630 = vmatprep.mubr.bf16.mxu0 %v2627_v36  ;;  %v2560_v35 = vcombine.low %v249_v24, %v253_v25  ;;  %v2567_v36 = vcombine.high %v256_v30, %v260_v31  ;;  %v316_v23 = vld [vmem:[%s3544_s8 + $0x2f0] sm:$0xff]  ;;  %v313_v24 = vld [vmem:[%s3544_s8 + $0x2d8] sm:$0xff] }
  0x81   : > { %1791 = vmatprep.mubr.bf16.mxu1 %v2629_v37  ;;  %v2569_v37 = vcombine.high %v257_v32, %v261_v33  ;;  %v317_v25 = vld [vmem:[%s3544_s8 + $0x2f8] sm:$0xff] }
  0x87   : > { %1631 = vmatmul.mubr.bf16.gmra.mrb[48].mxu0 %v2626_v42  ;;  %v2566_v42 = vcombine.low %v256_v30, %v260_v31  ;;  %v320_v30 = vld [vmem:[%s3544_s8 + $0x310] sm:$0xff] }
  0x88   : > { %1792 = vmatmul.mubr.bf16.gmra.mrb[48].mxu1 %v2628_v43  ;;  %1638 = vmatprep.mubr.bf16.mxu0 %v2635_v44  ;;  %v2568_v43 = vcombine.low %v257_v32, %v261_v33  ;;  %v2575_v44 = vcombine.high %v264_v38, %v268_v39  ;;  %v324_v31 = vld [vmem:[%s3544_s8 + $0x330] sm:$0xff]  ;;  %v321_v33 = vld [vmem:[%s3544_s8 + $0x318] sm:$0xff] }
  0x89   : > { %1799 = vmatprep.mubr.bf16.mxu1 %v2637_v45  ;;  %v2577_v45 = vcombine.high %v265_v40, %v269_v41 }
  0x8f   : > { %1639 = vmatmul.mubr.bf16.gmra.mrb[52].mxu0 %v2634_v50  ;;  %v2574_v50 = vcombine.low %v264_v38, %v268_v39 }
  0x90   : > { %1800 = vmatmul.mubr.bf16.gmra.mrb[52].mxu1 %v2636_v51  ;;  %1646 = vmatprep.mubr.bf16.mxu0 %v2643_v52  ;;  %v2576_v51 = vcombine.low %v265_v40, %v269_v41  ;;  %v2583_v52 = vcombine.high %v272_v46, %v276_v47  ;;  %v2624_v41 = vcombine.low %v313_v24, %v317_v25 }
  0x91   : > { %1807 = vmatprep.mubr.bf16.mxu1 %v2645_v53  ;;  %v2585_v53 = vcombine.high %v273_v48, %v277_v49 }
  0x97   : > { %1647 = vmatmul.mubr.bf16.gmra.mrb[56].mxu0 %v2642_v58  ;;  %v2582_v58 = vcombine.low %v272_v46, %v276_v47 }
  0x98   : > { %1808 = vmatmul.mubr.bf16.gmra.mrb[56].mxu1 %v2644_v59  ;;  %1654 = vmatprep.mubr.bf16.mxu0 %v2651_v60  ;;  %v2584_v59 = vcombine.low %v273_v48, %v277_v49  ;;  %v2591_v60 = vcombine.high %v280_v54, %v284_v55 }
  0x99   : > { %1815 = vmatprep.mubr.bf16.mxu1 %v2653_v61  ;;  %v2593_v61 = vcombine.high %v281_v56, %v285_v57 }
  0x9f   : > { %1655 = vmatmul.mubr.bf16.gmra.mrb[60].mxu0 %v2650_v2  ;;  %v2590_v2 = vcombine.low %v280_v54, %v284_v55  ;;  %v329_v55 = vld [vmem:[%s3544_s8 + $0x358] sm:$0xff] }
  0xa0   : > { %1816 = vmatmul.mubr.bf16.gmra.mrb[60].mxu1 %v2652_v3  ;;  %1856 = vmatprep.mubr.bf16.mxu0 %v2535_v4  ;;  %v2592_v3 = vcombine.low %v281_v56, %v285_v57  ;;  %v2599_v4 = vcombine.high %v288_v62, %v292_v63  ;;  %v333_v56 = vld [vmem:[%s3544_s8 + $0x378] sm:$0xff] }
  0xa1   : > { %2017 = vmatprep.mubr.bf16.mxu1 %v2537_v5  ;;  %v2601_v5 = vcombine.high %v289_v0, %v293_v1 }
  0xa7   : > { %1857 = vmatmul.mubr.bf16.vlgmr.msra.gmra.mrb[64].mxu0 %v2534_v10  ;;  %v2598_v10 = vcombine.low %v288_v62, %v292_v63 }
  0xa8   : > { %2018 = vmatmul.mubr.bf16.vlgmr.msra.gmra.mrb[64].mxu1 %v2536_v11  ;;  %1864 = vmatprep.mubr.bf16.mxu0 %v2543_v12  ;;  %v2600_v11 = vcombine.low %v289_v0, %v293_v1  ;;  %v2607_v12 = vcombine.high %v296_v6, %v300_v7 }
  0xa9   : > { %2025 = vmatprep.mubr.bf16.mxu1 %v2545_v13  ;;  %v2609_v13 = vcombine.high %v297_v8, %v301_v9 }
  0xaf   : > { %1865 = vmatmul.mubr.bf16.gmra.mrb[68].mxu0 %v2542_v18  ;;  %v2606_v18 = vcombine.low %v296_v6, %v300_v7 }
  0xb0   : > { %2026 = vmatmul.mubr.bf16.gmra.mrb[68].mxu1 %v2544_v19  ;;  %1872 = vmatprep.mubr.bf16.mxu0 %v2551_v20  ;;  %v2608_v19 = vcombine.low %v297_v8, %v301_v9  ;;  %v2615_v20 = vcombine.high %v304_v14, %v308_v15 }
  0xb1   : > { %2033 = vmatprep.mubr.bf16.mxu1 %v2553_v21  ;;  %v2617_v21 = vcombine.high %v305_v16, %v309_v17 }
  0xb7   : > { %1873 = vmatmul.mubr.bf16.gmra.mrb[72].mxu0 %v2550_v26  ;;  %v2614_v26 = vcombine.low %v304_v14, %v308_v15  ;;  %v341_v14 = vld [vmem:[%s3544_s8 + $0x3b8] sm:$0xff] }
  0xb8   : > { %2034 = vmatmul.mubr.bf16.gmra.mrb[72].mxu1 %v2552_v27  ;;  %1880 = vmatprep.mubr.bf16.mxu0 %v2559_v28  ;;  %v2616_v27 = vcombine.low %v305_v16, %v309_v17  ;;  %v2623_v28 = vcombine.high %v312_v22, %v316_v23 }
  0xb9   : > { %2041 = vmatprep.mubr.bf16.mxu1 %v2561_v29  ;;  %v2625_v29 = vcombine.high %v313_v24, %v317_v25 }
  0xbf   : > { %1881 = vmatmul.mubr.bf16.gmra.mrb[76].mxu0 %v2558_v34  ;;  %v325_v34 = vld [vmem:[%s3544_s8 + $0x338] sm:$0xff] }
  0xc0   : > { %2042 = vmatmul.mubr.bf16.gmra.mrb[76].mxu1 %v2560_v35  ;;  %1888 = vmatprep.mubr.bf16.mxu0 %v2567_v36  ;;  %v2633_v46 = vcombine.high %v321_v33, %v325_v34  ;;  %v2632_v63 = vcombine.low %v321_v33, %v325_v34  ;;  %v348_v33 = vld [vmem:[%s3544_s8 + $0x3f0] sm:$0xff] }
  0xc1   : > { %2049 = vmatprep.mubr.bf16.mxu1 %v2569_v37  ;;  %v2622_v37 = vcombine.low %v312_v22, %v316_v23 }
  0xc7   : > { %1889 = vmatmul.mubr.bf16.gmra.mrb[80].mxu0 %v2566_v42  ;;  %v2631_v42 = vcombine.high %v320_v30, %v324_v31 }
  0xc8   : > { %2050 = vmatmul.mubr.bf16.gmra.mrb[80].mxu1 %v2568_v43  ;;  %1896 = vmatprep.mubr.bf16.mxu0 %v2575_v44 }
  0xc9   : > { %2057 = vmatprep.mubr.bf16.mxu1 %v2577_v45 }
  0xcf   : > { %1897 = vmatmul.mubr.bf16.gmra.mrb[84].mxu0 %v2574_v50 }
  0xd0   : > { %2058 = vmatmul.mubr.bf16.gmra.mrb[84].mxu1 %v2576_v51  ;;  %1904 = vmatprep.mubr.bf16.mxu0 %v2583_v52  ;;  %v328_v52 = vld [vmem:[%s3544_s8 + $0x350] sm:$0xff] }
  0xd1   : > { %2065 = vmatprep.mubr.bf16.mxu1 %v2585_v53  ;;  %v332_v53 = vld [vmem:[%s3544_s8 + $0x370] sm:$0xff] }
  0xd2   : > { %v2639_v0 = vcombine.high %v328_v52, %v332_v53  ;;  %v2638_v17 = vcombine.low %v328_v52, %v332_v53 }
  0xd7   : > { %1905 = vmatmul.mubr.bf16.gmra.mrb[88].mxu0 %v2582_v58 }
  0xd8   : > { %2066 = vmatmul.mubr.bf16.gmra.mrb[88].mxu1 %v2584_v59  ;;  %1912 = vmatprep.mubr.bf16.mxu0 %v2591_v60  ;;  %v2630_v59 = vcombine.low %v320_v30, %v324_v31 }
  0xd9   : > { %2073 = vmatprep.mubr.bf16.mxu1 %v2593_v61 }
  0xdf   : > { %1913 = vmatmul.mubr.bf16.gmra.mrb[92].mxu0 %v2590_v2 }
  0xe0   : > { %2074 = vmatmul.mubr.bf16.gmra.mrb[92].mxu1 %v2592_v3  ;;  %1920 = vmatprep.mubr.bf16.mxu0 %v2599_v4  ;;  %v2641_v4 = vcombine.high %v329_v55, %v333_v56 }
  0xe1   : > { %2081 = vmatprep.mubr.bf16.mxu1 %v2601_v5 }
  0xe7   : > { %1921 = vmatmul.mubr.bf16.gmra.mrb[96].mxu0 %v2598_v10  ;;  %v336_v10 = vld [vmem:[%s3544_s8 + $0x390] sm:$0xff] }
  0xe8   : > { %2082 = vmatmul.mubr.bf16.gmra.mrb[96].mxu1 %v2600_v11  ;;  %1928 = vmatprep.mubr.bf16.mxu0 %v2607_v12  ;;  %v340_v11 = vld [vmem:[%s3544_s8 + $0x3b0] sm:$0xff] }
  0xe9   : > { %2089 = vmatprep.mubr.bf16.mxu1 %v2609_v13  ;;  %v337_v13 = vld [vmem:[%s3544_s8 + $0x398] sm:$0xff]  ;;  %v2647_v22 = vcombine.high %v336_v10, %v340_v11 }
  0xef   : > { %1929 = vmatmul.mubr.bf16.gmra.mrb[100].mxu0 %v2606_v18 }
  0xf0   : > { %2090 = vmatmul.mubr.bf16.gmra.mrb[100].mxu1 %v2608_v19  ;;  %1936 = vmatprep.mubr.bf16.mxu0 %v2615_v20 }
  0xf1   : > { %2097 = vmatprep.mubr.bf16.mxu1 %v2617_v21  ;;  %v2640_v21 = vcombine.low %v329_v55, %v333_v56 }
  0xf7   : > { %1937 = vmatmul.mubr.bf16.gmra.mrb[104].mxu0 %v2614_v26  ;;  %v2649_v26 = vcombine.high %v337_v13, %v341_v14 }
  0xf8   : > { %2098 = vmatmul.mubr.bf16.gmra.mrb[104].mxu1 %v2616_v27  ;;  %1944 = vmatprep.mubr.bf16.mxu0 %v2623_v28 }
  0xf9   : > { %2105 = vmatprep.mubr.bf16.mxu1 %v2625_v29 }
  0xfa   : > { %v2900_v32 = vpop.f32.mrb[0].mxu0 }
  0xfb   : > { %v3012_v35 = vpop.f32.mrb[0].mxu1  ;;  %v2901_v36 = vpop.f32.mrb[1].mxu0 }
  0xfc   : > { %v2902_v38 = vadd.f32 %v2901_v36, %v2900_v32  ;;  %v3013_v39 = vpop.f32.mrb[1].mxu1  ;;  %v2903_v40 = vpop.f32.mrb[2].mxu0  ;;  %v344_v32 = vld [vmem:[%s3544_s8 + $0x3d0] sm:$0xff]  ;;  %v349_v36 = vld [vmem:[%s3544_s8 + $0x3f8] sm:$0xff] }
  0xfd   : > { %v3014_v43 = vadd.f32 %v3013_v39, %v3012_v35  ;;  %v3015_v44 = vpop.f32.mrb[2].mxu1  ;;  %v2904_v45 = vpop.f32.mrb[3].mxu0  ;;  %v345_v35 = vld [vmem:[%s3544_s8 + $0x3d8] sm:$0xff]  ;;  %v2646_v39 = vcombine.low %v336_v10, %v340_v11  ;;  %s2529_s8 = sshll.u32 %s3911_s25, 2 }
  0xfe   : > { %v2905_v47 = vadd.f32 %v2904_v45, %v2903_v40  ;;  %v3016_v48 = vpop.f32.mrb[3].mxu1  ;;  %s3846_s13 = scalar_lea.vmem %s3907_s2, %s2529_s8 }
  0xff   : > { %v3764_v49 = vadd.f32 %v3014_v43, %v2902_v38  ;;  %v3017_v50 = vadd.f32 %v3016_v48, %v3015_v44  ;;  %1945 = vmatmul.mubr.bf16.gmra.mrb[108].mxu0 %v2622_v37  ;;  %v2648_v43 = vcombine.low %v337_v13, %v341_v14  ;;  %v2655_v44 = vcombine.high %v344_v32, %v348_v33 }
 0x100   : > { %2106 = vmatmul.mubr.bf16.gmra.mrb[108].mxu1 %v2624_v41  ;;  %1952 = vmatprep.mubr.bf16.mxu0 %v2631_v42  ;;  %v2657_v48 = vcombine.high %v345_v35, %v349_v36 }
 0x101   : > { %v3766_v51 = vadd.f32 %v3017_v50, %v2905_v47  ;;  %2113 = vmatprep.mubr.bf16.mxu1 %v2633_v46 }
 0x102   : > { %v2906_v54 = vpop.f32.mrb[4].mxu0 }
 0x103   : > { %v3018_v57 = vpop.f32.mrb[4].mxu1  ;;  %v2907_v58 = vpop.f32.mrb[5].mxu0 }
 0x104   : > { %v2908_v60 = vadd.f32 %v2907_v58, %v2906_v54  ;;  %v3019_v61 = vpop.f32.mrb[5].mxu1  ;;  %v2909_v62 = vpop.f32.mrb[6].mxu0 }
 0x105   : > { %v3020_v1 = vadd.f32 %v3019_v61, %v3018_v57  ;;  %v3021_v2 = vpop.f32.mrb[6].mxu1  ;;  %v2910_v3 = vpop.f32.mrb[7].mxu0 }
 0x106   : > { %v2911_v5 = vadd.f32 %v2910_v3, %v2909_v62  ;;  %v3022_v6 = vpop.f32.mrb[7].mxu1 }
 0x107   : > { %v3772_v7 = vadd.f32 %v3020_v1, %v2908_v60  ;;  %v3023_v8 = vadd.f32 %v3022_v6, %v3021_v2  ;;  %1953 = vmatmul.mubr.bf16.gmra.mrb[112].mxu0 %v2630_v59  ;;  %v2654_v59 = vcombine.low %v344_v32, %v348_v33 }
 0x108   : > { %2114 = vmatmul.mubr.bf16.gmra.mrb[112].mxu1 %v2632_v63  ;;  %1960 = vmatprep.mubr.bf16.mxu0 %v2639_v0  ;;  %v2656_v63 = vcombine.low %v345_v35, %v349_v36 }
 0x109   : > { %v3774_v9 = vadd.f32 %v3023_v8, %v2911_v5  ;;  %2121 = vmatprep.mubr.bf16.mxu1 %v2641_v4 }
 0x10a   : > { %v2912_v12 = vpop.f32.mrb[8].mxu0 }
 0x10b   : > { %v3024_v15 = vpop.f32.mrb[8].mxu1  ;;  %v2913_v16 = vpop.f32.mrb[9].mxu0 }
 0x10c   : > { %v2914_v18 = vadd.f32 %v2913_v16, %v2912_v12  ;;  %v3025_v19 = vpop.f32.mrb[9].mxu1  ;;  %v2915_v20 = vpop.f32.mrb[10].mxu0 }
 0x10d   : > { %v3026_v23 = vadd.f32 %v3025_v19, %v3024_v15  ;;  %v3027_v24 = vpop.f32.mrb[10].mxu1  ;;  %v2916_v25 = vpop.f32.mrb[11].mxu0 }
 0x10e   : > { %v2917_v27 = vadd.f32 %v2916_v25, %v2915_v20  ;;  %v3028_v28 = vpop.f32.mrb[11].mxu1 }
 0x10f   : > { %v3780_v29 = vadd.f32 %v3026_v23, %v2914_v18  ;;  %v3029_v30 = vadd.f32 %v3028_v28, %v3027_v24  ;;  %1961 = vmatmul.mubr.bf16.gmra.mrb[116].mxu0 %v2638_v17 }
 0x110   : > { %2122 = vmatmul.mubr.bf16.gmra.mrb[116].mxu1 %v2640_v21  ;;  %1968 = vmatprep.mubr.bf16.mxu0 %v2647_v22 }
 0x111   : > { %v3782_v31 = vadd.f32 %v3029_v30, %v2917_v27  ;;  %2129 = vmatprep.mubr.bf16.mxu1 %v2649_v26 }
 0x112   : > { %v2918_v34 = vpop.f32.mrb[12].mxu0 }
 0x113   : > { %v3030_v37 = vpop.f32.mrb[12].mxu1  ;;  %v2919_v38 = vpop.f32.mrb[13].mxu0 }
 0x114   : > { %v2920_v40 = vadd.f32 %v2919_v38, %v2918_v34  ;;  %v3031_v41 = vpop.f32.mrb[13].mxu1  ;;  %v2921_v42 = vpop.f32.mrb[14].mxu0 }
 0x115   : > { %v3032_v45 = vadd.f32 %v3031_v41, %v3030_v37  ;;  %v3033_v46 = vpop.f32.mrb[14].mxu1  ;;  %v2922_v47 = vpop.f32.mrb[15].mxu0 }
 0x116   : > { %v2923_v50 = vadd.f32 %v2922_v47, %v2921_v42  ;;  %v3034_v52 = vpop.f32.mrb[15].mxu1 }
 0x117   : > { %v3788_v53 = vadd.f32 %v3032_v45, %v2920_v40  ;;  %v3035_v54 = vadd.f32 %v3034_v52, %v3033_v46  ;;  %1969 = vmatmul.mubr.bf16.gmra.mrb[120].mxu0 %v2646_v39 }
 0x118   : > { %2130 = vmatmul.mubr.bf16.gmra.mrb[120].mxu1 %v2648_v43  ;;  %1976 = vmatprep.mubr.bf16.mxu0 %v2655_v44 }
 0x119   : > { %v3790_v55 = vadd.f32 %v3035_v54, %v2923_v50  ;;  %2137 = vmatprep.mubr.bf16.mxu1 %v2657_v48 }
 0x11a   : > { %v2924_v56 = vpop.f32.mrb[16].mxu0 }
 0x11b   : > { %v3036_v57 = vpop.f32.mrb[16].mxu1  ;;  %v2925_v58 = vpop.f32.mrb[17].mxu0 }
 0x11c   : > { %v2926_v60 = vadd.f32 %v2925_v58, %v2924_v56  ;;  %v3037_v61 = vpop.f32.mrb[17].mxu1  ;;  %v2927_v62 = vpop.f32.mrb[18].mxu0 }
 0x11d   : > { %v3038_v0 = vadd.f32 %v3037_v61, %v3036_v57  ;;  %v3039_v1 = vpop.f32.mrb[18].mxu1  ;;  %v2928_v2 = vpop.f32.mrb[19].mxu0 }
 0x11e   : > { %v2929_v3 = vadd.f32 %v2928_v2, %v2927_v62  ;;  %v3040_v4 = vpop.f32.mrb[19].mxu1 }
 0x11f   : > { %v3792_v5 = vadd.f32 %v3038_v0, %v2926_v60  ;;  %v3041_v6 = vadd.f32 %v3040_v4, %v3039_v1  ;;  %1977 = vmatmul.mubr.bf16.gmra.mrb[124].mxu0 %v2654_v59 }
 0x120   : > { %2138 = vmatmul.mubr.bf16.gmra.mrb[124].mxu1 %v2656_v63 }
 0x121   : > { %v3794_v8 = vadd.f32 %v3041_v6, %v2929_v3 }
 0x122   : > { %v2930_v10 = vpop.f32.mrb[20].mxu0 }
 0x123   : > { %v3042_v11 = vpop.f32.mrb[20].mxu1  ;;  %v2931_v12 = vpop.f32.mrb[21].mxu0 }
 0x124   : > { %v2932_v13 = vadd.f32 %v2931_v12, %v2930_v10  ;;  %v3043_v14 = vpop.f32.mrb[21].mxu1  ;;  %v2933_v15 = vpop.f32.mrb[22].mxu0 }
 0x125   : > { %v3044_v16 = vadd.f32 %v3043_v14, %v3042_v11  ;;  %v3045_v17 = vpop.f32.mrb[22].mxu1  ;;  %v2934_v18 = vpop.f32.mrb[23].mxu0 }
 0x126   : > { %v2935_v19 = vadd.f32 %v2934_v18, %v2933_v15  ;;  %v3046_v20 = vpop.f32.mrb[23].mxu1 }
 0x127   : > { %v3796_v21 = vadd.f32 %v3044_v16, %v2932_v13  ;;  %v3047_v22 = vadd.f32 %v3046_v20, %v3045_v17 }
 0x129   : > { %v3798_v23 = vadd.f32 %v3047_v22, %v2935_v19 }
 0x12a   : > { %v2936_v24 = vpop.f32.mrb[24].mxu0 }
 0x12b   : > { %v3048_v25 = vpop.f32.mrb[24].mxu1  ;;  %v2937_v26 = vpop.f32.mrb[25].mxu0 }
 0x12c   : > { %v2938_v27 = vadd.f32 %v2937_v26, %v2936_v24  ;;  %v3049_v28 = vpop.f32.mrb[25].mxu1  ;;  %v2939_v30 = vpop.f32.mrb[26].mxu0 }
 0x12d   : > { %v3050_v32 = vadd.f32 %v3049_v28, %v3048_v25  ;;  %v3051_v33 = vpop.f32.mrb[26].mxu1  ;;  %v2940_v34 = vpop.f32.mrb[27].mxu0 }
 0x12e   : > { %v2941_v35 = vadd.f32 %v2940_v34, %v2939_v30  ;;  %v3052_v36 = vpop.f32.mrb[27].mxu1 }
 0x12f   : > { %v3800_v37 = vadd.f32 %v3050_v32, %v2938_v27  ;;  %v3053_v38 = vadd.f32 %v3052_v36, %v3051_v33 }
 0x131   : > { %v3802_v39 = vadd.f32 %v3053_v38, %v2941_v35 }
 0x132   : > { %v2942_v40 = vpop.f32.mrb[28].mxu0 }
 0x133   : > { %v3054_v41 = vpop.f32.mrb[28].mxu1  ;;  %v2943_v42 = vpop.f32.mrb[29].mxu0 }
 0x134   : > { %v2944_v43 = vadd.f32 %v2943_v42, %v2942_v40  ;;  %v3055_v44 = vpop.f32.mrb[29].mxu1  ;;  %v2945_v45 = vpop.f32.mrb[30].mxu0 }
 0x135   : > { %v3056_v46 = vadd.f32 %v3055_v44, %v3054_v41  ;;  %v3057_v47 = vpop.f32.mrb[30].mxu1  ;;  %v2946_v48 = vpop.f32.mrb[31].mxu0 }
 0x136   : > { %v2947_v50 = vadd.f32 %v2946_v48, %v2945_v45  ;;  %v3058_v52 = vpop.f32.mrb[31].mxu1 }
 0x137   : > { %v3804_v54 = vadd.f32 %v3056_v46, %v2944_v43  ;;  %v3059_v56 = vadd.f32 %v3058_v52, %v3057_v47 }
 0x139   : > { %v3806_v57 = vadd.f32 %v3059_v56, %v2947_v50 }
 0x13a   : > { %v2948_v58 = vpop.f32.mrb[32].mxu0 }
 0x13b   : > { %v3060_v59 = vpop.f32.mrb[32].mxu1  ;;  %v2949_v60 = vpop.f32.mrb[33].mxu0 }
 0x13c   : > { %v2950_v61 = vadd.f32 %v2949_v60, %v2948_v58  ;;  %v3061_v62 = vpop.f32.mrb[33].mxu1  ;;  %v2951_v63 = vpop.f32.mrb[34].mxu0 }
 0x13d   : > { %v3062_v0 = vadd.f32 %v3061_v62, %v3060_v59  ;;  %v3063_v1 = vpop.f32.mrb[34].mxu1  ;;  %v2952_v2 = vpop.f32.mrb[35].mxu0 }
 0x13e   : > { %v2953_v3 = vadd.f32 %v2952_v2, %v2951_v63  ;;  %v3064_v4 = vpop.f32.mrb[35].mxu1 }
 0x13f   : > { %v3808_v6 = vadd.f32 %v3062_v0, %v2950_v61  ;;  %v3065_v10 = vadd.f32 %v3064_v4, %v3063_v1 }
 0x141   : > { %v3810_v11 = vadd.f32 %v3065_v10, %v2953_v3 }
 0x142   : > { %v2954_v12 = vpop.f32.mrb[36].mxu0 }
 0x143   : > { %v3066_v13 = vpop.f32.mrb[36].mxu1  ;;  %v2955_v14 = vpop.f32.mrb[37].mxu0 }
 0x144   : > { %v2956_v15 = vadd.f32 %v2955_v14, %v2954_v12  ;;  %v3067_v16 = vpop.f32.mrb[37].mxu1  ;;  %v2957_v17 = vpop.f32.mrb[38].mxu0 }
 0x145   : > { %v3068_v18 = vadd.f32 %v3067_v16, %v3066_v13  ;;  %v3069_v19 = vpop.f32.mrb[38].mxu1  ;;  %v2958_v20 = vpop.f32.mrb[39].mxu0 }
 0x146   : > { %v2959_v22 = vadd.f32 %v2958_v20, %v2957_v17  ;;  %v3070_v24 = vpop.f32.mrb[39].mxu1 }
 0x147   : > { %v3812_v25 = vadd.f32 %v3068_v18, %v2956_v15  ;;  %v3071_v26 = vadd.f32 %v3070_v24, %v3069_v19 }
 0x149   : > { %v3814_v27 = vadd.f32 %v3071_v26, %v2959_v22 }
 0x14a   : > { %v2960_v28 = vpop.f32.mrb[40].mxu0 }
 0x14b   : > { %v3072_v30 = vpop.f32.mrb[40].mxu1  ;;  %v2961_v32 = vpop.f32.mrb[41].mxu0 }
 0x14c   : > { %v2962_v33 = vadd.f32 %v2961_v32, %v2960_v28  ;;  %v3073_v34 = vpop.f32.mrb[41].mxu1  ;;  %v2963_v35 = vpop.f32.mrb[42].mxu0 }
 0x14d   : > { %v3074_v36 = vadd.f32 %v3073_v34, %v3072_v30  ;;  %v3075_v38 = vpop.f32.mrb[42].mxu1  ;;  %v2964_v40 = vpop.f32.mrb[43].mxu0 }
 0x14e   : > { %v2965_v41 = vadd.f32 %v2964_v40, %v2963_v35  ;;  %v3076_v42 = vpop.f32.mrb[43].mxu1 }
 0x14f   : > { %v3816_v43 = vadd.f32 %v3074_v36, %v2962_v33  ;;  %v3077_v44 = vadd.f32 %v3076_v42, %v3075_v38 }
 0x151   : > { %v3818_v45 = vadd.f32 %v3077_v44, %v2965_v41 }
 0x152   : > { %v2966_v46 = vpop.f32.mrb[44].mxu0 }
 0x153   : > { %v3078_v47 = vpop.f32.mrb[44].mxu1  ;;  %v2967_v48 = vpop.f32.mrb[45].mxu0 }
 0x154   : > { %v2968_v50 = vadd.f32 %v2967_v48, %v2966_v46  ;;  %v3079_v52 = vpop.f32.mrb[45].mxu1  ;;  %v2969_v56 = vpop.f32.mrb[46].mxu0 }
 0x155   : > { %v3080_v58 = vadd.f32 %v3079_v52, %v3078_v47  ;;  %v3081_v59 = vpop.f32.mrb[46].mxu1  ;;  %v2970_v60 = vpop.f32.mrb[47].mxu0 }
 0x156   : > { %v2971_v61 = vadd.f32 %v2970_v60, %v2969_v56  ;;  %v3082_v62 = vpop.f32.mrb[47].mxu1 }
 0x157   : > { %v3820_v63 = vadd.f32 %v3080_v58, %v2968_v50  ;;  %v3083_v0 = vadd.f32 %v3082_v62, %v3081_v59 }
 0x159   : > { %v3822_v1 = vadd.f32 %v3083_v0, %v2971_v61 }
 0x15a   : > { %v2972_v2 = vpop.f32.mrb[48].mxu0 }
 0x15b   : > { %v3084_v3 = vpop.f32.mrb[48].mxu1  ;;  %v2973_v4 = vpop.f32.mrb[49].mxu0 }
 0x15c   : > { %v2974_v10 = vadd.f32 %v2973_v4, %v2972_v2  ;;  %v3085_v12 = vpop.f32.mrb[49].mxu1  ;;  %v2975_v13 = vpop.f32.mrb[50].mxu0 }
 0x15d   : > { %v3086_v14 = vadd.f32 %v3085_v12, %v3084_v3  ;;  %v3087_v15 = vpop.f32.mrb[50].mxu1  ;;  %v2976_v16 = vpop.f32.mrb[51].mxu0 }
 0x15e   : > { %v2977_v17 = vadd.f32 %v2976_v16, %v2975_v13  ;;  %v3088_v18 = vpop.f32.mrb[51].mxu1 }
 0x15f   : > { %v3824_v19 = vadd.f32 %v3086_v14, %v2974_v10  ;;  %v3089_v20 = vadd.f32 %v3088_v18, %v3087_v15 }
 0x161   : > { %v3826_v22 = vadd.f32 %v3089_v20, %v2977_v17 }
 0x162   : > { %v2978_v24 = vpop.f32.mrb[52].mxu0 }
 0x163   : > { %v3090_v26 = vpop.f32.mrb[52].mxu1  ;;  %v2979_v28 = vpop.f32.mrb[53].mxu0 }
 0x164   : > { %v2980_v30 = vadd.f32 %v2979_v28, %v2978_v24  ;;  %v3091_v32 = vpop.f32.mrb[53].mxu1  ;;  %v2981_v33 = vpop.f32.mrb[54].mxu0 }
 0x165   : > { %v3092_v34 = vadd.f32 %v3091_v32, %v3090_v26  ;;  %v3093_v35 = vpop.f32.mrb[54].mxu1  ;;  %v2982_v36 = vpop.f32.mrb[55].mxu0 }
 0x166   : > { %v2983_v38 = vadd.f32 %v2982_v36, %v2981_v33  ;;  %v3094_v40 = vpop.f32.mrb[55].mxu1 }
 0x167   : > { %v3828_v41 = vadd.f32 %v3092_v34, %v2980_v30  ;;  %v3095_v42 = vadd.f32 %v3094_v40, %v3093_v35 }
 0x169   : > { %v3830_v44 = vadd.f32 %v3095_v42, %v2983_v38 }
 0x16a   : > { %v2984_v46 = vpop.f32.mrb[56].mxu0 }
 0x16b   : > { %v3096_v47 = vpop.f32.mrb[56].mxu1  ;;  %v2985_v48 = vpop.f32.mrb[57].mxu0 }
 0x16c   : > { %v2986_v50 = vadd.f32 %v2985_v48, %v2984_v46  ;;  %v3097_v52 = vpop.f32.mrb[57].mxu1  ;;  %v2987_v56 = vpop.f32.mrb[58].mxu0 }
 0x16d   : > { %v3098_v58 = vadd.f32 %v3097_v52, %v3096_v47  ;;  %v3099_v59 = vpop.f32.mrb[58].mxu1  ;;  %v2988_v60 = vpop.f32.mrb[59].mxu0 }
 0x16e   : > { %v2989_v61 = vadd.f32 %v2988_v60, %v2987_v56  ;;  %v3100_v62 = vpop.f32.mrb[59].mxu1 }
 0x16f   : > { %v3832_v0 = vadd.f32 %v3098_v58, %v2986_v50  ;;  %v3101_v2 = vadd.f32 %v3100_v62, %v3099_v59 }
 0x171   : > { %v3834_v3 = vadd.f32 %v3101_v2, %v2989_v61 }
 0x172   : > { %v2990_v4 = vpop.f32.mrb[60].mxu0 }
 0x173   : > { %v3102_v10 = vpop.f32.mrb[60].mxu1  ;;  %v2991_v12 = vpop.f32.mrb[61].mxu0 }
 0x174   : > { %v2992_v13 = vadd.f32 %v2991_v12, %v2990_v4  ;;  %v3103_v14 = vpop.f32.mrb[61].mxu1  ;;  %v2993_v15 = vpop.f32.mrb[62].mxu0 }
 0x175   : > { %v3104_v16 = vadd.f32 %v3103_v14, %v3102_v10  ;;  %v3105_v17 = vpop.f32.mrb[62].mxu1  ;;  %v2994_v18 = vpop.f32.mrb[63].mxu0 }
 0x176   : > { %v2995_v20 = vadd.f32 %v2994_v18, %v2993_v15  ;;  %v3106_v24 = vpop.f32.mrb[63].mxu1 }
 0x177   : > { %v3836_v26 = vadd.f32 %v3104_v16, %v2992_v13  ;;  %v3107_v28 = vadd.f32 %v3106_v24, %v3105_v17 }
 0x179   : > { %v3838_v30 = vadd.f32 %v3107_v28, %v2995_v20 }
 0x17a   : > { %v3124_v32 = vpop.f32.mrb[64].mxu0 }
 0x17b   : > { %v3236_v33 = vpop.f32.mrb[64].mxu1  ;;  %v3125_v34 = vpop.f32.mrb[65].mxu0 }
 0x17c   : > { %v3126_v35 = vadd.f32 %v3125_v34, %v3124_v32  ;;  %v3237_v36 = vpop.f32.mrb[65].mxu1  ;;  %v3127_v38 = vpop.f32.mrb[66].mxu0 }
 0x17d   : > { %v3238_v40 = vadd.f32 %v3237_v36, %v3236_v33  ;;  %v3239_v42 = vpop.f32.mrb[66].mxu1  ;;  %v3128_v46 = vpop.f32.mrb[67].mxu0 }
 0x17e   : > { %v1859_v47 = vadd.f32 %v3126_v35, %v3764_v49  ;;  %v3129_v48 = vadd.f32 %v3128_v46, %v3127_v38  ;;  %v3240_v50 = vpop.f32.mrb[67].mxu1 }
 0x17f   : > { %v3241_v52 = vadd.f32 %v3240_v50, %v3239_v42 }
 0x180   : > { %v2020_v56 = vadd.f32 %v3238_v40, %v1859_v47  ;;  %v1862_v58 = vadd.f32 %v3129_v48, %v3766_v51 }
 0x182   : > { %v2023_v59 = vadd.f32 %v3241_v52, %v1862_v58  ;;  %v3130_v60 = vpop.f32.mrb[68].mxu0  ;;  %v2344_v61 = vmul.f32 %v2020_v56, %v2020_v56 }
 0x183   : > { %v3242_v62 = vpop.f32.mrb[68].mxu1  ;;  %v3131_v2 = vpop.f32.mrb[69].mxu0 }
 0x184   : > { %v2792_v4 = vpack.c.bf16 %v2023_v59, %v2020_v56  ;;  %v2306_v49 = vadd.f32 %v2023_v59, %v2020_v56  ;;  %v2345_v10 = vmul.f32 %v2023_v59, %v2023_v59  ;;  %v3132_v12 = vadd.f32 %v3131_v2, %v3130_v60  ;;  %v3243_v13 = vpop.f32.mrb[69].mxu1  ;;  %v3133_v14 = vpop.f32.mrb[70].mxu0 }
 0x185   : > { %v3244_v15 = vadd.f32 %v3243_v13, %v3242_v62  ;;  %v3245_v51 = vpop.f32.mrb[70].mxu1  ;;  %v3134_v16 = vpop.f32.mrb[71].mxu0 }
 0x186   : > { %2793 = vst [vmem:[%s3846_s13] sm:$0xff] %v2792_v4   ;;  %v2376_v17 = vadd.f32 %v2345_v10, %v2344_v61  ;;  %v1867_v18 = vadd.f32 %v3132_v12, %v3772_v7  ;;  %v3135_v20 = vadd.f32 %v3134_v16, %v3133_v14  ;;  %v3246_v24 = vpop.f32.mrb[71].mxu1 }
 0x187   : > { %v3247_v28 = vadd.f32 %v3246_v24, %v3245_v51 }
 0x188   : > { %v2028_v32 = vadd.f32 %v3244_v15, %v1867_v18  ;;  %v1870_v33 = vadd.f32 %v3135_v20, %v3774_v9 }
 0x18a   : > { %v2307_v34 = vadd.f32 %v2306_v49, %v2028_v32  ;;  %v2346_v35 = vmul.f32 %v2028_v32, %v2028_v32  ;;  %v2031_v36 = vadd.f32 %v3247_v28, %v1870_v33  ;;  %v3136_v38 = vpop.f32.mrb[72].mxu0 }
 0x18b   : > { %v3248_v40 = vpop.f32.mrb[72].mxu1  ;;  %v3137_v42 = vpop.f32.mrb[73].mxu0 }
 0x18c   : > { %v2377_v46 = vadd.f32 %v2376_v17, %v2346_v35  ;;  %v2797_v47 = vpack.c.bf16 %v2031_v36, %v2028_v32  ;;  %v2308_v48 = vadd.f32 %v2307_v34, %v2031_v36  ;;  %v2347_v50 = vmul.f32 %v2031_v36, %v2031_v36  ;;  %v3249_v52 = vpop.f32.mrb[73].mxu1  ;;  %v3139_v56 = vpop.f32.mrb[74].mxu0 }
 0x18d   : > { %v3138_v7 = vadd.f32 %v3137_v42, %v3136_v38  ;;  %v3250_v58 = vadd.f32 %v3249_v52, %v3248_v40  ;;  %v3251_v59 = vpop.f32.mrb[74].mxu1  ;;  %v3140_v60 = vpop.f32.mrb[75].mxu0 }
 0x18e   : > { %2869 = vst [vmem:[%s3846_s13 + $0x8] sm:$0xff] %v2797_v47   ;;  %v2378_v61 = vadd.f32 %v2377_v46, %v2347_v50  ;;  %v3141_v9 = vadd.f32 %v3140_v60, %v3139_v56  ;;  %v3252_v62 = vpop.f32.mrb[75].mxu1 }
 0x18f   : > { %v1875_v2 = vadd.f32 %v3138_v7, %v3780_v29  ;;  %v3253_v4 = vadd.f32 %v3252_v62, %v3251_v59 }
 0x190   : > { %v1878_v49 = vadd.f32 %v3141_v9, %v3782_v31 }
 0x191   : > { %v2036_v10 = vadd.f32 %v3250_v58, %v1875_v2 }
 0x192   : > { %v2039_v12 = vadd.f32 %v3253_v4, %v1878_v49  ;;  %v3142_v13 = vpop.f32.mrb[76].mxu0 }
 0x193   : > { %v2309_v14 = vadd.f32 %v2308_v48, %v2036_v10  ;;  %v2348_v15 = vmul.f32 %v2036_v10, %v2036_v10  ;;  %v3254_v51 = vpop.f32.mrb[76].mxu1  ;;  %v3143_v16 = vpop.f32.mrb[77].mxu0 }
 0x194   : > { %v2802_v17 = vpack.c.bf16 %v2039_v12, %v2036_v10  ;;  %v2349_v18 = vmul.f32 %v2039_v12, %v2039_v12  ;;  %v3144_v20 = vadd.f32 %v3143_v16, %v3142_v13  ;;  %v3255_v24 = vpop.f32.mrb[77].mxu1  ;;  %v3145_v28 = vpop.f32.mrb[78].mxu0 }
 0x195   : > { %v2379_v32 = vadd.f32 %v2378_v61, %v2348_v15  ;;  %v2310_v33 = vadd.f32 %v2309_v14, %v2039_v12  ;;  %v3256_v34 = vadd.f32 %v3255_v24, %v3254_v51  ;;  %v3257_v29 = vpop.f32.mrb[78].mxu1  ;;  %v3146_v35 = vpop.f32.mrb[79].mxu0 }
 0x196   : > { %2870 = vst [vmem:[%s3846_s13 + $0x10] sm:$0xff] %v2802_v17   ;;  %v1883_v31 = vadd.f32 %v3144_v20, %v3788_v53  ;;  %v3147_v36 = vadd.f32 %v3146_v35, %v3145_v28  ;;  %v3258_v38 = vpop.f32.mrb[79].mxu1 }
 0x197   : > { %v2380_v40 = vadd.f32 %v2379_v32, %v2349_v18  ;;  %v3259_v42 = vadd.f32 %v3258_v38, %v3257_v29 }
 0x198   : > { %v2044_v46 = vadd.f32 %v3256_v34, %v1883_v31  ;;  %v1886_v47 = vadd.f32 %v3147_v36, %v3790_v55 }
 0x19a   : > { %v2311_v48 = vadd.f32 %v2310_v33, %v2044_v46  ;;  %v2350_v50 = vmul.f32 %v2044_v46, %v2044_v46  ;;  %v2047_v52 = vadd.f32 %v3259_v42, %v1886_v47  ;;  %v3148_v56 = vpop.f32.mrb[80].mxu0 }
 0x19b   : > { %v3260_v7 = vpop.f32.mrb[80].mxu1  ;;  %v3149_v58 = vpop.f32.mrb[81].mxu0 }
 0x19c   : > { %v2381_v59 = vadd.f32 %v2380_v40, %v2350_v50  ;;  %v2807_v60 = vpack.c.bf16 %v2047_v52, %v2044_v46  ;;  %v2312_v61 = vadd.f32 %v2311_v48, %v2047_v52  ;;  %v2351_v9 = vmul.f32 %v2047_v52, %v2047_v52  ;;  %v3261_v62 = vpop.f32.mrb[81].mxu1  ;;  %v3151_v53 = vpop.f32.mrb[82].mxu0 }
 0x19d   : > { %v3150_v2 = vadd.f32 %v3149_v58, %v3148_v56  ;;  %v3262_v4 = vadd.f32 %v3261_v62, %v3260_v7  ;;  %v3263_v49 = vpop.f32.mrb[82].mxu1  ;;  %v3152_v10 = vpop.f32.mrb[83].mxu0 }
 0x19e   : > { %2871 = vst [vmem:[%s3846_s13 + $0x18] sm:$0xff] %v2807_v60   ;;  %v2382_v12 = vadd.f32 %v2381_v59, %v2351_v9  ;;  %v3153_v55 = vadd.f32 %v3152_v10, %v3151_v53  ;;  %v3264_v13 = vpop.f32.mrb[83].mxu1 }
 0x19f   : > { %v1891_v14 = vadd.f32 %v3150_v2, %v3792_v5  ;;  %v3265_v15 = vadd.f32 %v3264_v13, %v3263_v49 }
 0x1a0   : > { %v1894_v51 = vadd.f32 %v3153_v55, %v3794_v8 }
 0x1a1   : > { %v2052_v16 = vadd.f32 %v3262_v4, %v1891_v14 }
 0x1a2   : > { %v2055_v17 = vadd.f32 %v3265_v15, %v1894_v51  ;;  %v3154_v18 = vpop.f32.mrb[84].mxu0 }
 0x1a3   : > { %v2313_v20 = vadd.f32 %v2312_v61, %v2052_v16  ;;  %v2352_v24 = vmul.f32 %v2052_v16, %v2052_v16  ;;  %v3266_v28 = vpop.f32.mrb[84].mxu1  ;;  %v3155_v32 = vpop.f32.mrb[85].mxu0 }
 0x1a4   : > { %v2812_v33 = vpack.c.bf16 %v2055_v17, %v2052_v16  ;;  %v2353_v34 = vmul.f32 %v2055_v17, %v2055_v17  ;;  %v3156_v29 = vadd.f32 %v3155_v32, %v3154_v18  ;;  %v3267_v35 = vpop.f32.mrb[85].mxu1  ;;  %v3157_v31 = vpop.f32.mrb[86].mxu0 }
 0x1a5   : > { %v2383_v36 = vadd.f32 %v2382_v12, %v2352_v24  ;;  %v2314_v38 = vadd.f32 %v2313_v20, %v2055_v17  ;;  %v3268_v40 = vadd.f32 %v3267_v35, %v3266_v28  ;;  %v3269_v5 = vpop.f32.mrb[86].mxu1  ;;  %v3158_v42 = vpop.f32.mrb[87].mxu0 }
 0x1a6   : > { %2872 = vst [vmem:[%s3846_s13 + $0x20] sm:$0xff] %v2812_v33   ;;  %v1899_v8 = vadd.f32 %v3156_v29, %v3796_v21  ;;  %v3159_v46 = vadd.f32 %v3158_v42, %v3157_v31  ;;  %v3270_v47 = vpop.f32.mrb[87].mxu1 }
 0x1a7   : > { %v2384_v48 = vadd.f32 %v2383_v36, %v2353_v34  ;;  %v3271_v50 = vadd.f32 %v3270_v47, %v3269_v5 }
 0x1a8   : > { %v2060_v52 = vadd.f32 %v3268_v40, %v1899_v8  ;;  %v1902_v56 = vadd.f32 %v3159_v46, %v3798_v23 }
 0x1aa   : > { %v2315_v7 = vadd.f32 %v2314_v38, %v2060_v52  ;;  %v2354_v58 = vmul.f32 %v2060_v52, %v2060_v52  ;;  %v2063_v59 = vadd.f32 %v3271_v50, %v1902_v56  ;;  %v3160_v60 = vpop.f32.mrb[88].mxu0 }
 0x1ab   : > { %v3272_v61 = vpop.f32.mrb[88].mxu1  ;;  %v3161_v9 = vpop.f32.mrb[89].mxu0 }
 0x1ac   : > { %v2385_v62 = vadd.f32 %v2384_v48, %v2354_v58  ;;  %v2817_v53 = vpack.c.bf16 %v2063_v59, %v2060_v52  ;;  %v2316_v2 = vadd.f32 %v2315_v7, %v2063_v59  ;;  %v2355_v4 = vmul.f32 %v2063_v59, %v2063_v59  ;;  %v3273_v49 = vpop.f32.mrb[89].mxu1  ;;  %v3163_v21 = vpop.f32.mrb[90].mxu0 }
 0x1ad   : > { %v3162_v10 = vadd.f32 %v3161_v9, %v3160_v60  ;;  %v3274_v12 = vadd.f32 %v3273_v49, %v3272_v61  ;;  %v3275_v55 = vpop.f32.mrb[90].mxu1  ;;  %v3164_v13 = vpop.f32.mrb[91].mxu0 }
 0x1ae   : > { %2873 = vst [vmem:[%s3846_s13 + $0x28] sm:$0xff] %v2817_v53   ;;  %v2386_v14 = vadd.f32 %v2385_v62, %v2355_v4  ;;  %v3165_v23 = vadd.f32 %v3164_v13, %v3163_v21  ;;  %v3276_v15 = vpop.f32.mrb[91].mxu1 }
 0x1af   : > { %v1907_v51 = vadd.f32 %v3162_v10, %v3800_v37  ;;  %v3277_v16 = vadd.f32 %v3276_v15, %v3275_v55 }
 0x1b0   : > { %v1910_v17 = vadd.f32 %v3165_v23, %v3802_v39 }
 0x1b1   : > { %v2068_v18 = vadd.f32 %v3274_v12, %v1907_v51 }
 0x1b2   : > { %v2071_v20 = vadd.f32 %v3277_v16, %v1910_v17  ;;  %v3166_v24 = vpop.f32.mrb[92].mxu0 }
 0x1b3   : > { %v2317_v28 = vadd.f32 %v2316_v2, %v2068_v18  ;;  %v2356_v32 = vmul.f32 %v2068_v18, %v2068_v18  ;;  %v3278_v33 = vpop.f32.mrb[92].mxu1  ;;  %v3167_v34 = vpop.f32.mrb[93].mxu0 }
 0x1b4   : > { %v2822_v29 = vpack.c.bf16 %v2071_v20, %v2068_v18  ;;  %v2357_v35 = vmul.f32 %v2071_v20, %v2071_v20  ;;  %v3168_v31 = vadd.f32 %v3167_v34, %v3166_v24  ;;  %v3279_v36 = vpop.f32.mrb[93].mxu1  ;;  %v3169_v38 = vpop.f32.mrb[94].mxu0 }
 0x1b5   : > { %v2387_v40 = vadd.f32 %v2386_v14, %v2356_v32  ;;  %v2318_v5 = vadd.f32 %v2317_v28, %v2071_v20  ;;  %v3280_v42 = vadd.f32 %v3279_v36, %v3278_v33  ;;  %v3281_v37 = vpop.f32.mrb[94].mxu1  ;;  %v3170_v8 = vpop.f32.mrb[95].mxu0 }
 0x1b6   : > { %2874 = vst [vmem:[%s3846_s13 + $0x30] sm:$0xff] %v2822_v29   ;;  %v1915_v39 = vadd.f32 %v3168_v31, %v3804_v54  ;;  %v3171_v46 = vadd.f32 %v3170_v8, %v3169_v38  ;;  %v3282_v47 = vpop.f32.mrb[95].mxu1 }
 0x1b7   : > { %v2388_v48 = vadd.f32 %v2387_v40, %v2357_v35  ;;  %v3283_v50 = vadd.f32 %v3282_v47, %v3281_v37 }
 0x1b8   : > { %v2076_v52 = vadd.f32 %v3280_v42, %v1915_v39  ;;  %v1918_v56 = vadd.f32 %v3171_v46, %v3806_v57 }
 0x1ba   : > { %v2319_v7 = vadd.f32 %v2318_v5, %v2076_v52  ;;  %v2358_v58 = vmul.f32 %v2076_v52, %v2076_v52  ;;  %v2079_v59 = vadd.f32 %v3283_v50, %v1918_v56  ;;  %v3172_v60 = vpop.f32.mrb[96].mxu0 }
 0x1bb   : > { %v3284_v61 = vpop.f32.mrb[96].mxu1  ;;  %v3173_v9 = vpop.f32.mrb[97].mxu0 }
 0x1bc   : > { %v2389_v62 = vadd.f32 %v2388_v48, %v2358_v58  ;;  %v2827_v53 = vpack.c.bf16 %v2079_v59, %v2076_v52  ;;  %v2320_v2 = vadd.f32 %v2319_v7, %v2079_v59  ;;  %v2359_v4 = vmul.f32 %v2079_v59, %v2079_v59  ;;  %v3285_v49 = vpop.f32.mrb[97].mxu1  ;;  %v3175_v54 = vpop.f32.mrb[98].mxu0 }
 0x1bd   : > { %v3174_v21 = vadd.f32 %v3173_v9, %v3172_v60  ;;  %v3286_v10 = vadd.f32 %v3285_v49, %v3284_v61  ;;  %v3287_v12 = vpop.f32.mrb[98].mxu1  ;;  %v3176_v55 = vpop.f32.mrb[99].mxu0 }
 0x1be   : > { %2875 = vst [vmem:[%s3846_s13 + $0x38] sm:$0xff] %v2827_v53   ;;  %v2390_v13 = vadd.f32 %v2389_v62, %v2359_v4  ;;  %v3177_v57 = vadd.f32 %v3176_v55, %v3175_v54  ;;  %v3288_v14 = vpop.f32.mrb[99].mxu1 }
 0x1bf   : > { %v1923_v23 = vadd.f32 %v3174_v21, %v3808_v6  ;;  %v3289_v15 = vadd.f32 %v3288_v14, %v3287_v12 }
 0x1c0   : > { %v1926_v51 = vadd.f32 %v3177_v57, %v3810_v11 }
 0x1c1   : > { %v2084_v16 = vadd.f32 %v3286_v10, %v1923_v23 }
 0x1c2   : > { %v2087_v17 = vadd.f32 %v3289_v15, %v1926_v51  ;;  %v3178_v18 = vpop.f32.mrb[100].mxu0 }
 0x1c3   : > { %v2321_v20 = vadd.f32 %v2320_v2, %v2084_v16  ;;  %v2360_v24 = vmul.f32 %v2084_v16, %v2084_v16  ;;  %v3290_v28 = vpop.f32.mrb[100].mxu1  ;;  %v3179_v32 = vpop.f32.mrb[101].mxu0 }
 0x1c4   : > { %v2832_v33 = vpack.c.bf16 %v2087_v17, %v2084_v16  ;;  %v2361_v34 = vmul.f32 %v2087_v17, %v2087_v17  ;;  %v3180_v29 = vadd.f32 %v3179_v32, %v3178_v18  ;;  %v3291_v35 = vpop.f32.mrb[101].mxu1  ;;  %v3181_v31 = vpop.f32.mrb[102].mxu0 }
 0x1c5   : > { %v2391_v36 = vadd.f32 %v2390_v13, %v2360_v24  ;;  %v2322_v38 = vadd.f32 %v2321_v20, %v2087_v17  ;;  %v3292_v40 = vadd.f32 %v3291_v35, %v3290_v28  ;;  %v3293_v6 = vpop.f32.mrb[102].mxu1  ;;  %v3182_v5 = vpop.f32.mrb[103].mxu0 }
 0x1c6   : > { %2876 = vst [vmem:[%s3846_s13 + $0x40] sm:$0xff] %v2832_v33   ;;  %v1931_v11 = vadd.f32 %v3180_v29, %v3812_v25  ;;  %v3183_v42 = vadd.f32 %v3182_v5, %v3181_v31  ;;  %v3294_v37 = vpop.f32.mrb[103].mxu1 }
 0x1c7   : > { %v2392_v8 = vadd.f32 %v2391_v36, %v2361_v34  ;;  %v3295_v39 = vadd.f32 %v3294_v37, %v3293_v6 }
 0x1c8   : > { %v2092_v46 = vadd.f32 %v3292_v40, %v1931_v11  ;;  %v1934_v47 = vadd.f32 %v3183_v42, %v3814_v27 }
 0x1ca   : > { %v2323_v48 = vadd.f32 %v2322_v38, %v2092_v46  ;;  %v2362_v50 = vmul.f32 %v2092_v46, %v2092_v46  ;;  %v2095_v52 = vadd.f32 %v3295_v39, %v1934_v47  ;;  %v3184_v56 = vpop.f32.mrb[104].mxu0 }
 0x1cb   : > { %v3296_v7 = vpop.f32.mrb[104].mxu1  ;;  %v3185_v58 = vpop.f32.mrb[105].mxu0 }
 0x1cc   : > { %v2393_v59 = vadd.f32 %v2392_v8, %v2362_v50  ;;  %v2837_v60 = vpack.c.bf16 %v2095_v52, %v2092_v46  ;;  %v2324_v61 = vadd.f32 %v2323_v48, %v2095_v52  ;;  %v2363_v9 = vmul.f32 %v2095_v52, %v2095_v52  ;;  %v3297_v62 = vpop.f32.mrb[105].mxu1  ;;  %v3187_v25 = vpop.f32.mrb[106].mxu0 }
 0x1cd   : > { %v3186_v53 = vadd.f32 %v3185_v58, %v3184_v56  ;;  %v3298_v2 = vadd.f32 %v3297_v62, %v3296_v7  ;;  %v3299_v4 = vpop.f32.mrb[106].mxu1  ;;  %v3188_v49 = vpop.f32.mrb[107].mxu0 }
 0x1ce   : > { %2877 = vst [vmem:[%s3846_s13 + $0x48] sm:$0xff] %v2837_v60   ;;  %v2394_v54 = vadd.f32 %v2393_v59, %v2363_v9  ;;  %v3189_v27 = vadd.f32 %v3188_v49, %v3187_v25  ;;  %v3300_v21 = vpop.f32.mrb[107].mxu1 }
 0x1cf   : > { %v1939_v10 = vadd.f32 %v3186_v53, %v3816_v43  ;;  %v3301_v12 = vadd.f32 %v3300_v21, %v3299_v4 }
 0x1d0   : > { %v1942_v55 = vadd.f32 %v3189_v27, %v3818_v45 }
 0x1d1   : > { %v2100_v13 = vadd.f32 %v3298_v2, %v1939_v10 }
 0x1d2   : > { %v2103_v57 = vadd.f32 %v3301_v12, %v1942_v55  ;;  %v3190_v14 = vpop.f32.mrb[108].mxu0 }
 0x1d3   : > { %v2325_v23 = vadd.f32 %v2324_v61, %v2100_v13  ;;  %v2364_v15 = vmul.f32 %v2100_v13, %v2100_v13  ;;  %v3302_v51 = vpop.f32.mrb[108].mxu1  ;;  %v3191_v16 = vpop.f32.mrb[109].mxu0 }
 0x1d4   : > { %v2842_v17 = vpack.c.bf16 %v2103_v57, %v2100_v13  ;;  %v2365_v18 = vmul.f32 %v2103_v57, %v2103_v57  ;;  %v3192_v20 = vadd.f32 %v3191_v16, %v3190_v14  ;;  %v3303_v24 = vpop.f32.mrb[109].mxu1  ;;  %v3193_v28 = vpop.f32.mrb[110].mxu0 }
 0x1d5   : > { %v2395_v32 = vadd.f32 %v2394_v54, %v2364_v15  ;;  %v2326_v33 = vadd.f32 %v2325_v23, %v2103_v57  ;;  %v3304_v34 = vadd.f32 %v3303_v24, %v3302_v51  ;;  %v3305_v43 = vpop.f32.mrb[110].mxu1  ;;  %v3194_v29 = vpop.f32.mrb[111].mxu0 }
 0x1d6   : > { %2878 = vst [vmem:[%s3846_s13 + $0x50] sm:$0xff] %v2842_v17   ;;  %v1947_v45 = vadd.f32 %v3192_v20, %v3820_v63  ;;  %v3195_v35 = vadd.f32 %v3194_v29, %v3193_v28  ;;  %v3306_v31 = vpop.f32.mrb[111].mxu1 }
 0x1d7   : > { %v2396_v36 = vadd.f32 %v2395_v32, %v2365_v18  ;;  %v3307_v38 = vadd.f32 %v3306_v31, %v3305_v43 }
 0x1d8   : > { %v2108_v40 = vadd.f32 %v3304_v34, %v1947_v45  ;;  %v1950_v6 = vadd.f32 %v3195_v35, %v3822_v1 }
 0x1da   : > { %v2327_v5 = vadd.f32 %v2326_v33, %v2108_v40  ;;  %v2366_v11 = vmul.f32 %v2108_v40, %v2108_v40  ;;  %v2111_v42 = vadd.f32 %v3307_v38, %v1950_v6  ;;  %v3196_v37 = vpop.f32.mrb[112].mxu0 }
 0x1db   : > { %v3308_v8 = vpop.f32.mrb[112].mxu1  ;;  %v3197_v39 = vpop.f32.mrb[113].mxu0 }
 0x1dc   : > { %v2397_v46 = vadd.f32 %v2396_v36, %v2366_v11  ;;  %v2847_v47 = vpack.c.bf16 %v2111_v42, %v2108_v40  ;;  %v2328_v48 = vadd.f32 %v2327_v5, %v2111_v42  ;;  %v2367_v50 = vmul.f32 %v2111_v42, %v2111_v42  ;;  %v3309_v52 = vpop.f32.mrb[113].mxu1  ;;  %v3199_v63 = vpop.f32.mrb[114].mxu0 }
 0x1dd   : > { %v3198_v56 = vadd.f32 %v3197_v39, %v3196_v37  ;;  %v3310_v7 = vadd.f32 %v3309_v52, %v3308_v8  ;;  %v3311_v58 = vpop.f32.mrb[114].mxu1  ;;  %v3200_v59 = vpop.f32.mrb[115].mxu0 }
 0x1de   : > { %2879 = vst [vmem:[%s3846_s13 + $0x58] sm:$0xff] %v2847_v47   ;;  %v2398_v60 = vadd.f32 %v2397_v46, %v2367_v50  ;;  %v3201_v1 = vadd.f32 %v3200_v59, %v3199_v63  ;;  %v3312_v61 = vpop.f32.mrb[115].mxu1 }
 0x1df   : > { %v1955_v9 = vadd.f32 %v3198_v56, %v3824_v19  ;;  %v3313_v62 = vadd.f32 %v3312_v61, %v3311_v58 }
 0x1e0   : > { %v1958_v25 = vadd.f32 %v3201_v1, %v3826_v22 }
 0x1e1   : > { %v2116_v53 = vadd.f32 %v3310_v7, %v1955_v9 }
 0x1e2   : > { %v2119_v2 = vadd.f32 %v3313_v62, %v1958_v25  ;;  %v3202_v4 = vpop.f32.mrb[116].mxu0 }
 0x1e3   : > { %v2329_v49 = vadd.f32 %v2328_v48, %v2116_v53  ;;  %v2368_v54 = vmul.f32 %v2116_v53, %v2116_v53  ;;  %v3314_v27 = vpop.f32.mrb[116].mxu1  ;;  %v3203_v21 = vpop.f32.mrb[117].mxu0 }
 0x1e4   : > { %v2852_v10 = vpack.c.bf16 %v2119_v2, %v2116_v53  ;;  %v2369_v12 = vmul.f32 %v2119_v2, %v2119_v2  ;;  %v3204_v55 = vadd.f32 %v3203_v21, %v3202_v4  ;;  %v3315_v13 = vpop.f32.mrb[117].mxu1  ;;  %v3205_v57 = vpop.f32.mrb[118].mxu0 }
 0x1e5   : > { %v2399_v14 = vadd.f32 %v2398_v60, %v2368_v54  ;;  %v2330_v23 = vadd.f32 %v2329_v49, %v2119_v2  ;;  %v3316_v15 = vadd.f32 %v3315_v13, %v3314_v27  ;;  %v3317_v19 = vpop.f32.mrb[118].mxu1  ;;  %v3206_v51 = vpop.f32.mrb[119].mxu0 }
 0x1e6   : > { %2880 = vst [vmem:[%s3846_s13 + $0x60] sm:$0xff] %v2852_v10   ;;  %v1963_v22 = vadd.f32 %v3204_v55, %v3828_v41  ;;  %v3207_v16 = vadd.f32 %v3206_v51, %v3205_v57  ;;  %v3318_v17 = vpop.f32.mrb[119].mxu1 }
 0x1e7   : > { %v2400_v18 = vadd.f32 %v2399_v14, %v2369_v12  ;;  %v3319_v20 = vadd.f32 %v3318_v17, %v3317_v19 }
 0x1e8   : > { %v2124_v24 = vadd.f32 %v3316_v15, %v1963_v22  ;;  %v1966_v28 = vadd.f32 %v3207_v16, %v3830_v44 }
 0x1ea   : > { %v2331_v32 = vadd.f32 %v2330_v23, %v2124_v24  ;;  %v2370_v33 = vmul.f32 %v2124_v24, %v2124_v24  ;;  %v2127_v34 = vadd.f32 %v3319_v20, %v1966_v28  ;;  %v3208_v43 = vpop.f32.mrb[120].mxu0 }
 0x1eb   : > { %v3320_v29 = vpop.f32.mrb[120].mxu1  ;;  %v3209_v45 = vpop.f32.mrb[121].mxu0 }
 0x1ec   : > { %v2401_v35 = vadd.f32 %v2400_v18, %v2370_v33  ;;  %v2857_v31 = vpack.c.bf16 %v2127_v34, %v2124_v24  ;;  %v2332_v36 = vadd.f32 %v2331_v32, %v2127_v34  ;;  %v2371_v38 = vmul.f32 %v2127_v34, %v2127_v34  ;;  %v3321_v40 = vpop.f32.mrb[121].mxu1  ;;  %v3211_v41 = vpop.f32.mrb[122].mxu0 }
 0x1ed   : > { %v3210_v6 = vadd.f32 %v3209_v45, %v3208_v43  ;;  %v3322_v5 = vadd.f32 %v3321_v40, %v3320_v29  ;;  %v3323_v11 = vpop.f32.mrb[122].mxu1  ;;  %v3212_v42 = vpop.f32.mrb[123].mxu0 }
 0x1ee   : > { %2881 = vst [vmem:[%s3846_s13 + $0x68] sm:$0xff] %v2857_v31   ;;  %v2402_v37 = vadd.f32 %v2401_v35, %v2371_v38  ;;  %v3213_v44 = vadd.f32 %v3212_v42, %v3211_v41  ;;  %v3324_v8 = vpop.f32.mrb[123].mxu1 }
 0x1ef   : > { %v1971_v39 = vadd.f32 %v3210_v6, %v3832_v0  ;;  %v3325_v46 = vadd.f32 %v3324_v8, %v3323_v11 }
 0x1f0   : > { %v1974_v47 = vadd.f32 %v3213_v44, %v3834_v3 }
 0x1f1   : > { %v2132_v48 = vadd.f32 %v3322_v5, %v1971_v39 }
 0x1f2   : > { %v2135_v50 = vadd.f32 %v3325_v46, %v1974_v47  ;;  %v3214_v52 = vpop.f32.mrb[124].mxu0 }
 0x1f3   : > { %v2333_v63 = vadd.f32 %v2332_v36, %v2132_v48  ;;  %v2372_v56 = vmul.f32 %v2132_v48, %v2132_v48  ;;  %v3326_v7 = vpop.f32.mrb[124].mxu1  ;;  %v3215_v58 = vpop.f32.mrb[125].mxu0 }
 0x1f4   : > { %v2862_v59 = vpack.c.bf16 %v2135_v50, %v2132_v48  ;;  %v2373_v60 = vmul.f32 %v2135_v50, %v2135_v50  ;;  %v3216_v1 = vadd.f32 %v3215_v58, %v3214_v52  ;;  %v3327_v61 = vpop.f32.mrb[125].mxu1  ;;  %v3217_v9 = vpop.f32.mrb[126].mxu0 }
 0x1f5   : > { %v2403_v62 = vadd.f32 %v2402_v37, %v2372_v56  ;;  %v2334_v25 = vadd.f32 %v2333_v63, %v2135_v50  ;;  %v3328_v53 = vadd.f32 %v3327_v61, %v3326_v7  ;;  %v3329_v0 = vpop.f32.mrb[126].mxu1  ;;  %v3218_v2 = vpop.f32.mrb[127].mxu0 }
 0x1f6   : > { %2882 = vst [vmem:[%s3846_s13 + $0x70] sm:$0xff] %v2862_v59   ;;  %v1979_v3 = vadd.f32 %v3216_v1, %v3836_v26  ;;  %v3219_v4 = vadd.f32 %v3218_v2, %v3217_v9  ;;  %v3330_v49 = vpop.f32.mrb[127].mxu1 }
 0x1f7   : > { %v2404_v54 = vadd.f32 %v2403_v62, %v2373_v60  ;;  %v3331_v27 = vadd.f32 %v3330_v49, %v3329_v0 }
 0x1f8   : > { %v2140_v21 = vadd.f32 %v3328_v53, %v1979_v3  ;;  %v1982_v10 = vadd.f32 %v3219_v4, %v3838_v30 }
 0x1fa   : > { %v2335_v12 = vadd.f32 %v2334_v25, %v2140_v21  ;;  %v2374_v55 = vmul.f32 %v2140_v21, %v2140_v21  ;;  %v2143_v13 = vadd.f32 %v3331_v27, %v1982_v10 }
 0x1fc   : > { %v2405_v57 = vadd.f32 %v2404_v54, %v2374_v55  ;;  %v2867_v14 = vpack.c.bf16 %v2143_v13, %v2140_v21  ;;  %v2336_v23 = vadd.f32 %v2335_v12, %v2143_v13  ;;  %v2375_v15 = vmul.f32 %v2143_v13, %v2143_v13 }
 0x1fe   : > { %2883 = vst [vmem:[%s3846_s13 + $0x78] sm:$0xff] %v2867_v14   ;;  %v2337_v19 = vrot.slane %v2336_v23, 4  ;;  %v2406_v51 = vadd.f32 %v2405_v57, %v2375_v15 }
 0x200   : > { %v2338_v26 = vadd.f32 %v2337_v19, %v2336_v23  ;;  %v2407_v22 = vrot.slane %v2406_v51, 4 }
 0x202   : > { %v2339_v16 = vrot.slane %v2338_v26, 2  ;;  %v2408_v17 = vadd.f32 %v2407_v22, %v2406_v51 }
 0x204   : > { %v2340_v18 = vadd.f32 %v2339_v16, %v2338_v26  ;;  %v2409_v20 = vrot.slane %v2408_v17, 2 }
 0x206   : > { %v2341_v30 = vrot.slane %v2340_v18, 1  ;;  %v2410_v24 = vadd.f32 %v2409_v20, %v2408_v17 }
 0x208   : > { %v2342_v28 = vadd.f32 %v2341_v30, %v2340_v18  ;;  %v2411_v32 = vrot.slane %v2410_v24, 1 }
 0x20a   : > { %2343 = vst [vmem:[%s217_s17] sm:$0x1] %v2342_v28  ;;  %v2412_v33 = vadd.f32 %v2411_v32, %v2410_v24 }
 0x20c   : > { %2413 = vst [vmem:[%s220_s20] sm:$0x1] %v2412_v33 }
 0x20d PF: > { %s15_s15 = sadd.s32 1, %s3410_s15  }
 0x20e   : > { %p12_p5 = scmp.ge.s32.totalorder %s15_s15, 4  }
 0x210   :  { %14 = sbr.rel (!%p12_p5) target bundleno = 1 (0x1), region = 82 }

// kernel: _lambda_.9
= control target key start
LH: loop header
LB: loop body
LE: loop exit
PB: predicated region body
PF: predicated region fallthrough
CT: control target
= control target key end

     0   :  { %s3909_s15 = smov 0   ;;  %s4833_s0 = inlined_call_operand.vmem [shape: bf16[128,2048], index: 0, kind: input, shape index: {}]   ;;  %s4834_s1 = inlined_call_operand.vmem [shape: bf16[2048,256], index: 1, kind: input, shape index: {}]   ;;  %s4835_s2 = inlined_call_operand.vmem [shape: bf16[128,256], index: 2, kind: output, shape index: {0}]   ;;  %s4836_s3 = inlined_call_operand.vmem [shape: f32[2,1,256], index: 3, kind: output, shape index: {1}]   ;;  %s4837_s4 = inlined_call_operand.vmem [shape: f32[2,1,256], index: 4, kind: output, shape index: {2}]  }
   0x1 LB: > { %s3915_s16 = sadd.s32 4294967295, %s3881_s15   ;;  %p3021_p0 = scmp.ge.s32.totalorder %s3881_s15, 1  ;;  %s3881_s15 = sphi %s3909_s15, %s15_s15  }
   0x2   : > { %p169_p1 = scmp.lt.s32.totalorder %s3881_s15, 3 }
   0x4   : > { %p170_p2 = pnand %p3021_p0, %p169_p1 }
   0x5   : > { %v3491_v0 = vld [vmem:[%s4834_s1 + $0x4] ss:$8 sps:$4 sm:$0xff] (!%p170_p2)   ;;  %v3495_v2 = vld [vmem:[%s4834_s1] ss:$8 sps:$4 sm:$0xff] (!%p170_p2)   ;;  %v3497_v4 = vld [vmem:[%s4834_s1 + $0x14] ss:$8 sps:$4 sm:$0xff] (!%p170_p2)  }
   0x6   : > { %173 = sbr.rel (%p170_p2) target bundleno = 527 (0x20f), region = 28  ;;  %v3493_v1 = vld [vmem:[%s4834_s1 + $0x404] ss:$8 sps:$4 sm:$0xff] (!%p170_p2)   ;;  %2147 = vmatprep.subr.bf16.mxu1 (!%p170_p2), %v3491_v0  ;;  %v3496_v3 = vld [vmem:[%s4834_s1 + $0x400] ss:$8 sps:$4 sm:$0xff] (!%p170_p2)   ;;  %s3022_s29 = sshll.u32 (!%p170_p2), %s3915_s16, 3 }
   0x7   : > { %2439 = vmatprep.subr.bf16.mxu0 (!%p170_p2), %v3493_v1  ;;  %2148 = vmatpush1.bf16.msra.mxu1 (!%p170_p2), %v3495_v2  ;;  %v3499_v5 = vld [vmem:[%s4834_s1 + $0x414] ss:$8 sps:$4 sm:$0xff] (!%p170_p2)   ;;  %v3501_v6 = vld [vmem:[%s4834_s1 + $0x10] ss:$8 sps:$4 sm:$0xff] (!%p170_p2)   ;;  %v3503_v8 = vld [vmem:[%s4834_s1 + $0x24] ss:$8 sps:$4 sm:$0xff] (!%p170_p2)  }
   0x8   : > { %2440 = vmatpush1.bf16.msra.mxu0 (!%p170_p2), %v3496_v3  ;;  %2149 = vmatprep.subr.bf16.mxu1 (!%p170_p2), %v3497_v4  ;;  %v3502_v7 = vld [vmem:[%s4834_s1 + $0x410] ss:$8 sps:$4 sm:$0xff] (!%p170_p2)   ;;  %v3505_v9 = vld [vmem:[%s4834_s1 + $0x424] ss:$8 sps:$4 sm:$0xff] (!%p170_p2)   ;;  %v3507_v10 = vld [vmem:[%s4834_s1 + $0x20] ss:$8 sps:$4 sm:$0xff] (!%p170_p2)  }
   0x9   : > { %2441 = vmatprep.subr.bf16.mxu0 (!%p170_p2), %v3499_v5  ;;  %v3508_v11 = vld [vmem:[%s4834_s1 + $0x420] ss:$8 sps:$4 sm:$0xff] (!%p170_p2)   ;;  %v3509_v12 = vld [vmem:[%s4834_s1 + $0x34] ss:$8 sps:$4 sm:$0xff] (!%p170_p2)   ;;  %v3513_v14 = vld [vmem:[%s4834_s1 + $0x30] ss:$8 sps:$4 sm:$0xff] (!%p170_p2)  }
   0xa   : > { %v3511_v13 = vld [vmem:[%s4834_s1 + $0x434] ss:$8 sps:$4 sm:$0xff] (!%p170_p2)   ;;  %v3514_v15 = vld [vmem:[%s4834_s1 + $0x430] ss:$8 sps:$4 sm:$0xff] (!%p170_p2)   ;;  %v3515_v16 = vld [vmem:[%s4834_s1 + $0x44] ss:$8 sps:$4 sm:$0xff] (!%p170_p2)  }
   0xb   : > { %2150 = vmatpush1.bf16.msra.mxu1 (!%p170_p2), %v3501_v6  ;;  %v3517_v17 = vld [vmem:[%s4834_s1 + $0x444] ss:$8 sps:$4 sm:$0xff] (!%p170_p2)   ;;  %v3519_v18 = vld [vmem:[%s4834_s1 + $0x40] ss:$8 sps:$4 sm:$0xff] (!%p170_p2)   ;;  %v3521_v20 = vld [vmem:[%s4834_s1 + $0x54] ss:$8 sps:$4 sm:$0xff] (!%p170_p2)  }
   0xc   : > { %2442 = vmatpush1.bf16.msra.mxu0 (!%p170_p2), %v3502_v7  ;;  %2151 = vmatprep.subr.bf16.mxu1 (!%p170_p2), %v3503_v8  ;;  %v3520_v19 = vld [vmem:[%s4834_s1 + $0x440] ss:$8 sps:$4 sm:$0xff] (!%p170_p2)   ;;  %v3523_v21 = vld [vmem:[%s4834_s1 + $0x454] ss:$8 sps:$4 sm:$0xff] (!%p170_p2)   ;;  %v3525_v22 = vld [vmem:[%s4834_s1 + $0x50] ss:$8 sps:$4 sm:$0xff] (!%p170_p2)  }
   0xd   : > { %2443 = vmatprep.subr.bf16.mxu0 %v3505_v9  ;;  %v3526_v23 = vld [vmem:[%s4834_s1 + $0x450] ss:$8 sps:$4 sm:$0xff]   ;;  %v3527_v24 = vld [vmem:[%s4834_s1 + $0x64] ss:$8 sps:$4 sm:$0xff]   ;;  %v3531_v26 = vld [vmem:[%s4834_s1 + $0x60] ss:$8 sps:$4 sm:$0xff]  }
   0xe   : > { %v3529_v25 = vld [vmem:[%s4834_s1 + $0x464] ss:$8 sps:$4 sm:$0xff]   ;;  %v3532_v27 = vld [vmem:[%s4834_s1 + $0x460] ss:$8 sps:$4 sm:$0xff]   ;;  %v3533_v28 = vld [vmem:[%s4834_s1 + $0x74] ss:$8 sps:$4 sm:$0xff]  }
   0xf   : > { %2152 = vmatpush1.bf16.msra.mxu1 %v3507_v10  ;;  %v3535_v29 = vld [vmem:[%s4834_s1 + $0x474] ss:$8 sps:$4 sm:$0xff]   ;;  %v3537_v30 = vld [vmem:[%s4834_s1 + $0x70] ss:$8 sps:$4 sm:$0xff]   ;;  %v3539_v32 = vld [vmem:[%s4834_s1 + $0x84] ss:$8 sps:$4 sm:$0xff]  }
  0x10   : > { %2444 = vmatpush1.bf16.msra.mxu0 %v3508_v11  ;;  %2153 = vmatprep.subr.bf16.mxu1 %v3509_v12  ;;  %v3538_v31 = vld [vmem:[%s4834_s1 + $0x470] ss:$8 sps:$4 sm:$0xff]   ;;  %p206_p3 = scmp.lt.s32.totalorder %s3022_s29, 15  ;;  %v3541_v33 = vld [vmem:[%s4834_s1 + $0x484] ss:$8 sps:$4 sm:$0xff]   ;;  %p219_p4 = scmp.lt.s32.totalorder %s3915_s16, 1 }
  0x11   : > { %2445 = vmatprep.subr.bf16.mxu0 %v3511_v13  ;;  %v3543_v34 = vld [vmem:[%s4834_s1 + $0x80] ss:$8 sps:$4 sm:$0xff]   ;;  %v3545_v36 = vld [vmem:[%s4834_s1 + $0x94] ss:$8 sps:$4 sm:$0xff]   ;;  %v3549_v38 = vld [vmem:[%s4834_s1 + $0x90] ss:$8 sps:$4 sm:$0xff]  }
  0x12   : > { %v3544_v35 = vld [vmem:[%s4834_s1 + $0x480] ss:$8 sps:$4 sm:$0xff]   ;;  %s4839_s29 = smov (!%p206_p3, %s3022_s29), 15  ;;  %v3547_v37 = vld [vmem:[%s4834_s1 + $0x494] ss:$8 sps:$4 sm:$0xff]   ;;  %s4841_s16 = smov (!%p219_p4, %s3915_s16), 1 }
  0x13   : > { %2154 = vmatpush1.bf16.msra.mxu1 %v3513_v14  ;;  %v3550_v39 = vld [vmem:[%s4834_s1 + $0x490] ss:$8 sps:$4 sm:$0xff]   ;;  %v3551_v40 = vld [vmem:[%s4834_s1 + $0xa4] ss:$8 sps:$4 sm:$0xff]   ;;  %s3360_s28 = sshll.u32 %s4839_s29, 6  ;;  %s3361_s21 = sshll.u32 %s4839_s29, 3 }
  0x14   : > { %2446 = vmatpush1.bf16.msra.mxu0 %v3514_v15  ;;  %2155 = vmatprep.subr.bf16.mxu1 %v3515_v16  ;;  %v3553_v41 = vld [vmem:[%s4834_s1 + $0x4a4] ss:$8 sps:$4 sm:$0xff]   ;;  %v3555_v42 = vld [vmem:[%s4834_s1 + $0xa0] ss:$8 sps:$4 sm:$0xff]   ;;  %s4058_s12 = scalar_lea.vmem %s4833_s0, %s3360_s28  ;;  %v3557_v44 = vld [vmem:[%s4834_s1 + $0xb4] ss:$8 sps:$4 sm:$0xff]   ;;  %s4812_s23 = scalar_lea.vmem %s4835_s2, %s3361_s21 }
  0x15   : > { %2447 = vmatprep.subr.bf16.mxu0 %v3517_v17  ;;  %v3556_v43 = vld [vmem:[%s4834_s1 + $0x4a0] ss:$8 sps:$4 sm:$0xff]   ;;  %v3559_v45 = vld [vmem:[%s4834_s1 + $0x4b4] ss:$8 sps:$4 sm:$0xff]   ;;  %v3561_v46 = vld [vmem:[%s4834_s1 + $0xb0] ss:$8 sps:$4 sm:$0xff]  }
  0x16   : > { %v3562_v47 = vld [vmem:[%s4834_s1 + $0x4b0] ss:$8 sps:$4 sm:$0xff]   ;;  %v227_v48 = vld [vmem:[%s4058_s12] sm:$0xff]  ;;  %v3569_v58 = vld [vmem:[%s4834_s1 + $0xd4] ss:$8 sps:$4 sm:$0xff]   ;;  %s3028_s29 = sshll.u32 %s4841_s16, 1 }
  0x17   : > { %2156 = vmatpush1.bf16.msra.mxu1 %v3519_v18  ;;  %v235_v49 = vld [vmem:[%s4058_s12 + $0x40] sm:$0xff]  ;;  %v3571_v59 = vld [vmem:[%s4834_s1 + $0x4d4] ss:$8 sps:$4 sm:$0xff]   ;;  %v3573_v60 = vld [vmem:[%s4834_s1 + $0xd0] ss:$8 sps:$4 sm:$0xff]   ;;  %s222_s26 = scalar_lea.vmem %s4836_s3, %s3028_s29  ;;  %s226_s30 = scalar_lea.vmem %s4837_s4, %s3028_s29 }
  0x18   : > { %2448 = vmatpush1.bf16.msra.mxu0 %v3520_v19  ;;  %2157 = vmatprep.subr.bf16.mxu1 %v3521_v20  ;;  %v3563_v50 = vld [vmem:[%s4834_s1 + $0xc4] ss:$8 sps:$4 sm:$0xff]   ;;  %v3031_v52 = vcombine.high %v227_v48, %v235_v49  ;;  %v3567_v56 = vld [vmem:[%s4834_s1 + $0xc0] ss:$8 sps:$4 sm:$0xff]   ;;  %v3574_v61 = vld [vmem:[%s4834_s1 + $0x4d0] ss:$8 sps:$4 sm:$0xff]   ;;  %v3030_v8 = vcombine.low %v227_v48, %v235_v49 }
  0x19   : > { %2449 = vmatprep.subr.bf16.mxu0 %v3523_v21  ;;  %v3565_v51 = vld [vmem:[%s4834_s1 + $0x4c4] ss:$8 sps:$4 sm:$0xff]   ;;  %v3568_v57 = vld [vmem:[%s4834_s1 + $0x4c0] ss:$8 sps:$4 sm:$0xff]   ;;  %v3581_v2 = vld [vmem:[%s4834_s1 + $0xf4] ss:$8 sps:$4 sm:$0xff]  }
  0x1a   : > { %v231_v53 = vld [vmem:[%s4058_s12 + $0x20] sm:$0xff]  ;;  %2179 = vmatprep.mubr.bf16.mxu1 %v3031_v52  ;;  %v3583_v3 = vld [vmem:[%s4834_s1 + $0x4f4] ss:$8 sps:$4 sm:$0xff]   ;;  %v3585_v4 = vld [vmem:[%s4834_s1 + $0xf0] ss:$8 sps:$4 sm:$0xff]  }
  0x1b   : > { %2158 = vmatpush1.bf16.msra.mxu1 %v3525_v22  ;;  %v239_v54 = vld [vmem:[%s4058_s12 + $0x60] sm:$0xff]  ;;  %v3586_v5 = vld [vmem:[%s4834_s1 + $0x4f0] ss:$8 sps:$4 sm:$0xff]   ;;  %v3595_v12 = vld [vmem:[%s4834_s1 + $0x114] ss:$8 sps:$4 sm:$0xff]  }
  0x1c   : > { %2450 = vmatpush1.bf16.msra.mxu0 %v3526_v23  ;;  %2159 = vmatprep.subr.bf16.mxu1 %v3527_v24  ;;  %v3039_v55 = vcombine.high %v231_v53, %v239_v54  ;;  %v3575_v62 = vld [vmem:[%s4834_s1 + $0xe4] ss:$8 sps:$4 sm:$0xff]   ;;  %v3579_v0 = vld [vmem:[%s4834_s1 + $0xe0] ss:$8 sps:$4 sm:$0xff]   ;;  %v3038_v10 = vcombine.low %v231_v53, %v239_v54  ;;  %v3598_v13 = vld [vmem:[%s4834_s1 + $0x514] ss:$8 sps:$4 sm:$0xff]  }
  0x1d   : > { %2451 = vmatprep.subr.bf16.mxu0 %v3529_v25  ;;  %v3577_v63 = vld [vmem:[%s4834_s1 + $0x4e4] ss:$8 sps:$4 sm:$0xff]   ;;  %v3580_v1 = vld [vmem:[%s4834_s1 + $0x4e0] ss:$8 sps:$4 sm:$0xff]   ;;  %v3593_v14 = vld [vmem:[%s4834_s1 + $0x110] ss:$8 sps:$4 sm:$0xff]  }
  0x1e   : > { %2471 = vmatprep.mubr.bf16.mxu0 %v3039_v55  ;;  %v3589_v6 = vld [vmem:[%s4834_s1 + $0x104] ss:$8 sps:$4 sm:$0xff]   ;;  %v3587_v9 = vld [vmem:[%s4834_s1 + $0x100] ss:$8 sps:$4 sm:$0xff]   ;;  %v3596_v15 = vld [vmem:[%s4834_s1 + $0x510] ss:$8 sps:$4 sm:$0xff]  }
  0x1f   : > { %2160 = vmatpush1.bf16.msra.mxu1 %v3531_v26  ;;  %v3592_v7 = vld [vmem:[%s4834_s1 + $0x504] ss:$8 sps:$4 sm:$0xff]   ;;  %v3590_v11 = vld [vmem:[%s4834_s1 + $0x500] ss:$8 sps:$4 sm:$0xff]   ;;  %v3607_v22 = vld [vmem:[%s4834_s1 + $0x134] ss:$8 sps:$4 sm:$0xff]  }
  0x20   : > { %2452 = vmatpush1.bf16.msra.mxu0 %v3532_v27  ;;  %2161 = vmatprep.subr.bf16.mxu1 %v3533_v28  ;;  %v3601_v16 = vld [vmem:[%s4834_s1 + $0x124] ss:$8 sps:$4 sm:$0xff]   ;;  %v3599_v18 = vld [vmem:[%s4834_s1 + $0x120] ss:$8 sps:$4 sm:$0xff]   ;;  %v3610_v23 = vld [vmem:[%s4834_s1 + $0x534] ss:$8 sps:$4 sm:$0xff]  }
  0x21   : > { %2453 = vmatprep.subr.bf16.mxu0 %v3535_v29  ;;  %v3604_v17 = vld [vmem:[%s4834_s1 + $0x524] ss:$8 sps:$4 sm:$0xff]   ;;  %v3602_v19 = vld [vmem:[%s4834_s1 + $0x520] ss:$8 sps:$4 sm:$0xff]   ;;  %v3605_v29 = vld [vmem:[%s4834_s1 + $0x130] ss:$8 sps:$4 sm:$0xff]  }
  0x22   : > { %v243_v20 = vld [vmem:[%s4058_s12 + $0x80] sm:$0xff] }
  0x23   : > { %2162 = vmatpush1.bf16.msra.mxu1 %v3537_v30  ;;  %v251_v21 = vld [vmem:[%s4058_s12 + $0xc0] sm:$0xff]  ;;  %v3608_v30 = vld [vmem:[%s4834_s1 + $0x530] ss:$8 sps:$4 sm:$0xff]  }
  0x24   : > { %2454 = vmatpush1.bf16.msra.mxu0 %v3538_v31  ;;  %2163 = vmatprep.subr.bf16.mxu1 %v3539_v32  ;;  %v3047_v24 = vcombine.high %v243_v20, %v251_v21  ;;  %v247_v25 = vld [vmem:[%s4058_s12 + $0xa0] sm:$0xff]  ;;  %v3046_v26 = vcombine.low %v243_v20, %v251_v21  ;;  %v3653_v20 = vld [vmem:[%s4834_s1 + $0x1b0] ss:$8 sps:$4 sm:$0xff]  }
  0x25   : > { %2455 = vmatprep.subr.bf16.mxu0 %v3541_v33  ;;  %v255_v27 = vld [vmem:[%s4058_s12 + $0xe0] sm:$0xff]  ;;  %v3656_v21 = vld [vmem:[%s4834_s1 + $0x5b0] ss:$8 sps:$4 sm:$0xff]  }
  0x26   : > { %v3055_v28 = vcombine.high %v247_v25, %v255_v27  ;;  %v3054_v31 = vcombine.low %v247_v25, %v255_v27  ;;  %v3613_v32 = vld [vmem:[%s4834_s1 + $0x144] ss:$8 sps:$4 sm:$0xff]   ;;  %v3623_v55 = vld [vmem:[%s4834_s1 + $0x160] ss:$8 sps:$4 sm:$0xff]   ;;  %v3670_v27 = vld [vmem:[%s4834_s1 + $0x5d4] ss:$8 sps:$4 sm:$0xff]  }
  0x27   : > { %2164 = vmatpush1.bf16.msra.mxu1 %v3543_v34  ;;  %v3616_v33 = vld [vmem:[%s4834_s1 + $0x544] ss:$8 sps:$4 sm:$0xff]   ;;  %v3662_v25 = vld [vmem:[%s4834_s1 + $0x5c0] ss:$8 sps:$4 sm:$0xff]  }
  0x28   : > { %2456 = vmatpush1.bf16.msra.mxu0 %v3544_v35  ;;  %2165 = vmatprep.subr.bf16.mxu1 %v3545_v36  ;;  %v259_v34 = vld [vmem:[%s4058_s12 + $0x100] sm:$0xff] }
  0x29   : > { %2457 = vmatprep.subr.bf16.mxu0 %v3547_v37  ;;  %v267_v35 = vld [vmem:[%s4058_s12 + $0x140] sm:$0xff] }
  0x2a   : > { %v3611_v36 = vld [vmem:[%s4834_s1 + $0x140] ss:$8 sps:$4 sm:$0xff]   ;;  %v3063_v37 = vcombine.high %v259_v34, %v267_v35 }
  0x2b   : > { %2166 = vmatpush1.bf16.msra.mxu1 %v3549_v38  ;;  %v3614_v38 = vld [vmem:[%s4834_s1 + $0x540] ss:$8 sps:$4 sm:$0xff]  }
  0x2c   : > { %2458 = vmatpush1.bf16.msra.mxu0 %v3550_v39  ;;  %2167 = vmatprep.subr.bf16.mxu1 %v3551_v40  ;;  %v263_v39 = vld [vmem:[%s4058_s12 + $0x120] sm:$0xff] }
  0x2d   : > { %2459 = vmatprep.subr.bf16.mxu0 %v3553_v41  ;;  %v271_v40 = vld [vmem:[%s4058_s12 + $0x160] sm:$0xff]  ;;  %v3062_v41 = vcombine.low %v259_v34, %v267_v35  ;;  %v3679_v34 = vld [vmem:[%s4834_s1 + $0x1f4] ss:$8 sps:$4 sm:$0xff]  }
  0x2e   : > { %v275_v48 = vld [vmem:[%s4058_s12 + $0x180] sm:$0xff]  ;;  %v3682_v35 = vld [vmem:[%s4834_s1 + $0x5f4] ss:$8 sps:$4 sm:$0xff]  }
  0x2f   : > { %2168 = vmatpush1.bf16.msra.mxu1 %v3555_v42  ;;  %v3619_v42 = vld [vmem:[%s4834_s1 + $0x154] ss:$8 sps:$4 sm:$0xff]   ;;  %v283_v49 = vld [vmem:[%s4058_s12 + $0x1c0] sm:$0xff] }
  0x30   : > { %2460 = vmatpush1.bf16.msra.mxu0 %v3556_v43  ;;  %2169 = vmatprep.subr.bf16.mxu1 %v3557_v44  ;;  %v3071_v43 = vcombine.high %v263_v39, %v271_v40  ;;  %v3622_v44 = vld [vmem:[%s4834_s1 + $0x554] ss:$8 sps:$4 sm:$0xff]   ;;  %v3079_v52 = vcombine.high %v275_v48, %v283_v49  ;;  %v279_v53 = vld [vmem:[%s4058_s12 + $0x1a0] sm:$0xff] }
  0x31   : > { %2461 = vmatprep.subr.bf16.mxu0 %v3559_v45  ;;  %v3617_v45 = vld [vmem:[%s4834_s1 + $0x150] ss:$8 sps:$4 sm:$0xff]   ;;  %v287_v54 = vld [vmem:[%s4058_s12 + $0x1e0] sm:$0xff] }
  0x33   : > { %2170 = vmatpush1.bf16.msra.mxu1 %v3561_v46  ;;  %v3620_v46 = vld [vmem:[%s4834_s1 + $0x550] ss:$8 sps:$4 sm:$0xff]  }
  0x34   : > { %2462 = vmatpush1.bf16.msra.mxu0 %v3562_v47  ;;  %2171 = vmatprep.subr.bf16.mxu1 %v3563_v50  ;;  %v3070_v47 = vcombine.low %v263_v39, %v271_v40  ;;  %v3625_v50 = vld [vmem:[%s4834_s1 + $0x164] ss:$8 sps:$4 sm:$0xff]   ;;  %v3683_v40 = vld [vmem:[%s4834_s1 + $0x200] ss:$8 sps:$4 sm:$0xff]  }
  0x35   : > { %2463 = vmatprep.subr.bf16.mxu0 %v3565_v51  ;;  %v3628_v51 = vld [vmem:[%s4834_s1 + $0x564] ss:$8 sps:$4 sm:$0xff]  }
  0x36   : > { %v3688_v39 = vld [vmem:[%s4834_s1 + $0x604] ss:$8 sps:$4 sm:$0xff]  }
  0x37   : > { %2172 = vmatpush1.bf16.msra.mxu1 %v3567_v56  ;;  %v3626_v56 = vld [vmem:[%s4834_s1 + $0x560] ss:$8 sps:$4 sm:$0xff]  }
  0x38   : > { %2464 = vmatpush1.bf16.msra.mxu0 %v3568_v57  ;;  %2173 = vmatprep.subr.bf16.mxu1 %v3569_v58  ;;  %v3087_v57 = vcombine.high %v279_v53, %v287_v54  ;;  %v3078_v58 = vcombine.low %v275_v48, %v283_v49  ;;  %v3691_v48 = vld [vmem:[%s4834_s1 + $0x214] ss:$8 sps:$4 sm:$0xff]  }
  0x39   : > { %2465 = vmatprep.subr.bf16.mxu0 %v3571_v59  ;;  %v3631_v59 = vld [vmem:[%s4834_s1 + $0x174] ss:$8 sps:$4 sm:$0xff]  }
  0x3a   : > { %v3694_v49 = vld [vmem:[%s4834_s1 + $0x614] ss:$8 sps:$4 sm:$0xff]  }
  0x3b   : > { %2174 = vmatpush1.bf16.msra.mxu1 %v3573_v60  ;;  %v3634_v60 = vld [vmem:[%s4834_s1 + $0x574] ss:$8 sps:$4 sm:$0xff]  }
  0x3c   : > { %2466 = vmatpush1.bf16.msra.mxu0 %v3574_v61  ;;  %2175 = vmatprep.subr.bf16.mxu1 %v3575_v62  ;;  %v3629_v61 = vld [vmem:[%s4834_s1 + $0x170] ss:$8 sps:$4 sm:$0xff]  }
  0x3d   : > { %2467 = vmatprep.subr.bf16.mxu0 %v3577_v63  ;;  %v3632_v62 = vld [vmem:[%s4834_s1 + $0x570] ss:$8 sps:$4 sm:$0xff]   ;;  %v4233_v63 = vld [vmem:[%s4058_s12 + $0x8] sm:$0xff] }
  0x3f   : > { %2176 = vmatpush1.bf16.msra.mxu1 %v3579_v0  ;;  %v3086_v0 = vcombine.low %v279_v53, %v287_v54  ;;  %v3692_v53 = vld [vmem:[%s4834_s1 + $0x610] ss:$8 sps:$4 sm:$0xff]   ;;  %v3697_v54 = vld [vmem:[%s4834_s1 + $0x224] ss:$8 sps:$4 sm:$0xff]  }
  0x40   : > { %2468 = vmatpush1.bf16.msra.mxu0 %v3580_v1  ;;  %2177 = vmatprep.subr.bf16.mxu1 %v3581_v2  ;;  %v4236_v1 = vld [vmem:[%s4058_s12 + $0x48] sm:$0xff] }
  0x41   : > { %2469 = vmatprep.subr.bf16.mxu0 %v3583_v3  ;;  %v3637_v2 = vld [vmem:[%s4834_s1 + $0x184] ss:$8 sps:$4 sm:$0xff]  }
  0x42   : > { %v3640_v3 = vld [vmem:[%s4834_s1 + $0x584] ss:$8 sps:$4 sm:$0xff]  }
  0x43   : > { %2178 = vmatpush1.bf16.msra.mxu1 %v3585_v4  ;;  %v3033_v4 = vcombine.high %v4233_v63, %v4236_v1 }
  0x44   : > { %2470 = vmatpush1.bf16.msra.mxu0 %v3586_v5  ;;  %2220 = vmatprep.subr.bf16.mxu1 %v3589_v6  ;;  %v4247_v5 = vld [vmem:[%s4058_s12 + $0x28] sm:$0xff] }
  0x45   : > { %2512 = vmatprep.subr.bf16.mxu0 %v3592_v7  ;;  %v4250_v6 = vld [vmem:[%s4058_s12 + $0x68] sm:$0xff] }
  0x46   : > { %2180 = vmatmul.mubr.bf16.vlgmr.msra.gmra.mrb[0].mxu1 %v3030_v8  ;;  %v3041_v7 = vcombine.high %v4247_v5, %v4250_v6  ;;  %v3635_v8 = vld [vmem:[%s4834_s1 + $0x180] ss:$8 sps:$4 sm:$0xff]  }
  0x47   : > { %2472 = vmatmul.mubr.bf16.vlgmr.msra.gmra.mrb[0].mxu0 %v3038_v10  ;;  %2221 = vmatpush1.bf16.msra.mxu1 %v3587_v9  ;;  %v3638_v9 = vld [vmem:[%s4834_s1 + $0x580] ss:$8 sps:$4 sm:$0xff]   ;;  %v3643_v10 = vld [vmem:[%s4834_s1 + $0x194] ss:$8 sps:$4 sm:$0xff]  }
  0x48   : > { %2513 = vmatpush1.bf16.msra.mxu0 %v3590_v11  ;;  %2222 = vmatprep.subr.bf16.mxu1 %v3595_v12  ;;  %v3646_v11 = vld [vmem:[%s4834_s1 + $0x594] ss:$8 sps:$4 sm:$0xff]   ;;  %v3641_v12 = vld [vmem:[%s4834_s1 + $0x190] ss:$8 sps:$4 sm:$0xff]  }
  0x49   : > { %2514 = vmatprep.subr.bf16.mxu0 %v3598_v13  ;;  %2189 = vmatprep.mubr.bf16.mxu1 %v3047_v24  ;;  %v3644_v13 = vld [vmem:[%s4834_s1 + $0x590] ss:$8 sps:$4 sm:$0xff]   ;;  %v3659_v24 = vld [vmem:[%s4834_s1 + $0x1c0] ss:$8 sps:$4 sm:$0xff]  }
  0x4a   : > { %2481 = vmatprep.mubr.bf16.mxu0 %v3055_v28  ;;  %v3665_v28 = vld [vmem:[%s4834_s1 + $0x1d0] ss:$8 sps:$4 sm:$0xff]  }
  0x4b   : > { %2223 = vmatpush1.bf16.msra.mxu1 %v3593_v14  ;;  %v3649_v14 = vld [vmem:[%s4834_s1 + $0x1a4] ss:$8 sps:$4 sm:$0xff]  }
  0x4c   : > { %2515 = vmatpush1.bf16.msra.mxu0 %v3596_v15  ;;  %2224 = vmatprep.subr.bf16.mxu1 %v3601_v16  ;;  %v3652_v15 = vld [vmem:[%s4834_s1 + $0x5a4] ss:$8 sps:$4 sm:$0xff]   ;;  %v3647_v16 = vld [vmem:[%s4834_s1 + $0x1a0] ss:$8 sps:$4 sm:$0xff]  }
  0x4d   : > { %2516 = vmatprep.subr.bf16.mxu0 %v3604_v17  ;;  %v3650_v17 = vld [vmem:[%s4834_s1 + $0x5a0] ss:$8 sps:$4 sm:$0xff]  }
  0x4e   : > { %2190 = vmatmul.mubr.bf16.gmra.mrb[4].mxu1 %v3046_v26  ;;  %v3667_v26 = vld [vmem:[%s4834_s1 + $0x1d4] ss:$8 sps:$4 sm:$0xff]  }
  0x4f   : > { %2225 = vmatpush1.bf16.msra.mxu1 %v3599_v18  ;;  %2482 = vmatmul.mubr.bf16.gmra.mrb[4].mxu0 %v3054_v31  ;;  %v3655_v18 = vld [vmem:[%s4834_s1 + $0x1b4] ss:$8 sps:$4 sm:$0xff]   ;;  %v3676_v31 = vld [vmem:[%s4834_s1 + $0x5e4] ss:$8 sps:$4 sm:$0xff]  }
  0x50   : > { %2517 = vmatpush1.bf16.msra.mxu0 %v3602_v19  ;;  %2226 = vmatprep.subr.bf16.mxu1 %v3607_v22  ;;  %v3658_v19 = vld [vmem:[%s4834_s1 + $0x5b4] ss:$8 sps:$4 sm:$0xff]   ;;  %v3661_v22 = vld [vmem:[%s4834_s1 + $0x1c4] ss:$8 sps:$4 sm:$0xff]  }
  0x51   : > { %2518 = vmatprep.subr.bf16.mxu0 %v3610_v23  ;;  %2199 = vmatprep.mubr.bf16.mxu1 %v3063_v37  ;;  %v3664_v23 = vld [vmem:[%s4834_s1 + $0x5c4] ss:$8 sps:$4 sm:$0xff]   ;;  %v3680_v37 = vld [vmem:[%s4834_s1 + $0x5f0] ss:$8 sps:$4 sm:$0xff]  }
  0x52   : > { %2491 = vmatprep.mubr.bf16.mxu0 %v3071_v43  ;;  %v3032_v43 = vcombine.low %v4233_v63, %v4236_v1  ;;  %v272_v63 = vld [vmem:[%s4058_s12 + $0x168] sm:$0xff]  ;;  %v3706_v1 = vld [vmem:[%s4834_s1 + $0x634] ss:$8 sps:$4 sm:$0xff]  }
  0x53   : > { %2227 = vmatpush1.bf16.msra.mxu1 %v3605_v29  ;;  %v3668_v29 = vld [vmem:[%s4834_s1 + $0x5d0] ss:$8 sps:$4 sm:$0xff]  }
  0x54   : > { %2519 = vmatpush1.bf16.msra.mxu0 %v3608_v30  ;;  %2228 = vmatprep.subr.bf16.mxu1 %v3613_v32  ;;  %v3673_v30 = vld [vmem:[%s4834_s1 + $0x1e4] ss:$8 sps:$4 sm:$0xff]   ;;  %v3671_v32 = vld [vmem:[%s4834_s1 + $0x1e0] ss:$8 sps:$4 sm:$0xff]  }
  0x55   : > { %2520 = vmatprep.subr.bf16.mxu0 %v3616_v33  ;;  %v3674_v33 = vld [vmem:[%s4834_s1 + $0x5e0] ss:$8 sps:$4 sm:$0xff]  }
  0x56   : > { %2200 = vmatmul.mubr.bf16.gmra.mrb[8].mxu1 %v3062_v41  ;;  %v3686_v41 = vld [vmem:[%s4834_s1 + $0x600] ss:$8 sps:$4 sm:$0xff]  }
  0x57   : > { %2229 = vmatpush1.bf16.msra.mxu1 %v3611_v36  ;;  %2492 = vmatmul.mubr.bf16.gmra.mrb[8].mxu0 %v3070_v47  ;;  %v3677_v36 = vld [vmem:[%s4834_s1 + $0x1f0] ss:$8 sps:$4 sm:$0xff]   ;;  %v256_v47 = vld [vmem:[%s4058_s12 + $0xe8] sm:$0xff] }
  0x58   : > { %2521 = vmatpush1.bf16.msra.mxu0 %v3614_v38  ;;  %2230 = vmatprep.subr.bf16.mxu1 %v3619_v42  ;;  %v3685_v38 = vld [vmem:[%s4834_s1 + $0x204] ss:$8 sps:$4 sm:$0xff]  }
  0x59   : > { %2522 = vmatprep.subr.bf16.mxu0 %v3622_v44  ;;  %2209 = vmatprep.mubr.bf16.mxu1 %v3079_v52  ;;  %v244_v42 = vld [vmem:[%s4058_s12 + $0x88] sm:$0xff]  ;;  %v3040_v44 = vcombine.low %v4247_v5, %v4250_v6  ;;  %v3689_v52 = vld [vmem:[%s4834_s1 + $0x210] ss:$8 sps:$4 sm:$0xff]  }
  0x5a   : > { %2501 = vmatprep.mubr.bf16.mxu0 %v3087_v57  ;;  %v3698_v57 = vld [vmem:[%s4834_s1 + $0x620] ss:$8 sps:$4 sm:$0xff]   ;;  %v3704_v5 = vld [vmem:[%s4834_s1 + $0x630] ss:$8 sps:$4 sm:$0xff]   ;;  %v3709_v6 = vld [vmem:[%s4834_s1 + $0x244] ss:$8 sps:$4 sm:$0xff]  }
  0x5b   : > { %2231 = vmatpush1.bf16.msra.mxu1 %v3617_v45  ;;  %v252_v45 = vld [vmem:[%s4058_s12 + $0xc8] sm:$0xff] }
  0x5c   : > { %2523 = vmatpush1.bf16.msra.mxu0 %v3620_v46  ;;  %2232 = vmatprep.subr.bf16.mxu1 %v3625_v50  ;;  %v248_v46 = vld [vmem:[%s4058_s12 + $0xa8] sm:$0xff]  ;;  %v3049_v50 = vcombine.high %v244_v42, %v252_v45 }
  0x5d   : > { %2524 = vmatprep.subr.bf16.mxu0 %v3628_v51  ;;  %v3057_v51 = vcombine.high %v248_v46, %v256_v47 }
  0x5e   : > { %2210 = vmatmul.mubr.bf16.gmra.mrb[12].mxu1 %v3078_v58  ;;  %v260_v58 = vld [vmem:[%s4058_s12 + $0x108] sm:$0xff] }
  0x5f   : > { %2233 = vmatpush1.bf16.msra.mxu1 %v3623_v55  ;;  %2252 = vmatprep.mubr.bf16.mxu1 %v3033_v4  ;;  %v3700_v55 = vld [vmem:[%s4834_s1 + $0x624] ss:$8 sps:$4 sm:$0xff]   ;;  %v3701_v4 = vld [vmem:[%s4834_s1 + $0x230] ss:$8 sps:$4 sm:$0xff]  }
  0x60   : > { %2525 = vmatpush1.bf16.msra.mxu0 %v3626_v56  ;;  %2234 = vmatprep.subr.bf16.mxu1 %v3631_v59  ;;  %v3695_v56 = vld [vmem:[%s4834_s1 + $0x220] ss:$8 sps:$4 sm:$0xff]  }
  0x61   : > { %2526 = vmatprep.subr.bf16.mxu0 %v3634_v60  ;;  %2502 = vmatmul.mubr.bf16.gmra.mrb[12].mxu0 %v3086_v0  ;;  %v268_v59 = vld [vmem:[%s4058_s12 + $0x148] sm:$0xff]  ;;  %v3048_v60 = vcombine.low %v244_v42, %v252_v45  ;;  %v3703_v0 = vld [vmem:[%s4834_s1 + $0x234] ss:$8 sps:$4 sm:$0xff]   ;;  %v3740_v45 = vld [vmem:[%s4834_s1 + $0x690] ss:$8 sps:$4 sm:$0xff]  }
  0x62   : > { %2544 = vmatprep.mubr.bf16.mxu0 %v3041_v7  ;;  %v3712_v7 = vld [vmem:[%s4834_s1 + $0x644] ss:$8 sps:$4 sm:$0xff]   ;;  %v3739_v42 = vld [vmem:[%s4834_s1 + $0x294] ss:$8 sps:$4 sm:$0xff]  }
  0x63   : > { %2235 = vmatpush1.bf16.msra.mxu1 %v3629_v61  ;;  %v3056_v61 = vcombine.low %v248_v46, %v256_v47  ;;  %v3745_v46 = vld [vmem:[%s4834_s1 + $0x2a4] ss:$8 sps:$4 sm:$0xff]  }
  0x64   : > { %2527 = vmatpush1.bf16.msra.mxu0 %v3632_v62  ;;  %2236 = vmatprep.subr.bf16.mxu1 %v3637_v2  ;;  %v264_v62 = vld [vmem:[%s4058_s12 + $0x128] sm:$0xff]  ;;  %v3065_v2 = vcombine.high %v260_v58, %v268_v59 }
  0x65   : > { %2528 = vmatprep.subr.bf16.mxu0 %v3640_v3  ;;  %v3073_v3 = vcombine.high %v264_v62, %v272_v63  ;;  %v3748_v47 = vld [vmem:[%s4834_s1 + $0x6a4] ss:$8 sps:$4 sm:$0xff]  }
  0x67   : > { %2237 = vmatpush1.bf16.msra.mxu1 %v3635_v8  ;;  %v3707_v8 = vld [vmem:[%s4834_s1 + $0x240] ss:$8 sps:$4 sm:$0xff]  }
  0x68   : > { %2529 = vmatpush1.bf16.msra.mxu0 %v3638_v9  ;;  %2238 = vmatprep.subr.bf16.mxu1 %v3643_v10  ;;  %v3710_v9 = vld [vmem:[%s4834_s1 + $0x640] ss:$8 sps:$4 sm:$0xff]  }
  0x69   : > { %2530 = vmatprep.subr.bf16.mxu0 %v3646_v11  ;;  %v276_v10 = vld [vmem:[%s4058_s12 + $0x188] sm:$0xff] }
  0x6a   : > { %v284_v11 = vld [vmem:[%s4058_s12 + $0x1c8] sm:$0xff] }
  0x6b   : > { %2239 = vmatpush1.bf16.msra.mxu1 %v3641_v12  ;;  %v3064_v12 = vcombine.low %v260_v58, %v268_v59  ;;  %v3763_v58 = vld [vmem:[%s4834_s1 + $0x2d4] ss:$8 sps:$4 sm:$0xff]  }
  0x6c   : > { %2531 = vmatpush1.bf16.msra.mxu0 %v3644_v13  ;;  %2240 = vmatprep.subr.bf16.mxu1 %v3649_v14  ;;  %v3072_v13 = vcombine.low %v264_v62, %v272_v63  ;;  %v280_v14 = vld [vmem:[%s4058_s12 + $0x1a8] sm:$0xff]  ;;  %v3766_v59 = vld [vmem:[%s4834_s1 + $0x6d4] ss:$8 sps:$4 sm:$0xff]  }
  0x6d   : > { %2532 = vmatprep.subr.bf16.mxu0 %v3652_v15  ;;  %v288_v15 = vld [vmem:[%s4058_s12 + $0x1e8] sm:$0xff] }
  0x6e   : > { %v3769_v62 = vld [vmem:[%s4834_s1 + $0x2e4] ss:$8 sps:$4 sm:$0xff]  }
  0x6f   : > { %2241 = vmatpush1.bf16.msra.mxu1 %v3647_v16  ;;  %v3715_v16 = vld [vmem:[%s4834_s1 + $0x254] ss:$8 sps:$4 sm:$0xff]   ;;  %v3772_v63 = vld [vmem:[%s4834_s1 + $0x6e4] ss:$8 sps:$4 sm:$0xff]  }
  0x70   : > { %2533 = vmatpush1.bf16.msra.mxu0 %v3650_v17  ;;  %2242 = vmatprep.subr.bf16.mxu1 %v3655_v18  ;;  %v3718_v17 = vld [vmem:[%s4834_s1 + $0x654] ss:$8 sps:$4 sm:$0xff]   ;;  %v3081_v18 = vcombine.high %v276_v10, %v284_v11 }
  0x71   : > { %2534 = vmatprep.subr.bf16.mxu0 %v3658_v19  ;;  %v3089_v19 = vcombine.high %v280_v14, %v288_v15 }
  0x73   : > { %2243 = vmatpush1.bf16.msra.mxu1 %v3653_v20  ;;  %v3713_v20 = vld [vmem:[%s4834_s1 + $0x250] ss:$8 sps:$4 sm:$0xff]  }
  0x74   : > { %2535 = vmatpush1.bf16.msra.mxu0 %v3656_v21  ;;  %2244 = vmatprep.subr.bf16.mxu1 %v3661_v22  ;;  %v3716_v21 = vld [vmem:[%s4834_s1 + $0x650] ss:$8 sps:$4 sm:$0xff]   ;;  %v3721_v22 = vld [vmem:[%s4834_s1 + $0x264] ss:$8 sps:$4 sm:$0xff]  }
  0x75   : > { %2536 = vmatprep.subr.bf16.mxu0 %v3664_v23  ;;  %v3724_v23 = vld [vmem:[%s4834_s1 + $0x664] ss:$8 sps:$4 sm:$0xff]  }
  0x77   : > { %2245 = vmatpush1.bf16.msra.mxu1 %v3659_v24  ;;  %v3719_v24 = vld [vmem:[%s4834_s1 + $0x260] ss:$8 sps:$4 sm:$0xff]  }
  0x78   : > { %2537 = vmatpush1.bf16.msra.mxu0 %v3662_v25  ;;  %2246 = vmatprep.subr.bf16.mxu1 %v3667_v26  ;;  %v3722_v25 = vld [vmem:[%s4834_s1 + $0x660] ss:$8 sps:$4 sm:$0xff]   ;;  %v4445_v26 = vld [vmem:[%s4058_s12 + $0x10] sm:$0xff] }
  0x79   : > { %2538 = vmatprep.subr.bf16.mxu0 %v3670_v27  ;;  %v4448_v27 = vld [vmem:[%s4058_s12 + $0x50] sm:$0xff] }
  0x7b   : > { %2247 = vmatpush1.bf16.msra.mxu1 %v3665_v28  ;;  %v3080_v28 = vcombine.low %v276_v10, %v284_v11  ;;  %v253_v11 = vld [vmem:[%s4058_s12 + $0xd0] sm:$0xff] }
  0x7c   : > { %2539 = vmatpush1.bf16.msra.mxu0 %v3668_v29  ;;  %2248 = vmatprep.subr.bf16.mxu1 %v3673_v30  ;;  %v3088_v29 = vcombine.low %v280_v14, %v288_v15  ;;  %v4451_v30 = vld [vmem:[%s4058_s12 + $0x30] sm:$0xff]  ;;  %v3779_v14 = vld [vmem:[%s4834_s1 + $0x300] ss:$8 sps:$4 sm:$0xff]  }
  0x7d   : > { %2540 = vmatprep.subr.bf16.mxu0 %v3676_v31  ;;  %v4454_v31 = vld [vmem:[%s4058_s12 + $0x70] sm:$0xff]  ;;  %v3782_v15 = vld [vmem:[%s4834_s1 + $0x700] ss:$8 sps:$4 sm:$0xff]  }
  0x7e   : > { %v3042_v10 = vcombine.low %v4451_v30, %v4454_v31 }
  0x7f   : > { %2249 = vmatpush1.bf16.msra.mxu1 %v3671_v32  ;;  %v3727_v32 = vld [vmem:[%s4834_s1 + $0x274] ss:$8 sps:$4 sm:$0xff]  }
  0x80   : > { %2541 = vmatpush1.bf16.msra.mxu0 %v3674_v33  ;;  %2250 = vmatprep.subr.bf16.mxu1 %v3679_v34  ;;  %v3730_v33 = vld [vmem:[%s4834_s1 + $0x674] ss:$8 sps:$4 sm:$0xff]   ;;  %v3035_v34 = vcombine.high %v4445_v26, %v4448_v27 }
  0x81   : > { %2542 = vmatprep.subr.bf16.mxu0 %v3682_v35  ;;  %v3043_v35 = vcombine.high %v4451_v30, %v4454_v31  ;;  %v3791_v30 = vld [vmem:[%s4834_s1 + $0x320] ss:$8 sps:$4 sm:$0xff]  }
  0x82   : > { %v3794_v31 = vld [vmem:[%s4834_s1 + $0x720] ss:$8 sps:$4 sm:$0xff]  }
  0x83   : > { %2251 = vmatpush1.bf16.msra.mxu1 %v3677_v36  ;;  %v3725_v36 = vld [vmem:[%s4834_s1 + $0x270] ss:$8 sps:$4 sm:$0xff]  }
  0x84   : > { %2543 = vmatpush1.bf16.msra.mxu0 %v3680_v37  ;;  %2293 = vmatprep.subr.bf16.mxu1 %v3685_v38  ;;  %v3728_v37 = vld [vmem:[%s4834_s1 + $0x670] ss:$8 sps:$4 sm:$0xff]   ;;  %v3733_v38 = vld [vmem:[%s4834_s1 + $0x284] ss:$8 sps:$4 sm:$0xff]  }
  0x85   : > { %2585 = vmatprep.subr.bf16.mxu0 %v3688_v39  ;;  %v3736_v39 = vld [vmem:[%s4834_s1 + $0x684] ss:$8 sps:$4 sm:$0xff]  }
  0x86   : > { %2253 = vmatmul.mubr.bf16.vlgmr.msra.gmra.mrb[0].mxu1 %v3032_v43  ;;  %v3742_v43 = vld [vmem:[%s4834_s1 + $0x694] ss:$8 sps:$4 sm:$0xff]  }
  0x87   : > { %2545 = vmatmul.mubr.bf16.vlgmr.msra.gmra.mrb[0].mxu0 %v3040_v44  ;;  %2294 = vmatpush1.bf16.msra.mxu1 %v3683_v40  ;;  %v3731_v40 = vld [vmem:[%s4834_s1 + $0x280] ss:$8 sps:$4 sm:$0xff]   ;;  %v3737_v44 = vld [vmem:[%s4834_s1 + $0x290] ss:$8 sps:$4 sm:$0xff]  }
  0x88   : > { %2586 = vmatpush1.bf16.msra.mxu0 %v3686_v41  ;;  %2295 = vmatprep.subr.bf16.mxu1 %v3691_v48  ;;  %v3734_v41 = vld [vmem:[%s4834_s1 + $0x680] ss:$8 sps:$4 sm:$0xff]  }
  0x89   : > { %2587 = vmatprep.subr.bf16.mxu0 %v3694_v49  ;;  %2262 = vmatprep.mubr.bf16.mxu1 %v3049_v50  ;;  %v3743_v48 = vld [vmem:[%s4834_s1 + $0x2a0] ss:$8 sps:$4 sm:$0xff]   ;;  %v3751_v50 = vld [vmem:[%s4834_s1 + $0x2b4] ss:$8 sps:$4 sm:$0xff]  }
  0x8a   : > { %2554 = vmatprep.mubr.bf16.mxu0 %v3057_v51  ;;  %v3746_v49 = vld [vmem:[%s4834_s1 + $0x6a0] ss:$8 sps:$4 sm:$0xff]   ;;  %v3754_v51 = vld [vmem:[%s4834_s1 + $0x6b4] ss:$8 sps:$4 sm:$0xff]  }
  0x8b   : > { %2296 = vmatpush1.bf16.msra.mxu1 %v3689_v52  ;;  %v3749_v52 = vld [vmem:[%s4834_s1 + $0x2b0] ss:$8 sps:$4 sm:$0xff]  }
  0x8c   : > { %2588 = vmatpush1.bf16.msra.mxu0 %v3692_v53  ;;  %2297 = vmatprep.subr.bf16.mxu1 %v3697_v54  ;;  %v3752_v53 = vld [vmem:[%s4834_s1 + $0x6b0] ss:$8 sps:$4 sm:$0xff]   ;;  %v3757_v54 = vld [vmem:[%s4834_s1 + $0x2c4] ss:$8 sps:$4 sm:$0xff]  }
  0x8d   : > { %2589 = vmatprep.subr.bf16.mxu0 %v3700_v55  ;;  %v3760_v55 = vld [vmem:[%s4834_s1 + $0x6c4] ss:$8 sps:$4 sm:$0xff]  }
  0x8e   : > { %2263 = vmatmul.mubr.bf16.gmra.mrb[4].mxu1 %v3048_v60  ;;  %v3761_v60 = vld [vmem:[%s4834_s1 + $0x2d0] ss:$8 sps:$4 sm:$0xff]  }
  0x8f   : > { %2555 = vmatmul.mubr.bf16.gmra.mrb[4].mxu0 %v3056_v61  ;;  %2298 = vmatpush1.bf16.msra.mxu1 %v3695_v56  ;;  %v3755_v56 = vld [vmem:[%s4834_s1 + $0x2c0] ss:$8 sps:$4 sm:$0xff]   ;;  %v3764_v61 = vld [vmem:[%s4834_s1 + $0x6d0] ss:$8 sps:$4 sm:$0xff]  }
  0x90   : > { %2590 = vmatpush1.bf16.msra.mxu0 %v3698_v57  ;;  %2299 = vmatprep.subr.bf16.mxu1 %v3703_v0  ;;  %v3758_v57 = vld [vmem:[%s4834_s1 + $0x6c0] ss:$8 sps:$4 sm:$0xff]  }
  0x91   : > { %2591 = vmatprep.subr.bf16.mxu0 %v3706_v1  ;;  %2272 = vmatprep.mubr.bf16.mxu1 %v3065_v2  ;;  %v3767_v0 = vld [vmem:[%s4834_s1 + $0x2e0] ss:$8 sps:$4 sm:$0xff]   ;;  %v3775_v2 = vld [vmem:[%s4834_s1 + $0x2f4] ss:$8 sps:$4 sm:$0xff]  }
  0x92   : > { %2564 = vmatprep.mubr.bf16.mxu0 %v3073_v3  ;;  %v3770_v1 = vld [vmem:[%s4834_s1 + $0x6e0] ss:$8 sps:$4 sm:$0xff]   ;;  %v3778_v3 = vld [vmem:[%s4834_s1 + $0x6f4] ss:$8 sps:$4 sm:$0xff]  }
  0x93   : > { %2300 = vmatpush1.bf16.msra.mxu1 %v3701_v4  ;;  %v3773_v4 = vld [vmem:[%s4834_s1 + $0x2f0] ss:$8 sps:$4 sm:$0xff]  }
  0x94   : > { %2592 = vmatpush1.bf16.msra.mxu0 %v3704_v5  ;;  %2301 = vmatprep.subr.bf16.mxu1 %v3709_v6  ;;  %v3776_v5 = vld [vmem:[%s4834_s1 + $0x6f0] ss:$8 sps:$4 sm:$0xff]   ;;  %v3781_v6 = vld [vmem:[%s4834_s1 + $0x304] ss:$8 sps:$4 sm:$0xff]  }
  0x95   : > { %2593 = vmatprep.subr.bf16.mxu0 %v3712_v7  ;;  %v3784_v7 = vld [vmem:[%s4834_s1 + $0x704] ss:$8 sps:$4 sm:$0xff]  }
  0x96   : > { %2273 = vmatmul.mubr.bf16.gmra.mrb[8].mxu1 %v3064_v12  ;;  %v249_v12 = vld [vmem:[%s4058_s12 + $0xb0] sm:$0xff] }
  0x97   : > { %2565 = vmatmul.mubr.bf16.gmra.mrb[8].mxu0 %v3072_v13  ;;  %2302 = vmatpush1.bf16.msra.mxu1 %v3707_v8  ;;  %v245_v8 = vld [vmem:[%s4058_s12 + $0x90] sm:$0xff] }
  0x98   : > { %2594 = vmatpush1.bf16.msra.mxu0 %v3710_v9  ;;  %2303 = vmatprep.subr.bf16.mxu1 %v3715_v16  ;;  %v3034_v9 = vcombine.low %v4445_v26, %v4448_v27  ;;  %v257_v13 = vld [vmem:[%s4058_s12 + $0xf0] sm:$0xff] }
  0x99   : > { %2595 = vmatprep.subr.bf16.mxu0 %v3718_v17  ;;  %2282 = vmatprep.mubr.bf16.mxu1 %v3081_v18  ;;  %v3787_v16 = vld [vmem:[%s4834_s1 + $0x314] ss:$8 sps:$4 sm:$0xff]   ;;  %v3051_v18 = vcombine.high %v245_v8, %v253_v11  ;;  %v3058_v26 = vcombine.low %v249_v12, %v257_v13 }
  0x9a   : > { %2574 = vmatprep.mubr.bf16.mxu0 %v3089_v19  ;;  %v3790_v17 = vld [vmem:[%s4834_s1 + $0x714] ss:$8 sps:$4 sm:$0xff]   ;;  %v3059_v19 = vcombine.high %v249_v12, %v257_v13  ;;  %v3833_v12 = vld [vmem:[%s4834_s1 + $0x390] ss:$8 sps:$4 sm:$0xff]  }
  0x9b   : > { %2304 = vmatpush1.bf16.msra.mxu1 %v3713_v20  ;;  %v3785_v20 = vld [vmem:[%s4834_s1 + $0x310] ss:$8 sps:$4 sm:$0xff]  }
  0x9c   : > { %2596 = vmatpush1.bf16.msra.mxu0 %v3716_v21  ;;  %2305 = vmatprep.subr.bf16.mxu1 %v3721_v22  ;;  %v3788_v21 = vld [vmem:[%s4834_s1 + $0x710] ss:$8 sps:$4 sm:$0xff]   ;;  %v3793_v22 = vld [vmem:[%s4834_s1 + $0x324] ss:$8 sps:$4 sm:$0xff]  }
  0x9d   : > { %2597 = vmatprep.subr.bf16.mxu0 %v3724_v23  ;;  %v3796_v23 = vld [vmem:[%s4834_s1 + $0x724] ss:$8 sps:$4 sm:$0xff]   ;;  %v269_v27 = vld [vmem:[%s4058_s12 + $0x150] sm:$0xff] }
  0x9e   : > { %2283 = vmatmul.mubr.bf16.gmra.mrb[12].mxu1 %v3080_v28  ;;  %v265_v28 = vld [vmem:[%s4058_s12 + $0x130] sm:$0xff] }
  0x9f   : > { %2575 = vmatmul.mubr.bf16.gmra.mrb[12].mxu0 %v3088_v29  ;;  %2306 = vmatpush1.bf16.msra.mxu1 %v3719_v24  ;;  %v261_v24 = vld [vmem:[%s4058_s12 + $0x110] sm:$0xff] }
  0xa0   : > { %2598 = vmatpush1.bf16.msra.mxu0 %v3722_v25  ;;  %2307 = vmatprep.subr.bf16.mxu1 %v3727_v32  ;;  %v3050_v25 = vcombine.low %v245_v8, %v253_v11  ;;  %v273_v29 = vld [vmem:[%s4058_s12 + $0x170] sm:$0xff]  ;;  %v3827_v8 = vld [vmem:[%s4834_s1 + $0x380] ss:$8 sps:$4 sm:$0xff]  }
  0xa1   : > { %2599 = vmatprep.subr.bf16.mxu0 %v3730_v33  ;;  %2325 = vmatprep.mubr.bf16.mxu1 %v3035_v34  ;;  %v3799_v32 = vld [vmem:[%s4834_s1 + $0x334] ss:$8 sps:$4 sm:$0xff]   ;;  %v3067_v34 = vcombine.high %v261_v24, %v269_v27  ;;  %v3836_v13 = vld [vmem:[%s4834_s1 + $0x790] ss:$8 sps:$4 sm:$0xff]  }
  0xa2   : > { %2617 = vmatprep.mubr.bf16.mxu0 %v3043_v35  ;;  %v3802_v33 = vld [vmem:[%s4834_s1 + $0x734] ss:$8 sps:$4 sm:$0xff]   ;;  %v3075_v35 = vcombine.high %v265_v28, %v273_v29 }
  0xa3   : > { %2308 = vmatpush1.bf16.msra.mxu1 %v3725_v36  ;;  %v3797_v36 = vld [vmem:[%s4834_s1 + $0x330] ss:$8 sps:$4 sm:$0xff]   ;;  %v3838_v11 = vld [vmem:[%s4834_s1 + $0x794] ss:$8 sps:$4 sm:$0xff]  }
  0xa4   : > { %2600 = vmatpush1.bf16.msra.mxu0 %v3728_v37  ;;  %2309 = vmatprep.subr.bf16.mxu1 %v3733_v38  ;;  %v3800_v37 = vld [vmem:[%s4834_s1 + $0x730] ss:$8 sps:$4 sm:$0xff]   ;;  %v3805_v38 = vld [vmem:[%s4834_s1 + $0x344] ss:$8 sps:$4 sm:$0xff]  }
  0xa5   : > { %2601 = vmatprep.subr.bf16.mxu0 %v3736_v39  ;;  %v3808_v39 = vld [vmem:[%s4834_s1 + $0x744] ss:$8 sps:$4 sm:$0xff]  }
  0xa7   : > { %2310 = vmatpush1.bf16.msra.mxu1 %v3731_v40  ;;  %v277_v40 = vld [vmem:[%s4058_s12 + $0x190] sm:$0xff] }
  0xa8   : > { %2602 = vmatpush1.bf16.msra.mxu0 %v3734_v41  ;;  %2311 = vmatprep.subr.bf16.mxu1 %v3739_v42  ;;  %v3066_v41 = vcombine.low %v261_v24, %v269_v27  ;;  %v3074_v42 = vcombine.low %v265_v28, %v273_v29  ;;  %v3851_v24 = vld [vmem:[%s4834_s1 + $0x3c0] ss:$8 sps:$4 sm:$0xff]   ;;  %v3862_v27 = vld [vmem:[%s4834_s1 + $0x7d4] ss:$8 sps:$4 sm:$0xff]   ;;  %v3857_v28 = vld [vmem:[%s4834_s1 + $0x3d0] ss:$8 sps:$4 sm:$0xff]  }
  0xa9   : > { %2603 = vmatprep.subr.bf16.mxu0 %v3742_v43  ;;  %v285_v43 = vld [vmem:[%s4058_s12 + $0x1d0] sm:$0xff] }
  0xaa   : > { %v3860_v29 = vld [vmem:[%s4834_s1 + $0x7d0] ss:$8 sps:$4 sm:$0xff]  }
  0xab   : > { %2312 = vmatpush1.bf16.msra.mxu1 %v3737_v44  ;;  %v281_v44 = vld [vmem:[%s4058_s12 + $0x1b0] sm:$0xff] }
  0xac   : > { %2604 = vmatpush1.bf16.msra.mxu0 %v3740_v45  ;;  %2313 = vmatprep.subr.bf16.mxu1 %v3745_v46  ;;  %v289_v45 = vld [vmem:[%s4058_s12 + $0x1f0] sm:$0xff]  ;;  %v3803_v46 = vld [vmem:[%s4834_s1 + $0x340] ss:$8 sps:$4 sm:$0xff]  }
  0xad   : > { %2605 = vmatprep.subr.bf16.mxu0 %v3748_v47  ;;  %v3806_v47 = vld [vmem:[%s4834_s1 + $0x740] ss:$8 sps:$4 sm:$0xff]  }
  0xaf   : > { %2314 = vmatpush1.bf16.msra.mxu1 %v3743_v48  ;;  %v3811_v48 = vld [vmem:[%s4834_s1 + $0x354] ss:$8 sps:$4 sm:$0xff]  }
  0xb0   : > { %2606 = vmatpush1.bf16.msra.mxu0 %v3746_v49  ;;  %2315 = vmatprep.subr.bf16.mxu1 %v3751_v50  ;;  %v3814_v49 = vld [vmem:[%s4834_s1 + $0x754] ss:$8 sps:$4 sm:$0xff]   ;;  %v3083_v50 = vcombine.high %v277_v40, %v285_v43 }
  0xb1   : > { %2607 = vmatprep.subr.bf16.mxu0 %v3754_v51  ;;  %v3091_v51 = vcombine.high %v281_v44, %v289_v45 }
  0xb3   : > { %2316 = vmatpush1.bf16.msra.mxu1 %v3749_v52  ;;  %v3809_v52 = vld [vmem:[%s4834_s1 + $0x350] ss:$8 sps:$4 sm:$0xff]  }
  0xb4   : > { %2608 = vmatpush1.bf16.msra.mxu0 %v3752_v53  ;;  %2317 = vmatprep.subr.bf16.mxu1 %v3757_v54  ;;  %v3812_v53 = vld [vmem:[%s4834_s1 + $0x750] ss:$8 sps:$4 sm:$0xff]   ;;  %v3817_v54 = vld [vmem:[%s4834_s1 + $0x364] ss:$8 sps:$4 sm:$0xff]  }
  0xb5   : > { %2609 = vmatprep.subr.bf16.mxu0 %v3760_v55  ;;  %v3820_v55 = vld [vmem:[%s4834_s1 + $0x764] ss:$8 sps:$4 sm:$0xff]  }
  0xb7   : > { %2318 = vmatpush1.bf16.msra.mxu1 %v3755_v56  ;;  %v4663_v56 = vld [vmem:[%s4058_s12 + $0x18] sm:$0xff] }
  0xb8   : > { %2610 = vmatpush1.bf16.msra.mxu0 %v3758_v57  ;;  %2319 = vmatprep.subr.bf16.mxu1 %v3763_v58  ;;  %v3082_v57 = vcombine.low %v277_v40, %v285_v43  ;;  %v3090_v58 = vcombine.low %v281_v44, %v289_v45  ;;  %v250_v40 = vld [vmem:[%s4058_s12 + $0xb8] sm:$0xff] }
  0xb9   : > { %2611 = vmatprep.subr.bf16.mxu0 %v3766_v59  ;;  %v4666_v59 = vld [vmem:[%s4058_s12 + $0x58] sm:$0xff] }
  0xbb   : > { %2320 = vmatpush1.bf16.msra.mxu1 %v3761_v60  ;;  %v4669_v60 = vld [vmem:[%s4058_s12 + $0x38] sm:$0xff] }
  0xbc   : > { %2612 = vmatpush1.bf16.msra.mxu0 %v3764_v61  ;;  %2321 = vmatprep.subr.bf16.mxu1 %v3769_v62  ;;  %v4672_v61 = vld [vmem:[%s4058_s12 + $0x78] sm:$0xff]  ;;  %v3815_v62 = vld [vmem:[%s4834_s1 + $0x360] ss:$8 sps:$4 sm:$0xff]  }
  0xbd   : > { %2613 = vmatprep.subr.bf16.mxu0 %v3772_v63  ;;  %v3818_v63 = vld [vmem:[%s4834_s1 + $0x760] ss:$8 sps:$4 sm:$0xff]   ;;  %v3044_v43 = vcombine.low %v4669_v60, %v4672_v61 }
  0xbf   : > { %2322 = vmatpush1.bf16.msra.mxu1 %v3767_v0  ;;  %v3823_v0 = vld [vmem:[%s4834_s1 + $0x374] ss:$8 sps:$4 sm:$0xff]  }
  0xc0   : > { %2614 = vmatpush1.bf16.msra.mxu0 %v3770_v1  ;;  %2323 = vmatprep.subr.bf16.mxu1 %v3775_v2  ;;  %v3826_v1 = vld [vmem:[%s4834_s1 + $0x774] ss:$8 sps:$4 sm:$0xff]   ;;  %v3037_v2 = vcombine.high %v4663_v56, %v4666_v59 }
  0xc1   : > { %2615 = vmatprep.subr.bf16.mxu0 %v3778_v3  ;;  %v3045_v3 = vcombine.high %v4669_v60, %v4672_v61 }
  0xc3   : > { %2324 = vmatpush1.bf16.msra.mxu1 %v3773_v4  ;;  %v3821_v4 = vld [vmem:[%s4834_s1 + $0x370] ss:$8 sps:$4 sm:$0xff]  }
  0xc4   : > { %2616 = vmatpush1.bf16.msra.mxu0 %v3776_v5  ;;  %2366 = vmatprep.subr.bf16.mxu1 %v3781_v6  ;;  %v3824_v5 = vld [vmem:[%s4834_s1 + $0x770] ss:$8 sps:$4 sm:$0xff]   ;;  %v3829_v6 = vld [vmem:[%s4834_s1 + $0x384] ss:$8 sps:$4 sm:$0xff]  }
  0xc5   : > { %2658 = vmatprep.subr.bf16.mxu0 %v3784_v7  ;;  %v3832_v7 = vld [vmem:[%s4834_s1 + $0x784] ss:$8 sps:$4 sm:$0xff]  }
  0xc6   : > { %2326 = vmatmul.mubr.bf16.vlgmr.msra.gmra.mrb[0].mxu1 %v3034_v9  ;;  %v3830_v9 = vld [vmem:[%s4834_s1 + $0x780] ss:$8 sps:$4 sm:$0xff]  }
  0xc7   : > { %2618 = vmatmul.mubr.bf16.vlgmr.msra.gmra.mrb[0].mxu0 %v3042_v10  ;;  %2367 = vmatpush1.bf16.msra.mxu1 %v3779_v14  ;;  %v3835_v10 = vld [vmem:[%s4834_s1 + $0x394] ss:$8 sps:$4 sm:$0xff]   ;;  %v3841_v14 = vld [vmem:[%s4834_s1 + $0x3a4] ss:$8 sps:$4 sm:$0xff]  }
  0xc8   : > { %2659 = vmatpush1.bf16.msra.mxu0 %v3782_v15  ;;  %2368 = vmatprep.subr.bf16.mxu1 %v3787_v16  ;;  %v3844_v15 = vld [vmem:[%s4834_s1 + $0x7a4] ss:$8 sps:$4 sm:$0xff]   ;;  %v3839_v16 = vld [vmem:[%s4834_s1 + $0x3a0] ss:$8 sps:$4 sm:$0xff]  }
  0xc9   : > { %2660 = vmatprep.subr.bf16.mxu0 %v3790_v17  ;;  %2335 = vmatprep.mubr.bf16.mxu1 %v3051_v18  ;;  %v3842_v17 = vld [vmem:[%s4834_s1 + $0x7a0] ss:$8 sps:$4 sm:$0xff]   ;;  %v3847_v18 = vld [vmem:[%s4834_s1 + $0x3b4] ss:$8 sps:$4 sm:$0xff]  }
  0xca   : > { %2627 = vmatprep.mubr.bf16.mxu0 %v3059_v19  ;;  %v3850_v19 = vld [vmem:[%s4834_s1 + $0x7b4] ss:$8 sps:$4 sm:$0xff]  }
  0xcb   : > { %2369 = vmatpush1.bf16.msra.mxu1 %v3785_v20  ;;  %v3845_v20 = vld [vmem:[%s4834_s1 + $0x3b0] ss:$8 sps:$4 sm:$0xff]  }
  0xcc   : > { %2661 = vmatpush1.bf16.msra.mxu0 %v3788_v21  ;;  %2370 = vmatprep.subr.bf16.mxu1 %v3793_v22  ;;  %v3848_v21 = vld [vmem:[%s4834_s1 + $0x7b0] ss:$8 sps:$4 sm:$0xff]   ;;  %v3853_v22 = vld [vmem:[%s4834_s1 + $0x3c4] ss:$8 sps:$4 sm:$0xff]  }
  0xcd   : > { %2662 = vmatprep.subr.bf16.mxu0 %v3796_v23  ;;  %v3856_v23 = vld [vmem:[%s4834_s1 + $0x7c4] ss:$8 sps:$4 sm:$0xff]  }
  0xce   : > { %2336 = vmatmul.mubr.bf16.gmra.mrb[4].mxu1 %v3050_v25  ;;  %v3854_v25 = vld [vmem:[%s4834_s1 + $0x7c0] ss:$8 sps:$4 sm:$0xff]  }
  0xcf   : > { %2628 = vmatmul.mubr.bf16.gmra.mrb[4].mxu0 %v3058_v26  ;;  %2371 = vmatpush1.bf16.msra.mxu1 %v3791_v30  ;;  %v3859_v26 = vld [vmem:[%s4834_s1 + $0x3d4] ss:$8 sps:$4 sm:$0xff]   ;;  %v3865_v30 = vld [vmem:[%s4834_s1 + $0x3e4] ss:$8 sps:$4 sm:$0xff]  }
  0xd0   : > { %2663 = vmatpush1.bf16.msra.mxu0 %v3794_v31  ;;  %2372 = vmatprep.subr.bf16.mxu1 %v3799_v32  ;;  %v3868_v31 = vld [vmem:[%s4834_s1 + $0x7e4] ss:$8 sps:$4 sm:$0xff]   ;;  %v3863_v32 = vld [vmem:[%s4834_s1 + $0x3e0] ss:$8 sps:$4 sm:$0xff]  }
  0xd1   : > { %2664 = vmatprep.subr.bf16.mxu0 %v3802_v33  ;;  %2345 = vmatprep.mubr.bf16.mxu1 %v3067_v34  ;;  %v3866_v33 = vld [vmem:[%s4834_s1 + $0x7e0] ss:$8 sps:$4 sm:$0xff]   ;;  %v3871_v34 = vld [vmem:[%s4834_s1 + $0x3f4] ss:$8 sps:$4 sm:$0xff]  }
  0xd2   : > { %2637 = vmatprep.mubr.bf16.mxu0 %v3075_v35  ;;  %v3874_v35 = vld [vmem:[%s4834_s1 + $0x7f4] ss:$8 sps:$4 sm:$0xff]  }
  0xd3   : > { %2373 = vmatpush1.bf16.msra.mxu1 %v3797_v36  ;;  %v3869_v36 = vld [vmem:[%s4834_s1 + $0x3f0] ss:$8 sps:$4 sm:$0xff]  }
  0xd4   : > { %2665 = vmatpush1.bf16.msra.mxu0 %v3800_v37  ;;  %2374 = vmatprep.subr.bf16.mxu1 %v3805_v38  ;;  %v3872_v37 = vld [vmem:[%s4834_s1 + $0x7f0] ss:$8 sps:$4 sm:$0xff]  }
  0xd5   : > { %2666 = vmatprep.subr.bf16.mxu0 %v3808_v39  ;;  %v246_v38 = vld [vmem:[%s4058_s12 + $0x98] sm:$0xff] }
  0xd6   : > { %2346 = vmatmul.mubr.bf16.gmra.mrb[8].mxu1 %v3066_v41  ;;  %v254_v39 = vld [vmem:[%s4058_s12 + $0xd8] sm:$0xff] }
  0xd7   : > { %2638 = vmatmul.mubr.bf16.gmra.mrb[8].mxu0 %v3074_v42  ;;  %2375 = vmatpush1.bf16.msra.mxu1 %v3803_v46  ;;  %v258_v41 = vld [vmem:[%s4058_s12 + $0xf8] sm:$0xff]  ;;  %v3036_v42 = vcombine.low %v4663_v56, %v4666_v59  ;;  %v3053_v44 = vcombine.high %v246_v38, %v254_v39 }
  0xd8   : > { %2667 = vmatpush1.bf16.msra.mxu0 %v3806_v47  ;;  %2376 = vmatprep.subr.bf16.mxu1 %v3811_v48  ;;  %v3061_v45 = vcombine.high %v250_v40, %v258_v41  ;;  %v262_v46 = vld [vmem:[%s4058_s12 + $0x118] sm:$0xff] }
  0xd9   : > { %2668 = vmatprep.subr.bf16.mxu0 %v3814_v49  ;;  %2355 = vmatprep.mubr.bf16.mxu1 %v3083_v50  ;;  %v270_v47 = vld [vmem:[%s4058_s12 + $0x158] sm:$0xff]  ;;  %v3052_v50 = vcombine.low %v246_v38, %v254_v39 }
  0xda   : > { %2647 = vmatprep.mubr.bf16.mxu0 %v3091_v51  ;;  %v266_v48 = vld [vmem:[%s4058_s12 + $0x138] sm:$0xff]  ;;  %v3060_v51 = vcombine.low %v250_v40, %v258_v41 }
  0xdb   : > { %2377 = vmatpush1.bf16.msra.mxu1 %v3809_v52  ;;  %v274_v49 = vld [vmem:[%s4058_s12 + $0x178] sm:$0xff]  ;;  %v3069_v52 = vcombine.high %v262_v46, %v270_v47 }
  0xdc   : > { %2669 = vmatpush1.bf16.msra.mxu0 %v3812_v53  ;;  %2378 = vmatprep.subr.bf16.mxu1 %v3817_v54  ;;  %v3077_v53 = vcombine.high %v266_v48, %v274_v49  ;;  %v278_v54 = vld [vmem:[%s4058_s12 + $0x198] sm:$0xff]  ;;  %v3076_v59 = vcombine.low %v266_v48, %v274_v49 }
  0xdd   : > { %2670 = vmatprep.subr.bf16.mxu0 %v3820_v55  ;;  %v286_v55 = vld [vmem:[%s4058_s12 + $0x1d8] sm:$0xff] }
  0xde   : > { %2356 = vmatmul.mubr.bf16.gmra.mrb[12].mxu1 %v3082_v57  ;;  %v282_v56 = vld [vmem:[%s4058_s12 + $0x1b8] sm:$0xff]  ;;  %v3085_v60 = vcombine.high %v278_v54, %v286_v55 }
  0xdf   : > { %2648 = vmatmul.mubr.bf16.gmra.mrb[12].mxu0 %v3090_v58  ;;  %2379 = vmatpush1.bf16.msra.mxu1 %v3815_v62  ;;  %v290_v57 = vld [vmem:[%s4058_s12 + $0x1f8] sm:$0xff]  ;;  %v3068_v58 = vcombine.low %v262_v46, %v270_v47  ;;  %v3084_v62 = vcombine.low %v278_v54, %v286_v55 }
  0xe0   : > { %2671 = vmatpush1.bf16.msra.mxu0 %v3818_v63  ;;  %2380 = vmatprep.subr.bf16.mxu1 %v3823_v0  ;;  %v3093_v61 = vcombine.high %v282_v56, %v290_v57  ;;  %v3092_v63 = vcombine.low %v282_v56, %v290_v57 }
  0xe1   : > { %2672 = vmatprep.subr.bf16.mxu0 %v3826_v1  ;;  %2398 = vmatprep.mubr.bf16.mxu1 %v3037_v2 }
  0xe2   : > { %2690 = vmatprep.mubr.bf16.mxu0 %v3045_v3 }
  0xe3   : > { %2381 = vmatpush1.bf16.msra.mxu1 %v3821_v4 }
  0xe4   : > { %2673 = vmatpush1.bf16.msra.mxu0 %v3824_v5  ;;  %2382 = vmatprep.subr.bf16.mxu1 %v3829_v6 }
  0xe5   : > { %2674 = vmatprep.subr.bf16.mxu0 %v3832_v7 }
  0xe7   : > { %2383 = vmatpush1.bf16.msra.mxu1 %v3827_v8 }
  0xe8   : > { %2675 = vmatpush1.bf16.msra.mxu0 %v3830_v9  ;;  %2384 = vmatprep.subr.bf16.mxu1 %v3835_v10 }
  0xe9   : > { %2676 = vmatprep.subr.bf16.mxu0 %v3838_v11 }
  0xeb   : > { %2385 = vmatpush1.bf16.msra.mxu1 %v3833_v12 }
  0xec   : > { %2677 = vmatpush1.bf16.msra.mxu0 %v3836_v13  ;;  %2386 = vmatprep.subr.bf16.mxu1 %v3841_v14 }
  0xed   : > { %2678 = vmatprep.subr.bf16.mxu0 %v3844_v15 }
  0xef   : > { %2387 = vmatpush1.bf16.msra.mxu1 %v3839_v16 }
  0xf0   : > { %2679 = vmatpush1.bf16.msra.mxu0 %v3842_v17  ;;  %2388 = vmatprep.subr.bf16.mxu1 %v3847_v18 }
  0xf1   : > { %2680 = vmatprep.subr.bf16.mxu0 %v3850_v19 }
  0xf3   : > { %2389 = vmatpush1.bf16.msra.mxu1 %v3845_v20 }
  0xf4   : > { %2681 = vmatpush1.bf16.msra.mxu0 %v3848_v21  ;;  %2390 = vmatprep.subr.bf16.mxu1 %v3853_v22 }
  0xf5   : > { %2682 = vmatprep.subr.bf16.mxu0 %v3856_v23 }
  0xf7   : > { %2391 = vmatpush1.bf16.msra.mxu1 %v3851_v24 }
  0xf8   : > { %2683 = vmatpush1.bf16.msra.mxu0 %v3854_v25  ;;  %2392 = vmatprep.subr.bf16.mxu1 %v3859_v26 }
  0xf9   : > { %2684 = vmatprep.subr.bf16.mxu0 %v3862_v27 }
  0xfb   : > { %2393 = vmatpush1.bf16.msra.mxu1 %v3857_v28 }
  0xfc   : > { %2685 = vmatpush1.bf16.msra.mxu0 %v3860_v29  ;;  %2394 = vmatprep.subr.bf16.mxu1 %v3865_v30 }
  0xfd   : > { %2686 = vmatprep.subr.bf16.mxu0 %v3868_v31 }
  0xff   : > { %2395 = vmatpush1.bf16.msra.mxu1 %v3863_v32 }
 0x100   : > { %2687 = vmatpush1.bf16.msra.mxu0 %v3866_v33  ;;  %2396 = vmatprep.subr.bf16.mxu1 %v3871_v34 }
 0x101   : > { %2688 = vmatprep.subr.bf16.mxu0 %v3874_v35 }
 0x103   : > { %2397 = vmatpush1.bf16.msra.mxu1 %v3869_v36 }
 0x104   : > { %2689 = vmatpush1.bf16.msra.mxu0 %v3872_v37 }
 0x106   : > { %2399 = vmatmul.mubr.bf16.vlgmr.msra.gmra.mrb[0].mxu1 %v3036_v42 }
 0x107   : > { %2691 = vmatmul.mubr.bf16.vlgmr.msra.gmra.mrb[0].mxu0 %v3044_v43  ;;  %2408 = vmatprep.mubr.bf16.mxu1 %v3053_v44 }
 0x108   : > { %2700 = vmatprep.mubr.bf16.mxu0 %v3061_v45 }
 0x10e   : > { %2409 = vmatmul.mubr.bf16.gmra.mrb[4].mxu1 %v3052_v50 }
 0x10f   : > { %2701 = vmatmul.mubr.bf16.gmra.mrb[4].mxu0 %v3060_v51  ;;  %2418 = vmatprep.mubr.bf16.mxu1 %v3069_v52 }
 0x110   : > { %2710 = vmatprep.mubr.bf16.mxu0 %v3077_v53 }
 0x116   : > { %2419 = vmatmul.mubr.bf16.gmra.mrb[8].mxu1 %v3068_v58 }
 0x117   : > { %2711 = vmatmul.mubr.bf16.gmra.mrb[8].mxu0 %v3076_v59  ;;  %2428 = vmatprep.mubr.bf16.mxu1 %v3085_v60 }
 0x118   : > { %2720 = vmatprep.mubr.bf16.mxu0 %v3093_v61 }
 0x11e   : > { %2429 = vmatmul.mubr.bf16.gmra.mrb[12].mxu1 %v3084_v62 }
 0x11f   : > { %2721 = vmatmul.mubr.bf16.gmra.mrb[12].mxu0 %v3092_v63 }
 0x1d9   : > { %v2400_v0 = vpop.f32.mrb[0].mxu1 }
 0x1da   : > { %v2692_v1 = vpop.f32.mrb[0].mxu0  ;;  %v2402_v3 = vpop.f32.mrb[1].mxu1 }
 0x1db   : > { %v3370_v2 = vadd.f32 %v2692_v1, %v2400_v0  ;;  %v2694_v4 = vpop.f32.mrb[1].mxu0  ;;  %v2404_v6 = vpop.f32.mrb[2].mxu1 }
 0x1dc   : > { %v3371_v5 = vadd.f32 %v2694_v4, %v2402_v3  ;;  %v2696_v7 = vpop.f32.mrb[2].mxu0  ;;  %v2406_v9 = vpop.f32.mrb[3].mxu1 }
 0x1dd   : > { %v3372_v8 = vadd.f32 %v2696_v7, %v2404_v6  ;;  %v2698_v10 = vpop.f32.mrb[3].mxu0  ;;  %v2836_v13 = vmul.f32 %v3370_v2, %v3370_v2 }
 0x1de   : > { %v3362_v11 = vpack.c.bf16 %v3371_v5, %v3370_v2  ;;  %v3373_v12 = vadd.f32 %v2698_v10, %v2406_v9  ;;  %v2837_v16 = vmul.f32 %v3371_v5, %v3371_v5 }
 0x1df   : > { %v2787_v14 = vadd.f32 %v3372_v8, %v3370_v2  ;;  %v2838_v15 = vmul.f32 %v3372_v8, %v3372_v8 }
 0x1e0   : > { %2779 = vst [vmem:[%s4812_s23] sm:$0xff] %v3362_v11  ;;  %v3363_v17 = vpack.c.bf16 %v3373_v12, %v3372_v8  ;;  %v2800_v18 = vadd.f32 %v3373_v12, %v3371_v5  ;;  %v2839_v19 = vmul.f32 %v3373_v12, %v3373_v12 }
 0x1e1   : > { %v2852_v20 = vadd.f32 %v2838_v15, %v2836_v13  ;;  %v2410_v22 = vpop.f32.mrb[4].mxu1 }
 0x1e2   : > { %2780 = vst [vmem:[%s4812_s23 + $0x8] sm:$0xff] %v3363_v17  ;;  %v2865_v21 = vadd.f32 %v2839_v19, %v2837_v16  ;;  %v2702_v23 = vpop.f32.mrb[4].mxu0  ;;  %v2412_v25 = vpop.f32.mrb[5].mxu1 }
 0x1e3   : > { %v3374_v24 = vadd.f32 %v2702_v23, %v2410_v22  ;;  %v2704_v26 = vpop.f32.mrb[5].mxu0  ;;  %v2414_v28 = vpop.f32.mrb[6].mxu1 }
 0x1e4   : > { %v3375_v27 = vadd.f32 %v2704_v26, %v2412_v25  ;;  %v2706_v29 = vpop.f32.mrb[6].mxu0  ;;  %v2416_v33 = vpop.f32.mrb[7].mxu1 }
 0x1e5   : > { %v2788_v30 = vadd.f32 %v3374_v24, %v2787_v14  ;;  %v2840_v31 = vmul.f32 %v3374_v24, %v3374_v24  ;;  %v3376_v32 = vadd.f32 %v2706_v29, %v2414_v28  ;;  %v2708_v34 = vpop.f32.mrb[7].mxu0 }
 0x1e6   : > { %v3364_v35 = vpack.c.bf16 %v3375_v27, %v3374_v24  ;;  %v2801_v36 = vadd.f32 %v3375_v27, %v2800_v18  ;;  %v2841_v37 = vmul.f32 %v3375_v27, %v3375_v27  ;;  %v3377_v38 = vadd.f32 %v2708_v34, %v2416_v33 }
 0x1e7   : > { %v2853_v39 = vadd.f32 %v2852_v20, %v2840_v31  ;;  %v2789_v40 = vadd.f32 %v3376_v32, %v2788_v30  ;;  %v2842_v41 = vmul.f32 %v3376_v32, %v3376_v32 }
 0x1e8   : > { %2781 = vst [vmem:[%s4812_s23 + $0x10] sm:$0xff] %v3364_v35  ;;  %v2866_v42 = vadd.f32 %v2865_v21, %v2841_v37  ;;  %v3365_v43 = vpack.c.bf16 %v3377_v38, %v3376_v32  ;;  %v2802_v44 = vadd.f32 %v3377_v38, %v2801_v36  ;;  %v2843_v45 = vmul.f32 %v3377_v38, %v3377_v38 }
 0x1e9   : > { %v2854_v46 = vadd.f32 %v2853_v39, %v2842_v41  ;;  %v2420_v48 = vpop.f32.mrb[8].mxu1  ;;  %v3883_v41 = vmov 1966171168  }
 0x1ea   : > { %2782 = vst [vmem:[%s4812_s23 + $0x18] sm:$0xff] %v3365_v43  ;;  %v2867_v47 = vadd.f32 %v2866_v42, %v2843_v45  ;;  %v2712_v49 = vpop.f32.mrb[8].mxu0  ;;  %v2422_v51 = vpop.f32.mrb[9].mxu1  ;;  %v2817_v42 = vunpack.c.l.s4 %v3883_v41  ;;  %v2819_v43 = vlaneseq }
 0x1eb   : > { %v3378_v50 = vadd.f32 %v2712_v49, %v2420_v48  ;;  %v2714_v52 = vpop.f32.mrb[9].mxu0  ;;  %v2424_v54 = vpop.f32.mrb[10].mxu1 }
 0x1ec   : > { %v3379_v53 = vadd.f32 %v2714_v52, %v2422_v51  ;;  %v2716_v55 = vpop.f32.mrb[10].mxu0  ;;  %v2426_v59 = vpop.f32.mrb[11].mxu1  ;;  %v2818_v52 = vunpack.c.0.s8 %v2817_v42  ;;  %vm2833_vm0 = vcmp.lt.s32.totalorder %v2819_v43, 256 }
 0x1ed   : > { %v2790_v56 = vadd.f32 %v3378_v50, %v2789_v40  ;;  %v2844_v57 = vmul.f32 %v3378_v50, %v3378_v50  ;;  %v3380_v58 = vadd.f32 %v2716_v55, %v2424_v54  ;;  %v2718_v60 = vpop.f32.mrb[11].mxu0 }
 0x1ee   : > { %v3366_v61 = vpack.c.bf16 %v3379_v53, %v3378_v50  ;;  %v2803_v62 = vadd.f32 %v3379_v53, %v2802_v44  ;;  %v2845_v63 = vmul.f32 %v3379_v53, %v3379_v53  ;;  %v3381_v0 = vadd.f32 %v2718_v60, %v2426_v59 }
 0x1ef   : > { %v2855_v1 = vadd.f32 %v2854_v46, %v2844_v57  ;;  %v2791_v2 = vadd.f32 %v3380_v58, %v2790_v56  ;;  %v2846_v3 = vmul.f32 %v3380_v58, %v3380_v58  ;;  %v2820_v53 = vshrl.u32 %v2819_v43, 7 }
 0x1f0   : > { %2783 = vst [vmem:[%s4812_s23 + $0x20] sm:$0xff] %v3366_v61  ;;  %v2868_v4 = vadd.f32 %v2867_v47, %v2845_v63  ;;  %v3367_v5 = vpack.c.bf16 %v3381_v0, %v3380_v58  ;;  %v2804_v6 = vadd.f32 %v3381_v0, %v2803_v62  ;;  %v2847_v7 = vmul.f32 %v3381_v0, %v3381_v0 }
 0x1f1   : > { %v2856_v8 = vadd.f32 %v2855_v1, %v2846_v3  ;;  %v2430_v10 = vpop.f32.mrb[12].mxu1  ;;  %v2821_v62 = vsub.s32 %v2818_v52, %v2820_v53 }
 0x1f2   : > { %2784 = vst [vmem:[%s4812_s23 + $0x28] sm:$0xff] %v3367_v5  ;;  %v2869_v9 = vadd.f32 %v2868_v4, %v2847_v7  ;;  %v2722_v11 = vpop.f32.mrb[12].mxu0  ;;  %v2432_v13 = vpop.f32.mrb[13].mxu1 }
 0x1f3   : > { %v3382_v12 = vadd.f32 %v2722_v11, %v2430_v10  ;;  %v2724_v14 = vpop.f32.mrb[13].mxu0  ;;  %v2434_v16 = vpop.f32.mrb[14].mxu1 }
 0x1f4   : > { %v3383_v15 = vadd.f32 %v2724_v14, %v2432_v13  ;;  %v2726_v17 = vpop.f32.mrb[14].mxu0  ;;  %v2436_v21 = vpop.f32.mrb[15].mxu1 }
 0x1f5   : > { %v2792_v18 = vadd.f32 %v3382_v12, %v2791_v2  ;;  %v2848_v19 = vmul.f32 %v3382_v12, %v3382_v12  ;;  %v3384_v20 = vadd.f32 %v2726_v17, %v2434_v16  ;;  %v2728_v22 = vpop.f32.mrb[15].mxu0 }
 0x1f6   : > { %v3368_v23 = vpack.c.bf16 %v3383_v15, %v3382_v12  ;;  %v2805_v24 = vadd.f32 %v3383_v15, %v2804_v6  ;;  %v2849_v25 = vmul.f32 %v3383_v15, %v3383_v15  ;;  %v3385_v26 = vadd.f32 %v2728_v22, %v2436_v21 }
 0x1f7   : > { %v2857_v27 = vadd.f32 %v2856_v8, %v2848_v19  ;;  %v2793_v28 = vadd.f32 %v3384_v20, %v2792_v18  ;;  %v2850_v29 = vmul.f32 %v3384_v20, %v3384_v20 }
 0x1f8   : > { %2785 = vst [vmem:[%s4812_s23 + $0x30] sm:$0xff] %v3368_v23  ;;  %v2870_v30 = vadd.f32 %v2869_v9, %v2849_v25  ;;  %v3369_v31 = vpack.c.bf16 %v3385_v26, %v3384_v20  ;;  %v2806_v32 = vadd.f32 %v3385_v26, %v2805_v24  ;;  %v2851_v33 = vmul.f32 %v3385_v26, %v3385_v26 }
 0x1f9   : > { %v2794_v34 = vrot.slane %v2793_v28, 4  ;;  %v2858_v35 = vadd.f32 %v2857_v27, %v2850_v29 }
 0x1fa   : > { %2786 = vst [vmem:[%s4812_s23 + $0x38] sm:$0xff] %v3369_v31  ;;  %v2807_v36 = vrot.slane %v2806_v32, 4  ;;  %v2871_v37 = vadd.f32 %v2870_v30, %v2851_v33 }
 0x1fb   : > { %v2795_v38 = vadd.f32 %v2794_v34, %v2793_v28  ;;  %v2859_v39 = vrot.slane %v2858_v35, 4 }
 0x1fc   : > { %v2808_v40 = vadd.f32 %v2807_v36, %v2806_v32  ;;  %v2872_v44 = vrot.slane %v2871_v37, 4 }
 0x1fd   : > { %v2796_v45 = vrot.slane %v2795_v38, 2  ;;  %v2860_v46 = vadd.f32 %v2859_v39, %v2858_v35 }
 0x1fe   : > { %v2809_v47 = vrot.slane %v2808_v40, 2  ;;  %v2873_v48 = vadd.f32 %v2872_v44, %v2871_v37 }
 0x1ff   : > { %v2797_v49 = vadd.f32 %v2796_v45, %v2795_v38  ;;  %v2861_v50 = vrot.slane %v2860_v46, 2 }
 0x200   : > { %v2810_v51 = vadd.f32 %v2809_v47, %v2808_v40  ;;  %v2874_v54 = vrot.slane %v2873_v48, 2 }
 0x201   : > { %v2798_v55 = vrot.slane %v2797_v49, 1  ;;  %v2862_v56 = vadd.f32 %v2861_v50, %v2860_v46 }
 0x202   : > { %v2811_v57 = vrot.slane %v2810_v51, 1  ;;  %v2875_v58 = vadd.f32 %v2874_v54, %v2873_v48 }
 0x203   : > { %v2799_v59 = vadd.f32 %v2798_v55, %v2797_v49  ;;  %v2863_v60 = vrot.slane %v2862_v56, 1 }
 0x204   : > { %v2812_v61 = vadd.f32 %v2811_v57, %v2810_v51  ;;  %v2876_v63 = vrot.slane %v2875_v58, 1 }
 0x205   : > { %v2864_v0 = vadd.f32 %v2863_v60, %v2862_v56 }
 0x206   : > { %v2815_v1 = vcombine.low %v2799_v59, %v2812_v61  ;;  %v2877_v2 = vadd.f32 %v2876_v63, %v2875_v58 }
 0x208   : > { %v2822_v3 = vrot.slane %v2815_v1, %v2821_v62  ;;  %v2880_v4 = vcombine.low %v2864_v0, %v2877_v2 }
 0x20a   : > { %v2829_v5 = vrot.slane %v2822_v3, %v2821_v62  ;;  %v2887_v6 = vrot.slane %v2880_v4, %v2821_v62 }
 0x20c   : > { %2835 = vst.msk [vmem:[%s222_s26] sm:$0x3] %vm2833_vm0, %v2829_v5  ;;  %v2894_v7 = vrot.slane %v2887_v6, %v2821_v62 }
 0x20e   : > { %2896 = vst.msk [vmem:[%s226_s30] sm:$0x3] %vm2833_vm0, %v2894_v7 }
 0x20f PF: > { %s15_s15 = sadd.s32 1, %s3881_s15  }
 0x210   : > { %p12_p5 = scmp.ge.s32.totalorder %s15_s15, 4  }
 0x212   :  { %14 = sbr.rel (!%p12_p5) target bundleno = 1 (0x1), region = 82 }

// kernel: _lambda_.10
= control target key start
LH: loop header
LB: loop body
LE: loop exit
PB: predicated region body
PF: predicated region fallthrough
CT: control target
= control target key end

     0   :  { %s488_s12 = smov 0   ;;  %s579_s0 = inlined_call_operand.vmem [shape: bf16[128,256], index: 0, kind: input, shape index: {}]   ;;  %s580_s1 = inlined_call_operand.vmem [shape: f32[1,256], index: 1, kind: input, shape index: {}]   ;;  %s581_s2 = inlined_call_operand.vmem [shape: f32[1,256], index: 2, kind: input, shape index: {}]   ;;  %s582_s3 = inlined_call_operand.vmem [shape: bf16[128,256], index: 3, kind: output, shape index: {}]  }
   0x1 LB: > { %s421_s13 = sadd.s32 4294967295, %s466_s12   ;;  %p425_p0 = scmp.ge.s32.totalorder %s466_s12, 1  ;;  %s466_s12 = sphi %s488_s12, %s13_s12  }
   0x2   : > { %p139_p1 = scmp.lt.s32.totalorder %s466_s12, 3 }
   0x4   : > { %p140_p2 = pnand %p425_p0, %p139_p1 }
   0x5   : > { %s426_s14 = sshll.u32 (!%p140_p2), %s421_s13, 3  ;;  %v205_v0 = vlaneseq (!%p140_p2)  ;;  %v203_v2 = vld [vmem:[%s580_s1] sm:$0x3] (!%p140_p2) }
   0x6   : > { %143 = sbr.rel (%p140_p2) target bundleno = 49 (0x31), region = 32  ;;  %p166_p3 = scmp.lt.s32.totalorder (!%p140_p2), %s426_s14, 15  ;;  %v231_v5 = vld [vmem:[%s581_s2] sm:$0x3] (!%p140_p2) }
   0x7   : > { %v206_v1 = vshrl.u32 (!%p140_p2), %v205_v0, 7 }
   0x9   : > { %v207_v3 = vsub.s32 (!%p140_p2), 0, %v206_v1  ;;  %v211_v4 = vsub.s32 (!%p140_p2), 1, %v206_v1 }
   0xb   : > { %v512_v6 = vrot.slane (!%p140_p2), %v203_v2, %v207_v3  ;;  %v514_v7 = vrot.slane (!%p140_p2), %v203_v2, %v211_v4  ;;  %v517_v9 = vrot.slane (!%p140_p2), %v231_v5, %v207_v3  ;;  %v519_v10 = vrot.slane (!%p140_p2), %v231_v5, %v211_v4 }
   0xd   : > { %s584_s14 = smov (!%p166_p3, %s426_s14), 15 }
   0xe   : > { %s442_s19 = sshll.u32 %s584_s14, 3 }
   0xf   : > { %s510_s22 = scalar_lea.vmem %s579_s0, %s442_s19  ;;  %s545_s25 = scalar_lea.vmem %s582_s3, %s442_s19 }
  0x10   : > { %v179_v8 = vld [vmem:[%s510_s22] sm:$0xff]  ;;  %v180_v11 = vld [vmem:[%s510_s22 + $0x8] sm:$0xff]  ;;  %v181_v12 = vld [vmem:[%s510_s22 + $0x10] sm:$0xff] }
  0x11   : > { %v187_v13 = vunpack.c.l.bf16 %v179_v8  ;;  %v188_v14 = vunpack.c.h.bf16 %v179_v8  ;;  %v189_v15 = vunpack.c.l.bf16 %v180_v11  ;;  %v190_v16 = vunpack.c.h.bf16 %v180_v11  ;;  %v182_v17 = vld [vmem:[%s510_s22 + $0x18] sm:$0xff]  ;;  %v183_v44 = vld [vmem:[%s510_s22 + $0x20] sm:$0xff]  ;;  %v184_v49 = vld [vmem:[%s510_s22 + $0x28] sm:$0xff] }
  0x12   : > { %v191_v18 = vunpack.c.l.bf16 %v181_v12  ;;  %v192_v19 = vunpack.c.h.bf16 %v181_v12  ;;  %v193_v20 = vunpack.c.l.bf16 %v182_v17  ;;  %v194_v21 = vunpack.c.h.bf16 %v182_v17  ;;  %v185_v60 = vld [vmem:[%s510_s22 + $0x30] sm:$0xff]  ;;  %v186_v61 = vld [vmem:[%s510_s22 + $0x38] sm:$0xff] }
  0x13   : > { %v215_v22 = vmul.f32 %v512_v6, %v187_v13  ;;  %v216_v23 = vmul.f32 %v514_v7, %v188_v14  ;;  %v217_v24 = vmul.f32 %v512_v6, %v189_v15  ;;  %v218_v25 = vmul.f32 %v514_v7, %v190_v16 }
  0x14   : > { %v219_v26 = vmul.f32 %v512_v6, %v191_v18  ;;  %v220_v27 = vmul.f32 %v514_v7, %v192_v19  ;;  %v221_v28 = vmul.f32 %v512_v6, %v193_v20  ;;  %v222_v29 = vmul.f32 %v514_v7, %v194_v21 }
  0x15   : > { %v243_v30 = vadd.f32 %v517_v9, %v215_v22  ;;  %v244_v31 = vadd.f32 %v519_v10, %v216_v23  ;;  %v245_v32 = vadd.f32 %v517_v9, %v217_v24  ;;  %v246_v33 = vadd.f32 %v519_v10, %v218_v25 }
  0x16   : > { %v247_v34 = vadd.f32 %v517_v9, %v219_v26  ;;  %v248_v35 = vadd.f32 %v519_v10, %v220_v27  ;;  %v249_v36 = vadd.f32 %v517_v9, %v221_v28  ;;  %v250_v37 = vadd.f32 %v519_v10, %v222_v29 }
  0x17   : > { %vm259_vm0 = vcmp.gt.f32.partialorder %v243_v30, 0.0  ;;  %vm260_vm1 = vcmp.gt.f32.partialorder %v244_v31, 0.0  ;;  %v275_v38 = vmul.f32 0.2, %v243_v30  ;;  %v276_v39 = vmul.f32 0.2, %v244_v31 }
  0x18   : > { %vm261_vm2 = vcmp.gt.f32.partialorder %v245_v32, 0.0  ;;  %vm262_vm3 = vcmp.gt.f32.partialorder %v246_v33, 0.0  ;;  %v277_v40 = vmul.f32 0.2, %v245_v32  ;;  %v278_v41 = vmul.f32 0.2, %v246_v33 }
  0x19   : > { %v291_v42 = vsel %vm259_vm0, %v243_v30, %v275_v38  ;;  %v292_v43 = vsel %vm260_vm1, %v244_v31, %v276_v39  ;;  %vm263_vm4 = vcmp.gt.f32.partialorder %v247_v34, 0.0  ;;  %vm264_vm5 = vcmp.gt.f32.partialorder %v248_v35, 0.0 }
  0x1a   : > { %v444_v45 = vpack.c.bf16 %v292_v43, %v291_v42  ;;  %v293_v46 = vsel %vm261_vm2, %v245_v32, %v277_v40  ;;  %v294_v47 = vsel %vm262_vm3, %v246_v33, %v278_v41  ;;  %v279_v48 = vmul.f32 0.2, %v247_v34 }
  0x1b   : > { %v445_v50 = vpack.c.bf16 %v294_v47, %v293_v46  ;;  %v280_v51 = vmul.f32 0.2, %v248_v35  ;;  %vm265_vm6 = vcmp.gt.f32.partialorder %v249_v36, 0.0  ;;  %vm266_vm7 = vcmp.gt.f32.partialorder %v250_v37, 0.0 }
  0x1c   : > { %355 = vst [vmem:[%s545_s25] sm:$0xff] %v444_v45  ;;  %v295_v52 = vsel %vm263_vm4, %v247_v34, %v279_v48  ;;  %v281_v53 = vmul.f32 0.2, %v249_v36  ;;  %v282_v54 = vmul.f32 0.2, %v250_v37  ;;  %v195_v55 = vunpack.c.l.bf16 %v183_v44 }
  0x1d   : > { %356 = vst [vmem:[%s545_s25 + $0x8] sm:$0xff] %v445_v50  ;;  %v296_v56 = vsel %vm264_vm5, %v248_v35, %v280_v51  ;;  %v196_v57 = vunpack.c.h.bf16 %v183_v44  ;;  %v197_v58 = vunpack.c.l.bf16 %v184_v49  ;;  %v198_v59 = vunpack.c.h.bf16 %v184_v49 }
  0x1e   : > { %v446_v62 = vpack.c.bf16 %v296_v56, %v295_v52  ;;  %v297_v63 = vsel %vm265_vm6, %v249_v36, %v281_v53  ;;  %v298_v0 = vsel %vm266_vm7, %v250_v37, %v282_v54  ;;  %v223_v1 = vmul.f32 %v512_v6, %v195_v55 }
  0x1f   : > { %v447_v2 = vpack.c.bf16 %v298_v0, %v297_v63  ;;  %v224_v3 = vmul.f32 %v514_v7, %v196_v57  ;;  %v225_v4 = vmul.f32 %v512_v6, %v197_v58  ;;  %v226_v5 = vmul.f32 %v514_v7, %v198_v59 }
  0x20   : > { %357 = vst [vmem:[%s545_s25 + $0x10] sm:$0xff] %v446_v62  ;;  %v251_v8 = vadd.f32 %v517_v9, %v223_v1  ;;  %v199_v11 = vunpack.c.l.bf16 %v185_v60  ;;  %v200_v12 = vunpack.c.h.bf16 %v185_v60  ;;  %v201_v13 = vunpack.c.l.bf16 %v186_v61 }
  0x21   : > { %358 = vst [vmem:[%s545_s25 + $0x18] sm:$0xff] %v447_v2  ;;  %v252_v14 = vadd.f32 %v519_v10, %v224_v3  ;;  %v253_v15 = vadd.f32 %v517_v9, %v225_v4  ;;  %v254_v16 = vadd.f32 %v519_v10, %v226_v5  ;;  %v202_v17 = vunpack.c.h.bf16 %v186_v61 }
  0x22   : > { %vm267_vm8 = vcmp.gt.f32.partialorder %v251_v8, 0.0  ;;  %v283_v18 = vmul.f32 0.2, %v251_v8  ;;  %v227_v19 = vmul.f32 %v512_v6, %v199_v11  ;;  %v228_v20 = vmul.f32 %v514_v7, %v200_v12 }
  0x23   : > { %vm268_vm9 = vcmp.gt.f32.partialorder %v252_v14, 0.0  ;;  %v284_v21 = vmul.f32 0.2, %v252_v14  ;;  %vm269_vm10 = vcmp.gt.f32.partialorder %v253_v15, 0.0  ;;  %vm270_vm11 = vcmp.gt.f32.partialorder %v254_v16, 0.0 }
  0x24   : > { %v299_v22 = vsel %vm267_vm8, %v251_v8, %v283_v18  ;;  %v285_v23 = vmul.f32 0.2, %v253_v15  ;;  %v286_v24 = vmul.f32 0.2, %v254_v16  ;;  %v255_v25 = vadd.f32 %v517_v9, %v227_v19 }
  0x25   : > { %v300_v26 = vsel %vm268_vm9, %v252_v14, %v284_v21  ;;  %v256_v27 = vadd.f32 %v519_v10, %v228_v20  ;;  %v229_v28 = vmul.f32 %v512_v6, %v201_v13  ;;  %v230_v29 = vmul.f32 %v514_v7, %v202_v17 }
  0x26   : > { %v448_v30 = vpack.c.bf16 %v300_v26, %v299_v22  ;;  %v301_v31 = vsel %vm269_vm10, %v253_v15, %v285_v23  ;;  %v302_v32 = vsel %vm270_vm11, %v254_v16, %v286_v24  ;;  %vm271_vm12 = vcmp.gt.f32.partialorder %v255_v25, 0.0 }
  0x27   : > { %v449_v33 = vpack.c.bf16 %v302_v32, %v301_v31  ;;  %vm272_vm13 = vcmp.gt.f32.partialorder %v256_v27, 0.0  ;;  %v287_v34 = vmul.f32 0.2, %v255_v25  ;;  %v288_v35 = vmul.f32 0.2, %v256_v27 }
  0x28   : > { %359 = vst [vmem:[%s545_s25 + $0x20] sm:$0xff] %v448_v30  ;;  %v257_v36 = vadd.f32 %v517_v9, %v229_v28  ;;  %v258_v37 = vadd.f32 %v519_v10, %v230_v29 }
  0x29   : > { %360 = vst [vmem:[%s545_s25 + $0x28] sm:$0xff] %v449_v33  ;;  %v303_v38 = vsel %vm271_vm12, %v255_v25, %v287_v34  ;;  %v304_v6 = vsel %vm272_vm13, %v256_v27, %v288_v35 }
  0x2a   : > { %v450_v39 = vpack.c.bf16 %v304_v6, %v303_v38  ;;  %vm273_vm14 = vcmp.gt.f32.partialorder %v257_v36, 0.0  ;;  %vm274_vm15 = vcmp.gt.f32.partialorder %v258_v37, 0.0  ;;  %v289_v7 = vmul.f32 0.2, %v257_v36 }
  0x2b   : > { %v290_v40 = vmul.f32 0.2, %v258_v37 }
  0x2c   : > { %361 = vst [vmem:[%s545_s25 + $0x30] sm:$0xff] %v450_v39  ;;  %v305_v41 = vsel %vm273_vm14, %v257_v36, %v289_v7 }
  0x2d   : > { %v306_v42 = vsel %vm274_vm15, %v258_v37, %v290_v40 }
  0x2e   : > { %v451_v43 = vpack.c.bf16 %v306_v42, %v305_v41 }
  0x30   : > { %362 = vst [vmem:[%s545_s25 + $0x38] sm:$0xff] %v451_v43 }
  0x31 PF: > { %s13_s12 = sadd.s32 1, %s466_s12  }
  0x32   : > { %p10_p4 = scmp.ge.s32.totalorder %s13_s12, 4  }
  0x34   :  { %12 = sbr.rel (!%p10_p4) target bundleno = 1 (0x1), region = 62 }

// kernel: _lambda_.11
= control target key start
LH: loop header
LB: loop body
LE: loop exit
PB: predicated region body
PF: predicated region fallthrough
CT: control target
= control target key end

     0   :  { %s15142_s1 = inlined_call_operand.vmem [shape: bf16[4096,512], index: 1, kind: input, shape index: {}]   ;;  %s15143_s0 = inlined_call_operand.vmem [shape: bf16[32,4096], index: 0, kind: input, shape index: {}]   ;;  %s15144_s2 = inlined_call_operand.vmem [shape: f32[1,512], index: 2, kind: input, shape index: {}]   ;;  %s15145_s3 = inlined_call_operand.vmem [shape: f32[1,512], index: 3, kind: input, shape index: {}]   ;;  %s15146_s4 = inlined_call_operand.vmem [shape: bf16[16,512], index: 4, kind: input, shape index: {}]   ;;  %s15147_s5 = inlined_call_operand.vmem [shape: f32[2,1], index: 5, kind: output, shape index: {}]  }
   0x1   :  { %v9933_v0 = vld [vmem:[%s15142_s1 + $0x4] ss:$16 sps:$4 sm:$0xff]   ;;  %v9935_v1 = vld [vmem:[%s15142_s1 + $0xc] ss:$16 sps:$4 sm:$0xff]   ;;  %v9937_v2 = vld [vmem:[%s15142_s1] ss:$16 sps:$4 sm:$0xff]  }
   0x2   :  { %6548 = vmatprep.subr.bf16.mxu0 %v9933_v0  ;;  %v9938_v3 = vld [vmem:[%s15142_s1 + $0x8] ss:$16 sps:$4 sm:$0xff]   ;;  %7396 = vmatprep.subr.bf16.mxu1 %v9935_v1  ;;  %v9939_v4 = vld [vmem:[%s15142_s1 + $0x24] ss:$16 sps:$4 sm:$0xff]   ;;  %v9941_v5 = vld [vmem:[%s15142_s1 + $0x2c] ss:$16 sps:$4 sm:$0xff]  }
   0x3   :  { %6549 = vmatpush1.bf16.msra.mxu0 %v9937_v2  ;;  %7397 = vmatpush1.bf16.msra.mxu1 %v9938_v3  ;;  %v9943_v6 = vld [vmem:[%s15142_s1 + $0x20] ss:$16 sps:$4 sm:$0xff]   ;;  %v9944_v7 = vld [vmem:[%s15142_s1 + $0x28] ss:$16 sps:$4 sm:$0xff]   ;;  %v9945_v8 = vld [vmem:[%s15142_s1 + $0x44] ss:$16 sps:$4 sm:$0xff]  }
   0x4   :  { %6550 = vmatprep.subr.bf16.mxu0 %v9939_v4  ;;  %7398 = vmatprep.subr.bf16.mxu1 %v9941_v5  ;;  %v9947_v9 = vld [vmem:[%s15142_s1 + $0x4c] ss:$16 sps:$4 sm:$0xff]   ;;  %v9949_v10 = vld [vmem:[%s15142_s1 + $0x40] ss:$16 sps:$4 sm:$0xff]   ;;  %v9950_v11 = vld [vmem:[%s15142_s1 + $0x48] ss:$16 sps:$4 sm:$0xff]  }
   0x5   :  { %v9951_v12 = vld [vmem:[%s15142_s1 + $0x64] ss:$16 sps:$4 sm:$0xff]   ;;  %v9953_v13 = vld [vmem:[%s15142_s1 + $0x6c] ss:$16 sps:$4 sm:$0xff]   ;;  %v9955_v14 = vld [vmem:[%s15142_s1 + $0x60] ss:$16 sps:$4 sm:$0xff]  }
   0x6   :  { %v9956_v15 = vld [vmem:[%s15142_s1 + $0x68] ss:$16 sps:$4 sm:$0xff]   ;;  %v9957_v16 = vld [vmem:[%s15142_s1 + $0x84] ss:$16 sps:$4 sm:$0xff]   ;;  %v9959_v17 = vld [vmem:[%s15142_s1 + $0x8c] ss:$16 sps:$4 sm:$0xff]  }
   0x7   :  { %6551 = vmatpush1.bf16.msra.mxu0 %v9943_v6  ;;  %7399 = vmatpush1.bf16.msra.mxu1 %v9944_v7  ;;  %v9961_v18 = vld [vmem:[%s15142_s1 + $0x80] ss:$16 sps:$4 sm:$0xff]   ;;  %v9962_v19 = vld [vmem:[%s15142_s1 + $0x88] ss:$16 sps:$4 sm:$0xff]   ;;  %v9963_v20 = vld [vmem:[%s15142_s1 + $0xa4] ss:$16 sps:$4 sm:$0xff]  }
   0x8   :  { %6552 = vmatprep.subr.bf16.mxu0 %v9945_v8  ;;  %7400 = vmatprep.subr.bf16.mxu1 %v9947_v9  ;;  %v9965_v21 = vld [vmem:[%s15142_s1 + $0xac] ss:$16 sps:$4 sm:$0xff]   ;;  %v9967_v22 = vld [vmem:[%s15142_s1 + $0xa0] ss:$16 sps:$4 sm:$0xff]   ;;  %v9968_v23 = vld [vmem:[%s15142_s1 + $0xa8] ss:$16 sps:$4 sm:$0xff]  }
   0x9   :  { %v9969_v24 = vld [vmem:[%s15142_s1 + $0xc4] ss:$16 sps:$4 sm:$0xff]   ;;  %v9971_v25 = vld [vmem:[%s15142_s1 + $0xcc] ss:$16 sps:$4 sm:$0xff]   ;;  %v9973_v26 = vld [vmem:[%s15142_s1 + $0xc0] ss:$16 sps:$4 sm:$0xff]  }
   0xa   :  { %v9974_v27 = vld [vmem:[%s15142_s1 + $0xc8] ss:$16 sps:$4 sm:$0xff]   ;;  %v9975_v28 = vld [vmem:[%s15142_s1 + $0xe4] ss:$16 sps:$4 sm:$0xff]   ;;  %v9977_v29 = vld [vmem:[%s15142_s1 + $0xec] ss:$16 sps:$4 sm:$0xff]  }
   0xb   :  { %6553 = vmatpush1.bf16.msra.mxu0 %v9949_v10  ;;  %7401 = vmatpush1.bf16.msra.mxu1 %v9950_v11  ;;  %v9979_v30 = vld [vmem:[%s15142_s1 + $0xe0] ss:$16 sps:$4 sm:$0xff]   ;;  %v9980_v31 = vld [vmem:[%s15142_s1 + $0xe8] ss:$16 sps:$4 sm:$0xff]   ;;  %v9981_v32 = vld [vmem:[%s15142_s1 + $0x104] ss:$16 sps:$4 sm:$0xff]  }
   0xc   :  { %6554 = vmatprep.subr.bf16.mxu0 %v9951_v12  ;;  %7402 = vmatprep.subr.bf16.mxu1 %v9953_v13  ;;  %v9983_v33 = vld [vmem:[%s15142_s1 + $0x10c] ss:$16 sps:$4 sm:$0xff]   ;;  %v9985_v34 = vld [vmem:[%s15142_s1 + $0x100] ss:$16 sps:$4 sm:$0xff]   ;;  %v9986_v35 = vld [vmem:[%s15142_s1 + $0x108] ss:$16 sps:$4 sm:$0xff]  }
   0xd   :  { %v9987_v36 = vld [vmem:[%s15142_s1 + $0x124] ss:$16 sps:$4 sm:$0xff]   ;;  %v9989_v37 = vld [vmem:[%s15142_s1 + $0x12c] ss:$16 sps:$4 sm:$0xff]   ;;  %v9991_v38 = vld [vmem:[%s15142_s1 + $0x120] ss:$16 sps:$4 sm:$0xff]  }
   0xe   :  { %v9992_v39 = vld [vmem:[%s15142_s1 + $0x128] ss:$16 sps:$4 sm:$0xff]   ;;  %v9993_v40 = vld [vmem:[%s15142_s1 + $0x144] ss:$16 sps:$4 sm:$0xff]   ;;  %v9995_v41 = vld [vmem:[%s15142_s1 + $0x14c] ss:$16 sps:$4 sm:$0xff]  }
   0xf   :  { %6555 = vmatpush1.bf16.msra.mxu0 %v9955_v14  ;;  %7403 = vmatpush1.bf16.msra.mxu1 %v9956_v15  ;;  %v9997_v42 = vld [vmem:[%s15142_s1 + $0x140] ss:$16 sps:$4 sm:$0xff]   ;;  %v9998_v43 = vld [vmem:[%s15142_s1 + $0x148] ss:$16 sps:$4 sm:$0xff]   ;;  %v9999_v44 = vld [vmem:[%s15142_s1 + $0x164] ss:$16 sps:$4 sm:$0xff]  }
  0x10   :  { %6556 = vmatprep.subr.bf16.mxu0 %v9957_v16  ;;  %7404 = vmatprep.subr.bf16.mxu1 %v9959_v17  ;;  %v10001_v45 = vld [vmem:[%s15142_s1 + $0x16c] ss:$16 sps:$4 sm:$0xff]   ;;  %v20_v46 = vld [vmem:[%s15143_s0] sm:$0xff]  ;;  %v10004_v49 = vld [vmem:[%s15142_s1 + $0x168] ss:$16 sps:$4 sm:$0xff]  }
  0x11   :  { %v36_v47 = vld [vmem:[%s15143_s0 + $0x80] sm:$0xff]  ;;  %v10007_v52 = vld [vmem:[%s15142_s1 + $0x18c] ss:$16 sps:$4 sm:$0xff]   ;;  %v10010_v54 = vld [vmem:[%s15142_s1 + $0x188] ss:$16 sps:$4 sm:$0xff]  }
  0x12   :  { %v10003_v48 = vld [vmem:[%s15142_s1 + $0x160] ss:$16 sps:$4 sm:$0xff]   ;;  %v8606_v50 = vcombine.high %v20_v46, %v36_v47  ;;  %v10005_v51 = vld [vmem:[%s15142_s1 + $0x184] ss:$16 sps:$4 sm:$0xff]   ;;  %v10013_v56 = vld [vmem:[%s15142_s1 + $0x1ac] ss:$16 sps:$4 sm:$0xff]   ;;  %v8605_v5 = vcombine.low %v20_v46, %v36_v47 }
  0x13   :  { %6557 = vmatpush1.bf16.msra.mxu0 %v9961_v18  ;;  %7405 = vmatpush1.bf16.msra.mxu1 %v9962_v19  ;;  %v10009_v53 = vld [vmem:[%s15142_s1 + $0x180] ss:$16 sps:$4 sm:$0xff]   ;;  %v10011_v55 = vld [vmem:[%s15142_s1 + $0x1a4] ss:$16 sps:$4 sm:$0xff]   ;;  %v10016_v58 = vld [vmem:[%s15142_s1 + $0x1a8] ss:$16 sps:$4 sm:$0xff]  }
  0x14   :  { %6558 = vmatprep.subr.bf16.mxu0 %v9963_v20  ;;  %7406 = vmatprep.subr.bf16.mxu1 %v9965_v21  ;;  %v10015_v57 = vld [vmem:[%s15142_s1 + $0x1a0] ss:$16 sps:$4 sm:$0xff]   ;;  %v10017_v59 = vld [vmem:[%s15142_s1 + $0x1c4] ss:$16 sps:$4 sm:$0xff]   ;;  %v10019_v60 = vld [vmem:[%s15142_s1 + $0x1cc] ss:$16 sps:$4 sm:$0xff]  }
  0x15   :  { %6580 = vmatprep.mubr.bf16.mxu0 %v8606_v50  ;;  %7428 = vmatprep.mubr.bf16.mxu1 %v8606_v50  ;;  %v10021_v61 = vld [vmem:[%s15142_s1 + $0x1c0] ss:$16 sps:$4 sm:$0xff]   ;;  %v10022_v62 = vld [vmem:[%s15142_s1 + $0x1c8] ss:$16 sps:$4 sm:$0xff]   ;;  %v10023_v63 = vld [vmem:[%s15142_s1 + $0x1e4] ss:$16 sps:$4 sm:$0xff]  }
  0x16   :  { %v10025_v0 = vld [vmem:[%s15142_s1 + $0x1ec] ss:$16 sps:$4 sm:$0xff]   ;;  %v10027_v1 = vld [vmem:[%s15142_s1 + $0x1e0] ss:$16 sps:$4 sm:$0xff]   ;;  %v10028_v2 = vld [vmem:[%s15142_s1 + $0x1e8] ss:$16 sps:$4 sm:$0xff]  }
  0x17   :  { %6559 = vmatpush1.bf16.msra.mxu0 %v9967_v22  ;;  %7407 = vmatpush1.bf16.msra.mxu1 %v9968_v23  ;;  %v10031_v3 = vld [vmem:[%s15142_s1 + $0x204] ss:$16 sps:$4 sm:$0xff]   ;;  %v10034_v4 = vld [vmem:[%s15142_s1 + $0x20c] ss:$16 sps:$4 sm:$0xff]   ;;  %v10029_v6 = vld [vmem:[%s15142_s1 + $0x200] ss:$16 sps:$4 sm:$0xff]  }
  0x18   :  { %6560 = vmatprep.subr.bf16.mxu0 %v9969_v24  ;;  %7408 = vmatprep.subr.bf16.mxu1 %v9971_v25  ;;  %v10032_v7 = vld [vmem:[%s15142_s1 + $0x208] ss:$16 sps:$4 sm:$0xff]   ;;  %v10037_v8 = vld [vmem:[%s15142_s1 + $0x224] ss:$16 sps:$4 sm:$0xff]   ;;  %v10040_v9 = vld [vmem:[%s15142_s1 + $0x22c] ss:$16 sps:$4 sm:$0xff]  }
  0x19   :  { %v10035_v10 = vld [vmem:[%s15142_s1 + $0x220] ss:$16 sps:$4 sm:$0xff]   ;;  %v10038_v11 = vld [vmem:[%s15142_s1 + $0x228] ss:$16 sps:$4 sm:$0xff]   ;;  %v10043_v12 = vld [vmem:[%s15142_s1 + $0x244] ss:$16 sps:$4 sm:$0xff]  }
  0x1a   :  { %v10046_v13 = vld [vmem:[%s15142_s1 + $0x24c] ss:$16 sps:$4 sm:$0xff]   ;;  %v10041_v14 = vld [vmem:[%s15142_s1 + $0x240] ss:$16 sps:$4 sm:$0xff]   ;;  %v10044_v15 = vld [vmem:[%s15142_s1 + $0x248] ss:$16 sps:$4 sm:$0xff]  }
  0x1b   :  { %6561 = vmatpush1.bf16.msra.mxu0 %v9973_v26  ;;  %7409 = vmatpush1.bf16.msra.mxu1 %v9974_v27  ;;  %v10049_v16 = vld [vmem:[%s15142_s1 + $0x264] ss:$16 sps:$4 sm:$0xff]   ;;  %v10052_v17 = vld [vmem:[%s15142_s1 + $0x26c] ss:$16 sps:$4 sm:$0xff]   ;;  %v10047_v18 = vld [vmem:[%s15142_s1 + $0x260] ss:$16 sps:$4 sm:$0xff]  }
  0x1c   :  { %6562 = vmatprep.subr.bf16.mxu0 %v9975_v28  ;;  %7410 = vmatprep.subr.bf16.mxu1 %v9977_v29  ;;  %v10050_v19 = vld [vmem:[%s15142_s1 + $0x268] ss:$16 sps:$4 sm:$0xff]   ;;  %v10055_v20 = vld [vmem:[%s15142_s1 + $0x284] ss:$16 sps:$4 sm:$0xff]   ;;  %v10058_v21 = vld [vmem:[%s15142_s1 + $0x28c] ss:$16 sps:$4 sm:$0xff]  }
  0x1d   :  { %v10053_v22 = vld [vmem:[%s15142_s1 + $0x280] ss:$16 sps:$4 sm:$0xff]   ;;  %v10056_v23 = vld [vmem:[%s15142_s1 + $0x288] ss:$16 sps:$4 sm:$0xff]   ;;  %v10061_v24 = vld [vmem:[%s15142_s1 + $0x2a4] ss:$16 sps:$4 sm:$0xff]  }
  0x1e   :  { %v10064_v25 = vld [vmem:[%s15142_s1 + $0x2ac] ss:$16 sps:$4 sm:$0xff]   ;;  %v52_v26 = vld [vmem:[%s15143_s0 + $0x100] sm:$0xff]  ;;  %v10080_v46 = vld [vmem:[%s15142_s1 + $0x308] ss:$16 sps:$4 sm:$0xff]  }
  0x1f   :  { %6563 = vmatpush1.bf16.msra.mxu0 %v9979_v30  ;;  %7411 = vmatpush1.bf16.msra.mxu1 %v9980_v31  ;;  %v68_v27 = vld [vmem:[%s15143_s0 + $0x180] sm:$0xff]  ;;  %v10062_v30 = vld [vmem:[%s15142_s1 + $0x2a8] ss:$16 sps:$4 sm:$0xff]  }
  0x20   :  { %6564 = vmatprep.subr.bf16.mxu0 %v9981_v32  ;;  %7412 = vmatprep.subr.bf16.mxu1 %v9983_v33  ;;  %v8638_v28 = vcombine.high %v52_v26, %v68_v27  ;;  %v10059_v29 = vld [vmem:[%s15142_s1 + $0x2a0] ss:$16 sps:$4 sm:$0xff]   ;;  %v8637_v31 = vcombine.low %v52_v26, %v68_v27  ;;  %v10067_v32 = vld [vmem:[%s15142_s1 + $0x2c4] ss:$16 sps:$4 sm:$0xff]   ;;  %v10070_v33 = vld [vmem:[%s15142_s1 + $0x2cc] ss:$16 sps:$4 sm:$0xff]  }
  0x21   :  { %v10085_v47 = vld [vmem:[%s15142_s1 + $0x324] ss:$16 sps:$4 sm:$0xff]   ;;  %v10086_v50 = vld [vmem:[%s15142_s1 + $0x328] ss:$16 sps:$4 sm:$0xff]  }
  0x22   :  { %v11969_v27 = vld [vmem:[%s15143_s0 + $0x90] sm:$0xff] }
  0x23   :  { %6565 = vmatpush1.bf16.msra.mxu0 %v9985_v34  ;;  %7413 = vmatpush1.bf16.msra.mxu1 %v9986_v35  ;;  %v11800_v34 = vld [vmem:[%s15143_s0 + $0x8] sm:$0xff] }
  0x24   :  { %6566 = vmatprep.subr.bf16.mxu0 %v9987_v36  ;;  %7414 = vmatprep.subr.bf16.mxu1 %v9989_v37  ;;  %v11805_v35 = vld [vmem:[%s15143_s0 + $0x88] sm:$0xff]  ;;  %v10065_v36 = vld [vmem:[%s15142_s1 + $0x2c0] ss:$16 sps:$4 sm:$0xff]  }
  0x25   :  { %v10068_v37 = vld [vmem:[%s15142_s1 + $0x2c8] ss:$16 sps:$4 sm:$0xff]  }
  0x27   :  { %6567 = vmatpush1.bf16.msra.mxu0 %v9991_v38  ;;  %7415 = vmatpush1.bf16.msra.mxu1 %v9992_v39  ;;  %v8608_v38 = vcombine.high %v11800_v34, %v11805_v35  ;;  %v10073_v39 = vld [vmem:[%s15142_s1 + $0x2e4] ss:$16 sps:$4 sm:$0xff]  }
  0x28   :  { %6568 = vmatprep.subr.bf16.mxu0 %v9993_v40  ;;  %7416 = vmatprep.subr.bf16.mxu1 %v9995_v41  ;;  %v10076_v40 = vld [vmem:[%s15142_s1 + $0x2ec] ss:$16 sps:$4 sm:$0xff]   ;;  %v10071_v41 = vld [vmem:[%s15142_s1 + $0x2e0] ss:$16 sps:$4 sm:$0xff]  }
  0x2b   :  { %6569 = vmatpush1.bf16.msra.mxu0 %v9997_v42  ;;  %7417 = vmatpush1.bf16.msra.mxu1 %v9998_v43  ;;  %v10074_v42 = vld [vmem:[%s15142_s1 + $0x2e8] ss:$16 sps:$4 sm:$0xff]   ;;  %v10079_v43 = vld [vmem:[%s15142_s1 + $0x304] ss:$16 sps:$4 sm:$0xff]  }
  0x2c   :  { %6570 = vmatprep.subr.bf16.mxu0 %v9999_v44  ;;  %7418 = vmatprep.subr.bf16.mxu1 %v10001_v45  ;;  %v10082_v44 = vld [vmem:[%s15142_s1 + $0x30c] ss:$16 sps:$4 sm:$0xff]   ;;  %v10077_v45 = vld [vmem:[%s15142_s1 + $0x300] ss:$16 sps:$4 sm:$0xff]  }
  0x2f   :  { %6571 = vmatpush1.bf16.msra.mxu0 %v10003_v48  ;;  %7419 = vmatpush1.bf16.msra.mxu1 %v10004_v49  ;;  %v10088_v48 = vld [vmem:[%s15142_s1 + $0x32c] ss:$16 sps:$4 sm:$0xff]   ;;  %v10083_v49 = vld [vmem:[%s15142_s1 + $0x320] ss:$16 sps:$4 sm:$0xff]  }
  0x30   :  { %6572 = vmatprep.subr.bf16.mxu0 %v10005_v51  ;;  %7420 = vmatprep.subr.bf16.mxu1 %v10007_v52  ;;  %v10091_v51 = vld [vmem:[%s15142_s1 + $0x344] ss:$16 sps:$4 sm:$0xff]   ;;  %v10094_v52 = vld [vmem:[%s15142_s1 + $0x34c] ss:$16 sps:$4 sm:$0xff]  }
  0x33   :  { %6573 = vmatpush1.bf16.msra.mxu0 %v10009_v53  ;;  %7421 = vmatpush1.bf16.msra.mxu1 %v10010_v54  ;;  %v10089_v53 = vld [vmem:[%s15142_s1 + $0x340] ss:$16 sps:$4 sm:$0xff]   ;;  %v10092_v54 = vld [vmem:[%s15142_s1 + $0x348] ss:$16 sps:$4 sm:$0xff]  }
  0x34   :  { %6574 = vmatprep.subr.bf16.mxu0 %v10011_v55  ;;  %7422 = vmatprep.subr.bf16.mxu1 %v10013_v56  ;;  %v10097_v55 = vld [vmem:[%s15142_s1 + $0x364] ss:$16 sps:$4 sm:$0xff]   ;;  %v10100_v56 = vld [vmem:[%s15142_s1 + $0x36c] ss:$16 sps:$4 sm:$0xff]  }
  0x37   :  { %6575 = vmatpush1.bf16.msra.mxu0 %v10015_v57  ;;  %7423 = vmatpush1.bf16.msra.mxu1 %v10016_v58  ;;  %v10095_v57 = vld [vmem:[%s15142_s1 + $0x360] ss:$16 sps:$4 sm:$0xff]   ;;  %v10098_v58 = vld [vmem:[%s15142_s1 + $0x368] ss:$16 sps:$4 sm:$0xff]  }
  0x38   :  { %6576 = vmatprep.subr.bf16.mxu0 %v10017_v59  ;;  %7424 = vmatprep.subr.bf16.mxu1 %v10019_v60  ;;  %v10103_v59 = vld [vmem:[%s15142_s1 + $0x384] ss:$16 sps:$4 sm:$0xff]   ;;  %v10106_v60 = vld [vmem:[%s15142_s1 + $0x38c] ss:$16 sps:$4 sm:$0xff]  }
  0x3b   :  { %6577 = vmatpush1.bf16.msra.mxu0 %v10021_v61  ;;  %7425 = vmatpush1.bf16.msra.mxu1 %v10022_v62  ;;  %v10101_v61 = vld [vmem:[%s15142_s1 + $0x380] ss:$16 sps:$4 sm:$0xff]   ;;  %v10104_v62 = vld [vmem:[%s15142_s1 + $0x388] ss:$16 sps:$4 sm:$0xff]  }
  0x3c   :  { %6578 = vmatprep.subr.bf16.mxu0 %v10023_v63  ;;  %7426 = vmatprep.subr.bf16.mxu1 %v10025_v0  ;;  %v10109_v63 = vld [vmem:[%s15142_s1 + $0x3a4] ss:$16 sps:$4 sm:$0xff]   ;;  %v10112_v0 = vld [vmem:[%s15142_s1 + $0x3ac] ss:$16 sps:$4 sm:$0xff]  }
  0x3f   :  { %6579 = vmatpush1.bf16.msra.mxu0 %v10027_v1  ;;  %7427 = vmatpush1.bf16.msra.mxu1 %v10028_v2  ;;  %v10107_v1 = vld [vmem:[%s15142_s1 + $0x3a0] ss:$16 sps:$4 sm:$0xff]   ;;  %v10110_v2 = vld [vmem:[%s15142_s1 + $0x3a8] ss:$16 sps:$4 sm:$0xff]  }
  0x40   :  { %6601 = vmatprep.subr.bf16.mxu0 %v10031_v3  ;;  %7449 = vmatprep.subr.bf16.mxu1 %v10034_v4  ;;  %v10115_v3 = vld [vmem:[%s15142_s1 + $0x3c4] ss:$16 sps:$4 sm:$0xff]   ;;  %v10118_v4 = vld [vmem:[%s15142_s1 + $0x3cc] ss:$16 sps:$4 sm:$0xff]  }
  0x42   :  { %6581 = vmatmul.mubr.bf16.vlgmr.msra.gmra.mrb[0].mxu0 %v8605_v5  ;;  %7429 = vmatmul.mubr.bf16.vlgmr.msra.gmra.mrb[0].mxu1 %v8605_v5  ;;  %v10113_v5 = vld [vmem:[%s15142_s1 + $0x3c0] ss:$16 sps:$4 sm:$0xff]  }
  0x43   :  { %6602 = vmatpush1.bf16.msra.mxu0 %v10029_v6  ;;  %7450 = vmatpush1.bf16.msra.mxu1 %v10032_v7  ;;  %v10116_v6 = vld [vmem:[%s15142_s1 + $0x3c8] ss:$16 sps:$4 sm:$0xff]   ;;  %v10121_v7 = vld [vmem:[%s15142_s1 + $0x3e4] ss:$16 sps:$4 sm:$0xff]  }
  0x44   :  { %6603 = vmatprep.subr.bf16.mxu0 %v10037_v8  ;;  %7451 = vmatprep.subr.bf16.mxu1 %v10040_v9  ;;  %v10124_v8 = vld [vmem:[%s15142_s1 + $0x3ec] ss:$16 sps:$4 sm:$0xff]   ;;  %v10119_v9 = vld [vmem:[%s15142_s1 + $0x3e0] ss:$16 sps:$4 sm:$0xff]  }
  0x45   :  { %6590 = vmatprep.mubr.bf16.mxu0 %v8638_v28  ;;  %7438 = vmatprep.mubr.bf16.mxu1 %v8638_v28  ;;  %v10137_v28 = vld [vmem:[%s15142_s1 + $0x440] ss:$16 sps:$4 sm:$0xff]  }
  0x47   :  { %6604 = vmatpush1.bf16.msra.mxu0 %v10035_v10  ;;  %7452 = vmatpush1.bf16.msra.mxu1 %v10038_v11  ;;  %v10122_v10 = vld [vmem:[%s15142_s1 + $0x3e8] ss:$16 sps:$4 sm:$0xff]   ;;  %v10127_v11 = vld [vmem:[%s15142_s1 + $0x404] ss:$16 sps:$4 sm:$0xff]  }
  0x48   :  { %6605 = vmatprep.subr.bf16.mxu0 %v10043_v12  ;;  %7453 = vmatprep.subr.bf16.mxu1 %v10046_v13  ;;  %v10130_v12 = vld [vmem:[%s15142_s1 + $0x40c] ss:$16 sps:$4 sm:$0xff]   ;;  %v10125_v13 = vld [vmem:[%s15142_s1 + $0x400] ss:$16 sps:$4 sm:$0xff]  }
  0x4a   :  { %6591 = vmatmul.mubr.bf16.gmra.mrb[4].mxu0 %v8637_v31  ;;  %7439 = vmatmul.mubr.bf16.gmra.mrb[4].mxu1 %v8637_v31  ;;  %v10148_v31 = vld [vmem:[%s15142_s1 + $0x46c] ss:$16 sps:$4 sm:$0xff]  }
  0x4b   :  { %6606 = vmatpush1.bf16.msra.mxu0 %v10041_v14  ;;  %7454 = vmatpush1.bf16.msra.mxu1 %v10044_v15  ;;  %v10128_v14 = vld [vmem:[%s15142_s1 + $0x408] ss:$16 sps:$4 sm:$0xff]   ;;  %v8607_v15 = vcombine.low %v11800_v34, %v11805_v35  ;;  %v10151_v35 = vld [vmem:[%s15142_s1 + $0x484] ss:$16 sps:$4 sm:$0xff]  }
  0x4c   :  { %6607 = vmatprep.subr.bf16.mxu0 %v10049_v16  ;;  %7455 = vmatprep.subr.bf16.mxu1 %v10052_v17  ;;  %v53_v16 = vld [vmem:[%s15143_s0 + $0x108] sm:$0xff] }
  0x4d   :  { %6633 = vmatprep.mubr.bf16.mxu0 %v8608_v38  ;;  %7481 = vmatprep.mubr.bf16.mxu1 %v8608_v38  ;;  %v69_v17 = vld [vmem:[%s15143_s0 + $0x188] sm:$0xff] }
  0x4e   :  { %v8639_v26 = vcombine.low %v53_v16, %v69_v17  ;;  %v10146_v34 = vld [vmem:[%s15142_s1 + $0x468] ss:$16 sps:$4 sm:$0xff]  }
  0x4f   :  { %6608 = vmatpush1.bf16.msra.mxu0 %v10047_v18  ;;  %7456 = vmatpush1.bf16.msra.mxu1 %v10050_v19  ;;  %v10133_v18 = vld [vmem:[%s15142_s1 + $0x424] ss:$16 sps:$4 sm:$0xff]   ;;  %v10136_v19 = vld [vmem:[%s15142_s1 + $0x42c] ss:$16 sps:$4 sm:$0xff]   ;;  %v10152_v38 = vld [vmem:[%s15142_s1 + $0x488] ss:$16 sps:$4 sm:$0xff]  }
  0x50   :  { %6609 = vmatprep.subr.bf16.mxu0 %v10055_v20  ;;  %7457 = vmatprep.subr.bf16.mxu1 %v10058_v21  ;;  %v8640_v20 = vcombine.high %v53_v16, %v69_v17  ;;  %v10131_v21 = vld [vmem:[%s15142_s1 + $0x420] ss:$16 sps:$4 sm:$0xff]   ;;  %v10220_v16 = vld [vmem:[%s15142_s1 + $0x5ec] ss:$16 sps:$4 sm:$0xff]  }
  0x51   :  { %v10215_v17 = vld [vmem:[%s15142_s1 + $0x5e0] ss:$16 sps:$4 sm:$0xff]  }
  0x53   :  { %6610 = vmatpush1.bf16.msra.mxu0 %v10053_v22  ;;  %7458 = vmatpush1.bf16.msra.mxu1 %v10056_v23  ;;  %v10134_v22 = vld [vmem:[%s15142_s1 + $0x428] ss:$16 sps:$4 sm:$0xff]   ;;  %v10139_v23 = vld [vmem:[%s15142_s1 + $0x444] ss:$16 sps:$4 sm:$0xff]  }
  0x54   :  { %6611 = vmatprep.subr.bf16.mxu0 %v10061_v24  ;;  %7459 = vmatprep.subr.bf16.mxu1 %v10064_v25  ;;  %v10142_v24 = vld [vmem:[%s15142_s1 + $0x44c] ss:$16 sps:$4 sm:$0xff]   ;;  %v11964_v25 = vld [vmem:[%s15143_s0 + $0x10] sm:$0xff] }
  0x57   :  { %6612 = vmatpush1.bf16.msra.mxu0 %v10059_v29  ;;  %7460 = vmatpush1.bf16.msra.mxu1 %v10062_v30  ;;  %v10140_v29 = vld [vmem:[%s15142_s1 + $0x448] ss:$16 sps:$4 sm:$0xff]   ;;  %v10145_v30 = vld [vmem:[%s15142_s1 + $0x464] ss:$16 sps:$4 sm:$0xff]  }
  0x58   :  { %6613 = vmatprep.subr.bf16.mxu0 %v10067_v32  ;;  %7461 = vmatprep.subr.bf16.mxu1 %v10070_v33  ;;  %v8610_v32 = vcombine.high %v11964_v25, %v11969_v27  ;;  %v10143_v33 = vld [vmem:[%s15142_s1 + $0x460] ss:$16 sps:$4 sm:$0xff]  }
  0x5b   :  { %6614 = vmatpush1.bf16.msra.mxu0 %v10065_v36  ;;  %7462 = vmatpush1.bf16.msra.mxu1 %v10068_v37  ;;  %v10154_v36 = vld [vmem:[%s15142_s1 + $0x48c] ss:$16 sps:$4 sm:$0xff]   ;;  %v10149_v37 = vld [vmem:[%s15142_s1 + $0x480] ss:$16 sps:$4 sm:$0xff]  }
  0x5c   :  { %6615 = vmatprep.subr.bf16.mxu0 %v10073_v39  ;;  %7463 = vmatprep.subr.bf16.mxu1 %v10076_v40  ;;  %v10157_v39 = vld [vmem:[%s15142_s1 + $0x4a4] ss:$16 sps:$4 sm:$0xff]   ;;  %v10160_v40 = vld [vmem:[%s15142_s1 + $0x4ac] ss:$16 sps:$4 sm:$0xff]  }
  0x5f   :  { %6616 = vmatpush1.bf16.msra.mxu0 %v10071_v41  ;;  %7464 = vmatpush1.bf16.msra.mxu1 %v10074_v42  ;;  %v10155_v41 = vld [vmem:[%s15142_s1 + $0x4a0] ss:$16 sps:$4 sm:$0xff]   ;;  %v10158_v42 = vld [vmem:[%s15142_s1 + $0x4a8] ss:$16 sps:$4 sm:$0xff]  }
  0x60   :  { %6617 = vmatprep.subr.bf16.mxu0 %v10079_v43  ;;  %7465 = vmatprep.subr.bf16.mxu1 %v10082_v44  ;;  %v10163_v43 = vld [vmem:[%s15142_s1 + $0x4c4] ss:$16 sps:$4 sm:$0xff]   ;;  %v10166_v44 = vld [vmem:[%s15142_s1 + $0x4cc] ss:$16 sps:$4 sm:$0xff]  }
  0x63   :  { %6618 = vmatpush1.bf16.msra.mxu0 %v10077_v45  ;;  %7466 = vmatpush1.bf16.msra.mxu1 %v10080_v46  ;;  %v10161_v45 = vld [vmem:[%s15142_s1 + $0x4c0] ss:$16 sps:$4 sm:$0xff]   ;;  %v10164_v46 = vld [vmem:[%s15142_s1 + $0x4c8] ss:$16 sps:$4 sm:$0xff]  }
  0x64   :  { %6619 = vmatprep.subr.bf16.mxu0 %v10085_v47  ;;  %7467 = vmatprep.subr.bf16.mxu1 %v10088_v48  ;;  %v10169_v47 = vld [vmem:[%s15142_s1 + $0x4e4] ss:$16 sps:$4 sm:$0xff]   ;;  %v10172_v48 = vld [vmem:[%s15142_s1 + $0x4ec] ss:$16 sps:$4 sm:$0xff]  }
  0x67   :  { %6620 = vmatpush1.bf16.msra.mxu0 %v10083_v49  ;;  %7468 = vmatpush1.bf16.msra.mxu1 %v10086_v50  ;;  %v10167_v49 = vld [vmem:[%s15142_s1 + $0x4e0] ss:$16 sps:$4 sm:$0xff]   ;;  %v10170_v50 = vld [vmem:[%s15142_s1 + $0x4e8] ss:$16 sps:$4 sm:$0xff]  }
  0x68   :  { %6621 = vmatprep.subr.bf16.mxu0 %v10091_v51  ;;  %7469 = vmatprep.subr.bf16.mxu1 %v10094_v52  ;;  %v10175_v51 = vld [vmem:[%s15142_s1 + $0x504] ss:$16 sps:$4 sm:$0xff]   ;;  %v10178_v52 = vld [vmem:[%s15142_s1 + $0x50c] ss:$16 sps:$4 sm:$0xff]  }
  0x6b   :  { %6622 = vmatpush1.bf16.msra.mxu0 %v10089_v53  ;;  %7470 = vmatpush1.bf16.msra.mxu1 %v10092_v54  ;;  %v10173_v53 = vld [vmem:[%s15142_s1 + $0x500] ss:$16 sps:$4 sm:$0xff]   ;;  %v10176_v54 = vld [vmem:[%s15142_s1 + $0x508] ss:$16 sps:$4 sm:$0xff]  }
  0x6c   :  { %6623 = vmatprep.subr.bf16.mxu0 %v10097_v55  ;;  %7471 = vmatprep.subr.bf16.mxu1 %v10100_v56  ;;  %v10181_v55 = vld [vmem:[%s15142_s1 + $0x524] ss:$16 sps:$4 sm:$0xff]   ;;  %v10184_v56 = vld [vmem:[%s15142_s1 + $0x52c] ss:$16 sps:$4 sm:$0xff]  }
  0x6f   :  { %6624 = vmatpush1.bf16.msra.mxu0 %v10095_v57  ;;  %7472 = vmatpush1.bf16.msra.mxu1 %v10098_v58  ;;  %v10179_v57 = vld [vmem:[%s15142_s1 + $0x520] ss:$16 sps:$4 sm:$0xff]   ;;  %v10182_v58 = vld [vmem:[%s15142_s1 + $0x528] ss:$16 sps:$4 sm:$0xff]  }
  0x70   :  { %6625 = vmatprep.subr.bf16.mxu0 %v10103_v59  ;;  %7473 = vmatprep.subr.bf16.mxu1 %v10106_v60  ;;  %v10187_v59 = vld [vmem:[%s15142_s1 + $0x544] ss:$16 sps:$4 sm:$0xff]   ;;  %v10190_v60 = vld [vmem:[%s15142_s1 + $0x54c] ss:$16 sps:$4 sm:$0xff]  }
  0x73   :  { %6626 = vmatpush1.bf16.msra.mxu0 %v10101_v61  ;;  %7474 = vmatpush1.bf16.msra.mxu1 %v10104_v62  ;;  %v10185_v61 = vld [vmem:[%s15142_s1 + $0x540] ss:$16 sps:$4 sm:$0xff]   ;;  %v10188_v62 = vld [vmem:[%s15142_s1 + $0x548] ss:$16 sps:$4 sm:$0xff]  }
  0x74   :  { %6627 = vmatprep.subr.bf16.mxu0 %v10109_v63  ;;  %7475 = vmatprep.subr.bf16.mxu1 %v10112_v0  ;;  %v10193_v63 = vld [vmem:[%s15142_s1 + $0x564] ss:$16 sps:$4 sm:$0xff]   ;;  %v10196_v0 = vld [vmem:[%s15142_s1 + $0x56c] ss:$16 sps:$4 sm:$0xff]  }
  0x77   :  { %6628 = vmatpush1.bf16.msra.mxu0 %v10107_v1  ;;  %7476 = vmatpush1.bf16.msra.mxu1 %v10110_v2  ;;  %v10191_v1 = vld [vmem:[%s15142_s1 + $0x560] ss:$16 sps:$4 sm:$0xff]   ;;  %v10194_v2 = vld [vmem:[%s15142_s1 + $0x568] ss:$16 sps:$4 sm:$0xff]  }
  0x78   :  { %6629 = vmatprep.subr.bf16.mxu0 %v10115_v3  ;;  %7477 = vmatprep.subr.bf16.mxu1 %v10118_v4  ;;  %v10199_v3 = vld [vmem:[%s15142_s1 + $0x584] ss:$16 sps:$4 sm:$0xff]   ;;  %v10202_v4 = vld [vmem:[%s15142_s1 + $0x58c] ss:$16 sps:$4 sm:$0xff]  }
  0x7b   :  { %6630 = vmatpush1.bf16.msra.mxu0 %v10113_v5  ;;  %7478 = vmatpush1.bf16.msra.mxu1 %v10116_v6  ;;  %v10197_v5 = vld [vmem:[%s15142_s1 + $0x580] ss:$16 sps:$4 sm:$0xff]   ;;  %v10200_v6 = vld [vmem:[%s15142_s1 + $0x588] ss:$16 sps:$4 sm:$0xff]  }
  0x7c   :  { %6631 = vmatprep.subr.bf16.mxu0 %v10121_v7  ;;  %7479 = vmatprep.subr.bf16.mxu1 %v10124_v8  ;;  %v10205_v7 = vld [vmem:[%s15142_s1 + $0x5a4] ss:$16 sps:$4 sm:$0xff]   ;;  %v10208_v8 = vld [vmem:[%s15142_s1 + $0x5ac] ss:$16 sps:$4 sm:$0xff]  }
  0x7f   :  { %6632 = vmatpush1.bf16.msra.mxu0 %v10119_v9  ;;  %7480 = vmatpush1.bf16.msra.mxu1 %v10122_v10  ;;  %v10203_v9 = vld [vmem:[%s15142_s1 + $0x5a0] ss:$16 sps:$4 sm:$0xff]   ;;  %v10206_v10 = vld [vmem:[%s15142_s1 + $0x5a8] ss:$16 sps:$4 sm:$0xff]  }
  0x80   :  { %6654 = vmatprep.subr.bf16.mxu0 %v10127_v11  ;;  %7502 = vmatprep.subr.bf16.mxu1 %v10130_v12  ;;  %v10211_v11 = vld [vmem:[%s15142_s1 + $0x5c4] ss:$16 sps:$4 sm:$0xff]   ;;  %v10214_v12 = vld [vmem:[%s15142_s1 + $0x5cc] ss:$16 sps:$4 sm:$0xff]  }
  0x82   :  { %6634 = vmatmul.mubr.bf16.vlgmr.msra.gmra.mrb[0].mxu0 %v8607_v15  ;;  %7482 = vmatmul.mubr.bf16.vlgmr.msra.gmra.mrb[0].mxu1 %v8607_v15  ;;  %v10217_v15 = vld [vmem:[%s15142_s1 + $0x5e4] ss:$16 sps:$4 sm:$0xff]  }
  0x83   :  { %6655 = vmatpush1.bf16.msra.mxu0 %v10125_v13  ;;  %7503 = vmatpush1.bf16.msra.mxu1 %v10128_v14  ;;  %v10209_v13 = vld [vmem:[%s15142_s1 + $0x5c0] ss:$16 sps:$4 sm:$0xff]   ;;  %v10212_v14 = vld [vmem:[%s15142_s1 + $0x5c8] ss:$16 sps:$4 sm:$0xff]  }
  0x84   :  { %6656 = vmatprep.subr.bf16.mxu0 %v10133_v18  ;;  %7504 = vmatprep.subr.bf16.mxu1 %v10136_v19  ;;  %v10218_v18 = vld [vmem:[%s15142_s1 + $0x5e8] ss:$16 sps:$4 sm:$0xff]   ;;  %v10223_v19 = vld [vmem:[%s15142_s1 + $0x604] ss:$16 sps:$4 sm:$0xff]  }
  0x85   :  { %6643 = vmatprep.mubr.bf16.mxu0 %v8640_v20  ;;  %7491 = vmatprep.mubr.bf16.mxu1 %v8640_v20  ;;  %v10226_v20 = vld [vmem:[%s15142_s1 + $0x60c] ss:$16 sps:$4 sm:$0xff]  }
  0x87   :  { %6657 = vmatpush1.bf16.msra.mxu0 %v10131_v21  ;;  %7505 = vmatpush1.bf16.msra.mxu1 %v10134_v22  ;;  %v54_v21 = vld [vmem:[%s15143_s0 + $0x110] sm:$0xff]  ;;  %v8609_v22 = vcombine.low %v11964_v25, %v11969_v27  ;;  %v10232_v27 = vld [vmem:[%s15142_s1 + $0x62c] ss:$16 sps:$4 sm:$0xff]  }
  0x88   :  { %6658 = vmatprep.subr.bf16.mxu0 %v10139_v23  ;;  %7506 = vmatprep.subr.bf16.mxu1 %v10142_v24  ;;  %v70_v23 = vld [vmem:[%s15143_s0 + $0x190] sm:$0xff] }
  0x89   :  { %v10221_v24 = vld [vmem:[%s15142_s1 + $0x600] ss:$16 sps:$4 sm:$0xff]   ;;  %v10229_v25 = vld [vmem:[%s15142_s1 + $0x624] ss:$16 sps:$4 sm:$0xff]  }
  0x8a   :  { %6644 = vmatmul.mubr.bf16.gmra.mrb[4].mxu0 %v8639_v26  ;;  %7492 = vmatmul.mubr.bf16.gmra.mrb[4].mxu1 %v8639_v26  ;;  %v10224_v26 = vld [vmem:[%s15142_s1 + $0x608] ss:$16 sps:$4 sm:$0xff]  }
  0x8b   :  { %6659 = vmatpush1.bf16.msra.mxu0 %v10137_v28  ;;  %7507 = vmatpush1.bf16.msra.mxu1 %v10140_v29  ;;  %v8642_v28 = vcombine.high %v54_v21, %v70_v23  ;;  %v10227_v29 = vld [vmem:[%s15142_s1 + $0x620] ss:$16 sps:$4 sm:$0xff]  }
  0x8c   :  { %6660 = vmatprep.subr.bf16.mxu0 %v10145_v30  ;;  %7508 = vmatprep.subr.bf16.mxu1 %v10148_v31  ;;  %v10230_v30 = vld [vmem:[%s15142_s1 + $0x628] ss:$16 sps:$4 sm:$0xff]   ;;  %v10235_v31 = vld [vmem:[%s15142_s1 + $0x644] ss:$16 sps:$4 sm:$0xff]  }
  0x8d   :  { %6686 = vmatprep.mubr.bf16.mxu0 %v8610_v32  ;;  %7534 = vmatprep.mubr.bf16.mxu1 %v8610_v32  ;;  %v10238_v32 = vld [vmem:[%s15142_s1 + $0x64c] ss:$16 sps:$4 sm:$0xff]  }
  0x8f   :  { %6661 = vmatpush1.bf16.msra.mxu0 %v10143_v33  ;;  %7509 = vmatpush1.bf16.msra.mxu1 %v10146_v34  ;;  %v12176_v33 = vld [vmem:[%s15143_s0 + $0x18] sm:$0xff]  ;;  %v8641_v34 = vcombine.low %v54_v21, %v70_v23  ;;  %v10305_v21 = vld [vmem:[%s15142_s1 + $0x7c0] ss:$16 sps:$4 sm:$0xff]   ;;  %v10313_v23 = vld [vmem:[%s15142_s1 + $0x7e4] ss:$16 sps:$4 sm:$0xff]  }
  0x90   :  { %6662 = vmatprep.subr.bf16.mxu0 %v10151_v35  ;;  %7510 = vmatprep.subr.bf16.mxu1 %v10154_v36  ;;  %v12181_v35 = vld [vmem:[%s15143_s0 + $0x98] sm:$0xff]  ;;  %v10233_v36 = vld [vmem:[%s15142_s1 + $0x640] ss:$16 sps:$4 sm:$0xff]  }
  0x93   :  { %6663 = vmatpush1.bf16.msra.mxu0 %v10149_v37  ;;  %7511 = vmatpush1.bf16.msra.mxu1 %v10152_v38  ;;  %v10236_v37 = vld [vmem:[%s15142_s1 + $0x648] ss:$16 sps:$4 sm:$0xff]   ;;  %v10241_v38 = vld [vmem:[%s15142_s1 + $0x664] ss:$16 sps:$4 sm:$0xff]  }
  0x94   :  { %6664 = vmatprep.subr.bf16.mxu0 %v10157_v39  ;;  %7512 = vmatprep.subr.bf16.mxu1 %v10160_v40  ;;  %v10244_v39 = vld [vmem:[%s15142_s1 + $0x66c] ss:$16 sps:$4 sm:$0xff]   ;;  %v8612_v40 = vcombine.high %v12176_v33, %v12181_v35 }
  0x97   :  { %6665 = vmatpush1.bf16.msra.mxu0 %v10155_v41  ;;  %7513 = vmatpush1.bf16.msra.mxu1 %v10158_v42  ;;  %v10239_v41 = vld [vmem:[%s15142_s1 + $0x660] ss:$16 sps:$4 sm:$0xff]   ;;  %v10242_v42 = vld [vmem:[%s15142_s1 + $0x668] ss:$16 sps:$4 sm:$0xff]  }
  0x98   :  { %6666 = vmatprep.subr.bf16.mxu0 %v10163_v43  ;;  %7514 = vmatprep.subr.bf16.mxu1 %v10166_v44  ;;  %v10247_v43 = vld [vmem:[%s15142_s1 + $0x684] ss:$16 sps:$4 sm:$0xff]   ;;  %v10250_v44 = vld [vmem:[%s15142_s1 + $0x68c] ss:$16 sps:$4 sm:$0xff]  }
  0x9b   :  { %6667 = vmatpush1.bf16.msra.mxu0 %v10161_v45  ;;  %7515 = vmatpush1.bf16.msra.mxu1 %v10164_v46  ;;  %v10245_v45 = vld [vmem:[%s15142_s1 + $0x680] ss:$16 sps:$4 sm:$0xff]   ;;  %v10248_v46 = vld [vmem:[%s15142_s1 + $0x688] ss:$16 sps:$4 sm:$0xff]  }
  0x9c   :  { %6668 = vmatprep.subr.bf16.mxu0 %v10169_v47  ;;  %7516 = vmatprep.subr.bf16.mxu1 %v10172_v48  ;;  %v10253_v47 = vld [vmem:[%s15142_s1 + $0x6a4] ss:$16 sps:$4 sm:$0xff]   ;;  %v10256_v48 = vld [vmem:[%s15142_s1 + $0x6ac] ss:$16 sps:$4 sm:$0xff]  }
  0x9f   :  { %6669 = vmatpush1.bf16.msra.mxu0 %v10167_v49  ;;  %7517 = vmatpush1.bf16.msra.mxu1 %v10170_v50  ;;  %v10251_v49 = vld [vmem:[%s15142_s1 + $0x6a0] ss:$16 sps:$4 sm:$0xff]   ;;  %v10254_v50 = vld [vmem:[%s15142_s1 + $0x6a8] ss:$16 sps:$4 sm:$0xff]  }
  0xa0   :  { %6670 = vmatprep.subr.bf16.mxu0 %v10175_v51  ;;  %7518 = vmatprep.subr.bf16.mxu1 %v10178_v52  ;;  %v10259_v51 = vld [vmem:[%s15142_s1 + $0x6c4] ss:$16 sps:$4 sm:$0xff]   ;;  %v10262_v52 = vld [vmem:[%s15142_s1 + $0x6cc] ss:$16 sps:$4 sm:$0xff]  }
  0xa3   :  { %6671 = vmatpush1.bf16.msra.mxu0 %v10173_v53  ;;  %7519 = vmatpush1.bf16.msra.mxu1 %v10176_v54  ;;  %v10257_v53 = vld [vmem:[%s15142_s1 + $0x6c0] ss:$16 sps:$4 sm:$0xff]   ;;  %v10260_v54 = vld [vmem:[%s15142_s1 + $0x6c8] ss:$16 sps:$4 sm:$0xff]  }
  0xa4   :  { %6672 = vmatprep.subr.bf16.mxu0 %v10181_v55  ;;  %7520 = vmatprep.subr.bf16.mxu1 %v10184_v56  ;;  %v10265_v55 = vld [vmem:[%s15142_s1 + $0x6e4] ss:$16 sps:$4 sm:$0xff]   ;;  %v10268_v56 = vld [vmem:[%s15142_s1 + $0x6ec] ss:$16 sps:$4 sm:$0xff]  }
  0xa7   :  { %6673 = vmatpush1.bf16.msra.mxu0 %v10179_v57  ;;  %7521 = vmatpush1.bf16.msra.mxu1 %v10182_v58  ;;  %v10263_v57 = vld [vmem:[%s15142_s1 + $0x6e0] ss:$16 sps:$4 sm:$0xff]   ;;  %v10266_v58 = vld [vmem:[%s15142_s1 + $0x6e8] ss:$16 sps:$4 sm:$0xff]  }
  0xa8   :  { %6674 = vmatprep.subr.bf16.mxu0 %v10187_v59  ;;  %7522 = vmatprep.subr.bf16.mxu1 %v10190_v60  ;;  %v10271_v59 = vld [vmem:[%s15142_s1 + $0x704] ss:$16 sps:$4 sm:$0xff]   ;;  %v10274_v60 = vld [vmem:[%s15142_s1 + $0x70c] ss:$16 sps:$4 sm:$0xff]  }
  0xab   :  { %6675 = vmatpush1.bf16.msra.mxu0 %v10185_v61  ;;  %7523 = vmatpush1.bf16.msra.mxu1 %v10188_v62  ;;  %v10269_v61 = vld [vmem:[%s15142_s1 + $0x700] ss:$16 sps:$4 sm:$0xff]   ;;  %v10272_v62 = vld [vmem:[%s15142_s1 + $0x708] ss:$16 sps:$4 sm:$0xff]  }
  0xac   :  { %6676 = vmatprep.subr.bf16.mxu0 %v10193_v63  ;;  %7524 = vmatprep.subr.bf16.mxu1 %v10196_v0  ;;  %v10277_v63 = vld [vmem:[%s15142_s1 + $0x724] ss:$16 sps:$4 sm:$0xff]   ;;  %v10280_v0 = vld [vmem:[%s15142_s1 + $0x72c] ss:$16 sps:$4 sm:$0xff]  }
  0xaf   :  { %6677 = vmatpush1.bf16.msra.mxu0 %v10191_v1  ;;  %7525 = vmatpush1.bf16.msra.mxu1 %v10194_v2  ;;  %v10275_v1 = vld [vmem:[%s15142_s1 + $0x720] ss:$16 sps:$4 sm:$0xff]   ;;  %v10278_v2 = vld [vmem:[%s15142_s1 + $0x728] ss:$16 sps:$4 sm:$0xff]  }
  0xb0   :  { %6678 = vmatprep.subr.bf16.mxu0 %v10199_v3  ;;  %7526 = vmatprep.subr.bf16.mxu1 %v10202_v4  ;;  %v10283_v3 = vld [vmem:[%s15142_s1 + $0x744] ss:$16 sps:$4 sm:$0xff]   ;;  %v10286_v4 = vld [vmem:[%s15142_s1 + $0x74c] ss:$16 sps:$4 sm:$0xff]  }
  0xb3   :  { %6679 = vmatpush1.bf16.msra.mxu0 %v10197_v5  ;;  %7527 = vmatpush1.bf16.msra.mxu1 %v10200_v6  ;;  %v10281_v5 = vld [vmem:[%s15142_s1 + $0x740] ss:$16 sps:$4 sm:$0xff]   ;;  %v10284_v6 = vld [vmem:[%s15142_s1 + $0x748] ss:$16 sps:$4 sm:$0xff]  }
  0xb4   :  { %6680 = vmatprep.subr.bf16.mxu0 %v10205_v7  ;;  %7528 = vmatprep.subr.bf16.mxu1 %v10208_v8  ;;  %v10289_v7 = vld [vmem:[%s15142_s1 + $0x764] ss:$16 sps:$4 sm:$0xff]   ;;  %v10292_v8 = vld [vmem:[%s15142_s1 + $0x76c] ss:$16 sps:$4 sm:$0xff]  }
  0xb7   :  { %6681 = vmatpush1.bf16.msra.mxu0 %v10203_v9  ;;  %7529 = vmatpush1.bf16.msra.mxu1 %v10206_v10  ;;  %v10287_v9 = vld [vmem:[%s15142_s1 + $0x760] ss:$16 sps:$4 sm:$0xff]   ;;  %v10290_v10 = vld [vmem:[%s15142_s1 + $0x768] ss:$16 sps:$4 sm:$0xff]  }
  0xb8   :  { %6682 = vmatprep.subr.bf16.mxu0 %v10211_v11  ;;  %7530 = vmatprep.subr.bf16.mxu1 %v10214_v12  ;;  %v10295_v11 = vld [vmem:[%s15142_s1 + $0x784] ss:$16 sps:$4 sm:$0xff]   ;;  %v10298_v12 = vld [vmem:[%s15142_s1 + $0x78c] ss:$16 sps:$4 sm:$0xff]  }
  0xbb   :  { %6683 = vmatpush1.bf16.msra.mxu0 %v10209_v13  ;;  %7531 = vmatpush1.bf16.msra.mxu1 %v10212_v14  ;;  %v10293_v13 = vld [vmem:[%s15142_s1 + $0x780] ss:$16 sps:$4 sm:$0xff]   ;;  %v10296_v14 = vld [vmem:[%s15142_s1 + $0x788] ss:$16 sps:$4 sm:$0xff]  }
  0xbc   :  { %6684 = vmatprep.subr.bf16.mxu0 %v10217_v15  ;;  %7532 = vmatprep.subr.bf16.mxu1 %v10220_v16  ;;  %v10301_v15 = vld [vmem:[%s15142_s1 + $0x7a4] ss:$16 sps:$4 sm:$0xff]   ;;  %v10304_v16 = vld [vmem:[%s15142_s1 + $0x7ac] ss:$16 sps:$4 sm:$0xff]  }
  0xbf   :  { %6685 = vmatpush1.bf16.msra.mxu0 %v10215_v17  ;;  %7533 = vmatpush1.bf16.msra.mxu1 %v10218_v18  ;;  %v10299_v17 = vld [vmem:[%s15142_s1 + $0x7a0] ss:$16 sps:$4 sm:$0xff]   ;;  %v10302_v18 = vld [vmem:[%s15142_s1 + $0x7a8] ss:$16 sps:$4 sm:$0xff]  }
  0xc0   :  { %6707 = vmatprep.subr.bf16.mxu0 %v10223_v19  ;;  %7555 = vmatprep.subr.bf16.mxu1 %v10226_v20  ;;  %v10307_v19 = vld [vmem:[%s15142_s1 + $0x7c4] ss:$16 sps:$4 sm:$0xff]   ;;  %v10310_v20 = vld [vmem:[%s15142_s1 + $0x7cc] ss:$16 sps:$4 sm:$0xff]  }
  0xc2   :  { %6687 = vmatmul.mubr.bf16.vlgmr.msra.gmra.mrb[0].mxu0 %v8609_v22  ;;  %7535 = vmatmul.mubr.bf16.vlgmr.msra.gmra.mrb[0].mxu1 %v8609_v22  ;;  %v10308_v22 = vld [vmem:[%s15142_s1 + $0x7c8] ss:$16 sps:$4 sm:$0xff]  }
  0xc3   :  { %6708 = vmatpush1.bf16.msra.mxu0 %v10221_v24  ;;  %7556 = vmatpush1.bf16.msra.mxu1 %v10224_v26  ;;  %v10316_v24 = vld [vmem:[%s15142_s1 + $0x7ec] ss:$16 sps:$4 sm:$0xff]   ;;  %v10311_v26 = vld [vmem:[%s15142_s1 + $0x7e0] ss:$16 sps:$4 sm:$0xff]  }
  0xc4   :  { %6709 = vmatprep.subr.bf16.mxu0 %v10229_v25  ;;  %7557 = vmatprep.subr.bf16.mxu1 %v10232_v27  ;;  %v10314_v25 = vld [vmem:[%s15142_s1 + $0x7e8] ss:$16 sps:$4 sm:$0xff]   ;;  %v10319_v27 = vld [vmem:[%s15142_s1 + $0x804] ss:$16 sps:$4 sm:$0xff]  }
  0xc5   :  { %6696 = vmatprep.mubr.bf16.mxu0 %v8642_v28  ;;  %7544 = vmatprep.mubr.bf16.mxu1 %v8642_v28  ;;  %v10322_v28 = vld [vmem:[%s15142_s1 + $0x80c] ss:$16 sps:$4 sm:$0xff]  }
  0xc7   :  { %6710 = vmatpush1.bf16.msra.mxu0 %v10227_v29  ;;  %7558 = vmatpush1.bf16.msra.mxu1 %v10230_v30  ;;  %v55_v29 = vld [vmem:[%s15143_s0 + $0x118] sm:$0xff]  ;;  %v8611_v30 = vcombine.low %v12176_v33, %v12181_v35 }
  0xc8   :  { %6711 = vmatprep.subr.bf16.mxu0 %v10235_v31  ;;  %7559 = vmatprep.subr.bf16.mxu1 %v10238_v32  ;;  %v71_v31 = vld [vmem:[%s15143_s0 + $0x198] sm:$0xff]  ;;  %v10317_v32 = vld [vmem:[%s15142_s1 + $0x800] ss:$16 sps:$4 sm:$0xff]  }
  0xc9   :  { %v10328_v33 = vld [vmem:[%s15142_s1 + $0x82c] ss:$16 sps:$4 sm:$0xff]   ;;  %v8644_v35 = vcombine.high %v55_v29, %v71_v31 }
  0xca   :  { %6697 = vmatmul.mubr.bf16.gmra.mrb[4].mxu0 %v8641_v34  ;;  %7545 = vmatmul.mubr.bf16.gmra.mrb[4].mxu1 %v8641_v34  ;;  %v10320_v34 = vld [vmem:[%s15142_s1 + $0x808] ss:$16 sps:$4 sm:$0xff]  }
  0xcb   :  { %6712 = vmatpush1.bf16.msra.mxu0 %v10233_v36  ;;  %7560 = vmatpush1.bf16.msra.mxu1 %v10236_v37  ;;  %v10325_v36 = vld [vmem:[%s15142_s1 + $0x824] ss:$16 sps:$4 sm:$0xff]   ;;  %v10323_v37 = vld [vmem:[%s15142_s1 + $0x820] ss:$16 sps:$4 sm:$0xff]  }
  0xcc   :  { %6713 = vmatprep.subr.bf16.mxu0 %v10241_v38  ;;  %7561 = vmatprep.subr.bf16.mxu1 %v10244_v39  ;;  %v10326_v38 = vld [vmem:[%s15142_s1 + $0x828] ss:$16 sps:$4 sm:$0xff]   ;;  %v10331_v39 = vld [vmem:[%s15142_s1 + $0x844] ss:$16 sps:$4 sm:$0xff]  }
  0xcd   :  { %6739 = vmatprep.mubr.bf16.mxu0 %v8612_v40  ;;  %7587 = vmatprep.mubr.bf16.mxu1 %v8612_v40  ;;  %v10334_v40 = vld [vmem:[%s15142_s1 + $0x84c] ss:$16 sps:$4 sm:$0xff]  }
  0xcf   :  { %6714 = vmatpush1.bf16.msra.mxu0 %v10239_v41  ;;  %7562 = vmatpush1.bf16.msra.mxu1 %v10242_v42  ;;  %v12388_v41 = vld [vmem:[%s15143_s0 + $0x20] sm:$0xff]  ;;  %v8643_v42 = vcombine.low %v55_v29, %v71_v31 }
  0xd0   :  { %6715 = vmatprep.subr.bf16.mxu0 %v10247_v43  ;;  %7563 = vmatprep.subr.bf16.mxu1 %v10250_v44  ;;  %v12393_v43 = vld [vmem:[%s15143_s0 + $0xa0] sm:$0xff] }
  0xd1   :  { %v10329_v44 = vld [vmem:[%s15142_s1 + $0x840] ss:$16 sps:$4 sm:$0xff]   ;;  %v10409_v31 = vld [vmem:[%s15142_s1 + $0x9e4] ss:$16 sps:$4 sm:$0xff]  }
  0xd2   :  { %v10401_v29 = vld [vmem:[%s15142_s1 + $0x9c0] ss:$16 sps:$4 sm:$0xff]  }
  0xd3   :  { %6716 = vmatpush1.bf16.msra.mxu0 %v10245_v45  ;;  %7564 = vmatpush1.bf16.msra.mxu1 %v10248_v46  ;;  %v10332_v45 = vld [vmem:[%s15142_s1 + $0x848] ss:$16 sps:$4 sm:$0xff]   ;;  %v10337_v46 = vld [vmem:[%s15142_s1 + $0x864] ss:$16 sps:$4 sm:$0xff]  }
  0xd4   :  { %6717 = vmatprep.subr.bf16.mxu0 %v10253_v47  ;;  %7565 = vmatprep.subr.bf16.mxu1 %v10256_v48  ;;  %v10340_v47 = vld [vmem:[%s15142_s1 + $0x86c] ss:$16 sps:$4 sm:$0xff]   ;;  %v8614_v48 = vcombine.high %v12388_v41, %v12393_v43 }
  0xd7   :  { %6718 = vmatpush1.bf16.msra.mxu0 %v10251_v49  ;;  %7566 = vmatpush1.bf16.msra.mxu1 %v10254_v50  ;;  %v10335_v49 = vld [vmem:[%s15142_s1 + $0x860] ss:$16 sps:$4 sm:$0xff]   ;;  %v10338_v50 = vld [vmem:[%s15142_s1 + $0x868] ss:$16 sps:$4 sm:$0xff]  }
  0xd8   :  { %6719 = vmatprep.subr.bf16.mxu0 %v10259_v51  ;;  %7567 = vmatprep.subr.bf16.mxu1 %v10262_v52  ;;  %v10343_v51 = vld [vmem:[%s15142_s1 + $0x884] ss:$16 sps:$4 sm:$0xff]   ;;  %v10346_v52 = vld [vmem:[%s15142_s1 + $0x88c] ss:$16 sps:$4 sm:$0xff]  }
  0xdb   :  { %6720 = vmatpush1.bf16.msra.mxu0 %v10257_v53  ;;  %7568 = vmatpush1.bf16.msra.mxu1 %v10260_v54  ;;  %v10341_v53 = vld [vmem:[%s15142_s1 + $0x880] ss:$16 sps:$4 sm:$0xff]   ;;  %v10344_v54 = vld [vmem:[%s15142_s1 + $0x888] ss:$16 sps:$4 sm:$0xff]  }
  0xdc   :  { %6721 = vmatprep.subr.bf16.mxu0 %v10265_v55  ;;  %7569 = vmatprep.subr.bf16.mxu1 %v10268_v56  ;;  %v10349_v55 = vld [vmem:[%s15142_s1 + $0x8a4] ss:$16 sps:$4 sm:$0xff]   ;;  %v10352_v56 = vld [vmem:[%s15142_s1 + $0x8ac] ss:$16 sps:$4 sm:$0xff]  }
  0xdf   :  { %6722 = vmatpush1.bf16.msra.mxu0 %v10263_v57  ;;  %7570 = vmatpush1.bf16.msra.mxu1 %v10266_v58  ;;  %v10347_v57 = vld [vmem:[%s15142_s1 + $0x8a0] ss:$16 sps:$4 sm:$0xff]   ;;  %v10350_v58 = vld [vmem:[%s15142_s1 + $0x8a8] ss:$16 sps:$4 sm:$0xff]  }
  0xe0   :  { %6723 = vmatprep.subr.bf16.mxu0 %v10271_v59  ;;  %7571 = vmatprep.subr.bf16.mxu1 %v10274_v60  ;;  %v10355_v59 = vld [vmem:[%s15142_s1 + $0x8c4] ss:$16 sps:$4 sm:$0xff]   ;;  %v10358_v60 = vld [vmem:[%s15142_s1 + $0x8cc] ss:$16 sps:$4 sm:$0xff]  }
  0xe3   :  { %6724 = vmatpush1.bf16.msra.mxu0 %v10269_v61  ;;  %7572 = vmatpush1.bf16.msra.mxu1 %v10272_v62  ;;  %v10353_v61 = vld [vmem:[%s15142_s1 + $0x8c0] ss:$16 sps:$4 sm:$0xff]   ;;  %v10356_v62 = vld [vmem:[%s15142_s1 + $0x8c8] ss:$16 sps:$4 sm:$0xff]  }
  0xe4   :  { %6725 = vmatprep.subr.bf16.mxu0 %v10277_v63  ;;  %7573 = vmatprep.subr.bf16.mxu1 %v10280_v0  ;;  %v10361_v63 = vld [vmem:[%s15142_s1 + $0x8e4] ss:$16 sps:$4 sm:$0xff]   ;;  %v10364_v0 = vld [vmem:[%s15142_s1 + $0x8ec] ss:$16 sps:$4 sm:$0xff]  }
  0xe7   :  { %6726 = vmatpush1.bf16.msra.mxu0 %v10275_v1  ;;  %7574 = vmatpush1.bf16.msra.mxu1 %v10278_v2  ;;  %v10359_v1 = vld [vmem:[%s15142_s1 + $0x8e0] ss:$16 sps:$4 sm:$0xff]   ;;  %v10362_v2 = vld [vmem:[%s15142_s1 + $0x8e8] ss:$16 sps:$4 sm:$0xff]  }
  0xe8   :  { %6727 = vmatprep.subr.bf16.mxu0 %v10283_v3  ;;  %7575 = vmatprep.subr.bf16.mxu1 %v10286_v4  ;;  %v10367_v3 = vld [vmem:[%s15142_s1 + $0x904] ss:$16 sps:$4 sm:$0xff]   ;;  %v10370_v4 = vld [vmem:[%s15142_s1 + $0x90c] ss:$16 sps:$4 sm:$0xff]  }
  0xeb   :  { %6728 = vmatpush1.bf16.msra.mxu0 %v10281_v5  ;;  %7576 = vmatpush1.bf16.msra.mxu1 %v10284_v6  ;;  %v10365_v5 = vld [vmem:[%s15142_s1 + $0x900] ss:$16 sps:$4 sm:$0xff]   ;;  %v10368_v6 = vld [vmem:[%s15142_s1 + $0x908] ss:$16 sps:$4 sm:$0xff]  }
  0xec   :  { %6729 = vmatprep.subr.bf16.mxu0 %v10289_v7  ;;  %7577 = vmatprep.subr.bf16.mxu1 %v10292_v8  ;;  %v10373_v7 = vld [vmem:[%s15142_s1 + $0x924] ss:$16 sps:$4 sm:$0xff]   ;;  %v10376_v8 = vld [vmem:[%s15142_s1 + $0x92c] ss:$16 sps:$4 sm:$0xff]  }
  0xef   :  { %6730 = vmatpush1.bf16.msra.mxu0 %v10287_v9  ;;  %7578 = vmatpush1.bf16.msra.mxu1 %v10290_v10  ;;  %v10371_v9 = vld [vmem:[%s15142_s1 + $0x920] ss:$16 sps:$4 sm:$0xff]   ;;  %v10374_v10 = vld [vmem:[%s15142_s1 + $0x928] ss:$16 sps:$4 sm:$0xff]  }
  0xf0   :  { %6731 = vmatprep.subr.bf16.mxu0 %v10295_v11  ;;  %7579 = vmatprep.subr.bf16.mxu1 %v10298_v12  ;;  %v10379_v11 = vld [vmem:[%s15142_s1 + $0x944] ss:$16 sps:$4 sm:$0xff]   ;;  %v10382_v12 = vld [vmem:[%s15142_s1 + $0x94c] ss:$16 sps:$4 sm:$0xff]  }
  0xf3   :  { %6732 = vmatpush1.bf16.msra.mxu0 %v10293_v13  ;;  %7580 = vmatpush1.bf16.msra.mxu1 %v10296_v14  ;;  %v10377_v13 = vld [vmem:[%s15142_s1 + $0x940] ss:$16 sps:$4 sm:$0xff]   ;;  %v10380_v14 = vld [vmem:[%s15142_s1 + $0x948] ss:$16 sps:$4 sm:$0xff]  }
  0xf4   :  { %6733 = vmatprep.subr.bf16.mxu0 %v10301_v15  ;;  %7581 = vmatprep.subr.bf16.mxu1 %v10304_v16  ;;  %v10385_v15 = vld [vmem:[%s15142_s1 + $0x964] ss:$16 sps:$4 sm:$0xff]   ;;  %v10388_v16 = vld [vmem:[%s15142_s1 + $0x96c] ss:$16 sps:$4 sm:$0xff]  }
  0xf7   :  { %6734 = vmatpush1.bf16.msra.mxu0 %v10299_v17  ;;  %7582 = vmatpush1.bf16.msra.mxu1 %v10302_v18  ;;  %v10383_v17 = vld [vmem:[%s15142_s1 + $0x960] ss:$16 sps:$4 sm:$0xff]   ;;  %v10386_v18 = vld [vmem:[%s15142_s1 + $0x968] ss:$16 sps:$4 sm:$0xff]  }
  0xf8   :  { %6735 = vmatprep.subr.bf16.mxu0 %v10307_v19  ;;  %7583 = vmatprep.subr.bf16.mxu1 %v10310_v20  ;;  %v10391_v19 = vld [vmem:[%s15142_s1 + $0x984] ss:$16 sps:$4 sm:$0xff]   ;;  %v10394_v20 = vld [vmem:[%s15142_s1 + $0x98c] ss:$16 sps:$4 sm:$0xff]  }
  0xfb   :  { %6736 = vmatpush1.bf16.msra.mxu0 %v10305_v21  ;;  %7584 = vmatpush1.bf16.msra.mxu1 %v10308_v22  ;;  %v10389_v21 = vld [vmem:[%s15142_s1 + $0x980] ss:$16 sps:$4 sm:$0xff]   ;;  %v10392_v22 = vld [vmem:[%s15142_s1 + $0x988] ss:$16 sps:$4 sm:$0xff]  }
  0xfc   :  { %6737 = vmatprep.subr.bf16.mxu0 %v10313_v23  ;;  %7585 = vmatprep.subr.bf16.mxu1 %v10316_v24  ;;  %v10397_v23 = vld [vmem:[%s15142_s1 + $0x9a4] ss:$16 sps:$4 sm:$0xff]   ;;  %v10400_v24 = vld [vmem:[%s15142_s1 + $0x9ac] ss:$16 sps:$4 sm:$0xff]  }
  0xff   :  { %6738 = vmatpush1.bf16.msra.mxu0 %v10311_v26  ;;  %7586 = vmatpush1.bf16.msra.mxu1 %v10314_v25  ;;  %v10395_v26 = vld [vmem:[%s15142_s1 + $0x9a0] ss:$16 sps:$4 sm:$0xff]   ;;  %v10398_v25 = vld [vmem:[%s15142_s1 + $0x9a8] ss:$16 sps:$4 sm:$0xff]  }
 0x100   :  { %6760 = vmatprep.subr.bf16.mxu0 %v10319_v27  ;;  %7608 = vmatprep.subr.bf16.mxu1 %v10322_v28  ;;  %v10403_v27 = vld [vmem:[%s15142_s1 + $0x9c4] ss:$16 sps:$4 sm:$0xff]   ;;  %v10406_v28 = vld [vmem:[%s15142_s1 + $0x9cc] ss:$16 sps:$4 sm:$0xff]  }
 0x102   :  { %6740 = vmatmul.mubr.bf16.vlgmr.msra.gmra.mrb[0].mxu0 %v8611_v30  ;;  %7588 = vmatmul.mubr.bf16.vlgmr.msra.gmra.mrb[0].mxu1 %v8611_v30  ;;  %v10404_v30 = vld [vmem:[%s15142_s1 + $0x9c8] ss:$16 sps:$4 sm:$0xff]  }
 0x103   :  { %6761 = vmatpush1.bf16.msra.mxu0 %v10317_v32  ;;  %7609 = vmatpush1.bf16.msra.mxu1 %v10320_v34  ;;  %v10412_v32 = vld [vmem:[%s15142_s1 + $0x9ec] ss:$16 sps:$4 sm:$0xff]   ;;  %v10407_v34 = vld [vmem:[%s15142_s1 + $0x9e0] ss:$16 sps:$4 sm:$0xff]  }
 0x104   :  { %6762 = vmatprep.subr.bf16.mxu0 %v10325_v36  ;;  %7610 = vmatprep.subr.bf16.mxu1 %v10328_v33  ;;  %v10410_v36 = vld [vmem:[%s15142_s1 + $0x9e8] ss:$16 sps:$4 sm:$0xff]   ;;  %v10415_v33 = vld [vmem:[%s15142_s1 + $0xa04] ss:$16 sps:$4 sm:$0xff]  }
 0x105   :  { %6749 = vmatprep.mubr.bf16.mxu0 %v8644_v35  ;;  %7597 = vmatprep.mubr.bf16.mxu1 %v8644_v35  ;;  %v10418_v35 = vld [vmem:[%s15142_s1 + $0xa0c] ss:$16 sps:$4 sm:$0xff]  }
 0x107   :  { %6763 = vmatpush1.bf16.msra.mxu0 %v10323_v37  ;;  %7611 = vmatpush1.bf16.msra.mxu1 %v10326_v38  ;;  %v56_v37 = vld [vmem:[%s15143_s0 + $0x120] sm:$0xff] }
 0x108   :  { %6764 = vmatprep.subr.bf16.mxu0 %v10331_v39  ;;  %7612 = vmatprep.subr.bf16.mxu1 %v10334_v40  ;;  %v72_v38 = vld [vmem:[%s15143_s0 + $0x1a0] sm:$0xff]  ;;  %v8613_v39 = vcombine.low %v12388_v41, %v12393_v43  ;;  %v10424_v41 = vld [vmem:[%s15142_s1 + $0xa2c] ss:$16 sps:$4 sm:$0xff]  }
 0x109   :  { %v10413_v40 = vld [vmem:[%s15142_s1 + $0xa00] ss:$16 sps:$4 sm:$0xff]  }
 0x10a   :  { %6750 = vmatmul.mubr.bf16.gmra.mrb[4].mxu0 %v8643_v42  ;;  %7598 = vmatmul.mubr.bf16.gmra.mrb[4].mxu1 %v8643_v42  ;;  %v10416_v42 = vld [vmem:[%s15142_s1 + $0xa08] ss:$16 sps:$4 sm:$0xff]   ;;  %v10419_v43 = vld [vmem:[%s15142_s1 + $0xa20] ss:$16 sps:$4 sm:$0xff]  }
 0x10b   :  { %6765 = vmatpush1.bf16.msra.mxu0 %v10329_v44  ;;  %7613 = vmatpush1.bf16.msra.mxu1 %v10332_v45  ;;  %v10421_v44 = vld [vmem:[%s15142_s1 + $0xa24] ss:$16 sps:$4 sm:$0xff]   ;;  %v10422_v45 = vld [vmem:[%s15142_s1 + $0xa28] ss:$16 sps:$4 sm:$0xff]  }
 0x10c   :  { %6766 = vmatprep.subr.bf16.mxu0 %v10337_v46  ;;  %7614 = vmatprep.subr.bf16.mxu1 %v10340_v47  ;;  %v8646_v46 = vcombine.high %v56_v37, %v72_v38  ;;  %v10427_v47 = vld [vmem:[%s15142_s1 + $0xa44] ss:$16 sps:$4 sm:$0xff]  }
 0x10d   :  { %6792 = vmatprep.mubr.bf16.mxu0 %v8614_v48  ;;  %7640 = vmatprep.mubr.bf16.mxu1 %v8614_v48  ;;  %v10430_v48 = vld [vmem:[%s15142_s1 + $0xa4c] ss:$16 sps:$4 sm:$0xff]  }
 0x10f   :  { %6767 = vmatpush1.bf16.msra.mxu0 %v10335_v49  ;;  %7615 = vmatpush1.bf16.msra.mxu1 %v10338_v50  ;;  %v12600_v49 = vld [vmem:[%s15143_s0 + $0x28] sm:$0xff] }
 0x110   :  { %6768 = vmatprep.subr.bf16.mxu0 %v10343_v51  ;;  %7616 = vmatprep.subr.bf16.mxu1 %v10346_v52  ;;  %v12605_v50 = vld [vmem:[%s15143_s0 + $0xa8] sm:$0xff]  ;;  %v8645_v51 = vcombine.low %v56_v37, %v72_v38  ;;  %v10425_v52 = vld [vmem:[%s15142_s1 + $0xa40] ss:$16 sps:$4 sm:$0xff]  }
 0x111   :  { %v10497_v37 = vld [vmem:[%s15142_s1 + $0xbc0] ss:$16 sps:$4 sm:$0xff]   ;;  %v10500_v38 = vld [vmem:[%s15142_s1 + $0xbc8] ss:$16 sps:$4 sm:$0xff]  }
 0x113   :  { %6769 = vmatpush1.bf16.msra.mxu0 %v10341_v53  ;;  %7617 = vmatpush1.bf16.msra.mxu1 %v10344_v54  ;;  %v10428_v53 = vld [vmem:[%s15142_s1 + $0xa48] ss:$16 sps:$4 sm:$0xff]   ;;  %v10433_v54 = vld [vmem:[%s15142_s1 + $0xa64] ss:$16 sps:$4 sm:$0xff]  }
 0x114   :  { %6770 = vmatprep.subr.bf16.mxu0 %v10349_v55  ;;  %7618 = vmatprep.subr.bf16.mxu1 %v10352_v56  ;;  %v10436_v55 = vld [vmem:[%s15142_s1 + $0xa6c] ss:$16 sps:$4 sm:$0xff]   ;;  %v8616_v56 = vcombine.high %v12600_v49, %v12605_v50 }
 0x117   :  { %6771 = vmatpush1.bf16.msra.mxu0 %v10347_v57  ;;  %7619 = vmatpush1.bf16.msra.mxu1 %v10350_v58  ;;  %v10431_v57 = vld [vmem:[%s15142_s1 + $0xa60] ss:$16 sps:$4 sm:$0xff]   ;;  %v10434_v58 = vld [vmem:[%s15142_s1 + $0xa68] ss:$16 sps:$4 sm:$0xff]  }
 0x118   :  { %6772 = vmatprep.subr.bf16.mxu0 %v10355_v59  ;;  %7620 = vmatprep.subr.bf16.mxu1 %v10358_v60  ;;  %v10439_v59 = vld [vmem:[%s15142_s1 + $0xa84] ss:$16 sps:$4 sm:$0xff]   ;;  %v10442_v60 = vld [vmem:[%s15142_s1 + $0xa8c] ss:$16 sps:$4 sm:$0xff]  }
 0x11b   :  { %6773 = vmatpush1.bf16.msra.mxu0 %v10353_v61  ;;  %7621 = vmatpush1.bf16.msra.mxu1 %v10356_v62  ;;  %v10437_v61 = vld [vmem:[%s15142_s1 + $0xa80] ss:$16 sps:$4 sm:$0xff]   ;;  %v10440_v62 = vld [vmem:[%s15142_s1 + $0xa88] ss:$16 sps:$4 sm:$0xff]  }
 0x11c   :  { %6774 = vmatprep.subr.bf16.mxu0 %v10361_v63  ;;  %7622 = vmatprep.subr.bf16.mxu1 %v10364_v0  ;;  %v10445_v63 = vld [vmem:[%s15142_s1 + $0xaa4] ss:$16 sps:$4 sm:$0xff]   ;;  %v10448_v0 = vld [vmem:[%s15142_s1 + $0xaac] ss:$16 sps:$4 sm:$0xff]  }
 0x11f   :  { %6775 = vmatpush1.bf16.msra.mxu0 %v10359_v1  ;;  %7623 = vmatpush1.bf16.msra.mxu1 %v10362_v2  ;;  %v10443_v1 = vld [vmem:[%s15142_s1 + $0xaa0] ss:$16 sps:$4 sm:$0xff]   ;;  %v10446_v2 = vld [vmem:[%s15142_s1 + $0xaa8] ss:$16 sps:$4 sm:$0xff]  }
 0x120   :  { %6776 = vmatprep.subr.bf16.mxu0 %v10367_v3  ;;  %7624 = vmatprep.subr.bf16.mxu1 %v10370_v4  ;;  %v10451_v3 = vld [vmem:[%s15142_s1 + $0xac4] ss:$16 sps:$4 sm:$0xff]   ;;  %v10454_v4 = vld [vmem:[%s15142_s1 + $0xacc] ss:$16 sps:$4 sm:$0xff]  }
 0x123   :  { %6777 = vmatpush1.bf16.msra.mxu0 %v10365_v5  ;;  %7625 = vmatpush1.bf16.msra.mxu1 %v10368_v6  ;;  %v10449_v5 = vld [vmem:[%s15142_s1 + $0xac0] ss:$16 sps:$4 sm:$0xff]   ;;  %v10452_v6 = vld [vmem:[%s15142_s1 + $0xac8] ss:$16 sps:$4 sm:$0xff]  }
 0x124   :  { %6778 = vmatprep.subr.bf16.mxu0 %v10373_v7  ;;  %7626 = vmatprep.subr.bf16.mxu1 %v10376_v8  ;;  %v10457_v7 = vld [vmem:[%s15142_s1 + $0xae4] ss:$16 sps:$4 sm:$0xff]   ;;  %v10460_v8 = vld [vmem:[%s15142_s1 + $0xaec] ss:$16 sps:$4 sm:$0xff]  }
 0x127   :  { %6779 = vmatpush1.bf16.msra.mxu0 %v10371_v9  ;;  %7627 = vmatpush1.bf16.msra.mxu1 %v10374_v10  ;;  %v10455_v9 = vld [vmem:[%s15142_s1 + $0xae0] ss:$16 sps:$4 sm:$0xff]   ;;  %v10458_v10 = vld [vmem:[%s15142_s1 + $0xae8] ss:$16 sps:$4 sm:$0xff]  }
 0x128   :  { %6780 = vmatprep.subr.bf16.mxu0 %v10379_v11  ;;  %7628 = vmatprep.subr.bf16.mxu1 %v10382_v12  ;;  %v10463_v11 = vld [vmem:[%s15142_s1 + $0xb04] ss:$16 sps:$4 sm:$0xff]   ;;  %v10466_v12 = vld [vmem:[%s15142_s1 + $0xb0c] ss:$16 sps:$4 sm:$0xff]  }
 0x12b   :  { %6781 = vmatpush1.bf16.msra.mxu0 %v10377_v13  ;;  %7629 = vmatpush1.bf16.msra.mxu1 %v10380_v14  ;;  %v10461_v13 = vld [vmem:[%s15142_s1 + $0xb00] ss:$16 sps:$4 sm:$0xff]   ;;  %v10464_v14 = vld [vmem:[%s15142_s1 + $0xb08] ss:$16 sps:$4 sm:$0xff]  }
 0x12c   :  { %6782 = vmatprep.subr.bf16.mxu0 %v10385_v15  ;;  %7630 = vmatprep.subr.bf16.mxu1 %v10388_v16  ;;  %v10469_v15 = vld [vmem:[%s15142_s1 + $0xb24] ss:$16 sps:$4 sm:$0xff]   ;;  %v10472_v16 = vld [vmem:[%s15142_s1 + $0xb2c] ss:$16 sps:$4 sm:$0xff]  }
 0x12f   :  { %6783 = vmatpush1.bf16.msra.mxu0 %v10383_v17  ;;  %7631 = vmatpush1.bf16.msra.mxu1 %v10386_v18  ;;  %v10467_v17 = vld [vmem:[%s15142_s1 + $0xb20] ss:$16 sps:$4 sm:$0xff]   ;;  %v10470_v18 = vld [vmem:[%s15142_s1 + $0xb28] ss:$16 sps:$4 sm:$0xff]  }
 0x130   :  { %6784 = vmatprep.subr.bf16.mxu0 %v10391_v19  ;;  %7632 = vmatprep.subr.bf16.mxu1 %v10394_v20  ;;  %v10475_v19 = vld [vmem:[%s15142_s1 + $0xb44] ss:$16 sps:$4 sm:$0xff]   ;;  %v10478_v20 = vld [vmem:[%s15142_s1 + $0xb4c] ss:$16 sps:$4 sm:$0xff]  }
 0x133   :  { %6785 = vmatpush1.bf16.msra.mxu0 %v10389_v21  ;;  %7633 = vmatpush1.bf16.msra.mxu1 %v10392_v22  ;;  %v10473_v21 = vld [vmem:[%s15142_s1 + $0xb40] ss:$16 sps:$4 sm:$0xff]   ;;  %v10476_v22 = vld [vmem:[%s15142_s1 + $0xb48] ss:$16 sps:$4 sm:$0xff]  }
 0x134   :  { %6786 = vmatprep.subr.bf16.mxu0 %v10397_v23  ;;  %7634 = vmatprep.subr.bf16.mxu1 %v10400_v24  ;;  %v10481_v23 = vld [vmem:[%s15142_s1 + $0xb64] ss:$16 sps:$4 sm:$0xff]   ;;  %v10484_v24 = vld [vmem:[%s15142_s1 + $0xb6c] ss:$16 sps:$4 sm:$0xff]  }
 0x137   :  { %6787 = vmatpush1.bf16.msra.mxu0 %v10395_v26  ;;  %7635 = vmatpush1.bf16.msra.mxu1 %v10398_v25  ;;  %v10479_v26 = vld [vmem:[%s15142_s1 + $0xb60] ss:$16 sps:$4 sm:$0xff]   ;;  %v10482_v25 = vld [vmem:[%s15142_s1 + $0xb68] ss:$16 sps:$4 sm:$0xff]  }
 0x138   :  { %6788 = vmatprep.subr.bf16.mxu0 %v10403_v27  ;;  %7636 = vmatprep.subr.bf16.mxu1 %v10406_v28  ;;  %v10487_v27 = vld [vmem:[%s15142_s1 + $0xb84] ss:$16 sps:$4 sm:$0xff]   ;;  %v10490_v28 = vld [vmem:[%s15142_s1 + $0xb8c] ss:$16 sps:$4 sm:$0xff]  }
 0x13b   :  { %6789 = vmatpush1.bf16.msra.mxu0 %v10401_v29  ;;  %7637 = vmatpush1.bf16.msra.mxu1 %v10404_v30  ;;  %v10485_v29 = vld [vmem:[%s15142_s1 + $0xb80] ss:$16 sps:$4 sm:$0xff]   ;;  %v10488_v30 = vld [vmem:[%s15142_s1 + $0xb88] ss:$16 sps:$4 sm:$0xff]  }
 0x13c   :  { %6790 = vmatprep.subr.bf16.mxu0 %v10409_v31  ;;  %7638 = vmatprep.subr.bf16.mxu1 %v10412_v32  ;;  %v10493_v31 = vld [vmem:[%s15142_s1 + $0xba4] ss:$16 sps:$4 sm:$0xff]   ;;  %v10496_v32 = vld [vmem:[%s15142_s1 + $0xbac] ss:$16 sps:$4 sm:$0xff]  }
 0x13f   :  { %6791 = vmatpush1.bf16.msra.mxu0 %v10407_v34  ;;  %7639 = vmatpush1.bf16.msra.mxu1 %v10410_v36  ;;  %v10491_v34 = vld [vmem:[%s15142_s1 + $0xba0] ss:$16 sps:$4 sm:$0xff]   ;;  %v10494_v36 = vld [vmem:[%s15142_s1 + $0xba8] ss:$16 sps:$4 sm:$0xff]  }
 0x140   :  { %6813 = vmatprep.subr.bf16.mxu0 %v10415_v33  ;;  %7661 = vmatprep.subr.bf16.mxu1 %v10418_v35  ;;  %v10499_v33 = vld [vmem:[%s15142_s1 + $0xbc4] ss:$16 sps:$4 sm:$0xff]   ;;  %v10502_v35 = vld [vmem:[%s15142_s1 + $0xbcc] ss:$16 sps:$4 sm:$0xff]  }
 0x142   :  { %6793 = vmatmul.mubr.bf16.vlgmr.msra.gmra.mrb[0].mxu0 %v8613_v39  ;;  %7641 = vmatmul.mubr.bf16.vlgmr.msra.gmra.mrb[0].mxu1 %v8613_v39  ;;  %v10505_v39 = vld [vmem:[%s15142_s1 + $0xbe4] ss:$16 sps:$4 sm:$0xff]  }
 0x143   :  { %6814 = vmatpush1.bf16.msra.mxu0 %v10413_v40  ;;  %7662 = vmatpush1.bf16.msra.mxu1 %v10416_v42  ;;  %v10508_v40 = vld [vmem:[%s15142_s1 + $0xbec] ss:$16 sps:$4 sm:$0xff]   ;;  %v10503_v42 = vld [vmem:[%s15142_s1 + $0xbe0] ss:$16 sps:$4 sm:$0xff]  }
 0x144   :  { %6815 = vmatprep.subr.bf16.mxu0 %v10421_v44  ;;  %7663 = vmatprep.subr.bf16.mxu1 %v10424_v41  ;;  %v10506_v44 = vld [vmem:[%s15142_s1 + $0xbe8] ss:$16 sps:$4 sm:$0xff]   ;;  %v10511_v41 = vld [vmem:[%s15142_s1 + $0xc04] ss:$16 sps:$4 sm:$0xff]  }
 0x145   :  { %6802 = vmatprep.mubr.bf16.mxu0 %v8646_v46  ;;  %7650 = vmatprep.mubr.bf16.mxu1 %v8646_v46  ;;  %v73_v46 = vld [vmem:[%s15143_s0 + $0x1a8] sm:$0xff] }
 0x147   :  { %6816 = vmatpush1.bf16.msra.mxu0 %v10419_v43  ;;  %7664 = vmatpush1.bf16.msra.mxu1 %v10422_v45  ;;  %v10514_v43 = vld [vmem:[%s15142_s1 + $0xc0c] ss:$16 sps:$4 sm:$0xff]  }
 0x148   :  { %6817 = vmatprep.subr.bf16.mxu0 %v10427_v47  ;;  %7665 = vmatprep.subr.bf16.mxu1 %v10430_v48  ;;  %v57_v45 = vld [vmem:[%s15143_s0 + $0x128] sm:$0xff]  ;;  %v8615_v47 = vcombine.low %v12600_v49, %v12605_v50  ;;  %v10509_v48 = vld [vmem:[%s15142_s1 + $0xc00] ss:$16 sps:$4 sm:$0xff]  }
 0x149   :  { %v10520_v49 = vld [vmem:[%s15142_s1 + $0xc2c] ss:$16 sps:$4 sm:$0xff]   ;;  %v10515_v50 = vld [vmem:[%s15142_s1 + $0xc20] ss:$16 sps:$4 sm:$0xff]  }
 0x14a   :  { %6803 = vmatmul.mubr.bf16.gmra.mrb[4].mxu0 %v8645_v51  ;;  %7651 = vmatmul.mubr.bf16.gmra.mrb[4].mxu1 %v8645_v51  ;;  %v10512_v51 = vld [vmem:[%s15142_s1 + $0xc08] ss:$16 sps:$4 sm:$0xff]  }
 0x14b   :  { %6818 = vmatpush1.bf16.msra.mxu0 %v10425_v52  ;;  %7666 = vmatpush1.bf16.msra.mxu1 %v10428_v53  ;;  %v10517_v52 = vld [vmem:[%s15142_s1 + $0xc24] ss:$16 sps:$4 sm:$0xff]   ;;  %v10518_v53 = vld [vmem:[%s15142_s1 + $0xc28] ss:$16 sps:$4 sm:$0xff]  }
 0x14c   :  { %6819 = vmatprep.subr.bf16.mxu0 %v10433_v54  ;;  %7667 = vmatprep.subr.bf16.mxu1 %v10436_v55  ;;  %v8648_v54 = vcombine.high %v57_v45, %v73_v46  ;;  %v10523_v55 = vld [vmem:[%s15142_s1 + $0xc44] ss:$16 sps:$4 sm:$0xff]  }
 0x14d   :  { %6845 = vmatprep.mubr.bf16.mxu0 %v8616_v56  ;;  %7693 = vmatprep.mubr.bf16.mxu1 %v8616_v56  ;;  %v10526_v56 = vld [vmem:[%s15142_s1 + $0xc4c] ss:$16 sps:$4 sm:$0xff]  }
 0x14f   :  { %6820 = vmatpush1.bf16.msra.mxu0 %v10431_v57  ;;  %7668 = vmatpush1.bf16.msra.mxu1 %v10434_v58  ;;  %v12812_v57 = vld [vmem:[%s15143_s0 + $0x30] sm:$0xff] }
 0x150   :  { %6821 = vmatprep.subr.bf16.mxu0 %v10439_v59  ;;  %7669 = vmatprep.subr.bf16.mxu1 %v10442_v60  ;;  %v12817_v58 = vld [vmem:[%s15143_s0 + $0xb0] sm:$0xff]  ;;  %v8647_v59 = vcombine.low %v57_v45, %v73_v46  ;;  %v10596_v46 = vld [vmem:[%s15142_s1 + $0xdc8] ss:$16 sps:$4 sm:$0xff]  }
 0x151   :  { %v10521_v60 = vld [vmem:[%s15142_s1 + $0xc40] ss:$16 sps:$4 sm:$0xff]  }
 0x152   :  { %v10593_v45 = vld [vmem:[%s15142_s1 + $0xdc0] ss:$16 sps:$4 sm:$0xff]  }
 0x153   :  { %6822 = vmatpush1.bf16.msra.mxu0 %v10437_v61  ;;  %7670 = vmatpush1.bf16.msra.mxu1 %v10440_v62  ;;  %v10524_v61 = vld [vmem:[%s15142_s1 + $0xc48] ss:$16 sps:$4 sm:$0xff]   ;;  %v10529_v62 = vld [vmem:[%s15142_s1 + $0xc64] ss:$16 sps:$4 sm:$0xff]  }
 0x154   :  { %6823 = vmatprep.subr.bf16.mxu0 %v10445_v63  ;;  %7671 = vmatprep.subr.bf16.mxu1 %v10448_v0  ;;  %v10532_v63 = vld [vmem:[%s15142_s1 + $0xc6c] ss:$16 sps:$4 sm:$0xff]   ;;  %v8618_v0 = vcombine.high %v12812_v57, %v12817_v58 }
 0x157   :  { %6824 = vmatpush1.bf16.msra.mxu0 %v10443_v1  ;;  %7672 = vmatpush1.bf16.msra.mxu1 %v10446_v2  ;;  %v10527_v1 = vld [vmem:[%s15142_s1 + $0xc60] ss:$16 sps:$4 sm:$0xff]   ;;  %v10530_v2 = vld [vmem:[%s15142_s1 + $0xc68] ss:$16 sps:$4 sm:$0xff]  }
 0x158   :  { %6825 = vmatprep.subr.bf16.mxu0 %v10451_v3  ;;  %7673 = vmatprep.subr.bf16.mxu1 %v10454_v4  ;;  %v10535_v3 = vld [vmem:[%s15142_s1 + $0xc84] ss:$16 sps:$4 sm:$0xff]   ;;  %v10538_v4 = vld [vmem:[%s15142_s1 + $0xc8c] ss:$16 sps:$4 sm:$0xff]  }
 0x15b   :  { %6826 = vmatpush1.bf16.msra.mxu0 %v10449_v5  ;;  %7674 = vmatpush1.bf16.msra.mxu1 %v10452_v6  ;;  %v10533_v5 = vld [vmem:[%s15142_s1 + $0xc80] ss:$16 sps:$4 sm:$0xff]   ;;  %v10536_v6 = vld [vmem:[%s15142_s1 + $0xc88] ss:$16 sps:$4 sm:$0xff]  }
 0x15c   :  { %6827 = vmatprep.subr.bf16.mxu0 %v10457_v7  ;;  %7675 = vmatprep.subr.bf16.mxu1 %v10460_v8  ;;  %v10541_v7 = vld [vmem:[%s15142_s1 + $0xca4] ss:$16 sps:$4 sm:$0xff]   ;;  %v10544_v8 = vld [vmem:[%s15142_s1 + $0xcac] ss:$16 sps:$4 sm:$0xff]  }
 0x15f   :  { %6828 = vmatpush1.bf16.msra.mxu0 %v10455_v9  ;;  %7676 = vmatpush1.bf16.msra.mxu1 %v10458_v10  ;;  %v10539_v9 = vld [vmem:[%s15142_s1 + $0xca0] ss:$16 sps:$4 sm:$0xff]   ;;  %v10542_v10 = vld [vmem:[%s15142_s1 + $0xca8] ss:$16 sps:$4 sm:$0xff]  }
 0x160   :  { %6829 = vmatprep.subr.bf16.mxu0 %v10463_v11  ;;  %7677 = vmatprep.subr.bf16.mxu1 %v10466_v12  ;;  %v10547_v11 = vld [vmem:[%s15142_s1 + $0xcc4] ss:$16 sps:$4 sm:$0xff]   ;;  %v10550_v12 = vld [vmem:[%s15142_s1 + $0xccc] ss:$16 sps:$4 sm:$0xff]  }
 0x163   :  { %6830 = vmatpush1.bf16.msra.mxu0 %v10461_v13  ;;  %7678 = vmatpush1.bf16.msra.mxu1 %v10464_v14  ;;  %v10545_v13 = vld [vmem:[%s15142_s1 + $0xcc0] ss:$16 sps:$4 sm:$0xff]   ;;  %v10548_v14 = vld [vmem:[%s15142_s1 + $0xcc8] ss:$16 sps:$4 sm:$0xff]  }
 0x164   :  { %6831 = vmatprep.subr.bf16.mxu0 %v10469_v15  ;;  %7679 = vmatprep.subr.bf16.mxu1 %v10472_v16  ;;  %v10553_v15 = vld [vmem:[%s15142_s1 + $0xce4] ss:$16 sps:$4 sm:$0xff]   ;;  %v10556_v16 = vld [vmem:[%s15142_s1 + $0xcec] ss:$16 sps:$4 sm:$0xff]  }
 0x167   :  { %6832 = vmatpush1.bf16.msra.mxu0 %v10467_v17  ;;  %7680 = vmatpush1.bf16.msra.mxu1 %v10470_v18  ;;  %v10551_v17 = vld [vmem:[%s15142_s1 + $0xce0] ss:$16 sps:$4 sm:$0xff]   ;;  %v10554_v18 = vld [vmem:[%s15142_s1 + $0xce8] ss:$16 sps:$4 sm:$0xff]  }
 0x168   :  { %6833 = vmatprep.subr.bf16.mxu0 %v10475_v19  ;;  %7681 = vmatprep.subr.bf16.mxu1 %v10478_v20  ;;  %v10559_v19 = vld [vmem:[%s15142_s1 + $0xd04] ss:$16 sps:$4 sm:$0xff]   ;;  %v10562_v20 = vld [vmem:[%s15142_s1 + $0xd0c] ss:$16 sps:$4 sm:$0xff]  }
 0x16b   :  { %6834 = vmatpush1.bf16.msra.mxu0 %v10473_v21  ;;  %7682 = vmatpush1.bf16.msra.mxu1 %v10476_v22  ;;  %v10557_v21 = vld [vmem:[%s15142_s1 + $0xd00] ss:$16 sps:$4 sm:$0xff]   ;;  %v10560_v22 = vld [vmem:[%s15142_s1 + $0xd08] ss:$16 sps:$4 sm:$0xff]  }
 0x16c   :  { %6835 = vmatprep.subr.bf16.mxu0 %v10481_v23  ;;  %7683 = vmatprep.subr.bf16.mxu1 %v10484_v24  ;;  %v10565_v23 = vld [vmem:[%s15142_s1 + $0xd24] ss:$16 sps:$4 sm:$0xff]   ;;  %v10568_v24 = vld [vmem:[%s15142_s1 + $0xd2c] ss:$16 sps:$4 sm:$0xff]  }
 0x16f   :  { %6836 = vmatpush1.bf16.msra.mxu0 %v10479_v26  ;;  %7684 = vmatpush1.bf16.msra.mxu1 %v10482_v25  ;;  %v10563_v26 = vld [vmem:[%s15142_s1 + $0xd20] ss:$16 sps:$4 sm:$0xff]   ;;  %v10566_v25 = vld [vmem:[%s15142_s1 + $0xd28] ss:$16 sps:$4 sm:$0xff]  }
 0x170   :  { %6837 = vmatprep.subr.bf16.mxu0 %v10487_v27  ;;  %7685 = vmatprep.subr.bf16.mxu1 %v10490_v28  ;;  %v10571_v27 = vld [vmem:[%s15142_s1 + $0xd44] ss:$16 sps:$4 sm:$0xff]   ;;  %v10574_v28 = vld [vmem:[%s15142_s1 + $0xd4c] ss:$16 sps:$4 sm:$0xff]  }
 0x173   :  { %6838 = vmatpush1.bf16.msra.mxu0 %v10485_v29  ;;  %7686 = vmatpush1.bf16.msra.mxu1 %v10488_v30  ;;  %v10569_v29 = vld [vmem:[%s15142_s1 + $0xd40] ss:$16 sps:$4 sm:$0xff]   ;;  %v10572_v30 = vld [vmem:[%s15142_s1 + $0xd48] ss:$16 sps:$4 sm:$0xff]  }
 0x174   :  { %6839 = vmatprep.subr.bf16.mxu0 %v10493_v31  ;;  %7687 = vmatprep.subr.bf16.mxu1 %v10496_v32  ;;  %v10577_v31 = vld [vmem:[%s15142_s1 + $0xd64] ss:$16 sps:$4 sm:$0xff]   ;;  %v10580_v32 = vld [vmem:[%s15142_s1 + $0xd6c] ss:$16 sps:$4 sm:$0xff]  }
 0x177   :  { %6840 = vmatpush1.bf16.msra.mxu0 %v10491_v34  ;;  %7688 = vmatpush1.bf16.msra.mxu1 %v10494_v36  ;;  %v10575_v34 = vld [vmem:[%s15142_s1 + $0xd60] ss:$16 sps:$4 sm:$0xff]   ;;  %v10578_v36 = vld [vmem:[%s15142_s1 + $0xd68] ss:$16 sps:$4 sm:$0xff]  }
 0x178   :  { %6841 = vmatprep.subr.bf16.mxu0 %v10499_v33  ;;  %7689 = vmatprep.subr.bf16.mxu1 %v10502_v35  ;;  %v10583_v33 = vld [vmem:[%s15142_s1 + $0xd84] ss:$16 sps:$4 sm:$0xff]   ;;  %v10586_v35 = vld [vmem:[%s15142_s1 + $0xd8c] ss:$16 sps:$4 sm:$0xff]  }
 0x17b   :  { %6842 = vmatpush1.bf16.msra.mxu0 %v10497_v37  ;;  %7690 = vmatpush1.bf16.msra.mxu1 %v10500_v38  ;;  %v10581_v37 = vld [vmem:[%s15142_s1 + $0xd80] ss:$16 sps:$4 sm:$0xff]   ;;  %v10584_v38 = vld [vmem:[%s15142_s1 + $0xd88] ss:$16 sps:$4 sm:$0xff]  }
 0x17c   :  { %6843 = vmatprep.subr.bf16.mxu0 %v10505_v39  ;;  %7691 = vmatprep.subr.bf16.mxu1 %v10508_v40  ;;  %v10589_v39 = vld [vmem:[%s15142_s1 + $0xda4] ss:$16 sps:$4 sm:$0xff]   ;;  %v10592_v40 = vld [vmem:[%s15142_s1 + $0xdac] ss:$16 sps:$4 sm:$0xff]  }
 0x17f   :  { %6844 = vmatpush1.bf16.msra.mxu0 %v10503_v42  ;;  %7692 = vmatpush1.bf16.msra.mxu1 %v10506_v44  ;;  %v10587_v42 = vld [vmem:[%s15142_s1 + $0xda0] ss:$16 sps:$4 sm:$0xff]   ;;  %v10590_v44 = vld [vmem:[%s15142_s1 + $0xda8] ss:$16 sps:$4 sm:$0xff]  }
 0x180   :  { %6866 = vmatprep.subr.bf16.mxu0 %v10511_v41  ;;  %7714 = vmatprep.subr.bf16.mxu1 %v10514_v43  ;;  %v10595_v41 = vld [vmem:[%s15142_s1 + $0xdc4] ss:$16 sps:$4 sm:$0xff]   ;;  %v10598_v43 = vld [vmem:[%s15142_s1 + $0xdcc] ss:$16 sps:$4 sm:$0xff]  }
 0x182   :  { %6846 = vmatmul.mubr.bf16.vlgmr.msra.gmra.mrb[0].mxu0 %v8615_v47  ;;  %7694 = vmatmul.mubr.bf16.vlgmr.msra.gmra.mrb[0].mxu1 %v8615_v47  ;;  %v10601_v47 = vld [vmem:[%s15142_s1 + $0xde4] ss:$16 sps:$4 sm:$0xff]  }
 0x183   :  { %6867 = vmatpush1.bf16.msra.mxu0 %v10509_v48  ;;  %7715 = vmatpush1.bf16.msra.mxu1 %v10512_v51  ;;  %v10604_v48 = vld [vmem:[%s15142_s1 + $0xdec] ss:$16 sps:$4 sm:$0xff]   ;;  %v10599_v51 = vld [vmem:[%s15142_s1 + $0xde0] ss:$16 sps:$4 sm:$0xff]  }
 0x184   :  { %6868 = vmatprep.subr.bf16.mxu0 %v10517_v52  ;;  %7716 = vmatprep.subr.bf16.mxu1 %v10520_v49  ;;  %v10602_v52 = vld [vmem:[%s15142_s1 + $0xde8] ss:$16 sps:$4 sm:$0xff]   ;;  %v10607_v49 = vld [vmem:[%s15142_s1 + $0xe04] ss:$16 sps:$4 sm:$0xff]  }
 0x185   :  { %6855 = vmatprep.mubr.bf16.mxu0 %v8648_v54  ;;  %7703 = vmatprep.mubr.bf16.mxu1 %v8648_v54  ;;  %v74_v54 = vld [vmem:[%s15143_s0 + $0x1b0] sm:$0xff] }
 0x187   :  { %6869 = vmatpush1.bf16.msra.mxu0 %v10515_v50  ;;  %7717 = vmatpush1.bf16.msra.mxu1 %v10518_v53  ;;  %v10610_v50 = vld [vmem:[%s15142_s1 + $0xe0c] ss:$16 sps:$4 sm:$0xff]   ;;  %v58_v53 = vld [vmem:[%s15143_s0 + $0x130] sm:$0xff] }
 0x188   :  { %6870 = vmatprep.subr.bf16.mxu0 %v10523_v55  ;;  %7718 = vmatprep.subr.bf16.mxu1 %v10526_v56  ;;  %v8617_v55 = vcombine.low %v12812_v57, %v12817_v58  ;;  %v10605_v56 = vld [vmem:[%s15142_s1 + $0xe00] ss:$16 sps:$4 sm:$0xff]   ;;  %v10616_v57 = vld [vmem:[%s15142_s1 + $0xe2c] ss:$16 sps:$4 sm:$0xff]  }
 0x189   :  { %v10611_v58 = vld [vmem:[%s15142_s1 + $0xe20] ss:$16 sps:$4 sm:$0xff]  }
 0x18a   :  { %6856 = vmatmul.mubr.bf16.gmra.mrb[4].mxu0 %v8647_v59  ;;  %7704 = vmatmul.mubr.bf16.gmra.mrb[4].mxu1 %v8647_v59  ;;  %v10608_v59 = vld [vmem:[%s15142_s1 + $0xe08] ss:$16 sps:$4 sm:$0xff]  }
 0x18b   :  { %6871 = vmatpush1.bf16.msra.mxu0 %v10521_v60  ;;  %7719 = vmatpush1.bf16.msra.mxu1 %v10524_v61  ;;  %v10613_v60 = vld [vmem:[%s15142_s1 + $0xe24] ss:$16 sps:$4 sm:$0xff]   ;;  %v10614_v61 = vld [vmem:[%s15142_s1 + $0xe28] ss:$16 sps:$4 sm:$0xff]  }
 0x18c   :  { %6872 = vmatprep.subr.bf16.mxu0 %v10529_v62  ;;  %7720 = vmatprep.subr.bf16.mxu1 %v10532_v63  ;;  %v8650_v62 = vcombine.high %v58_v53, %v74_v54  ;;  %v10619_v63 = vld [vmem:[%s15142_s1 + $0xe44] ss:$16 sps:$4 sm:$0xff]  }
 0x18d   :  { %6898 = vmatprep.mubr.bf16.mxu0 %v8618_v0  ;;  %7746 = vmatprep.mubr.bf16.mxu1 %v8618_v0  ;;  %v10622_v0 = vld [vmem:[%s15142_s1 + $0xe4c] ss:$16 sps:$4 sm:$0xff]  }
 0x18f   :  { %6873 = vmatpush1.bf16.msra.mxu0 %v10527_v1  ;;  %7721 = vmatpush1.bf16.msra.mxu1 %v10530_v2  ;;  %v13024_v1 = vld [vmem:[%s15143_s0 + $0x38] sm:$0xff] }
 0x190   :  { %6874 = vmatprep.subr.bf16.mxu0 %v10535_v3  ;;  %7722 = vmatprep.subr.bf16.mxu1 %v10538_v4  ;;  %v13029_v2 = vld [vmem:[%s15143_s0 + $0xb8] sm:$0xff]  ;;  %v8649_v3 = vcombine.low %v58_v53, %v74_v54  ;;  %v10617_v4 = vld [vmem:[%s15142_s1 + $0xe40] ss:$16 sps:$4 sm:$0xff]  }
 0x191   :  { %v10689_v53 = vld [vmem:[%s15142_s1 + $0xfc0] ss:$16 sps:$4 sm:$0xff]   ;;  %v10692_v54 = vld [vmem:[%s15142_s1 + $0xfc8] ss:$16 sps:$4 sm:$0xff]  }
 0x193   :  { %6875 = vmatpush1.bf16.msra.mxu0 %v10533_v5  ;;  %7723 = vmatpush1.bf16.msra.mxu1 %v10536_v6  ;;  %v10620_v5 = vld [vmem:[%s15142_s1 + $0xe48] ss:$16 sps:$4 sm:$0xff]   ;;  %v10625_v6 = vld [vmem:[%s15142_s1 + $0xe64] ss:$16 sps:$4 sm:$0xff]  }
 0x194   :  { %6876 = vmatprep.subr.bf16.mxu0 %v10541_v7  ;;  %7724 = vmatprep.subr.bf16.mxu1 %v10544_v8  ;;  %v10628_v7 = vld [vmem:[%s15142_s1 + $0xe6c] ss:$16 sps:$4 sm:$0xff]   ;;  %v8620_v8 = vcombine.high %v13024_v1, %v13029_v2 }
 0x197   :  { %6877 = vmatpush1.bf16.msra.mxu0 %v10539_v9  ;;  %7725 = vmatpush1.bf16.msra.mxu1 %v10542_v10  ;;  %v10623_v9 = vld [vmem:[%s15142_s1 + $0xe60] ss:$16 sps:$4 sm:$0xff]   ;;  %v10626_v10 = vld [vmem:[%s15142_s1 + $0xe68] ss:$16 sps:$4 sm:$0xff]  }
 0x198   :  { %6878 = vmatprep.subr.bf16.mxu0 %v10547_v11  ;;  %7726 = vmatprep.subr.bf16.mxu1 %v10550_v12  ;;  %v10631_v11 = vld [vmem:[%s15142_s1 + $0xe84] ss:$16 sps:$4 sm:$0xff]   ;;  %v10634_v12 = vld [vmem:[%s15142_s1 + $0xe8c] ss:$16 sps:$4 sm:$0xff]  }
 0x19b   :  { %6879 = vmatpush1.bf16.msra.mxu0 %v10545_v13  ;;  %7727 = vmatpush1.bf16.msra.mxu1 %v10548_v14  ;;  %v10629_v13 = vld [vmem:[%s15142_s1 + $0xe80] ss:$16 sps:$4 sm:$0xff]   ;;  %v10632_v14 = vld [vmem:[%s15142_s1 + $0xe88] ss:$16 sps:$4 sm:$0xff]  }
 0x19c   :  { %6880 = vmatprep.subr.bf16.mxu0 %v10553_v15  ;;  %7728 = vmatprep.subr.bf16.mxu1 %v10556_v16  ;;  %v10637_v15 = vld [vmem:[%s15142_s1 + $0xea4] ss:$16 sps:$4 sm:$0xff]   ;;  %v10640_v16 = vld [vmem:[%s15142_s1 + $0xeac] ss:$16 sps:$4 sm:$0xff]  }
 0x19f   :  { %6881 = vmatpush1.bf16.msra.mxu0 %v10551_v17  ;;  %7729 = vmatpush1.bf16.msra.mxu1 %v10554_v18  ;;  %v10635_v17 = vld [vmem:[%s15142_s1 + $0xea0] ss:$16 sps:$4 sm:$0xff]   ;;  %v10638_v18 = vld [vmem:[%s15142_s1 + $0xea8] ss:$16 sps:$4 sm:$0xff]  }
 0x1a0   :  { %6882 = vmatprep.subr.bf16.mxu0 %v10559_v19  ;;  %7730 = vmatprep.subr.bf16.mxu1 %v10562_v20  ;;  %v10643_v19 = vld [vmem:[%s15142_s1 + $0xec4] ss:$16 sps:$4 sm:$0xff]   ;;  %v10646_v20 = vld [vmem:[%s15142_s1 + $0xecc] ss:$16 sps:$4 sm:$0xff]  }
 0x1a3   :  { %6883 = vmatpush1.bf16.msra.mxu0 %v10557_v21  ;;  %7731 = vmatpush1.bf16.msra.mxu1 %v10560_v22  ;;  %v10641_v21 = vld [vmem:[%s15142_s1 + $0xec0] ss:$16 sps:$4 sm:$0xff]   ;;  %v10644_v22 = vld [vmem:[%s15142_s1 + $0xec8] ss:$16 sps:$4 sm:$0xff]  }
 0x1a4   :  { %6884 = vmatprep.subr.bf16.mxu0 %v10565_v23  ;;  %7732 = vmatprep.subr.bf16.mxu1 %v10568_v24  ;;  %v10649_v23 = vld [vmem:[%s15142_s1 + $0xee4] ss:$16 sps:$4 sm:$0xff]   ;;  %v10652_v24 = vld [vmem:[%s15142_s1 + $0xeec] ss:$16 sps:$4 sm:$0xff]  }
 0x1a7   :  { %6885 = vmatpush1.bf16.msra.mxu0 %v10563_v26  ;;  %7733 = vmatpush1.bf16.msra.mxu1 %v10566_v25  ;;  %v10647_v26 = vld [vmem:[%s15142_s1 + $0xee0] ss:$16 sps:$4 sm:$0xff]   ;;  %v10650_v25 = vld [vmem:[%s15142_s1 + $0xee8] ss:$16 sps:$4 sm:$0xff]  }
 0x1a8   :  { %6886 = vmatprep.subr.bf16.mxu0 %v10571_v27  ;;  %7734 = vmatprep.subr.bf16.mxu1 %v10574_v28  ;;  %v10655_v27 = vld [vmem:[%s15142_s1 + $0xf04] ss:$16 sps:$4 sm:$0xff]   ;;  %v10658_v28 = vld [vmem:[%s15142_s1 + $0xf0c] ss:$16 sps:$4 sm:$0xff]  }
 0x1ab   :  { %6887 = vmatpush1.bf16.msra.mxu0 %v10569_v29  ;;  %7735 = vmatpush1.bf16.msra.mxu1 %v10572_v30  ;;  %v10653_v29 = vld [vmem:[%s15142_s1 + $0xf00] ss:$16 sps:$4 sm:$0xff]   ;;  %v10656_v30 = vld [vmem:[%s15142_s1 + $0xf08] ss:$16 sps:$4 sm:$0xff]  }
 0x1ac   :  { %6888 = vmatprep.subr.bf16.mxu0 %v10577_v31  ;;  %7736 = vmatprep.subr.bf16.mxu1 %v10580_v32  ;;  %v10661_v31 = vld [vmem:[%s15142_s1 + $0xf24] ss:$16 sps:$4 sm:$0xff]   ;;  %v10664_v32 = vld [vmem:[%s15142_s1 + $0xf2c] ss:$16 sps:$4 sm:$0xff]  }
 0x1af   :  { %6889 = vmatpush1.bf16.msra.mxu0 %v10575_v34  ;;  %7737 = vmatpush1.bf16.msra.mxu1 %v10578_v36  ;;  %v10659_v34 = vld [vmem:[%s15142_s1 + $0xf20] ss:$16 sps:$4 sm:$0xff]   ;;  %v10662_v36 = vld [vmem:[%s15142_s1 + $0xf28] ss:$16 sps:$4 sm:$0xff]  }
 0x1b0   :  { %6890 = vmatprep.subr.bf16.mxu0 %v10583_v33  ;;  %7738 = vmatprep.subr.bf16.mxu1 %v10586_v35  ;;  %v10667_v33 = vld [vmem:[%s15142_s1 + $0xf44] ss:$16 sps:$4 sm:$0xff]   ;;  %v10670_v35 = vld [vmem:[%s15142_s1 + $0xf4c] ss:$16 sps:$4 sm:$0xff]  }
 0x1b3   :  { %6891 = vmatpush1.bf16.msra.mxu0 %v10581_v37  ;;  %7739 = vmatpush1.bf16.msra.mxu1 %v10584_v38  ;;  %v10665_v37 = vld [vmem:[%s15142_s1 + $0xf40] ss:$16 sps:$4 sm:$0xff]   ;;  %v10668_v38 = vld [vmem:[%s15142_s1 + $0xf48] ss:$16 sps:$4 sm:$0xff]  }
 0x1b4   :  { %6892 = vmatprep.subr.bf16.mxu0 %v10589_v39  ;;  %7740 = vmatprep.subr.bf16.mxu1 %v10592_v40  ;;  %v10673_v39 = vld [vmem:[%s15142_s1 + $0xf64] ss:$16 sps:$4 sm:$0xff]   ;;  %v10676_v40 = vld [vmem:[%s15142_s1 + $0xf6c] ss:$16 sps:$4 sm:$0xff]  }
 0x1b7   :  { %6893 = vmatpush1.bf16.msra.mxu0 %v10587_v42  ;;  %7741 = vmatpush1.bf16.msra.mxu1 %v10590_v44  ;;  %v10671_v42 = vld [vmem:[%s15142_s1 + $0xf60] ss:$16 sps:$4 sm:$0xff]   ;;  %v10674_v44 = vld [vmem:[%s15142_s1 + $0xf68] ss:$16 sps:$4 sm:$0xff]  }
 0x1b8   :  { %6894 = vmatprep.subr.bf16.mxu0 %v10595_v41  ;;  %7742 = vmatprep.subr.bf16.mxu1 %v10598_v43  ;;  %v10679_v41 = vld [vmem:[%s15142_s1 + $0xf84] ss:$16 sps:$4 sm:$0xff]   ;;  %v10682_v43 = vld [vmem:[%s15142_s1 + $0xf8c] ss:$16 sps:$4 sm:$0xff]  }
 0x1bb   :  { %6895 = vmatpush1.bf16.msra.mxu0 %v10593_v45  ;;  %7743 = vmatpush1.bf16.msra.mxu1 %v10596_v46  ;;  %v10677_v45 = vld [vmem:[%s15142_s1 + $0xf80] ss:$16 sps:$4 sm:$0xff]   ;;  %v10680_v46 = vld [vmem:[%s15142_s1 + $0xf88] ss:$16 sps:$4 sm:$0xff]  }
 0x1bc   :  { %6896 = vmatprep.subr.bf16.mxu0 %v10601_v47  ;;  %7744 = vmatprep.subr.bf16.mxu1 %v10604_v48  ;;  %v10685_v47 = vld [vmem:[%s15142_s1 + $0xfa4] ss:$16 sps:$4 sm:$0xff]   ;;  %v10688_v48 = vld [vmem:[%s15142_s1 + $0xfac] ss:$16 sps:$4 sm:$0xff]  }
 0x1bf   :  { %6897 = vmatpush1.bf16.msra.mxu0 %v10599_v51  ;;  %7745 = vmatpush1.bf16.msra.mxu1 %v10602_v52  ;;  %v10683_v51 = vld [vmem:[%s15142_s1 + $0xfa0] ss:$16 sps:$4 sm:$0xff]   ;;  %v10686_v52 = vld [vmem:[%s15142_s1 + $0xfa8] ss:$16 sps:$4 sm:$0xff]  }
 0x1c0   :  { %6919 = vmatprep.subr.bf16.mxu0 %v10607_v49  ;;  %7767 = vmatprep.subr.bf16.mxu1 %v10610_v50  ;;  %v10691_v49 = vld [vmem:[%s15142_s1 + $0xfc4] ss:$16 sps:$4 sm:$0xff]   ;;  %v10694_v50 = vld [vmem:[%s15142_s1 + $0xfcc] ss:$16 sps:$4 sm:$0xff]  }
 0x1c2   :  { %6899 = vmatmul.mubr.bf16.vlgmr.msra.gmra.mrb[0].mxu0 %v8617_v55  ;;  %7747 = vmatmul.mubr.bf16.vlgmr.msra.gmra.mrb[0].mxu1 %v8617_v55  ;;  %v10697_v55 = vld [vmem:[%s15142_s1 + $0xfe4] ss:$16 sps:$4 sm:$0xff]  }
 0x1c3   :  { %6920 = vmatpush1.bf16.msra.mxu0 %v10605_v56  ;;  %7768 = vmatpush1.bf16.msra.mxu1 %v10608_v59  ;;  %v10700_v56 = vld [vmem:[%s15142_s1 + $0xfec] ss:$16 sps:$4 sm:$0xff]   ;;  %v10695_v59 = vld [vmem:[%s15142_s1 + $0xfe0] ss:$16 sps:$4 sm:$0xff]  }
 0x1c4   :  { %6921 = vmatprep.subr.bf16.mxu0 %v10613_v60  ;;  %7769 = vmatprep.subr.bf16.mxu1 %v10616_v57  ;;  %v10698_v60 = vld [vmem:[%s15142_s1 + $0xfe8] ss:$16 sps:$4 sm:$0xff]   ;;  %v10703_v57 = vld [vmem:[%s15142_s1 + $0x1004] ss:$16 sps:$4 sm:$0xff]  }
 0x1c5   :  { %6908 = vmatprep.mubr.bf16.mxu0 %v8650_v62  ;;  %7756 = vmatprep.mubr.bf16.mxu1 %v8650_v62  ;;  %v75_v62 = vld [vmem:[%s15143_s0 + $0x1b8] sm:$0xff] }
 0x1c7   :  { %6922 = vmatpush1.bf16.msra.mxu0 %v10611_v58  ;;  %7770 = vmatpush1.bf16.msra.mxu1 %v10614_v61  ;;  %v10706_v58 = vld [vmem:[%s15142_s1 + $0x100c] ss:$16 sps:$4 sm:$0xff]  }
 0x1c8   :  { %6923 = vmatprep.subr.bf16.mxu0 %v10619_v63  ;;  %7771 = vmatprep.subr.bf16.mxu1 %v10622_v0  ;;  %v59_v61 = vld [vmem:[%s15143_s0 + $0x138] sm:$0xff]  ;;  %v8619_v63 = vcombine.low %v13024_v1, %v13029_v2  ;;  %v10701_v0 = vld [vmem:[%s15142_s1 + $0x1000] ss:$16 sps:$4 sm:$0xff]  }
 0x1c9   :  { %v10712_v1 = vld [vmem:[%s15142_s1 + $0x102c] ss:$16 sps:$4 sm:$0xff]   ;;  %v10707_v2 = vld [vmem:[%s15142_s1 + $0x1020] ss:$16 sps:$4 sm:$0xff]  }
 0x1ca   :  { %6909 = vmatmul.mubr.bf16.gmra.mrb[4].mxu0 %v8649_v3  ;;  %7757 = vmatmul.mubr.bf16.gmra.mrb[4].mxu1 %v8649_v3  ;;  %v10704_v3 = vld [vmem:[%s15142_s1 + $0x1008] ss:$16 sps:$4 sm:$0xff]  }
 0x1cb   :  { %6924 = vmatpush1.bf16.msra.mxu0 %v10617_v4  ;;  %7772 = vmatpush1.bf16.msra.mxu1 %v10620_v5  ;;  %v10709_v4 = vld [vmem:[%s15142_s1 + $0x1024] ss:$16 sps:$4 sm:$0xff]   ;;  %v10710_v5 = vld [vmem:[%s15142_s1 + $0x1028] ss:$16 sps:$4 sm:$0xff]  }
 0x1cc   :  { %6925 = vmatprep.subr.bf16.mxu0 %v10625_v6  ;;  %7773 = vmatprep.subr.bf16.mxu1 %v10628_v7  ;;  %v8652_v6 = vcombine.high %v59_v61, %v75_v62  ;;  %v10715_v7 = vld [vmem:[%s15142_s1 + $0x1044] ss:$16 sps:$4 sm:$0xff]  }
 0x1cd   :  { %6951 = vmatprep.mubr.bf16.mxu0 %v8620_v8  ;;  %7799 = vmatprep.mubr.bf16.mxu1 %v8620_v8  ;;  %v10718_v8 = vld [vmem:[%s15142_s1 + $0x104c] ss:$16 sps:$4 sm:$0xff]  }
 0x1cf   :  { %6926 = vmatpush1.bf16.msra.mxu0 %v10623_v9  ;;  %7774 = vmatpush1.bf16.msra.mxu1 %v10626_v10  ;;  %v13236_v9 = vld [vmem:[%s15143_s0 + $0x40] sm:$0xff] }
 0x1d0   :  { %6927 = vmatprep.subr.bf16.mxu0 %v10631_v11  ;;  %7775 = vmatprep.subr.bf16.mxu1 %v10634_v12  ;;  %v13241_v10 = vld [vmem:[%s15143_s0 + $0xc0] sm:$0xff]  ;;  %v8651_v11 = vcombine.low %v59_v61, %v75_v62  ;;  %v10788_v62 = vld [vmem:[%s15142_s1 + $0x11c8] ss:$16 sps:$4 sm:$0xff]  }
 0x1d1   :  { %v10713_v12 = vld [vmem:[%s15142_s1 + $0x1040] ss:$16 sps:$4 sm:$0xff]  }
 0x1d2   :  { %v10785_v61 = vld [vmem:[%s15142_s1 + $0x11c0] ss:$16 sps:$4 sm:$0xff]  }
 0x1d3   :  { %6928 = vmatpush1.bf16.msra.mxu0 %v10629_v13  ;;  %7776 = vmatpush1.bf16.msra.mxu1 %v10632_v14  ;;  %v10716_v13 = vld [vmem:[%s15142_s1 + $0x1048] ss:$16 sps:$4 sm:$0xff]   ;;  %v10721_v14 = vld [vmem:[%s15142_s1 + $0x1064] ss:$16 sps:$4 sm:$0xff]  }
 0x1d4   :  { %6929 = vmatprep.subr.bf16.mxu0 %v10637_v15  ;;  %7777 = vmatprep.subr.bf16.mxu1 %v10640_v16  ;;  %v10724_v15 = vld [vmem:[%s15142_s1 + $0x106c] ss:$16 sps:$4 sm:$0xff]   ;;  %v8622_v16 = vcombine.high %v13236_v9, %v13241_v10 }
 0x1d7   :  { %6930 = vmatpush1.bf16.msra.mxu0 %v10635_v17  ;;  %7778 = vmatpush1.bf16.msra.mxu1 %v10638_v18  ;;  %v10719_v17 = vld [vmem:[%s15142_s1 + $0x1060] ss:$16 sps:$4 sm:$0xff]   ;;  %v10722_v18 = vld [vmem:[%s15142_s1 + $0x1068] ss:$16 sps:$4 sm:$0xff]  }
 0x1d8   :  { %6931 = vmatprep.subr.bf16.mxu0 %v10643_v19  ;;  %7779 = vmatprep.subr.bf16.mxu1 %v10646_v20  ;;  %v10727_v19 = vld [vmem:[%s15142_s1 + $0x1084] ss:$16 sps:$4 sm:$0xff]   ;;  %v10730_v20 = vld [vmem:[%s15142_s1 + $0x108c] ss:$16 sps:$4 sm:$0xff]  }
 0x1db   :  { %6932 = vmatpush1.bf16.msra.mxu0 %v10641_v21  ;;  %7780 = vmatpush1.bf16.msra.mxu1 %v10644_v22  ;;  %v10725_v21 = vld [vmem:[%s15142_s1 + $0x1080] ss:$16 sps:$4 sm:$0xff]   ;;  %v10728_v22 = vld [vmem:[%s15142_s1 + $0x1088] ss:$16 sps:$4 sm:$0xff]  }
 0x1dc   :  { %6933 = vmatprep.subr.bf16.mxu0 %v10649_v23  ;;  %7781 = vmatprep.subr.bf16.mxu1 %v10652_v24  ;;  %v10733_v23 = vld [vmem:[%s15142_s1 + $0x10a4] ss:$16 sps:$4 sm:$0xff]   ;;  %v10736_v24 = vld [vmem:[%s15142_s1 + $0x10ac] ss:$16 sps:$4 sm:$0xff]  }
 0x1df   :  { %6934 = vmatpush1.bf16.msra.mxu0 %v10647_v26  ;;  %7782 = vmatpush1.bf16.msra.mxu1 %v10650_v25  ;;  %v10731_v26 = vld [vmem:[%s15142_s1 + $0x10a0] ss:$16 sps:$4 sm:$0xff]   ;;  %v10734_v25 = vld [vmem:[%s15142_s1 + $0x10a8] ss:$16 sps:$4 sm:$0xff]  }
 0x1e0   :  { %6935 = vmatprep.subr.bf16.mxu0 %v10655_v27  ;;  %7783 = vmatprep.subr.bf16.mxu1 %v10658_v28  ;;  %v10739_v27 = vld [vmem:[%s15142_s1 + $0x10c4] ss:$16 sps:$4 sm:$0xff]   ;;  %v10742_v28 = vld [vmem:[%s15142_s1 + $0x10cc] ss:$16 sps:$4 sm:$0xff]  }
 0x1e3   :  { %6936 = vmatpush1.bf16.msra.mxu0 %v10653_v29  ;;  %7784 = vmatpush1.bf16.msra.mxu1 %v10656_v30  ;;  %v10737_v29 = vld [vmem:[%s15142_s1 + $0x10c0] ss:$16 sps:$4 sm:$0xff]   ;;  %v10740_v30 = vld [vmem:[%s15142_s1 + $0x10c8] ss:$16 sps:$4 sm:$0xff]  }
 0x1e4   :  { %6937 = vmatprep.subr.bf16.mxu0 %v10661_v31  ;;  %7785 = vmatprep.subr.bf16.mxu1 %v10664_v32  ;;  %v10745_v31 = vld [vmem:[%s15142_s1 + $0x10e4] ss:$16 sps:$4 sm:$0xff]   ;;  %v10748_v32 = vld [vmem:[%s15142_s1 + $0x10ec] ss:$16 sps:$4 sm:$0xff]  }
 0x1e7   :  { %6938 = vmatpush1.bf16.msra.mxu0 %v10659_v34  ;;  %7786 = vmatpush1.bf16.msra.mxu1 %v10662_v36  ;;  %v10743_v34 = vld [vmem:[%s15142_s1 + $0x10e0] ss:$16 sps:$4 sm:$0xff]   ;;  %v10746_v36 = vld [vmem:[%s15142_s1 + $0x10e8] ss:$16 sps:$4 sm:$0xff]  }
 0x1e8   :  { %6939 = vmatprep.subr.bf16.mxu0 %v10667_v33  ;;  %7787 = vmatprep.subr.bf16.mxu1 %v10670_v35  ;;  %v10751_v33 = vld [vmem:[%s15142_s1 + $0x1104] ss:$16 sps:$4 sm:$0xff]   ;;  %v10754_v35 = vld [vmem:[%s15142_s1 + $0x110c] ss:$16 sps:$4 sm:$0xff]  }
 0x1eb   :  { %6940 = vmatpush1.bf16.msra.mxu0 %v10665_v37  ;;  %7788 = vmatpush1.bf16.msra.mxu1 %v10668_v38  ;;  %v10749_v37 = vld [vmem:[%s15142_s1 + $0x1100] ss:$16 sps:$4 sm:$0xff]   ;;  %v10752_v38 = vld [vmem:[%s15142_s1 + $0x1108] ss:$16 sps:$4 sm:$0xff]  }
 0x1ec   :  { %6941 = vmatprep.subr.bf16.mxu0 %v10673_v39  ;;  %7789 = vmatprep.subr.bf16.mxu1 %v10676_v40  ;;  %v10757_v39 = vld [vmem:[%s15142_s1 + $0x1124] ss:$16 sps:$4 sm:$0xff]   ;;  %v10760_v40 = vld [vmem:[%s15142_s1 + $0x112c] ss:$16 sps:$4 sm:$0xff]  }
 0x1ef   :  { %6942 = vmatpush1.bf16.msra.mxu0 %v10671_v42  ;;  %7790 = vmatpush1.bf16.msra.mxu1 %v10674_v44  ;;  %v10755_v42 = vld [vmem:[%s15142_s1 + $0x1120] ss:$16 sps:$4 sm:$0xff]   ;;  %v10758_v44 = vld [vmem:[%s15142_s1 + $0x1128] ss:$16 sps:$4 sm:$0xff]  }
 0x1f0   :  { %6943 = vmatprep.subr.bf16.mxu0 %v10679_v41  ;;  %7791 = vmatprep.subr.bf16.mxu1 %v10682_v43  ;;  %v10763_v41 = vld [vmem:[%s15142_s1 + $0x1144] ss:$16 sps:$4 sm:$0xff]   ;;  %v10766_v43 = vld [vmem:[%s15142_s1 + $0x114c] ss:$16 sps:$4 sm:$0xff]  }
 0x1f3   :  { %6944 = vmatpush1.bf16.msra.mxu0 %v10677_v45  ;;  %7792 = vmatpush1.bf16.msra.mxu1 %v10680_v46  ;;  %v10761_v45 = vld [vmem:[%s15142_s1 + $0x1140] ss:$16 sps:$4 sm:$0xff]   ;;  %v10764_v46 = vld [vmem:[%s15142_s1 + $0x1148] ss:$16 sps:$4 sm:$0xff]  }
 0x1f4   :  { %6945 = vmatprep.subr.bf16.mxu0 %v10685_v47  ;;  %7793 = vmatprep.subr.bf16.mxu1 %v10688_v48  ;;  %v10769_v47 = vld [vmem:[%s15142_s1 + $0x1164] ss:$16 sps:$4 sm:$0xff]   ;;  %v10772_v48 = vld [vmem:[%s15142_s1 + $0x116c] ss:$16 sps:$4 sm:$0xff]  }
 0x1f7   :  { %6946 = vmatpush1.bf16.msra.mxu0 %v10683_v51  ;;  %7794 = vmatpush1.bf16.msra.mxu1 %v10686_v52  ;;  %v10767_v51 = vld [vmem:[%s15142_s1 + $0x1160] ss:$16 sps:$4 sm:$0xff]   ;;  %v10770_v52 = vld [vmem:[%s15142_s1 + $0x1168] ss:$16 sps:$4 sm:$0xff]  }
 0x1f8   :  { %6947 = vmatprep.subr.bf16.mxu0 %v10691_v49  ;;  %7795 = vmatprep.subr.bf16.mxu1 %v10694_v50  ;;  %v10775_v49 = vld [vmem:[%s15142_s1 + $0x1184] ss:$16 sps:$4 sm:$0xff]   ;;  %v10778_v50 = vld [vmem:[%s15142_s1 + $0x118c] ss:$16 sps:$4 sm:$0xff]  }
 0x1fb   :  { %6948 = vmatpush1.bf16.msra.mxu0 %v10689_v53  ;;  %7796 = vmatpush1.bf16.msra.mxu1 %v10692_v54  ;;  %v10773_v53 = vld [vmem:[%s15142_s1 + $0x1180] ss:$16 sps:$4 sm:$0xff]   ;;  %v10776_v54 = vld [vmem:[%s15142_s1 + $0x1188] ss:$16 sps:$4 sm:$0xff]  }
 0x1fc   :  { %6949 = vmatprep.subr.bf16.mxu0 %v10697_v55  ;;  %7797 = vmatprep.subr.bf16.mxu1 %v10700_v56  ;;  %v10781_v55 = vld [vmem:[%s15142_s1 + $0x11a4] ss:$16 sps:$4 sm:$0xff]   ;;  %v10784_v56 = vld [vmem:[%s15142_s1 + $0x11ac] ss:$16 sps:$4 sm:$0xff]  }
 0x1ff   :  { %6950 = vmatpush1.bf16.msra.mxu0 %v10695_v59  ;;  %7798 = vmatpush1.bf16.msra.mxu1 %v10698_v60  ;;  %v10779_v59 = vld [vmem:[%s15142_s1 + $0x11a0] ss:$16 sps:$4 sm:$0xff]   ;;  %v10782_v60 = vld [vmem:[%s15142_s1 + $0x11a8] ss:$16 sps:$4 sm:$0xff]  }
 0x200   :  { %6972 = vmatprep.subr.bf16.mxu0 %v10703_v57  ;;  %7820 = vmatprep.subr.bf16.mxu1 %v10706_v58  ;;  %v10787_v57 = vld [vmem:[%s15142_s1 + $0x11c4] ss:$16 sps:$4 sm:$0xff]   ;;  %v10790_v58 = vld [vmem:[%s15142_s1 + $0x11cc] ss:$16 sps:$4 sm:$0xff]  }
 0x202   :  { %6952 = vmatmul.mubr.bf16.vlgmr.msra.gmra.mrb[0].mxu0 %v8619_v63  ;;  %7800 = vmatmul.mubr.bf16.vlgmr.msra.gmra.mrb[0].mxu1 %v8619_v63  ;;  %v10793_v63 = vld [vmem:[%s15142_s1 + $0x11e4] ss:$16 sps:$4 sm:$0xff]  }
 0x203   :  { %6973 = vmatpush1.bf16.msra.mxu0 %v10701_v0  ;;  %7821 = vmatpush1.bf16.msra.mxu1 %v10704_v3  ;;  %v10796_v0 = vld [vmem:[%s15142_s1 + $0x11ec] ss:$16 sps:$4 sm:$0xff]   ;;  %v10791_v3 = vld [vmem:[%s15142_s1 + $0x11e0] ss:$16 sps:$4 sm:$0xff]  }
 0x204   :  { %6974 = vmatprep.subr.bf16.mxu0 %v10709_v4  ;;  %7822 = vmatprep.subr.bf16.mxu1 %v10712_v1  ;;  %v10794_v4 = vld [vmem:[%s15142_s1 + $0x11e8] ss:$16 sps:$4 sm:$0xff]   ;;  %v10799_v1 = vld [vmem:[%s15142_s1 + $0x1204] ss:$16 sps:$4 sm:$0xff]  }
 0x205   :  { %6961 = vmatprep.mubr.bf16.mxu0 %v8652_v6  ;;  %7809 = vmatprep.mubr.bf16.mxu1 %v8652_v6  ;;  %v76_v6 = vld [vmem:[%s15143_s0 + $0x1c0] sm:$0xff] }
 0x207   :  { %6975 = vmatpush1.bf16.msra.mxu0 %v10707_v2  ;;  %7823 = vmatpush1.bf16.msra.mxu1 %v10710_v5  ;;  %v10802_v2 = vld [vmem:[%s15142_s1 + $0x120c] ss:$16 sps:$4 sm:$0xff]   ;;  %v60_v5 = vld [vmem:[%s15143_s0 + $0x140] sm:$0xff] }
 0x208   :  { %6976 = vmatprep.subr.bf16.mxu0 %v10715_v7  ;;  %7824 = vmatprep.subr.bf16.mxu1 %v10718_v8  ;;  %v8621_v7 = vcombine.low %v13236_v9, %v13241_v10  ;;  %v10797_v8 = vld [vmem:[%s15142_s1 + $0x1200] ss:$16 sps:$4 sm:$0xff]   ;;  %v10808_v9 = vld [vmem:[%s15142_s1 + $0x122c] ss:$16 sps:$4 sm:$0xff]  }
 0x209   :  { %v10803_v10 = vld [vmem:[%s15142_s1 + $0x1220] ss:$16 sps:$4 sm:$0xff]  }
 0x20a   :  { %6962 = vmatmul.mubr.bf16.gmra.mrb[4].mxu0 %v8651_v11  ;;  %7810 = vmatmul.mubr.bf16.gmra.mrb[4].mxu1 %v8651_v11  ;;  %v10800_v11 = vld [vmem:[%s15142_s1 + $0x1208] ss:$16 sps:$4 sm:$0xff]  }
 0x20b   :  { %6977 = vmatpush1.bf16.msra.mxu0 %v10713_v12  ;;  %7825 = vmatpush1.bf16.msra.mxu1 %v10716_v13  ;;  %v10805_v12 = vld [vmem:[%s15142_s1 + $0x1224] ss:$16 sps:$4 sm:$0xff]   ;;  %v10806_v13 = vld [vmem:[%s15142_s1 + $0x1228] ss:$16 sps:$4 sm:$0xff]  }
 0x20c   :  { %6978 = vmatprep.subr.bf16.mxu0 %v10721_v14  ;;  %7826 = vmatprep.subr.bf16.mxu1 %v10724_v15  ;;  %v8654_v14 = vcombine.high %v60_v5, %v76_v6  ;;  %v10811_v15 = vld [vmem:[%s15142_s1 + $0x1244] ss:$16 sps:$4 sm:$0xff]  }
 0x20d   :  { %7004 = vmatprep.mubr.bf16.mxu0 %v8622_v16  ;;  %7852 = vmatprep.mubr.bf16.mxu1 %v8622_v16  ;;  %v10814_v16 = vld [vmem:[%s15142_s1 + $0x124c] ss:$16 sps:$4 sm:$0xff]  }
 0x20f   :  { %6979 = vmatpush1.bf16.msra.mxu0 %v10719_v17  ;;  %7827 = vmatpush1.bf16.msra.mxu1 %v10722_v18  ;;  %v13448_v17 = vld [vmem:[%s15143_s0 + $0x48] sm:$0xff] }
 0x210   :  { %6980 = vmatprep.subr.bf16.mxu0 %v10727_v19  ;;  %7828 = vmatprep.subr.bf16.mxu1 %v10730_v20  ;;  %v13453_v18 = vld [vmem:[%s15143_s0 + $0xc8] sm:$0xff]  ;;  %v8653_v19 = vcombine.low %v60_v5, %v76_v6  ;;  %v10809_v20 = vld [vmem:[%s15142_s1 + $0x1240] ss:$16 sps:$4 sm:$0xff]  }
 0x211   :  { %v10881_v5 = vld [vmem:[%s15142_s1 + $0x13c0] ss:$16 sps:$4 sm:$0xff]   ;;  %v10884_v6 = vld [vmem:[%s15142_s1 + $0x13c8] ss:$16 sps:$4 sm:$0xff]  }
 0x213   :  { %6981 = vmatpush1.bf16.msra.mxu0 %v10725_v21  ;;  %7829 = vmatpush1.bf16.msra.mxu1 %v10728_v22  ;;  %v10812_v21 = vld [vmem:[%s15142_s1 + $0x1248] ss:$16 sps:$4 sm:$0xff]   ;;  %v10817_v22 = vld [vmem:[%s15142_s1 + $0x1264] ss:$16 sps:$4 sm:$0xff]  }
 0x214   :  { %6982 = vmatprep.subr.bf16.mxu0 %v10733_v23  ;;  %7830 = vmatprep.subr.bf16.mxu1 %v10736_v24  ;;  %v10820_v23 = vld [vmem:[%s15142_s1 + $0x126c] ss:$16 sps:$4 sm:$0xff]   ;;  %v8624_v24 = vcombine.high %v13448_v17, %v13453_v18 }
 0x217   :  { %6983 = vmatpush1.bf16.msra.mxu0 %v10731_v26  ;;  %7831 = vmatpush1.bf16.msra.mxu1 %v10734_v25  ;;  %v10815_v26 = vld [vmem:[%s15142_s1 + $0x1260] ss:$16 sps:$4 sm:$0xff]   ;;  %v10818_v25 = vld [vmem:[%s15142_s1 + $0x1268] ss:$16 sps:$4 sm:$0xff]  }
 0x218   :  { %6984 = vmatprep.subr.bf16.mxu0 %v10739_v27  ;;  %7832 = vmatprep.subr.bf16.mxu1 %v10742_v28  ;;  %v10823_v27 = vld [vmem:[%s15142_s1 + $0x1284] ss:$16 sps:$4 sm:$0xff]   ;;  %v10826_v28 = vld [vmem:[%s15142_s1 + $0x128c] ss:$16 sps:$4 sm:$0xff]  }
 0x21b   :  { %6985 = vmatpush1.bf16.msra.mxu0 %v10737_v29  ;;  %7833 = vmatpush1.bf16.msra.mxu1 %v10740_v30  ;;  %v10821_v29 = vld [vmem:[%s15142_s1 + $0x1280] ss:$16 sps:$4 sm:$0xff]   ;;  %v10824_v30 = vld [vmem:[%s15142_s1 + $0x1288] ss:$16 sps:$4 sm:$0xff]  }
 0x21c   :  { %6986 = vmatprep.subr.bf16.mxu0 %v10745_v31  ;;  %7834 = vmatprep.subr.bf16.mxu1 %v10748_v32  ;;  %v10829_v31 = vld [vmem:[%s15142_s1 + $0x12a4] ss:$16 sps:$4 sm:$0xff]   ;;  %v10832_v32 = vld [vmem:[%s15142_s1 + $0x12ac] ss:$16 sps:$4 sm:$0xff]  }
 0x21f   :  { %6987 = vmatpush1.bf16.msra.mxu0 %v10743_v34  ;;  %7835 = vmatpush1.bf16.msra.mxu1 %v10746_v36  ;;  %v10827_v34 = vld [vmem:[%s15142_s1 + $0x12a0] ss:$16 sps:$4 sm:$0xff]   ;;  %v10830_v36 = vld [vmem:[%s15142_s1 + $0x12a8] ss:$16 sps:$4 sm:$0xff]  }
 0x220   :  { %6988 = vmatprep.subr.bf16.mxu0 %v10751_v33  ;;  %7836 = vmatprep.subr.bf16.mxu1 %v10754_v35  ;;  %v10835_v33 = vld [vmem:[%s15142_s1 + $0x12c4] ss:$16 sps:$4 sm:$0xff]   ;;  %v10838_v35 = vld [vmem:[%s15142_s1 + $0x12cc] ss:$16 sps:$4 sm:$0xff]  }
 0x223   :  { %6989 = vmatpush1.bf16.msra.mxu0 %v10749_v37  ;;  %7837 = vmatpush1.bf16.msra.mxu1 %v10752_v38  ;;  %v10833_v37 = vld [vmem:[%s15142_s1 + $0x12c0] ss:$16 sps:$4 sm:$0xff]   ;;  %v10836_v38 = vld [vmem:[%s15142_s1 + $0x12c8] ss:$16 sps:$4 sm:$0xff]  }
 0x224   :  { %6990 = vmatprep.subr.bf16.mxu0 %v10757_v39  ;;  %7838 = vmatprep.subr.bf16.mxu1 %v10760_v40  ;;  %v10841_v39 = vld [vmem:[%s15142_s1 + $0x12e4] ss:$16 sps:$4 sm:$0xff]   ;;  %v10844_v40 = vld [vmem:[%s15142_s1 + $0x12ec] ss:$16 sps:$4 sm:$0xff]  }
 0x227   :  { %6991 = vmatpush1.bf16.msra.mxu0 %v10755_v42  ;;  %7839 = vmatpush1.bf16.msra.mxu1 %v10758_v44  ;;  %v10839_v42 = vld [vmem:[%s15142_s1 + $0x12e0] ss:$16 sps:$4 sm:$0xff]   ;;  %v10842_v44 = vld [vmem:[%s15142_s1 + $0x12e8] ss:$16 sps:$4 sm:$0xff]  }
 0x228   :  { %6992 = vmatprep.subr.bf16.mxu0 %v10763_v41  ;;  %7840 = vmatprep.subr.bf16.mxu1 %v10766_v43  ;;  %v10847_v41 = vld [vmem:[%s15142_s1 + $0x1304] ss:$16 sps:$4 sm:$0xff]   ;;  %v10850_v43 = vld [vmem:[%s15142_s1 + $0x130c] ss:$16 sps:$4 sm:$0xff]  }
 0x22b   :  { %6993 = vmatpush1.bf16.msra.mxu0 %v10761_v45  ;;  %7841 = vmatpush1.bf16.msra.mxu1 %v10764_v46  ;;  %v10845_v45 = vld [vmem:[%s15142_s1 + $0x1300] ss:$16 sps:$4 sm:$0xff]   ;;  %v10848_v46 = vld [vmem:[%s15142_s1 + $0x1308] ss:$16 sps:$4 sm:$0xff]  }
 0x22c   :  { %6994 = vmatprep.subr.bf16.mxu0 %v10769_v47  ;;  %7842 = vmatprep.subr.bf16.mxu1 %v10772_v48  ;;  %v10853_v47 = vld [vmem:[%s15142_s1 + $0x1324] ss:$16 sps:$4 sm:$0xff]   ;;  %v10856_v48 = vld [vmem:[%s15142_s1 + $0x132c] ss:$16 sps:$4 sm:$0xff]  }
 0x22f   :  { %6995 = vmatpush1.bf16.msra.mxu0 %v10767_v51  ;;  %7843 = vmatpush1.bf16.msra.mxu1 %v10770_v52  ;;  %v10851_v51 = vld [vmem:[%s15142_s1 + $0x1320] ss:$16 sps:$4 sm:$0xff]   ;;  %v10854_v52 = vld [vmem:[%s15142_s1 + $0x1328] ss:$16 sps:$4 sm:$0xff]  }
 0x230   :  { %6996 = vmatprep.subr.bf16.mxu0 %v10775_v49  ;;  %7844 = vmatprep.subr.bf16.mxu1 %v10778_v50  ;;  %v10859_v49 = vld [vmem:[%s15142_s1 + $0x1344] ss:$16 sps:$4 sm:$0xff]   ;;  %v10862_v50 = vld [vmem:[%s15142_s1 + $0x134c] ss:$16 sps:$4 sm:$0xff]  }
 0x233   :  { %6997 = vmatpush1.bf16.msra.mxu0 %v10773_v53  ;;  %7845 = vmatpush1.bf16.msra.mxu1 %v10776_v54  ;;  %v10857_v53 = vld [vmem:[%s15142_s1 + $0x1340] ss:$16 sps:$4 sm:$0xff]   ;;  %v10860_v54 = vld [vmem:[%s15142_s1 + $0x1348] ss:$16 sps:$4 sm:$0xff]  }
 0x234   :  { %6998 = vmatprep.subr.bf16.mxu0 %v10781_v55  ;;  %7846 = vmatprep.subr.bf16.mxu1 %v10784_v56  ;;  %v10865_v55 = vld [vmem:[%s15142_s1 + $0x1364] ss:$16 sps:$4 sm:$0xff]   ;;  %v10868_v56 = vld [vmem:[%s15142_s1 + $0x136c] ss:$16 sps:$4 sm:$0xff]  }
 0x237   :  { %6999 = vmatpush1.bf16.msra.mxu0 %v10779_v59  ;;  %7847 = vmatpush1.bf16.msra.mxu1 %v10782_v60  ;;  %v10863_v59 = vld [vmem:[%s15142_s1 + $0x1360] ss:$16 sps:$4 sm:$0xff]   ;;  %v10866_v60 = vld [vmem:[%s15142_s1 + $0x1368] ss:$16 sps:$4 sm:$0xff]  }
 0x238   :  { %7000 = vmatprep.subr.bf16.mxu0 %v10787_v57  ;;  %7848 = vmatprep.subr.bf16.mxu1 %v10790_v58  ;;  %v10871_v57 = vld [vmem:[%s15142_s1 + $0x1384] ss:$16 sps:$4 sm:$0xff]   ;;  %v10874_v58 = vld [vmem:[%s15142_s1 + $0x138c] ss:$16 sps:$4 sm:$0xff]  }
 0x23b   :  { %7001 = vmatpush1.bf16.msra.mxu0 %v10785_v61  ;;  %7849 = vmatpush1.bf16.msra.mxu1 %v10788_v62  ;;  %v10869_v61 = vld [vmem:[%s15142_s1 + $0x1380] ss:$16 sps:$4 sm:$0xff]   ;;  %v10872_v62 = vld [vmem:[%s15142_s1 + $0x1388] ss:$16 sps:$4 sm:$0xff]  }
 0x23c   :  { %7002 = vmatprep.subr.bf16.mxu0 %v10793_v63  ;;  %7850 = vmatprep.subr.bf16.mxu1 %v10796_v0  ;;  %v10877_v63 = vld [vmem:[%s15142_s1 + $0x13a4] ss:$16 sps:$4 sm:$0xff]   ;;  %v10880_v0 = vld [vmem:[%s15142_s1 + $0x13ac] ss:$16 sps:$4 sm:$0xff]  }
 0x23f   :  { %7003 = vmatpush1.bf16.msra.mxu0 %v10791_v3  ;;  %7851 = vmatpush1.bf16.msra.mxu1 %v10794_v4  ;;  %v10875_v3 = vld [vmem:[%s15142_s1 + $0x13a0] ss:$16 sps:$4 sm:$0xff]   ;;  %v10878_v4 = vld [vmem:[%s15142_s1 + $0x13a8] ss:$16 sps:$4 sm:$0xff]  }
 0x240   :  { %7025 = vmatprep.subr.bf16.mxu0 %v10799_v1  ;;  %7873 = vmatprep.subr.bf16.mxu1 %v10802_v2  ;;  %v10883_v1 = vld [vmem:[%s15142_s1 + $0x13c4] ss:$16 sps:$4 sm:$0xff]   ;;  %v10886_v2 = vld [vmem:[%s15142_s1 + $0x13cc] ss:$16 sps:$4 sm:$0xff]  }
 0x242   :  { %7005 = vmatmul.mubr.bf16.vlgmr.msra.gmra.mrb[0].mxu0 %v8621_v7  ;;  %7853 = vmatmul.mubr.bf16.vlgmr.msra.gmra.mrb[0].mxu1 %v8621_v7  ;;  %v10889_v7 = vld [vmem:[%s15142_s1 + $0x13e4] ss:$16 sps:$4 sm:$0xff]  }
 0x243   :  { %7026 = vmatpush1.bf16.msra.mxu0 %v10797_v8  ;;  %7874 = vmatpush1.bf16.msra.mxu1 %v10800_v11  ;;  %v10892_v8 = vld [vmem:[%s15142_s1 + $0x13ec] ss:$16 sps:$4 sm:$0xff]   ;;  %v10887_v11 = vld [vmem:[%s15142_s1 + $0x13e0] ss:$16 sps:$4 sm:$0xff]  }
 0x244   :  { %7027 = vmatprep.subr.bf16.mxu0 %v10805_v12  ;;  %7875 = vmatprep.subr.bf16.mxu1 %v10808_v9  ;;  %v10890_v12 = vld [vmem:[%s15142_s1 + $0x13e8] ss:$16 sps:$4 sm:$0xff]   ;;  %v10895_v9 = vld [vmem:[%s15142_s1 + $0x1404] ss:$16 sps:$4 sm:$0xff]  }
 0x245   :  { %7014 = vmatprep.mubr.bf16.mxu0 %v8654_v14  ;;  %7862 = vmatprep.mubr.bf16.mxu1 %v8654_v14  ;;  %v61_v14 = vld [vmem:[%s15143_s0 + $0x148] sm:$0xff] }
 0x247   :  { %7028 = vmatpush1.bf16.msra.mxu0 %v10803_v10  ;;  %7876 = vmatpush1.bf16.msra.mxu1 %v10806_v13  ;;  %v10898_v10 = vld [vmem:[%s15142_s1 + $0x140c] ss:$16 sps:$4 sm:$0xff]   ;;  %v8623_v13 = vcombine.low %v13448_v17, %v13453_v18  ;;  %v10901_v17 = vld [vmem:[%s15142_s1 + $0x1424] ss:$16 sps:$4 sm:$0xff]  }
 0x248   :  { %7029 = vmatprep.subr.bf16.mxu0 %v10811_v15  ;;  %7877 = vmatprep.subr.bf16.mxu1 %v10814_v16  ;;  %v77_v15 = vld [vmem:[%s15143_s0 + $0x1c8] sm:$0xff]  ;;  %v10893_v16 = vld [vmem:[%s15142_s1 + $0x1400] ss:$16 sps:$4 sm:$0xff]  }
 0x249   :  { %v10904_v18 = vld [vmem:[%s15142_s1 + $0x142c] ss:$16 sps:$4 sm:$0xff]  }
 0x24a   :  { %7015 = vmatmul.mubr.bf16.gmra.mrb[4].mxu0 %v8653_v19  ;;  %7863 = vmatmul.mubr.bf16.gmra.mrb[4].mxu1 %v8653_v19  ;;  %v10896_v19 = vld [vmem:[%s15142_s1 + $0x1408] ss:$16 sps:$4 sm:$0xff]  }
 0x24b   :  { %7030 = vmatpush1.bf16.msra.mxu0 %v10809_v20  ;;  %7878 = vmatpush1.bf16.msra.mxu1 %v10812_v21  ;;  %v8656_v20 = vcombine.high %v61_v14, %v77_v15  ;;  %v10899_v21 = vld [vmem:[%s15142_s1 + $0x1420] ss:$16 sps:$4 sm:$0xff]  }
 0x24c   :  { %7031 = vmatprep.subr.bf16.mxu0 %v10817_v22  ;;  %7879 = vmatprep.subr.bf16.mxu1 %v10820_v23  ;;  %v10902_v22 = vld [vmem:[%s15142_s1 + $0x1428] ss:$16 sps:$4 sm:$0xff]   ;;  %v10907_v23 = vld [vmem:[%s15142_s1 + $0x1444] ss:$16 sps:$4 sm:$0xff]  }
 0x24d   :  { %7057 = vmatprep.mubr.bf16.mxu0 %v8624_v24  ;;  %7905 = vmatprep.mubr.bf16.mxu1 %v8624_v24  ;;  %v10910_v24 = vld [vmem:[%s15142_s1 + $0x144c] ss:$16 sps:$4 sm:$0xff]  }
 0x24f   :  { %7032 = vmatpush1.bf16.msra.mxu0 %v10815_v26  ;;  %7880 = vmatpush1.bf16.msra.mxu1 %v10818_v25  ;;  %v8655_v26 = vcombine.low %v61_v14, %v77_v15  ;;  %v13660_v25 = vld [vmem:[%s15143_s0 + $0x50] sm:$0xff]  ;;  %v10980_v14 = vld [vmem:[%s15142_s1 + $0x15c8] ss:$16 sps:$4 sm:$0xff]  }
 0x250   :  { %7033 = vmatprep.subr.bf16.mxu0 %v10823_v27  ;;  %7881 = vmatprep.subr.bf16.mxu1 %v10826_v28  ;;  %v13665_v27 = vld [vmem:[%s15143_s0 + $0xd0] sm:$0xff] }
 0x251   :  { %v10905_v28 = vld [vmem:[%s15142_s1 + $0x1440] ss:$16 sps:$4 sm:$0xff]   ;;  %v10985_v15 = vld [vmem:[%s15142_s1 + $0x15e4] ss:$16 sps:$4 sm:$0xff]  }
 0x253   :  { %7034 = vmatpush1.bf16.msra.mxu0 %v10821_v29  ;;  %7882 = vmatpush1.bf16.msra.mxu1 %v10824_v30  ;;  %v10908_v29 = vld [vmem:[%s15142_s1 + $0x1448] ss:$16 sps:$4 sm:$0xff]   ;;  %v10913_v30 = vld [vmem:[%s15142_s1 + $0x1464] ss:$16 sps:$4 sm:$0xff]  }
 0x254   :  { %7035 = vmatprep.subr.bf16.mxu0 %v10829_v31  ;;  %7883 = vmatprep.subr.bf16.mxu1 %v10832_v32  ;;  %v10916_v31 = vld [vmem:[%s15142_s1 + $0x146c] ss:$16 sps:$4 sm:$0xff]   ;;  %v8626_v32 = vcombine.high %v13660_v25, %v13665_v27 }
 0x257   :  { %7036 = vmatpush1.bf16.msra.mxu0 %v10827_v34  ;;  %7884 = vmatpush1.bf16.msra.mxu1 %v10830_v36  ;;  %v10911_v34 = vld [vmem:[%s15142_s1 + $0x1460] ss:$16 sps:$4 sm:$0xff]   ;;  %v10914_v36 = vld [vmem:[%s15142_s1 + $0x1468] ss:$16 sps:$4 sm:$0xff]  }
 0x258   :  { %7037 = vmatprep.subr.bf16.mxu0 %v10835_v33  ;;  %7885 = vmatprep.subr.bf16.mxu1 %v10838_v35  ;;  %v10919_v33 = vld [vmem:[%s15142_s1 + $0x1484] ss:$16 sps:$4 sm:$0xff]   ;;  %v10922_v35 = vld [vmem:[%s15142_s1 + $0x148c] ss:$16 sps:$4 sm:$0xff]  }
 0x25b   :  { %7038 = vmatpush1.bf16.msra.mxu0 %v10833_v37  ;;  %7886 = vmatpush1.bf16.msra.mxu1 %v10836_v38  ;;  %v10917_v37 = vld [vmem:[%s15142_s1 + $0x1480] ss:$16 sps:$4 sm:$0xff]   ;;  %v10920_v38 = vld [vmem:[%s15142_s1 + $0x1488] ss:$16 sps:$4 sm:$0xff]  }
 0x25c   :  { %7039 = vmatprep.subr.bf16.mxu0 %v10841_v39  ;;  %7887 = vmatprep.subr.bf16.mxu1 %v10844_v40  ;;  %v10925_v39 = vld [vmem:[%s15142_s1 + $0x14a4] ss:$16 sps:$4 sm:$0xff]   ;;  %v10928_v40 = vld [vmem:[%s15142_s1 + $0x14ac] ss:$16 sps:$4 sm:$0xff]  }
 0x25f   :  { %7040 = vmatpush1.bf16.msra.mxu0 %v10839_v42  ;;  %7888 = vmatpush1.bf16.msra.mxu1 %v10842_v44  ;;  %v10923_v42 = vld [vmem:[%s15142_s1 + $0x14a0] ss:$16 sps:$4 sm:$0xff]   ;;  %v10926_v44 = vld [vmem:[%s15142_s1 + $0x14a8] ss:$16 sps:$4 sm:$0xff]  }
 0x260   :  { %7041 = vmatprep.subr.bf16.mxu0 %v10847_v41  ;;  %7889 = vmatprep.subr.bf16.mxu1 %v10850_v43  ;;  %v10931_v41 = vld [vmem:[%s15142_s1 + $0x14c4] ss:$16 sps:$4 sm:$0xff]   ;;  %v10934_v43 = vld [vmem:[%s15142_s1 + $0x14cc] ss:$16 sps:$4 sm:$0xff]  }
 0x263   :  { %7042 = vmatpush1.bf16.msra.mxu0 %v10845_v45  ;;  %7890 = vmatpush1.bf16.msra.mxu1 %v10848_v46  ;;  %v10929_v45 = vld [vmem:[%s15142_s1 + $0x14c0] ss:$16 sps:$4 sm:$0xff]   ;;  %v10932_v46 = vld [vmem:[%s15142_s1 + $0x14c8] ss:$16 sps:$4 sm:$0xff]  }
 0x264   :  { %7043 = vmatprep.subr.bf16.mxu0 %v10853_v47  ;;  %7891 = vmatprep.subr.bf16.mxu1 %v10856_v48  ;;  %v10937_v47 = vld [vmem:[%s15142_s1 + $0x14e4] ss:$16 sps:$4 sm:$0xff]   ;;  %v10940_v48 = vld [vmem:[%s15142_s1 + $0x14ec] ss:$16 sps:$4 sm:$0xff]  }
 0x267   :  { %7044 = vmatpush1.bf16.msra.mxu0 %v10851_v51  ;;  %7892 = vmatpush1.bf16.msra.mxu1 %v10854_v52  ;;  %v10935_v51 = vld [vmem:[%s15142_s1 + $0x14e0] ss:$16 sps:$4 sm:$0xff]   ;;  %v10938_v52 = vld [vmem:[%s15142_s1 + $0x14e8] ss:$16 sps:$4 sm:$0xff]  }
 0x268   :  { %7045 = vmatprep.subr.bf16.mxu0 %v10859_v49  ;;  %7893 = vmatprep.subr.bf16.mxu1 %v10862_v50  ;;  %v10943_v49 = vld [vmem:[%s15142_s1 + $0x1504] ss:$16 sps:$4 sm:$0xff]   ;;  %v10946_v50 = vld [vmem:[%s15142_s1 + $0x150c] ss:$16 sps:$4 sm:$0xff]  }
 0x26b   :  { %7046 = vmatpush1.bf16.msra.mxu0 %v10857_v53  ;;  %7894 = vmatpush1.bf16.msra.mxu1 %v10860_v54  ;;  %v10941_v53 = vld [vmem:[%s15142_s1 + $0x1500] ss:$16 sps:$4 sm:$0xff]   ;;  %v10944_v54 = vld [vmem:[%s15142_s1 + $0x1508] ss:$16 sps:$4 sm:$0xff]  }
 0x26c   :  { %7047 = vmatprep.subr.bf16.mxu0 %v10865_v55  ;;  %7895 = vmatprep.subr.bf16.mxu1 %v10868_v56  ;;  %v10949_v55 = vld [vmem:[%s15142_s1 + $0x1524] ss:$16 sps:$4 sm:$0xff]   ;;  %v10952_v56 = vld [vmem:[%s15142_s1 + $0x152c] ss:$16 sps:$4 sm:$0xff]  }
 0x26f   :  { %7048 = vmatpush1.bf16.msra.mxu0 %v10863_v59  ;;  %7896 = vmatpush1.bf16.msra.mxu1 %v10866_v60  ;;  %v10947_v59 = vld [vmem:[%s15142_s1 + $0x1520] ss:$16 sps:$4 sm:$0xff]   ;;  %v10950_v60 = vld [vmem:[%s15142_s1 + $0x1528] ss:$16 sps:$4 sm:$0xff]  }
 0x270   :  { %7049 = vmatprep.subr.bf16.mxu0 %v10871_v57  ;;  %7897 = vmatprep.subr.bf16.mxu1 %v10874_v58  ;;  %v10955_v57 = vld [vmem:[%s15142_s1 + $0x1544] ss:$16 sps:$4 sm:$0xff]   ;;  %v10958_v58 = vld [vmem:[%s15142_s1 + $0x154c] ss:$16 sps:$4 sm:$0xff]  }
 0x273   :  { %7050 = vmatpush1.bf16.msra.mxu0 %v10869_v61  ;;  %7898 = vmatpush1.bf16.msra.mxu1 %v10872_v62  ;;  %v10953_v61 = vld [vmem:[%s15142_s1 + $0x1540] ss:$16 sps:$4 sm:$0xff]   ;;  %v10956_v62 = vld [vmem:[%s15142_s1 + $0x1548] ss:$16 sps:$4 sm:$0xff]  }
 0x274   :  { %7051 = vmatprep.subr.bf16.mxu0 %v10877_v63  ;;  %7899 = vmatprep.subr.bf16.mxu1 %v10880_v0  ;;  %v10961_v63 = vld [vmem:[%s15142_s1 + $0x1564] ss:$16 sps:$4 sm:$0xff]   ;;  %v10964_v0 = vld [vmem:[%s15142_s1 + $0x156c] ss:$16 sps:$4 sm:$0xff]  }
 0x277   :  { %7052 = vmatpush1.bf16.msra.mxu0 %v10875_v3  ;;  %7900 = vmatpush1.bf16.msra.mxu1 %v10878_v4  ;;  %v10959_v3 = vld [vmem:[%s15142_s1 + $0x1560] ss:$16 sps:$4 sm:$0xff]   ;;  %v10962_v4 = vld [vmem:[%s15142_s1 + $0x1568] ss:$16 sps:$4 sm:$0xff]  }
 0x278   :  { %7053 = vmatprep.subr.bf16.mxu0 %v10883_v1  ;;  %7901 = vmatprep.subr.bf16.mxu1 %v10886_v2  ;;  %v10967_v1 = vld [vmem:[%s15142_s1 + $0x1584] ss:$16 sps:$4 sm:$0xff]   ;;  %v10970_v2 = vld [vmem:[%s15142_s1 + $0x158c] ss:$16 sps:$4 sm:$0xff]  }
 0x27b   :  { %7054 = vmatpush1.bf16.msra.mxu0 %v10881_v5  ;;  %7902 = vmatpush1.bf16.msra.mxu1 %v10884_v6  ;;  %v10965_v5 = vld [vmem:[%s15142_s1 + $0x1580] ss:$16 sps:$4 sm:$0xff]   ;;  %v10968_v6 = vld [vmem:[%s15142_s1 + $0x1588] ss:$16 sps:$4 sm:$0xff]  }
 0x27c   :  { %7055 = vmatprep.subr.bf16.mxu0 %v10889_v7  ;;  %7903 = vmatprep.subr.bf16.mxu1 %v10892_v8  ;;  %v10973_v7 = vld [vmem:[%s15142_s1 + $0x15a4] ss:$16 sps:$4 sm:$0xff]   ;;  %v10976_v8 = vld [vmem:[%s15142_s1 + $0x15ac] ss:$16 sps:$4 sm:$0xff]  }
 0x27f   :  { %7056 = vmatpush1.bf16.msra.mxu0 %v10887_v11  ;;  %7904 = vmatpush1.bf16.msra.mxu1 %v10890_v12  ;;  %v10971_v11 = vld [vmem:[%s15142_s1 + $0x15a0] ss:$16 sps:$4 sm:$0xff]   ;;  %v10974_v12 = vld [vmem:[%s15142_s1 + $0x15a8] ss:$16 sps:$4 sm:$0xff]  }
 0x280   :  { %7078 = vmatprep.subr.bf16.mxu0 %v10895_v9  ;;  %7926 = vmatprep.subr.bf16.mxu1 %v10898_v10  ;;  %v10979_v9 = vld [vmem:[%s15142_s1 + $0x15c4] ss:$16 sps:$4 sm:$0xff]   ;;  %v10982_v10 = vld [vmem:[%s15142_s1 + $0x15cc] ss:$16 sps:$4 sm:$0xff]  }
 0x282   :  { %7058 = vmatmul.mubr.bf16.vlgmr.msra.gmra.mrb[0].mxu0 %v8623_v13  ;;  %7906 = vmatmul.mubr.bf16.vlgmr.msra.gmra.mrb[0].mxu1 %v8623_v13  ;;  %v10977_v13 = vld [vmem:[%s15142_s1 + $0x15c0] ss:$16 sps:$4 sm:$0xff]  }
 0x283   :  { %7079 = vmatpush1.bf16.msra.mxu0 %v10893_v16  ;;  %7927 = vmatpush1.bf16.msra.mxu1 %v10896_v19  ;;  %v10988_v16 = vld [vmem:[%s15142_s1 + $0x15ec] ss:$16 sps:$4 sm:$0xff]   ;;  %v10983_v19 = vld [vmem:[%s15142_s1 + $0x15e0] ss:$16 sps:$4 sm:$0xff]  }
 0x284   :  { %7080 = vmatprep.subr.bf16.mxu0 %v10901_v17  ;;  %7928 = vmatprep.subr.bf16.mxu1 %v10904_v18  ;;  %v10986_v17 = vld [vmem:[%s15142_s1 + $0x15e8] ss:$16 sps:$4 sm:$0xff]   ;;  %v10991_v18 = vld [vmem:[%s15142_s1 + $0x1604] ss:$16 sps:$4 sm:$0xff]  }
 0x285   :  { %7067 = vmatprep.mubr.bf16.mxu0 %v8656_v20  ;;  %7915 = vmatprep.mubr.bf16.mxu1 %v8656_v20  ;;  %v10994_v20 = vld [vmem:[%s15142_s1 + $0x160c] ss:$16 sps:$4 sm:$0xff]  }
 0x287   :  { %7081 = vmatpush1.bf16.msra.mxu0 %v10899_v21  ;;  %7929 = vmatpush1.bf16.msra.mxu1 %v10902_v22  ;;  %v8625_v21 = vcombine.low %v13660_v25, %v13665_v27  ;;  %v62_v22 = vld [vmem:[%s15143_s0 + $0x150] sm:$0xff]  ;;  %v11000_v27 = vld [vmem:[%s15142_s1 + $0x162c] ss:$16 sps:$4 sm:$0xff]  }
 0x288   :  { %7082 = vmatprep.subr.bf16.mxu0 %v10907_v23  ;;  %7930 = vmatprep.subr.bf16.mxu1 %v10910_v24  ;;  %v78_v23 = vld [vmem:[%s15143_s0 + $0x1d0] sm:$0xff] }
 0x289   :  { %v10989_v24 = vld [vmem:[%s15142_s1 + $0x1600] ss:$16 sps:$4 sm:$0xff]   ;;  %v10997_v25 = vld [vmem:[%s15142_s1 + $0x1624] ss:$16 sps:$4 sm:$0xff]  }
 0x28a   :  { %7068 = vmatmul.mubr.bf16.gmra.mrb[4].mxu0 %v8655_v26  ;;  %7916 = vmatmul.mubr.bf16.gmra.mrb[4].mxu1 %v8655_v26  ;;  %v10992_v26 = vld [vmem:[%s15142_s1 + $0x1608] ss:$16 sps:$4 sm:$0xff]  }
 0x28b   :  { %7083 = vmatpush1.bf16.msra.mxu0 %v10905_v28  ;;  %7931 = vmatpush1.bf16.msra.mxu1 %v10908_v29  ;;  %v8658_v28 = vcombine.high %v62_v22, %v78_v23  ;;  %v10995_v29 = vld [vmem:[%s15142_s1 + $0x1620] ss:$16 sps:$4 sm:$0xff]  }
 0x28c   :  { %7084 = vmatprep.subr.bf16.mxu0 %v10913_v30  ;;  %7932 = vmatprep.subr.bf16.mxu1 %v10916_v31  ;;  %v10998_v30 = vld [vmem:[%s15142_s1 + $0x1628] ss:$16 sps:$4 sm:$0xff]   ;;  %v11003_v31 = vld [vmem:[%s15142_s1 + $0x1644] ss:$16 sps:$4 sm:$0xff]  }
 0x28d   :  { %7110 = vmatprep.mubr.bf16.mxu0 %v8626_v32  ;;  %7958 = vmatprep.mubr.bf16.mxu1 %v8626_v32  ;;  %v11006_v32 = vld [vmem:[%s15142_s1 + $0x164c] ss:$16 sps:$4 sm:$0xff]  }
 0x28f   :  { %7085 = vmatpush1.bf16.msra.mxu0 %v10911_v34  ;;  %7933 = vmatpush1.bf16.msra.mxu1 %v10914_v36  ;;  %v8657_v34 = vcombine.low %v62_v22, %v78_v23  ;;  %v13872_v36 = vld [vmem:[%s15143_s0 + $0x58] sm:$0xff]  ;;  %v11081_v23 = vld [vmem:[%s15142_s1 + $0x17e4] ss:$16 sps:$4 sm:$0xff]  }
 0x290   :  { %7086 = vmatprep.subr.bf16.mxu0 %v10919_v33  ;;  %7934 = vmatprep.subr.bf16.mxu1 %v10922_v35  ;;  %v13877_v33 = vld [vmem:[%s15143_s0 + $0xd8] sm:$0xff]  ;;  %v11001_v35 = vld [vmem:[%s15142_s1 + $0x1640] ss:$16 sps:$4 sm:$0xff]  }
 0x291   :  { %v11076_v22 = vld [vmem:[%s15142_s1 + $0x17c8] ss:$16 sps:$4 sm:$0xff]  }
 0x293   :  { %7087 = vmatpush1.bf16.msra.mxu0 %v10917_v37  ;;  %7935 = vmatpush1.bf16.msra.mxu1 %v10920_v38  ;;  %v11004_v37 = vld [vmem:[%s15142_s1 + $0x1648] ss:$16 sps:$4 sm:$0xff]   ;;  %v11009_v38 = vld [vmem:[%s15142_s1 + $0x1664] ss:$16 sps:$4 sm:$0xff]  }
 0x294   :  { %7088 = vmatprep.subr.bf16.mxu0 %v10925_v39  ;;  %7936 = vmatprep.subr.bf16.mxu1 %v10928_v40  ;;  %v11012_v39 = vld [vmem:[%s15142_s1 + $0x166c] ss:$16 sps:$4 sm:$0xff]   ;;  %v8628_v40 = vcombine.high %v13872_v36, %v13877_v33 }
 0x297   :  { %7089 = vmatpush1.bf16.msra.mxu0 %v10923_v42  ;;  %7937 = vmatpush1.bf16.msra.mxu1 %v10926_v44  ;;  %v11007_v42 = vld [vmem:[%s15142_s1 + $0x1660] ss:$16 sps:$4 sm:$0xff]   ;;  %v11010_v44 = vld [vmem:[%s15142_s1 + $0x1668] ss:$16 sps:$4 sm:$0xff]  }
 0x298   :  { %7090 = vmatprep.subr.bf16.mxu0 %v10931_v41  ;;  %7938 = vmatprep.subr.bf16.mxu1 %v10934_v43  ;;  %v11015_v41 = vld [vmem:[%s15142_s1 + $0x1684] ss:$16 sps:$4 sm:$0xff]   ;;  %v11018_v43 = vld [vmem:[%s15142_s1 + $0x168c] ss:$16 sps:$4 sm:$0xff]  }
 0x29b   :  { %7091 = vmatpush1.bf16.msra.mxu0 %v10929_v45  ;;  %7939 = vmatpush1.bf16.msra.mxu1 %v10932_v46  ;;  %v11013_v45 = vld [vmem:[%s15142_s1 + $0x1680] ss:$16 sps:$4 sm:$0xff]   ;;  %v11016_v46 = vld [vmem:[%s15142_s1 + $0x1688] ss:$16 sps:$4 sm:$0xff]  }
 0x29c   :  { %7092 = vmatprep.subr.bf16.mxu0 %v10937_v47  ;;  %7940 = vmatprep.subr.bf16.mxu1 %v10940_v48  ;;  %v11021_v47 = vld [vmem:[%s15142_s1 + $0x16a4] ss:$16 sps:$4 sm:$0xff]   ;;  %v11024_v48 = vld [vmem:[%s15142_s1 + $0x16ac] ss:$16 sps:$4 sm:$0xff]  }
 0x29f   :  { %7093 = vmatpush1.bf16.msra.mxu0 %v10935_v51  ;;  %7941 = vmatpush1.bf16.msra.mxu1 %v10938_v52  ;;  %v11019_v51 = vld [vmem:[%s15142_s1 + $0x16a0] ss:$16 sps:$4 sm:$0xff]   ;;  %v11022_v52 = vld [vmem:[%s15142_s1 + $0x16a8] ss:$16 sps:$4 sm:$0xff]  }
 0x2a0   :  { %7094 = vmatprep.subr.bf16.mxu0 %v10943_v49  ;;  %7942 = vmatprep.subr.bf16.mxu1 %v10946_v50  ;;  %v11027_v49 = vld [vmem:[%s15142_s1 + $0x16c4] ss:$16 sps:$4 sm:$0xff]   ;;  %v11030_v50 = vld [vmem:[%s15142_s1 + $0x16cc] ss:$16 sps:$4 sm:$0xff]  }
 0x2a3   :  { %7095 = vmatpush1.bf16.msra.mxu0 %v10941_v53  ;;  %7943 = vmatpush1.bf16.msra.mxu1 %v10944_v54  ;;  %v11025_v53 = vld [vmem:[%s15142_s1 + $0x16c0] ss:$16 sps:$4 sm:$0xff]   ;;  %v11028_v54 = vld [vmem:[%s15142_s1 + $0x16c8] ss:$16 sps:$4 sm:$0xff]  }
 0x2a4   :  { %7096 = vmatprep.subr.bf16.mxu0 %v10949_v55  ;;  %7944 = vmatprep.subr.bf16.mxu1 %v10952_v56  ;;  %v11033_v55 = vld [vmem:[%s15142_s1 + $0x16e4] ss:$16 sps:$4 sm:$0xff]   ;;  %v11036_v56 = vld [vmem:[%s15142_s1 + $0x16ec] ss:$16 sps:$4 sm:$0xff]  }
 0x2a7   :  { %7097 = vmatpush1.bf16.msra.mxu0 %v10947_v59  ;;  %7945 = vmatpush1.bf16.msra.mxu1 %v10950_v60  ;;  %v11031_v59 = vld [vmem:[%s15142_s1 + $0x16e0] ss:$16 sps:$4 sm:$0xff]   ;;  %v11034_v60 = vld [vmem:[%s15142_s1 + $0x16e8] ss:$16 sps:$4 sm:$0xff]  }
 0x2a8   :  { %7098 = vmatprep.subr.bf16.mxu0 %v10955_v57  ;;  %7946 = vmatprep.subr.bf16.mxu1 %v10958_v58  ;;  %v11039_v57 = vld [vmem:[%s15142_s1 + $0x1704] ss:$16 sps:$4 sm:$0xff]   ;;  %v11042_v58 = vld [vmem:[%s15142_s1 + $0x170c] ss:$16 sps:$4 sm:$0xff]  }
 0x2ab   :  { %7099 = vmatpush1.bf16.msra.mxu0 %v10953_v61  ;;  %7947 = vmatpush1.bf16.msra.mxu1 %v10956_v62  ;;  %v11037_v61 = vld [vmem:[%s15142_s1 + $0x1700] ss:$16 sps:$4 sm:$0xff]   ;;  %v11040_v62 = vld [vmem:[%s15142_s1 + $0x1708] ss:$16 sps:$4 sm:$0xff]  }
 0x2ac   :  { %7100 = vmatprep.subr.bf16.mxu0 %v10961_v63  ;;  %7948 = vmatprep.subr.bf16.mxu1 %v10964_v0  ;;  %v11045_v63 = vld [vmem:[%s15142_s1 + $0x1724] ss:$16 sps:$4 sm:$0xff]   ;;  %v11048_v0 = vld [vmem:[%s15142_s1 + $0x172c] ss:$16 sps:$4 sm:$0xff]  }
 0x2af   :  { %7101 = vmatpush1.bf16.msra.mxu0 %v10959_v3  ;;  %7949 = vmatpush1.bf16.msra.mxu1 %v10962_v4  ;;  %v11043_v3 = vld [vmem:[%s15142_s1 + $0x1720] ss:$16 sps:$4 sm:$0xff]   ;;  %v11046_v4 = vld [vmem:[%s15142_s1 + $0x1728] ss:$16 sps:$4 sm:$0xff]  }
 0x2b0   :  { %7102 = vmatprep.subr.bf16.mxu0 %v10967_v1  ;;  %7950 = vmatprep.subr.bf16.mxu1 %v10970_v2  ;;  %v11051_v1 = vld [vmem:[%s15142_s1 + $0x1744] ss:$16 sps:$4 sm:$0xff]   ;;  %v11054_v2 = vld [vmem:[%s15142_s1 + $0x174c] ss:$16 sps:$4 sm:$0xff]  }
 0x2b3   :  { %7103 = vmatpush1.bf16.msra.mxu0 %v10965_v5  ;;  %7951 = vmatpush1.bf16.msra.mxu1 %v10968_v6  ;;  %v11049_v5 = vld [vmem:[%s15142_s1 + $0x1740] ss:$16 sps:$4 sm:$0xff]   ;;  %v11052_v6 = vld [vmem:[%s15142_s1 + $0x1748] ss:$16 sps:$4 sm:$0xff]  }
 0x2b4   :  { %7104 = vmatprep.subr.bf16.mxu0 %v10973_v7  ;;  %7952 = vmatprep.subr.bf16.mxu1 %v10976_v8  ;;  %v11057_v7 = vld [vmem:[%s15142_s1 + $0x1764] ss:$16 sps:$4 sm:$0xff]   ;;  %v11060_v8 = vld [vmem:[%s15142_s1 + $0x176c] ss:$16 sps:$4 sm:$0xff]  }
 0x2b7   :  { %7105 = vmatpush1.bf16.msra.mxu0 %v10971_v11  ;;  %7953 = vmatpush1.bf16.msra.mxu1 %v10974_v12  ;;  %v11055_v11 = vld [vmem:[%s15142_s1 + $0x1760] ss:$16 sps:$4 sm:$0xff]   ;;  %v11058_v12 = vld [vmem:[%s15142_s1 + $0x1768] ss:$16 sps:$4 sm:$0xff]  }
 0x2b8   :  { %7106 = vmatprep.subr.bf16.mxu0 %v10979_v9  ;;  %7954 = vmatprep.subr.bf16.mxu1 %v10982_v10  ;;  %v11063_v9 = vld [vmem:[%s15142_s1 + $0x1784] ss:$16 sps:$4 sm:$0xff]   ;;  %v11066_v10 = vld [vmem:[%s15142_s1 + $0x178c] ss:$16 sps:$4 sm:$0xff]  }
 0x2bb   :  { %7107 = vmatpush1.bf16.msra.mxu0 %v10977_v13  ;;  %7955 = vmatpush1.bf16.msra.mxu1 %v10980_v14  ;;  %v11061_v13 = vld [vmem:[%s15142_s1 + $0x1780] ss:$16 sps:$4 sm:$0xff]   ;;  %v11064_v14 = vld [vmem:[%s15142_s1 + $0x1788] ss:$16 sps:$4 sm:$0xff]  }
 0x2bc   :  { %7108 = vmatprep.subr.bf16.mxu0 %v10985_v15  ;;  %7956 = vmatprep.subr.bf16.mxu1 %v10988_v16  ;;  %v11069_v15 = vld [vmem:[%s15142_s1 + $0x17a4] ss:$16 sps:$4 sm:$0xff]   ;;  %v11072_v16 = vld [vmem:[%s15142_s1 + $0x17ac] ss:$16 sps:$4 sm:$0xff]  }
 0x2bf   :  { %7109 = vmatpush1.bf16.msra.mxu0 %v10983_v19  ;;  %7957 = vmatpush1.bf16.msra.mxu1 %v10986_v17  ;;  %v11067_v19 = vld [vmem:[%s15142_s1 + $0x17a0] ss:$16 sps:$4 sm:$0xff]   ;;  %v11070_v17 = vld [vmem:[%s15142_s1 + $0x17a8] ss:$16 sps:$4 sm:$0xff]  }
 0x2c0   :  { %7131 = vmatprep.subr.bf16.mxu0 %v10991_v18  ;;  %7979 = vmatprep.subr.bf16.mxu1 %v10994_v20  ;;  %v11075_v18 = vld [vmem:[%s15142_s1 + $0x17c4] ss:$16 sps:$4 sm:$0xff]   ;;  %v11078_v20 = vld [vmem:[%s15142_s1 + $0x17cc] ss:$16 sps:$4 sm:$0xff]  }
 0x2c2   :  { %7111 = vmatmul.mubr.bf16.vlgmr.msra.gmra.mrb[0].mxu0 %v8625_v21  ;;  %7959 = vmatmul.mubr.bf16.vlgmr.msra.gmra.mrb[0].mxu1 %v8625_v21  ;;  %v11073_v21 = vld [vmem:[%s15142_s1 + $0x17c0] ss:$16 sps:$4 sm:$0xff]  }
 0x2c3   :  { %7132 = vmatpush1.bf16.msra.mxu0 %v10989_v24  ;;  %7980 = vmatpush1.bf16.msra.mxu1 %v10992_v26  ;;  %v11084_v24 = vld [vmem:[%s15142_s1 + $0x17ec] ss:$16 sps:$4 sm:$0xff]   ;;  %v11079_v26 = vld [vmem:[%s15142_s1 + $0x17e0] ss:$16 sps:$4 sm:$0xff]  }
 0x2c4   :  { %7133 = vmatprep.subr.bf16.mxu0 %v10997_v25  ;;  %7981 = vmatprep.subr.bf16.mxu1 %v11000_v27  ;;  %v11082_v25 = vld [vmem:[%s15142_s1 + $0x17e8] ss:$16 sps:$4 sm:$0xff]   ;;  %v11087_v27 = vld [vmem:[%s15142_s1 + $0x1804] ss:$16 sps:$4 sm:$0xff]  }
 0x2c5   :  { %7120 = vmatprep.mubr.bf16.mxu0 %v8658_v28  ;;  %7968 = vmatprep.mubr.bf16.mxu1 %v8658_v28  ;;  %v11090_v28 = vld [vmem:[%s15142_s1 + $0x180c] ss:$16 sps:$4 sm:$0xff]  }
 0x2c7   :  { %7134 = vmatpush1.bf16.msra.mxu0 %v10995_v29  ;;  %7982 = vmatpush1.bf16.msra.mxu1 %v10998_v30  ;;  %v8627_v29 = vcombine.low %v13872_v36, %v13877_v33  ;;  %v63_v30 = vld [vmem:[%s15143_s0 + $0x158] sm:$0xff]  ;;  %v11093_v36 = vld [vmem:[%s15142_s1 + $0x1824] ss:$16 sps:$4 sm:$0xff]  }
 0x2c8   :  { %7135 = vmatprep.subr.bf16.mxu0 %v11003_v31  ;;  %7983 = vmatprep.subr.bf16.mxu1 %v11006_v32  ;;  %v79_v31 = vld [vmem:[%s15143_s0 + $0x1d8] sm:$0xff]  ;;  %v11085_v32 = vld [vmem:[%s15142_s1 + $0x1800] ss:$16 sps:$4 sm:$0xff]  }
 0x2c9   :  { %v11096_v33 = vld [vmem:[%s15142_s1 + $0x182c] ss:$16 sps:$4 sm:$0xff]  }
 0x2ca   :  { %7121 = vmatmul.mubr.bf16.gmra.mrb[4].mxu0 %v8657_v34  ;;  %7969 = vmatmul.mubr.bf16.gmra.mrb[4].mxu1 %v8657_v34  ;;  %v11088_v34 = vld [vmem:[%s15142_s1 + $0x1808] ss:$16 sps:$4 sm:$0xff]  }
 0x2cb   :  { %7136 = vmatpush1.bf16.msra.mxu0 %v11001_v35  ;;  %7984 = vmatpush1.bf16.msra.mxu1 %v11004_v37  ;;  %v8660_v35 = vcombine.high %v63_v30, %v79_v31  ;;  %v11091_v37 = vld [vmem:[%s15142_s1 + $0x1820] ss:$16 sps:$4 sm:$0xff]  }
 0x2cc   :  { %7137 = vmatprep.subr.bf16.mxu0 %v11009_v38  ;;  %7985 = vmatprep.subr.bf16.mxu1 %v11012_v39  ;;  %v11094_v38 = vld [vmem:[%s15142_s1 + $0x1828] ss:$16 sps:$4 sm:$0xff]   ;;  %v11099_v39 = vld [vmem:[%s15142_s1 + $0x1844] ss:$16 sps:$4 sm:$0xff]  }
 0x2cd   :  { %7163 = vmatprep.mubr.bf16.mxu0 %v8628_v40  ;;  %8011 = vmatprep.mubr.bf16.mxu1 %v8628_v40  ;;  %v11102_v40 = vld [vmem:[%s15142_s1 + $0x184c] ss:$16 sps:$4 sm:$0xff]  }
 0x2cf   :  { %7138 = vmatpush1.bf16.msra.mxu0 %v11007_v42  ;;  %7986 = vmatpush1.bf16.msra.mxu1 %v11010_v44  ;;  %v8659_v42 = vcombine.low %v63_v30, %v79_v31  ;;  %v14084_v44 = vld [vmem:[%s15143_s0 + $0x60] sm:$0xff]  ;;  %v11172_v30 = vld [vmem:[%s15142_s1 + $0x19c8] ss:$16 sps:$4 sm:$0xff]  }
 0x2d0   :  { %7139 = vmatprep.subr.bf16.mxu0 %v11015_v41  ;;  %7987 = vmatprep.subr.bf16.mxu1 %v11018_v43  ;;  %v14089_v41 = vld [vmem:[%s15143_s0 + $0xe0] sm:$0xff] }
 0x2d1   :  { %v11097_v43 = vld [vmem:[%s15142_s1 + $0x1840] ss:$16 sps:$4 sm:$0xff]   ;;  %v11177_v31 = vld [vmem:[%s15142_s1 + $0x19e4] ss:$16 sps:$4 sm:$0xff]  }
 0x2d3   :  { %7140 = vmatpush1.bf16.msra.mxu0 %v11013_v45  ;;  %7988 = vmatpush1.bf16.msra.mxu1 %v11016_v46  ;;  %v11100_v45 = vld [vmem:[%s15142_s1 + $0x1848] ss:$16 sps:$4 sm:$0xff]   ;;  %v11105_v46 = vld [vmem:[%s15142_s1 + $0x1864] ss:$16 sps:$4 sm:$0xff]  }
 0x2d4   :  { %7141 = vmatprep.subr.bf16.mxu0 %v11021_v47  ;;  %7989 = vmatprep.subr.bf16.mxu1 %v11024_v48  ;;  %v11108_v47 = vld [vmem:[%s15142_s1 + $0x186c] ss:$16 sps:$4 sm:$0xff]   ;;  %v8630_v48 = vcombine.high %v14084_v44, %v14089_v41 }
 0x2d7   :  { %7142 = vmatpush1.bf16.msra.mxu0 %v11019_v51  ;;  %7990 = vmatpush1.bf16.msra.mxu1 %v11022_v52  ;;  %v11103_v51 = vld [vmem:[%s15142_s1 + $0x1860] ss:$16 sps:$4 sm:$0xff]   ;;  %v11106_v52 = vld [vmem:[%s15142_s1 + $0x1868] ss:$16 sps:$4 sm:$0xff]  }
 0x2d8   :  { %7143 = vmatprep.subr.bf16.mxu0 %v11027_v49  ;;  %7991 = vmatprep.subr.bf16.mxu1 %v11030_v50  ;;  %v11111_v49 = vld [vmem:[%s15142_s1 + $0x1884] ss:$16 sps:$4 sm:$0xff]   ;;  %v11114_v50 = vld [vmem:[%s15142_s1 + $0x188c] ss:$16 sps:$4 sm:$0xff]  }
 0x2db   :  { %7144 = vmatpush1.bf16.msra.mxu0 %v11025_v53  ;;  %7992 = vmatpush1.bf16.msra.mxu1 %v11028_v54  ;;  %v11109_v53 = vld [vmem:[%s15142_s1 + $0x1880] ss:$16 sps:$4 sm:$0xff]   ;;  %v11112_v54 = vld [vmem:[%s15142_s1 + $0x1888] ss:$16 sps:$4 sm:$0xff]  }
 0x2dc   :  { %7145 = vmatprep.subr.bf16.mxu0 %v11033_v55  ;;  %7993 = vmatprep.subr.bf16.mxu1 %v11036_v56  ;;  %v11117_v55 = vld [vmem:[%s15142_s1 + $0x18a4] ss:$16 sps:$4 sm:$0xff]   ;;  %v11120_v56 = vld [vmem:[%s15142_s1 + $0x18ac] ss:$16 sps:$4 sm:$0xff]  }
 0x2df   :  { %7146 = vmatpush1.bf16.msra.mxu0 %v11031_v59  ;;  %7994 = vmatpush1.bf16.msra.mxu1 %v11034_v60  ;;  %v11115_v59 = vld [vmem:[%s15142_s1 + $0x18a0] ss:$16 sps:$4 sm:$0xff]   ;;  %v11118_v60 = vld [vmem:[%s15142_s1 + $0x18a8] ss:$16 sps:$4 sm:$0xff]  }
 0x2e0   :  { %7147 = vmatprep.subr.bf16.mxu0 %v11039_v57  ;;  %7995 = vmatprep.subr.bf16.mxu1 %v11042_v58  ;;  %v11123_v57 = vld [vmem:[%s15142_s1 + $0x18c4] ss:$16 sps:$4 sm:$0xff]   ;;  %v11126_v58 = vld [vmem:[%s15142_s1 + $0x18cc] ss:$16 sps:$4 sm:$0xff]  }
 0x2e3   :  { %7148 = vmatpush1.bf16.msra.mxu0 %v11037_v61  ;;  %7996 = vmatpush1.bf16.msra.mxu1 %v11040_v62  ;;  %v11121_v61 = vld [vmem:[%s15142_s1 + $0x18c0] ss:$16 sps:$4 sm:$0xff]   ;;  %v11124_v62 = vld [vmem:[%s15142_s1 + $0x18c8] ss:$16 sps:$4 sm:$0xff]  }
 0x2e4   :  { %7149 = vmatprep.subr.bf16.mxu0 %v11045_v63  ;;  %7997 = vmatprep.subr.bf16.mxu1 %v11048_v0  ;;  %v11129_v63 = vld [vmem:[%s15142_s1 + $0x18e4] ss:$16 sps:$4 sm:$0xff]   ;;  %v11132_v0 = vld [vmem:[%s15142_s1 + $0x18ec] ss:$16 sps:$4 sm:$0xff]  }
 0x2e7   :  { %7150 = vmatpush1.bf16.msra.mxu0 %v11043_v3  ;;  %7998 = vmatpush1.bf16.msra.mxu1 %v11046_v4  ;;  %v11127_v3 = vld [vmem:[%s15142_s1 + $0x18e0] ss:$16 sps:$4 sm:$0xff]   ;;  %v11130_v4 = vld [vmem:[%s15142_s1 + $0x18e8] ss:$16 sps:$4 sm:$0xff]  }
 0x2e8   :  { %7151 = vmatprep.subr.bf16.mxu0 %v11051_v1  ;;  %7999 = vmatprep.subr.bf16.mxu1 %v11054_v2  ;;  %v11135_v1 = vld [vmem:[%s15142_s1 + $0x1904] ss:$16 sps:$4 sm:$0xff]   ;;  %v11138_v2 = vld [vmem:[%s15142_s1 + $0x190c] ss:$16 sps:$4 sm:$0xff]  }
 0x2eb   :  { %7152 = vmatpush1.bf16.msra.mxu0 %v11049_v5  ;;  %8000 = vmatpush1.bf16.msra.mxu1 %v11052_v6  ;;  %v11133_v5 = vld [vmem:[%s15142_s1 + $0x1900] ss:$16 sps:$4 sm:$0xff]   ;;  %v11136_v6 = vld [vmem:[%s15142_s1 + $0x1908] ss:$16 sps:$4 sm:$0xff]  }
 0x2ec   :  { %7153 = vmatprep.subr.bf16.mxu0 %v11057_v7  ;;  %8001 = vmatprep.subr.bf16.mxu1 %v11060_v8  ;;  %v11141_v7 = vld [vmem:[%s15142_s1 + $0x1924] ss:$16 sps:$4 sm:$0xff]   ;;  %v11144_v8 = vld [vmem:[%s15142_s1 + $0x192c] ss:$16 sps:$4 sm:$0xff]  }
 0x2ef   :  { %7154 = vmatpush1.bf16.msra.mxu0 %v11055_v11  ;;  %8002 = vmatpush1.bf16.msra.mxu1 %v11058_v12  ;;  %v11139_v11 = vld [vmem:[%s15142_s1 + $0x1920] ss:$16 sps:$4 sm:$0xff]   ;;  %v11142_v12 = vld [vmem:[%s15142_s1 + $0x1928] ss:$16 sps:$4 sm:$0xff]  }
 0x2f0   :  { %7155 = vmatprep.subr.bf16.mxu0 %v11063_v9  ;;  %8003 = vmatprep.subr.bf16.mxu1 %v11066_v10  ;;  %v11147_v9 = vld [vmem:[%s15142_s1 + $0x1944] ss:$16 sps:$4 sm:$0xff]   ;;  %v11150_v10 = vld [vmem:[%s15142_s1 + $0x194c] ss:$16 sps:$4 sm:$0xff]  }
 0x2f3   :  { %7156 = vmatpush1.bf16.msra.mxu0 %v11061_v13  ;;  %8004 = vmatpush1.bf16.msra.mxu1 %v11064_v14  ;;  %v11145_v13 = vld [vmem:[%s15142_s1 + $0x1940] ss:$16 sps:$4 sm:$0xff]   ;;  %v11148_v14 = vld [vmem:[%s15142_s1 + $0x1948] ss:$16 sps:$4 sm:$0xff]  }
 0x2f4   :  { %7157 = vmatprep.subr.bf16.mxu0 %v11069_v15  ;;  %8005 = vmatprep.subr.bf16.mxu1 %v11072_v16  ;;  %v11153_v15 = vld [vmem:[%s15142_s1 + $0x1964] ss:$16 sps:$4 sm:$0xff]   ;;  %v11156_v16 = vld [vmem:[%s15142_s1 + $0x196c] ss:$16 sps:$4 sm:$0xff]  }
 0x2f7   :  { %7158 = vmatpush1.bf16.msra.mxu0 %v11067_v19  ;;  %8006 = vmatpush1.bf16.msra.mxu1 %v11070_v17  ;;  %v11151_v19 = vld [vmem:[%s15142_s1 + $0x1960] ss:$16 sps:$4 sm:$0xff]   ;;  %v11154_v17 = vld [vmem:[%s15142_s1 + $0x1968] ss:$16 sps:$4 sm:$0xff]  }
 0x2f8   :  { %7159 = vmatprep.subr.bf16.mxu0 %v11075_v18  ;;  %8007 = vmatprep.subr.bf16.mxu1 %v11078_v20  ;;  %v11159_v18 = vld [vmem:[%s15142_s1 + $0x1984] ss:$16 sps:$4 sm:$0xff]   ;;  %v11162_v20 = vld [vmem:[%s15142_s1 + $0x198c] ss:$16 sps:$4 sm:$0xff]  }
 0x2fb   :  { %7160 = vmatpush1.bf16.msra.mxu0 %v11073_v21  ;;  %8008 = vmatpush1.bf16.msra.mxu1 %v11076_v22  ;;  %v11157_v21 = vld [vmem:[%s15142_s1 + $0x1980] ss:$16 sps:$4 sm:$0xff]   ;;  %v11160_v22 = vld [vmem:[%s15142_s1 + $0x1988] ss:$16 sps:$4 sm:$0xff]  }
 0x2fc   :  { %7161 = vmatprep.subr.bf16.mxu0 %v11081_v23  ;;  %8009 = vmatprep.subr.bf16.mxu1 %v11084_v24  ;;  %v11165_v23 = vld [vmem:[%s15142_s1 + $0x19a4] ss:$16 sps:$4 sm:$0xff]   ;;  %v11168_v24 = vld [vmem:[%s15142_s1 + $0x19ac] ss:$16 sps:$4 sm:$0xff]  }
 0x2ff   :  { %7162 = vmatpush1.bf16.msra.mxu0 %v11079_v26  ;;  %8010 = vmatpush1.bf16.msra.mxu1 %v11082_v25  ;;  %v11163_v26 = vld [vmem:[%s15142_s1 + $0x19a0] ss:$16 sps:$4 sm:$0xff]   ;;  %v11166_v25 = vld [vmem:[%s15142_s1 + $0x19a8] ss:$16 sps:$4 sm:$0xff]  }
 0x300   :  { %7184 = vmatprep.subr.bf16.mxu0 %v11087_v27  ;;  %8032 = vmatprep.subr.bf16.mxu1 %v11090_v28  ;;  %v11171_v27 = vld [vmem:[%s15142_s1 + $0x19c4] ss:$16 sps:$4 sm:$0xff]   ;;  %v11174_v28 = vld [vmem:[%s15142_s1 + $0x19cc] ss:$16 sps:$4 sm:$0xff]  }
 0x302   :  { %7164 = vmatmul.mubr.bf16.vlgmr.msra.gmra.mrb[0].mxu0 %v8627_v29  ;;  %8012 = vmatmul.mubr.bf16.vlgmr.msra.gmra.mrb[0].mxu1 %v8627_v29  ;;  %v11169_v29 = vld [vmem:[%s15142_s1 + $0x19c0] ss:$16 sps:$4 sm:$0xff]  }
 0x303   :  { %7185 = vmatpush1.bf16.msra.mxu0 %v11085_v32  ;;  %8033 = vmatpush1.bf16.msra.mxu1 %v11088_v34  ;;  %v11180_v32 = vld [vmem:[%s15142_s1 + $0x19ec] ss:$16 sps:$4 sm:$0xff]   ;;  %v11175_v34 = vld [vmem:[%s15142_s1 + $0x19e0] ss:$16 sps:$4 sm:$0xff]  }
 0x304   :  { %7186 = vmatprep.subr.bf16.mxu0 %v11093_v36  ;;  %8034 = vmatprep.subr.bf16.mxu1 %v11096_v33  ;;  %v11178_v36 = vld [vmem:[%s15142_s1 + $0x19e8] ss:$16 sps:$4 sm:$0xff]   ;;  %v11183_v33 = vld [vmem:[%s15142_s1 + $0x1a04] ss:$16 sps:$4 sm:$0xff]  }
 0x305   :  { %7173 = vmatprep.mubr.bf16.mxu0 %v8660_v35  ;;  %8021 = vmatprep.mubr.bf16.mxu1 %v8660_v35  ;;  %v11186_v35 = vld [vmem:[%s15142_s1 + $0x1a0c] ss:$16 sps:$4 sm:$0xff]  }
 0x307   :  { %7187 = vmatpush1.bf16.msra.mxu0 %v11091_v37  ;;  %8035 = vmatpush1.bf16.msra.mxu1 %v11094_v38  ;;  %v8629_v37 = vcombine.low %v14084_v44, %v14089_v41  ;;  %v64_v38 = vld [vmem:[%s15143_s0 + $0x160] sm:$0xff]  ;;  %v11192_v41 = vld [vmem:[%s15142_s1 + $0x1a2c] ss:$16 sps:$4 sm:$0xff]  }
 0x308   :  { %7188 = vmatprep.subr.bf16.mxu0 %v11099_v39  ;;  %8036 = vmatprep.subr.bf16.mxu1 %v11102_v40  ;;  %v80_v39 = vld [vmem:[%s15143_s0 + $0x1e0] sm:$0xff] }
 0x309   :  { %v11181_v40 = vld [vmem:[%s15142_s1 + $0x1a00] ss:$16 sps:$4 sm:$0xff]   ;;  %v11189_v44 = vld [vmem:[%s15142_s1 + $0x1a24] ss:$16 sps:$4 sm:$0xff]  }
 0x30a   :  { %7174 = vmatmul.mubr.bf16.gmra.mrb[4].mxu0 %v8659_v42  ;;  %8022 = vmatmul.mubr.bf16.gmra.mrb[4].mxu1 %v8659_v42  ;;  %v11184_v42 = vld [vmem:[%s15142_s1 + $0x1a08] ss:$16 sps:$4 sm:$0xff]  }
 0x30b   :  { %7189 = vmatpush1.bf16.msra.mxu0 %v11097_v43  ;;  %8037 = vmatpush1.bf16.msra.mxu1 %v11100_v45  ;;  %v8662_v43 = vcombine.high %v64_v38, %v80_v39  ;;  %v11187_v45 = vld [vmem:[%s15142_s1 + $0x1a20] ss:$16 sps:$4 sm:$0xff]  }
 0x30c   :  { %7190 = vmatprep.subr.bf16.mxu0 %v11105_v46  ;;  %8038 = vmatprep.subr.bf16.mxu1 %v11108_v47  ;;  %v11190_v46 = vld [vmem:[%s15142_s1 + $0x1a28] ss:$16 sps:$4 sm:$0xff]   ;;  %v11195_v47 = vld [vmem:[%s15142_s1 + $0x1a44] ss:$16 sps:$4 sm:$0xff]  }
 0x30d   :  { %7216 = vmatprep.mubr.bf16.mxu0 %v8630_v48  ;;  %8064 = vmatprep.mubr.bf16.mxu1 %v8630_v48  ;;  %v11198_v48 = vld [vmem:[%s15142_s1 + $0x1a4c] ss:$16 sps:$4 sm:$0xff]  }
 0x30f   :  { %7191 = vmatpush1.bf16.msra.mxu0 %v11103_v51  ;;  %8039 = vmatpush1.bf16.msra.mxu1 %v11106_v52  ;;  %v8661_v51 = vcombine.low %v64_v38, %v80_v39  ;;  %v14296_v52 = vld [vmem:[%s15143_s0 + $0x68] sm:$0xff]  ;;  %v11273_v39 = vld [vmem:[%s15142_s1 + $0x1be4] ss:$16 sps:$4 sm:$0xff]  }
 0x310   :  { %7192 = vmatprep.subr.bf16.mxu0 %v11111_v49  ;;  %8040 = vmatprep.subr.bf16.mxu1 %v11114_v50  ;;  %v14301_v49 = vld [vmem:[%s15143_s0 + $0xe8] sm:$0xff]  ;;  %v11193_v50 = vld [vmem:[%s15142_s1 + $0x1a40] ss:$16 sps:$4 sm:$0xff]  }
 0x311   :  { %v11268_v38 = vld [vmem:[%s15142_s1 + $0x1bc8] ss:$16 sps:$4 sm:$0xff]  }
 0x313   :  { %7193 = vmatpush1.bf16.msra.mxu0 %v11109_v53  ;;  %8041 = vmatpush1.bf16.msra.mxu1 %v11112_v54  ;;  %v11196_v53 = vld [vmem:[%s15142_s1 + $0x1a48] ss:$16 sps:$4 sm:$0xff]   ;;  %v11201_v54 = vld [vmem:[%s15142_s1 + $0x1a64] ss:$16 sps:$4 sm:$0xff]  }
 0x314   :  { %7194 = vmatprep.subr.bf16.mxu0 %v11117_v55  ;;  %8042 = vmatprep.subr.bf16.mxu1 %v11120_v56  ;;  %v11204_v55 = vld [vmem:[%s15142_s1 + $0x1a6c] ss:$16 sps:$4 sm:$0xff]   ;;  %v8632_v56 = vcombine.high %v14296_v52, %v14301_v49 }
 0x317   :  { %7195 = vmatpush1.bf16.msra.mxu0 %v11115_v59  ;;  %8043 = vmatpush1.bf16.msra.mxu1 %v11118_v60  ;;  %v11199_v59 = vld [vmem:[%s15142_s1 + $0x1a60] ss:$16 sps:$4 sm:$0xff]   ;;  %v11202_v60 = vld [vmem:[%s15142_s1 + $0x1a68] ss:$16 sps:$4 sm:$0xff]  }
 0x318   :  { %7196 = vmatprep.subr.bf16.mxu0 %v11123_v57  ;;  %8044 = vmatprep.subr.bf16.mxu1 %v11126_v58  ;;  %v11207_v57 = vld [vmem:[%s15142_s1 + $0x1a84] ss:$16 sps:$4 sm:$0xff]   ;;  %v11210_v58 = vld [vmem:[%s15142_s1 + $0x1a8c] ss:$16 sps:$4 sm:$0xff]  }
 0x31b   :  { %7197 = vmatpush1.bf16.msra.mxu0 %v11121_v61  ;;  %8045 = vmatpush1.bf16.msra.mxu1 %v11124_v62  ;;  %v11205_v61 = vld [vmem:[%s15142_s1 + $0x1a80] ss:$16 sps:$4 sm:$0xff]   ;;  %v11208_v62 = vld [vmem:[%s15142_s1 + $0x1a88] ss:$16 sps:$4 sm:$0xff]  }
 0x31c   :  { %7198 = vmatprep.subr.bf16.mxu0 %v11129_v63  ;;  %8046 = vmatprep.subr.bf16.mxu1 %v11132_v0  ;;  %v11213_v63 = vld [vmem:[%s15142_s1 + $0x1aa4] ss:$16 sps:$4 sm:$0xff]   ;;  %v11216_v0 = vld [vmem:[%s15142_s1 + $0x1aac] ss:$16 sps:$4 sm:$0xff]  }
 0x31f   :  { %7199 = vmatpush1.bf16.msra.mxu0 %v11127_v3  ;;  %8047 = vmatpush1.bf16.msra.mxu1 %v11130_v4  ;;  %v11211_v3 = vld [vmem:[%s15142_s1 + $0x1aa0] ss:$16 sps:$4 sm:$0xff]   ;;  %v11214_v4 = vld [vmem:[%s15142_s1 + $0x1aa8] ss:$16 sps:$4 sm:$0xff]  }
 0x320   :  { %7200 = vmatprep.subr.bf16.mxu0 %v11135_v1  ;;  %8048 = vmatprep.subr.bf16.mxu1 %v11138_v2  ;;  %v11219_v1 = vld [vmem:[%s15142_s1 + $0x1ac4] ss:$16 sps:$4 sm:$0xff]   ;;  %v11222_v2 = vld [vmem:[%s15142_s1 + $0x1acc] ss:$16 sps:$4 sm:$0xff]  }
 0x323   :  { %7201 = vmatpush1.bf16.msra.mxu0 %v11133_v5  ;;  %8049 = vmatpush1.bf16.msra.mxu1 %v11136_v6  ;;  %v11217_v5 = vld [vmem:[%s15142_s1 + $0x1ac0] ss:$16 sps:$4 sm:$0xff]   ;;  %v11220_v6 = vld [vmem:[%s15142_s1 + $0x1ac8] ss:$16 sps:$4 sm:$0xff]  }
 0x324   :  { %7202 = vmatprep.subr.bf16.mxu0 %v11141_v7  ;;  %8050 = vmatprep.subr.bf16.mxu1 %v11144_v8  ;;  %v11225_v7 = vld [vmem:[%s15142_s1 + $0x1ae4] ss:$16 sps:$4 sm:$0xff]   ;;  %v11228_v8 = vld [vmem:[%s15142_s1 + $0x1aec] ss:$16 sps:$4 sm:$0xff]  }
 0x327   :  { %7203 = vmatpush1.bf16.msra.mxu0 %v11139_v11  ;;  %8051 = vmatpush1.bf16.msra.mxu1 %v11142_v12  ;;  %v11223_v11 = vld [vmem:[%s15142_s1 + $0x1ae0] ss:$16 sps:$4 sm:$0xff]   ;;  %v11226_v12 = vld [vmem:[%s15142_s1 + $0x1ae8] ss:$16 sps:$4 sm:$0xff]  }
 0x328   :  { %7204 = vmatprep.subr.bf16.mxu0 %v11147_v9  ;;  %8052 = vmatprep.subr.bf16.mxu1 %v11150_v10  ;;  %v11231_v9 = vld [vmem:[%s15142_s1 + $0x1b04] ss:$16 sps:$4 sm:$0xff]   ;;  %v11234_v10 = vld [vmem:[%s15142_s1 + $0x1b0c] ss:$16 sps:$4 sm:$0xff]  }
 0x32b   :  { %7205 = vmatpush1.bf16.msra.mxu0 %v11145_v13  ;;  %8053 = vmatpush1.bf16.msra.mxu1 %v11148_v14  ;;  %v11229_v13 = vld [vmem:[%s15142_s1 + $0x1b00] ss:$16 sps:$4 sm:$0xff]   ;;  %v11232_v14 = vld [vmem:[%s15142_s1 + $0x1b08] ss:$16 sps:$4 sm:$0xff]  }
 0x32c   :  { %7206 = vmatprep.subr.bf16.mxu0 %v11153_v15  ;;  %8054 = vmatprep.subr.bf16.mxu1 %v11156_v16  ;;  %v11237_v15 = vld [vmem:[%s15142_s1 + $0x1b24] ss:$16 sps:$4 sm:$0xff]   ;;  %v11240_v16 = vld [vmem:[%s15142_s1 + $0x1b2c] ss:$16 sps:$4 sm:$0xff]  }
 0x32f   :  { %7207 = vmatpush1.bf16.msra.mxu0 %v11151_v19  ;;  %8055 = vmatpush1.bf16.msra.mxu1 %v11154_v17  ;;  %v11235_v19 = vld [vmem:[%s15142_s1 + $0x1b20] ss:$16 sps:$4 sm:$0xff]   ;;  %v11238_v17 = vld [vmem:[%s15142_s1 + $0x1b28] ss:$16 sps:$4 sm:$0xff]  }
 0x330   :  { %7208 = vmatprep.subr.bf16.mxu0 %v11159_v18  ;;  %8056 = vmatprep.subr.bf16.mxu1 %v11162_v20  ;;  %v11243_v18 = vld [vmem:[%s15142_s1 + $0x1b44] ss:$16 sps:$4 sm:$0xff]   ;;  %v11246_v20 = vld [vmem:[%s15142_s1 + $0x1b4c] ss:$16 sps:$4 sm:$0xff]  }
 0x333   :  { %7209 = vmatpush1.bf16.msra.mxu0 %v11157_v21  ;;  %8057 = vmatpush1.bf16.msra.mxu1 %v11160_v22  ;;  %v11241_v21 = vld [vmem:[%s15142_s1 + $0x1b40] ss:$16 sps:$4 sm:$0xff]   ;;  %v11244_v22 = vld [vmem:[%s15142_s1 + $0x1b48] ss:$16 sps:$4 sm:$0xff]  }
 0x334   :  { %7210 = vmatprep.subr.bf16.mxu0 %v11165_v23  ;;  %8058 = vmatprep.subr.bf16.mxu1 %v11168_v24  ;;  %v11249_v23 = vld [vmem:[%s15142_s1 + $0x1b64] ss:$16 sps:$4 sm:$0xff]   ;;  %v11252_v24 = vld [vmem:[%s15142_s1 + $0x1b6c] ss:$16 sps:$4 sm:$0xff]  }
 0x337   :  { %7211 = vmatpush1.bf16.msra.mxu0 %v11163_v26  ;;  %8059 = vmatpush1.bf16.msra.mxu1 %v11166_v25  ;;  %v11247_v26 = vld [vmem:[%s15142_s1 + $0x1b60] ss:$16 sps:$4 sm:$0xff]   ;;  %v11250_v25 = vld [vmem:[%s15142_s1 + $0x1b68] ss:$16 sps:$4 sm:$0xff]  }
 0x338   :  { %7212 = vmatprep.subr.bf16.mxu0 %v11171_v27  ;;  %8060 = vmatprep.subr.bf16.mxu1 %v11174_v28  ;;  %v11255_v27 = vld [vmem:[%s15142_s1 + $0x1b84] ss:$16 sps:$4 sm:$0xff]   ;;  %v11258_v28 = vld [vmem:[%s15142_s1 + $0x1b8c] ss:$16 sps:$4 sm:$0xff]  }
 0x33b   :  { %7213 = vmatpush1.bf16.msra.mxu0 %v11169_v29  ;;  %8061 = vmatpush1.bf16.msra.mxu1 %v11172_v30  ;;  %v11253_v29 = vld [vmem:[%s15142_s1 + $0x1b80] ss:$16 sps:$4 sm:$0xff]   ;;  %v11256_v30 = vld [vmem:[%s15142_s1 + $0x1b88] ss:$16 sps:$4 sm:$0xff]  }
 0x33c   :  { %7214 = vmatprep.subr.bf16.mxu0 %v11177_v31  ;;  %8062 = vmatprep.subr.bf16.mxu1 %v11180_v32  ;;  %v11261_v31 = vld [vmem:[%s15142_s1 + $0x1ba4] ss:$16 sps:$4 sm:$0xff]   ;;  %v11264_v32 = vld [vmem:[%s15142_s1 + $0x1bac] ss:$16 sps:$4 sm:$0xff]  }
 0x33f   :  { %7215 = vmatpush1.bf16.msra.mxu0 %v11175_v34  ;;  %8063 = vmatpush1.bf16.msra.mxu1 %v11178_v36  ;;  %v11259_v34 = vld [vmem:[%s15142_s1 + $0x1ba0] ss:$16 sps:$4 sm:$0xff]   ;;  %v11262_v36 = vld [vmem:[%s15142_s1 + $0x1ba8] ss:$16 sps:$4 sm:$0xff]  }
 0x340   :  { %7237 = vmatprep.subr.bf16.mxu0 %v11183_v33  ;;  %8085 = vmatprep.subr.bf16.mxu1 %v11186_v35  ;;  %v11267_v33 = vld [vmem:[%s15142_s1 + $0x1bc4] ss:$16 sps:$4 sm:$0xff]   ;;  %v11270_v35 = vld [vmem:[%s15142_s1 + $0x1bcc] ss:$16 sps:$4 sm:$0xff]  }
 0x342   :  { %7217 = vmatmul.mubr.bf16.vlgmr.msra.gmra.mrb[0].mxu0 %v8629_v37  ;;  %8065 = vmatmul.mubr.bf16.vlgmr.msra.gmra.mrb[0].mxu1 %v8629_v37  ;;  %v11265_v37 = vld [vmem:[%s15142_s1 + $0x1bc0] ss:$16 sps:$4 sm:$0xff]  }
 0x343   :  { %7238 = vmatpush1.bf16.msra.mxu0 %v11181_v40  ;;  %8086 = vmatpush1.bf16.msra.mxu1 %v11184_v42  ;;  %v11276_v40 = vld [vmem:[%s15142_s1 + $0x1bec] ss:$16 sps:$4 sm:$0xff]   ;;  %v11271_v42 = vld [vmem:[%s15142_s1 + $0x1be0] ss:$16 sps:$4 sm:$0xff]  }
 0x344   :  { %7239 = vmatprep.subr.bf16.mxu0 %v11189_v44  ;;  %8087 = vmatprep.subr.bf16.mxu1 %v11192_v41  ;;  %v11274_v44 = vld [vmem:[%s15142_s1 + $0x1be8] ss:$16 sps:$4 sm:$0xff]   ;;  %v11279_v41 = vld [vmem:[%s15142_s1 + $0x1c04] ss:$16 sps:$4 sm:$0xff]  }
 0x345   :  { %7226 = vmatprep.mubr.bf16.mxu0 %v8662_v43  ;;  %8074 = vmatprep.mubr.bf16.mxu1 %v8662_v43  ;;  %v11282_v43 = vld [vmem:[%s15142_s1 + $0x1c0c] ss:$16 sps:$4 sm:$0xff]  }
 0x347   :  { %7240 = vmatpush1.bf16.msra.mxu0 %v11187_v45  ;;  %8088 = vmatpush1.bf16.msra.mxu1 %v11190_v46  ;;  %v8631_v45 = vcombine.low %v14296_v52, %v14301_v49  ;;  %v65_v46 = vld [vmem:[%s15143_s0 + $0x168] sm:$0xff]  ;;  %v11285_v52 = vld [vmem:[%s15142_s1 + $0x1c24] ss:$16 sps:$4 sm:$0xff]  }
 0x348   :  { %7241 = vmatprep.subr.bf16.mxu0 %v11195_v47  ;;  %8089 = vmatprep.subr.bf16.mxu1 %v11198_v48  ;;  %v81_v47 = vld [vmem:[%s15143_s0 + $0x1e8] sm:$0xff]  ;;  %v11277_v48 = vld [vmem:[%s15142_s1 + $0x1c00] ss:$16 sps:$4 sm:$0xff]  }
 0x349   :  { %v11288_v49 = vld [vmem:[%s15142_s1 + $0x1c2c] ss:$16 sps:$4 sm:$0xff]  }
 0x34a   :  { %7227 = vmatmul.mubr.bf16.gmra.mrb[4].mxu0 %v8661_v51  ;;  %8075 = vmatmul.mubr.bf16.gmra.mrb[4].mxu1 %v8661_v51  ;;  %v11280_v51 = vld [vmem:[%s15142_s1 + $0x1c08] ss:$16 sps:$4 sm:$0xff]  }
 0x34b   :  { %7242 = vmatpush1.bf16.msra.mxu0 %v11193_v50  ;;  %8090 = vmatpush1.bf16.msra.mxu1 %v11196_v53  ;;  %v8664_v50 = vcombine.high %v65_v46, %v81_v47  ;;  %v11283_v53 = vld [vmem:[%s15142_s1 + $0x1c20] ss:$16 sps:$4 sm:$0xff]  }
 0x34c   :  { %7243 = vmatprep.subr.bf16.mxu0 %v11201_v54  ;;  %8091 = vmatprep.subr.bf16.mxu1 %v11204_v55  ;;  %v11286_v54 = vld [vmem:[%s15142_s1 + $0x1c28] ss:$16 sps:$4 sm:$0xff]   ;;  %v11291_v55 = vld [vmem:[%s15142_s1 + $0x1c44] ss:$16 sps:$4 sm:$0xff]  }
 0x34d   :  { %7269 = vmatprep.mubr.bf16.mxu0 %v8632_v56  ;;  %8117 = vmatprep.mubr.bf16.mxu1 %v8632_v56  ;;  %v11294_v56 = vld [vmem:[%s15142_s1 + $0x1c4c] ss:$16 sps:$4 sm:$0xff]  }
 0x34f   :  { %7244 = vmatpush1.bf16.msra.mxu0 %v11199_v59  ;;  %8092 = vmatpush1.bf16.msra.mxu1 %v11202_v60  ;;  %v8663_v59 = vcombine.low %v65_v46, %v81_v47  ;;  %v14508_v60 = vld [vmem:[%s15143_s0 + $0x70] sm:$0xff]  ;;  %v11364_v46 = vld [vmem:[%s15142_s1 + $0x1dc8] ss:$16 sps:$4 sm:$0xff]  }
 0x350   :  { %7245 = vmatprep.subr.bf16.mxu0 %v11207_v57  ;;  %8093 = vmatprep.subr.bf16.mxu1 %v11210_v58  ;;  %v14513_v57 = vld [vmem:[%s15143_s0 + $0xf0] sm:$0xff] }
 0x351   :  { %v11289_v58 = vld [vmem:[%s15142_s1 + $0x1c40] ss:$16 sps:$4 sm:$0xff]   ;;  %v11369_v47 = vld [vmem:[%s15142_s1 + $0x1de4] ss:$16 sps:$4 sm:$0xff]  }
 0x353   :  { %7246 = vmatpush1.bf16.msra.mxu0 %v11205_v61  ;;  %8094 = vmatpush1.bf16.msra.mxu1 %v11208_v62  ;;  %v11292_v61 = vld [vmem:[%s15142_s1 + $0x1c48] ss:$16 sps:$4 sm:$0xff]   ;;  %v11297_v62 = vld [vmem:[%s15142_s1 + $0x1c64] ss:$16 sps:$4 sm:$0xff]  }
 0x354   :  { %7247 = vmatprep.subr.bf16.mxu0 %v11213_v63  ;;  %8095 = vmatprep.subr.bf16.mxu1 %v11216_v0  ;;  %v11300_v63 = vld [vmem:[%s15142_s1 + $0x1c6c] ss:$16 sps:$4 sm:$0xff]   ;;  %v8634_v0 = vcombine.high %v14508_v60, %v14513_v57 }
 0x357   :  { %7248 = vmatpush1.bf16.msra.mxu0 %v11211_v3  ;;  %8096 = vmatpush1.bf16.msra.mxu1 %v11214_v4  ;;  %v11295_v3 = vld [vmem:[%s15142_s1 + $0x1c60] ss:$16 sps:$4 sm:$0xff]   ;;  %v11298_v4 = vld [vmem:[%s15142_s1 + $0x1c68] ss:$16 sps:$4 sm:$0xff]  }
 0x358   :  { %7249 = vmatprep.subr.bf16.mxu0 %v11219_v1  ;;  %8097 = vmatprep.subr.bf16.mxu1 %v11222_v2  ;;  %v11303_v1 = vld [vmem:[%s15142_s1 + $0x1c84] ss:$16 sps:$4 sm:$0xff]   ;;  %v11306_v2 = vld [vmem:[%s15142_s1 + $0x1c8c] ss:$16 sps:$4 sm:$0xff]  }
 0x35b   :  { %7250 = vmatpush1.bf16.msra.mxu0 %v11217_v5  ;;  %8098 = vmatpush1.bf16.msra.mxu1 %v11220_v6  ;;  %v11301_v5 = vld [vmem:[%s15142_s1 + $0x1c80] ss:$16 sps:$4 sm:$0xff]   ;;  %v11304_v6 = vld [vmem:[%s15142_s1 + $0x1c88] ss:$16 sps:$4 sm:$0xff]  }
 0x35c   :  { %7251 = vmatprep.subr.bf16.mxu0 %v11225_v7  ;;  %8099 = vmatprep.subr.bf16.mxu1 %v11228_v8  ;;  %v11309_v7 = vld [vmem:[%s15142_s1 + $0x1ca4] ss:$16 sps:$4 sm:$0xff]   ;;  %v11312_v8 = vld [vmem:[%s15142_s1 + $0x1cac] ss:$16 sps:$4 sm:$0xff]  }
 0x35f   :  { %7252 = vmatpush1.bf16.msra.mxu0 %v11223_v11  ;;  %8100 = vmatpush1.bf16.msra.mxu1 %v11226_v12  ;;  %v11307_v11 = vld [vmem:[%s15142_s1 + $0x1ca0] ss:$16 sps:$4 sm:$0xff]   ;;  %v11310_v12 = vld [vmem:[%s15142_s1 + $0x1ca8] ss:$16 sps:$4 sm:$0xff]  }
 0x360   :  { %7253 = vmatprep.subr.bf16.mxu0 %v11231_v9  ;;  %8101 = vmatprep.subr.bf16.mxu1 %v11234_v10  ;;  %v11315_v9 = vld [vmem:[%s15142_s1 + $0x1cc4] ss:$16 sps:$4 sm:$0xff]   ;;  %v11318_v10 = vld [vmem:[%s15142_s1 + $0x1ccc] ss:$16 sps:$4 sm:$0xff]  }
 0x363   :  { %7254 = vmatpush1.bf16.msra.mxu0 %v11229_v13  ;;  %8102 = vmatpush1.bf16.msra.mxu1 %v11232_v14  ;;  %v11313_v13 = vld [vmem:[%s15142_s1 + $0x1cc0] ss:$16 sps:$4 sm:$0xff]   ;;  %v11316_v14 = vld [vmem:[%s15142_s1 + $0x1cc8] ss:$16 sps:$4 sm:$0xff]  }
 0x364   :  { %7255 = vmatprep.subr.bf16.mxu0 %v11237_v15  ;;  %8103 = vmatprep.subr.bf16.mxu1 %v11240_v16  ;;  %v11321_v15 = vld [vmem:[%s15142_s1 + $0x1ce4] ss:$16 sps:$4 sm:$0xff]   ;;  %v11324_v16 = vld [vmem:[%s15142_s1 + $0x1cec] ss:$16 sps:$4 sm:$0xff]  }
 0x367   :  { %7256 = vmatpush1.bf16.msra.mxu0 %v11235_v19  ;;  %8104 = vmatpush1.bf16.msra.mxu1 %v11238_v17  ;;  %v11319_v19 = vld [vmem:[%s15142_s1 + $0x1ce0] ss:$16 sps:$4 sm:$0xff]   ;;  %v11322_v17 = vld [vmem:[%s15142_s1 + $0x1ce8] ss:$16 sps:$4 sm:$0xff]  }
 0x368   :  { %7257 = vmatprep.subr.bf16.mxu0 %v11243_v18  ;;  %8105 = vmatprep.subr.bf16.mxu1 %v11246_v20  ;;  %v11327_v18 = vld [vmem:[%s15142_s1 + $0x1d04] ss:$16 sps:$4 sm:$0xff]   ;;  %v11330_v20 = vld [vmem:[%s15142_s1 + $0x1d0c] ss:$16 sps:$4 sm:$0xff]  }
 0x36b   :  { %7258 = vmatpush1.bf16.msra.mxu0 %v11241_v21  ;;  %8106 = vmatpush1.bf16.msra.mxu1 %v11244_v22  ;;  %v11325_v21 = vld [vmem:[%s15142_s1 + $0x1d00] ss:$16 sps:$4 sm:$0xff]   ;;  %v11328_v22 = vld [vmem:[%s15142_s1 + $0x1d08] ss:$16 sps:$4 sm:$0xff]  }
 0x36c   :  { %7259 = vmatprep.subr.bf16.mxu0 %v11249_v23  ;;  %8107 = vmatprep.subr.bf16.mxu1 %v11252_v24  ;;  %v11333_v23 = vld [vmem:[%s15142_s1 + $0x1d24] ss:$16 sps:$4 sm:$0xff]   ;;  %v11336_v24 = vld [vmem:[%s15142_s1 + $0x1d2c] ss:$16 sps:$4 sm:$0xff]  }
 0x36f   :  { %7260 = vmatpush1.bf16.msra.mxu0 %v11247_v26  ;;  %8108 = vmatpush1.bf16.msra.mxu1 %v11250_v25  ;;  %v11331_v26 = vld [vmem:[%s15142_s1 + $0x1d20] ss:$16 sps:$4 sm:$0xff]   ;;  %v11334_v25 = vld [vmem:[%s15142_s1 + $0x1d28] ss:$16 sps:$4 sm:$0xff]  }
 0x370   :  { %7261 = vmatprep.subr.bf16.mxu0 %v11255_v27  ;;  %8109 = vmatprep.subr.bf16.mxu1 %v11258_v28  ;;  %v11339_v27 = vld [vmem:[%s15142_s1 + $0x1d44] ss:$16 sps:$4 sm:$0xff]   ;;  %v11342_v28 = vld [vmem:[%s15142_s1 + $0x1d4c] ss:$16 sps:$4 sm:$0xff]  }
 0x373   :  { %7262 = vmatpush1.bf16.msra.mxu0 %v11253_v29  ;;  %8110 = vmatpush1.bf16.msra.mxu1 %v11256_v30  ;;  %v11337_v29 = vld [vmem:[%s15142_s1 + $0x1d40] ss:$16 sps:$4 sm:$0xff]   ;;  %v11340_v30 = vld [vmem:[%s15142_s1 + $0x1d48] ss:$16 sps:$4 sm:$0xff]  }
 0x374   :  { %7263 = vmatprep.subr.bf16.mxu0 %v11261_v31  ;;  %8111 = vmatprep.subr.bf16.mxu1 %v11264_v32  ;;  %v11345_v31 = vld [vmem:[%s15142_s1 + $0x1d64] ss:$16 sps:$4 sm:$0xff]   ;;  %v11348_v32 = vld [vmem:[%s15142_s1 + $0x1d6c] ss:$16 sps:$4 sm:$0xff]  }
 0x377   :  { %7264 = vmatpush1.bf16.msra.mxu0 %v11259_v34  ;;  %8112 = vmatpush1.bf16.msra.mxu1 %v11262_v36  ;;  %v11343_v34 = vld [vmem:[%s15142_s1 + $0x1d60] ss:$16 sps:$4 sm:$0xff]   ;;  %v11346_v36 = vld [vmem:[%s15142_s1 + $0x1d68] ss:$16 sps:$4 sm:$0xff]  }
 0x378   :  { %7265 = vmatprep.subr.bf16.mxu0 %v11267_v33  ;;  %8113 = vmatprep.subr.bf16.mxu1 %v11270_v35  ;;  %v11351_v33 = vld [vmem:[%s15142_s1 + $0x1d84] ss:$16 sps:$4 sm:$0xff]   ;;  %v11354_v35 = vld [vmem:[%s15142_s1 + $0x1d8c] ss:$16 sps:$4 sm:$0xff]  }
 0x37b   :  { %7266 = vmatpush1.bf16.msra.mxu0 %v11265_v37  ;;  %8114 = vmatpush1.bf16.msra.mxu1 %v11268_v38  ;;  %v11349_v37 = vld [vmem:[%s15142_s1 + $0x1d80] ss:$16 sps:$4 sm:$0xff]   ;;  %v11352_v38 = vld [vmem:[%s15142_s1 + $0x1d88] ss:$16 sps:$4 sm:$0xff]  }
 0x37c   :  { %7267 = vmatprep.subr.bf16.mxu0 %v11273_v39  ;;  %8115 = vmatprep.subr.bf16.mxu1 %v11276_v40  ;;  %v11357_v39 = vld [vmem:[%s15142_s1 + $0x1da4] ss:$16 sps:$4 sm:$0xff]   ;;  %v11360_v40 = vld [vmem:[%s15142_s1 + $0x1dac] ss:$16 sps:$4 sm:$0xff]  }
 0x37f   :  { %7268 = vmatpush1.bf16.msra.mxu0 %v11271_v42  ;;  %8116 = vmatpush1.bf16.msra.mxu1 %v11274_v44  ;;  %v11355_v42 = vld [vmem:[%s15142_s1 + $0x1da0] ss:$16 sps:$4 sm:$0xff]   ;;  %v11358_v44 = vld [vmem:[%s15142_s1 + $0x1da8] ss:$16 sps:$4 sm:$0xff]  }
 0x380   :  { %7290 = vmatprep.subr.bf16.mxu0 %v11279_v41  ;;  %8138 = vmatprep.subr.bf16.mxu1 %v11282_v43  ;;  %v11363_v41 = vld [vmem:[%s15142_s1 + $0x1dc4] ss:$16 sps:$4 sm:$0xff]   ;;  %v11366_v43 = vld [vmem:[%s15142_s1 + $0x1dcc] ss:$16 sps:$4 sm:$0xff]  }
 0x382   :  { %7270 = vmatmul.mubr.bf16.vlgmr.msra.gmra.mrb[0].mxu0 %v8631_v45  ;;  %8118 = vmatmul.mubr.bf16.vlgmr.msra.gmra.mrb[0].mxu1 %v8631_v45  ;;  %v11361_v45 = vld [vmem:[%s15142_s1 + $0x1dc0] ss:$16 sps:$4 sm:$0xff]  }
 0x383   :  { %7291 = vmatpush1.bf16.msra.mxu0 %v11277_v48  ;;  %8139 = vmatpush1.bf16.msra.mxu1 %v11280_v51  ;;  %v11372_v48 = vld [vmem:[%s15142_s1 + $0x1dec] ss:$16 sps:$4 sm:$0xff]   ;;  %v11367_v51 = vld [vmem:[%s15142_s1 + $0x1de0] ss:$16 sps:$4 sm:$0xff]  }
 0x384   :  { %7292 = vmatprep.subr.bf16.mxu0 %v11285_v52  ;;  %8140 = vmatprep.subr.bf16.mxu1 %v11288_v49  ;;  %v11370_v52 = vld [vmem:[%s15142_s1 + $0x1de8] ss:$16 sps:$4 sm:$0xff]   ;;  %v11375_v49 = vld [vmem:[%s15142_s1 + $0x1e04] ss:$16 sps:$4 sm:$0xff]  }
 0x385   :  { %7279 = vmatprep.mubr.bf16.mxu0 %v8664_v50  ;;  %8127 = vmatprep.mubr.bf16.mxu1 %v8664_v50  ;;  %v11378_v50 = vld [vmem:[%s15142_s1 + $0x1e0c] ss:$16 sps:$4 sm:$0xff]  }
 0x387   :  { %7293 = vmatpush1.bf16.msra.mxu0 %v11283_v53  ;;  %8141 = vmatpush1.bf16.msra.mxu1 %v11286_v54  ;;  %v8633_v53 = vcombine.low %v14508_v60, %v14513_v57  ;;  %v66_v54 = vld [vmem:[%s15143_s0 + $0x170] sm:$0xff]  ;;  %v11384_v57 = vld [vmem:[%s15142_s1 + $0x1e2c] ss:$16 sps:$4 sm:$0xff]  }
 0x388   :  { %7294 = vmatprep.subr.bf16.mxu0 %v11291_v55  ;;  %8142 = vmatprep.subr.bf16.mxu1 %v11294_v56  ;;  %v82_v55 = vld [vmem:[%s15143_s0 + $0x1f0] sm:$0xff] }
 0x389   :  { %v11373_v56 = vld [vmem:[%s15142_s1 + $0x1e00] ss:$16 sps:$4 sm:$0xff]   ;;  %v11381_v60 = vld [vmem:[%s15142_s1 + $0x1e24] ss:$16 sps:$4 sm:$0xff]  }
 0x38a   :  { %7280 = vmatmul.mubr.bf16.gmra.mrb[4].mxu0 %v8663_v59  ;;  %8128 = vmatmul.mubr.bf16.gmra.mrb[4].mxu1 %v8663_v59  ;;  %v11376_v59 = vld [vmem:[%s15142_s1 + $0x1e08] ss:$16 sps:$4 sm:$0xff]  }
 0x38b   :  { %7295 = vmatpush1.bf16.msra.mxu0 %v11289_v58  ;;  %8143 = vmatpush1.bf16.msra.mxu1 %v11292_v61  ;;  %v8666_v58 = vcombine.high %v66_v54, %v82_v55  ;;  %v11379_v61 = vld [vmem:[%s15142_s1 + $0x1e20] ss:$16 sps:$4 sm:$0xff]  }
 0x38c   :  { %7296 = vmatprep.subr.bf16.mxu0 %v11297_v62  ;;  %8144 = vmatprep.subr.bf16.mxu1 %v11300_v63  ;;  %v11382_v62 = vld [vmem:[%s15142_s1 + $0x1e28] ss:$16 sps:$4 sm:$0xff]   ;;  %v11387_v63 = vld [vmem:[%s15142_s1 + $0x1e44] ss:$16 sps:$4 sm:$0xff]  }
 0x38d   :  { %7322 = vmatprep.mubr.bf16.mxu0 %v8634_v0  ;;  %8170 = vmatprep.mubr.bf16.mxu1 %v8634_v0  ;;  %v11390_v0 = vld [vmem:[%s15142_s1 + $0x1e4c] ss:$16 sps:$4 sm:$0xff]  }
 0x38f   :  { %7297 = vmatpush1.bf16.msra.mxu0 %v11295_v3  ;;  %8145 = vmatpush1.bf16.msra.mxu1 %v11298_v4  ;;  %v8665_v3 = vcombine.low %v66_v54, %v82_v55  ;;  %v14720_v4 = vld [vmem:[%s15143_s0 + $0x78] sm:$0xff]  ;;  %v11465_v55 = vld [vmem:[%s15142_s1 + $0x1fe4] ss:$16 sps:$4 sm:$0xff]  }
 0x390   :  { %7298 = vmatprep.subr.bf16.mxu0 %v11303_v1  ;;  %8146 = vmatprep.subr.bf16.mxu1 %v11306_v2  ;;  %v14725_v1 = vld [vmem:[%s15143_s0 + $0xf8] sm:$0xff]  ;;  %v11385_v2 = vld [vmem:[%s15142_s1 + $0x1e40] ss:$16 sps:$4 sm:$0xff]  }
 0x391   :  { %v11460_v54 = vld [vmem:[%s15142_s1 + $0x1fc8] ss:$16 sps:$4 sm:$0xff]  }
 0x393   :  { %7299 = vmatpush1.bf16.msra.mxu0 %v11301_v5  ;;  %8147 = vmatpush1.bf16.msra.mxu1 %v11304_v6  ;;  %v11388_v5 = vld [vmem:[%s15142_s1 + $0x1e48] ss:$16 sps:$4 sm:$0xff]   ;;  %v11393_v6 = vld [vmem:[%s15142_s1 + $0x1e64] ss:$16 sps:$4 sm:$0xff]  }
 0x394   :  { %7300 = vmatprep.subr.bf16.mxu0 %v11309_v7  ;;  %8148 = vmatprep.subr.bf16.mxu1 %v11312_v8  ;;  %v11396_v7 = vld [vmem:[%s15142_s1 + $0x1e6c] ss:$16 sps:$4 sm:$0xff]   ;;  %v8636_v8 = vcombine.high %v14720_v4, %v14725_v1 }
 0x397   :  { %7301 = vmatpush1.bf16.msra.mxu0 %v11307_v11  ;;  %8149 = vmatpush1.bf16.msra.mxu1 %v11310_v12  ;;  %v11391_v11 = vld [vmem:[%s15142_s1 + $0x1e60] ss:$16 sps:$4 sm:$0xff]   ;;  %v11394_v12 = vld [vmem:[%s15142_s1 + $0x1e68] ss:$16 sps:$4 sm:$0xff]  }
 0x398   :  { %7302 = vmatprep.subr.bf16.mxu0 %v11315_v9  ;;  %8150 = vmatprep.subr.bf16.mxu1 %v11318_v10  ;;  %v11399_v9 = vld [vmem:[%s15142_s1 + $0x1e84] ss:$16 sps:$4 sm:$0xff]   ;;  %v11402_v10 = vld [vmem:[%s15142_s1 + $0x1e8c] ss:$16 sps:$4 sm:$0xff]  }
 0x39b   :  { %7303 = vmatpush1.bf16.msra.mxu0 %v11313_v13  ;;  %8151 = vmatpush1.bf16.msra.mxu1 %v11316_v14  ;;  %v11397_v13 = vld [vmem:[%s15142_s1 + $0x1e80] ss:$16 sps:$4 sm:$0xff]   ;;  %v11400_v14 = vld [vmem:[%s15142_s1 + $0x1e88] ss:$16 sps:$4 sm:$0xff]  }
 0x39c   :  { %7304 = vmatprep.subr.bf16.mxu0 %v11321_v15  ;;  %8152 = vmatprep.subr.bf16.mxu1 %v11324_v16  ;;  %v11405_v15 = vld [vmem:[%s15142_s1 + $0x1ea4] ss:$16 sps:$4 sm:$0xff]   ;;  %v11408_v16 = vld [vmem:[%s15142_s1 + $0x1eac] ss:$16 sps:$4 sm:$0xff]  }
 0x39f   :  { %7305 = vmatpush1.bf16.msra.mxu0 %v11319_v19  ;;  %8153 = vmatpush1.bf16.msra.mxu1 %v11322_v17  ;;  %v11403_v19 = vld [vmem:[%s15142_s1 + $0x1ea0] ss:$16 sps:$4 sm:$0xff]   ;;  %v11406_v17 = vld [vmem:[%s15142_s1 + $0x1ea8] ss:$16 sps:$4 sm:$0xff]  }
 0x3a0   :  { %7306 = vmatprep.subr.bf16.mxu0 %v11327_v18  ;;  %8154 = vmatprep.subr.bf16.mxu1 %v11330_v20  ;;  %v11411_v18 = vld [vmem:[%s15142_s1 + $0x1ec4] ss:$16 sps:$4 sm:$0xff]   ;;  %v11414_v20 = vld [vmem:[%s15142_s1 + $0x1ecc] ss:$16 sps:$4 sm:$0xff]  }
 0x3a3   :  { %7307 = vmatpush1.bf16.msra.mxu0 %v11325_v21  ;;  %8155 = vmatpush1.bf16.msra.mxu1 %v11328_v22  ;;  %v11409_v21 = vld [vmem:[%s15142_s1 + $0x1ec0] ss:$16 sps:$4 sm:$0xff]   ;;  %v11412_v22 = vld [vmem:[%s15142_s1 + $0x1ec8] ss:$16 sps:$4 sm:$0xff]  }
 0x3a4   :  { %7308 = vmatprep.subr.bf16.mxu0 %v11333_v23  ;;  %8156 = vmatprep.subr.bf16.mxu1 %v11336_v24  ;;  %v11417_v23 = vld [vmem:[%s15142_s1 + $0x1ee4] ss:$16 sps:$4 sm:$0xff]   ;;  %v11420_v24 = vld [vmem:[%s15142_s1 + $0x1eec] ss:$16 sps:$4 sm:$0xff]  }
 0x3a7   :  { %7309 = vmatpush1.bf16.msra.mxu0 %v11331_v26  ;;  %8157 = vmatpush1.bf16.msra.mxu1 %v11334_v25  ;;  %v11415_v26 = vld [vmem:[%s15142_s1 + $0x1ee0] ss:$16 sps:$4 sm:$0xff]   ;;  %v11418_v25 = vld [vmem:[%s15142_s1 + $0x1ee8] ss:$16 sps:$4 sm:$0xff]  }
 0x3a8   :  { %7310 = vmatprep.subr.bf16.mxu0 %v11339_v27  ;;  %8158 = vmatprep.subr.bf16.mxu1 %v11342_v28  ;;  %v11423_v27 = vld [vmem:[%s15142_s1 + $0x1f04] ss:$16 sps:$4 sm:$0xff]   ;;  %v11426_v28 = vld [vmem:[%s15142_s1 + $0x1f0c] ss:$16 sps:$4 sm:$0xff]  }
 0x3ab   :  { %7311 = vmatpush1.bf16.msra.mxu0 %v11337_v29  ;;  %8159 = vmatpush1.bf16.msra.mxu1 %v11340_v30  ;;  %v11421_v29 = vld [vmem:[%s15142_s1 + $0x1f00] ss:$16 sps:$4 sm:$0xff]   ;;  %v11424_v30 = vld [vmem:[%s15142_s1 + $0x1f08] ss:$16 sps:$4 sm:$0xff]  }
 0x3ac   :  { %7312 = vmatprep.subr.bf16.mxu0 %v11345_v31  ;;  %8160 = vmatprep.subr.bf16.mxu1 %v11348_v32  ;;  %v11429_v31 = vld [vmem:[%s15142_s1 + $0x1f24] ss:$16 sps:$4 sm:$0xff]   ;;  %v11432_v32 = vld [vmem:[%s15142_s1 + $0x1f2c] ss:$16 sps:$4 sm:$0xff]  }
 0x3af   :  { %7313 = vmatpush1.bf16.msra.mxu0 %v11343_v34  ;;  %8161 = vmatpush1.bf16.msra.mxu1 %v11346_v36  ;;  %v11427_v34 = vld [vmem:[%s15142_s1 + $0x1f20] ss:$16 sps:$4 sm:$0xff]   ;;  %v11430_v36 = vld [vmem:[%s15142_s1 + $0x1f28] ss:$16 sps:$4 sm:$0xff]  }
 0x3b0   :  { %7314 = vmatprep.subr.bf16.mxu0 %v11351_v33  ;;  %8162 = vmatprep.subr.bf16.mxu1 %v11354_v35  ;;  %v11435_v33 = vld [vmem:[%s15142_s1 + $0x1f44] ss:$16 sps:$4 sm:$0xff]   ;;  %v11438_v35 = vld [vmem:[%s15142_s1 + $0x1f4c] ss:$16 sps:$4 sm:$0xff]  }
 0x3b3   :  { %7315 = vmatpush1.bf16.msra.mxu0 %v11349_v37  ;;  %8163 = vmatpush1.bf16.msra.mxu1 %v11352_v38  ;;  %v11433_v37 = vld [vmem:[%s15142_s1 + $0x1f40] ss:$16 sps:$4 sm:$0xff]   ;;  %v11436_v38 = vld [vmem:[%s15142_s1 + $0x1f48] ss:$16 sps:$4 sm:$0xff]  }
 0x3b4   :  { %7316 = vmatprep.subr.bf16.mxu0 %v11357_v39  ;;  %8164 = vmatprep.subr.bf16.mxu1 %v11360_v40  ;;  %v11441_v39 = vld [vmem:[%s15142_s1 + $0x1f64] ss:$16 sps:$4 sm:$0xff]   ;;  %v11444_v40 = vld [vmem:[%s15142_s1 + $0x1f6c] ss:$16 sps:$4 sm:$0xff]  }
 0x3b7   :  { %7317 = vmatpush1.bf16.msra.mxu0 %v11355_v42  ;;  %8165 = vmatpush1.bf16.msra.mxu1 %v11358_v44  ;;  %v11439_v42 = vld [vmem:[%s15142_s1 + $0x1f60] ss:$16 sps:$4 sm:$0xff]   ;;  %v11442_v44 = vld [vmem:[%s15142_s1 + $0x1f68] ss:$16 sps:$4 sm:$0xff]  }
 0x3b8   :  { %7318 = vmatprep.subr.bf16.mxu0 %v11363_v41  ;;  %8166 = vmatprep.subr.bf16.mxu1 %v11366_v43  ;;  %v11447_v41 = vld [vmem:[%s15142_s1 + $0x1f84] ss:$16 sps:$4 sm:$0xff]   ;;  %v11450_v43 = vld [vmem:[%s15142_s1 + $0x1f8c] ss:$16 sps:$4 sm:$0xff]  }
 0x3bb   :  { %7319 = vmatpush1.bf16.msra.mxu0 %v11361_v45  ;;  %8167 = vmatpush1.bf16.msra.mxu1 %v11364_v46  ;;  %v11445_v45 = vld [vmem:[%s15142_s1 + $0x1f80] ss:$16 sps:$4 sm:$0xff]   ;;  %v11448_v46 = vld [vmem:[%s15142_s1 + $0x1f88] ss:$16 sps:$4 sm:$0xff]  }
 0x3bc   :  { %7320 = vmatprep.subr.bf16.mxu0 %v11369_v47  ;;  %8168 = vmatprep.subr.bf16.mxu1 %v11372_v48  ;;  %v11453_v47 = vld [vmem:[%s15142_s1 + $0x1fa4] ss:$16 sps:$4 sm:$0xff]   ;;  %v11456_v48 = vld [vmem:[%s15142_s1 + $0x1fac] ss:$16 sps:$4 sm:$0xff]  }
 0x3bf   :  { %7321 = vmatpush1.bf16.msra.mxu0 %v11367_v51  ;;  %8169 = vmatpush1.bf16.msra.mxu1 %v11370_v52  ;;  %v11451_v51 = vld [vmem:[%s15142_s1 + $0x1fa0] ss:$16 sps:$4 sm:$0xff]   ;;  %v11454_v52 = vld [vmem:[%s15142_s1 + $0x1fa8] ss:$16 sps:$4 sm:$0xff]  }
 0x3c0   :  { %7343 = vmatprep.subr.bf16.mxu0 %v11375_v49  ;;  %8191 = vmatprep.subr.bf16.mxu1 %v11378_v50  ;;  %v11459_v49 = vld [vmem:[%s15142_s1 + $0x1fc4] ss:$16 sps:$4 sm:$0xff]   ;;  %v11462_v50 = vld [vmem:[%s15142_s1 + $0x1fcc] ss:$16 sps:$4 sm:$0xff]  }
 0x3c2   :  { %7323 = vmatmul.mubr.bf16.vlgmr.msra.gmra.mrb[0].mxu0 %v8633_v53  ;;  %8171 = vmatmul.mubr.bf16.vlgmr.msra.gmra.mrb[0].mxu1 %v8633_v53  ;;  %v11457_v53 = vld [vmem:[%s15142_s1 + $0x1fc0] ss:$16 sps:$4 sm:$0xff]  }
 0x3c3   :  { %7344 = vmatpush1.bf16.msra.mxu0 %v11373_v56  ;;  %8192 = vmatpush1.bf16.msra.mxu1 %v11376_v59  ;;  %v11468_v56 = vld [vmem:[%s15142_s1 + $0x1fec] ss:$16 sps:$4 sm:$0xff]   ;;  %v11463_v59 = vld [vmem:[%s15142_s1 + $0x1fe0] ss:$16 sps:$4 sm:$0xff]  }
 0x3c4   :  { %7345 = vmatprep.subr.bf16.mxu0 %v11381_v60  ;;  %8193 = vmatprep.subr.bf16.mxu1 %v11384_v57  ;;  %v11466_v60 = vld [vmem:[%s15142_s1 + $0x1fe8] ss:$16 sps:$4 sm:$0xff]  }
 0x3c5   :  { %7332 = vmatprep.mubr.bf16.mxu0 %v8666_v58  ;;  %8180 = vmatprep.mubr.bf16.mxu1 %v8666_v58  ;;  %v67_v57 = vld [vmem:[%s15143_s0 + $0x178] sm:$0xff] }
 0x3c6   :  { %v83_v58 = vld [vmem:[%s15143_s0 + $0x1f8] sm:$0xff] }
 0x3c7   :  { %7346 = vmatpush1.bf16.msra.mxu0 %v11379_v61  ;;  %8194 = vmatpush1.bf16.msra.mxu1 %v11382_v62  ;;  %v8635_v61 = vcombine.low %v14720_v4, %v14725_v1  ;;  %v8668_v62 = vcombine.high %v67_v57, %v83_v58 }
 0x3c8   :  { %7347 = vmatprep.subr.bf16.mxu0 %v11387_v63  ;;  %8195 = vmatprep.subr.bf16.mxu1 %v11390_v0  ;;  %v8667_v63 = vcombine.low %v67_v57, %v83_v58 }
 0x3ca   :  { %7333 = vmatmul.mubr.bf16.gmra.mrb[4].mxu0 %v8665_v3  ;;  %8181 = vmatmul.mubr.bf16.gmra.mrb[4].mxu1 %v8665_v3 }
 0x3cb   :  { %7348 = vmatpush1.bf16.msra.mxu0 %v11385_v2  ;;  %8196 = vmatpush1.bf16.msra.mxu1 %v11388_v5 }
 0x3cc   :  { %7349 = vmatprep.subr.bf16.mxu0 %v11393_v6  ;;  %8197 = vmatprep.subr.bf16.mxu1 %v11396_v7 }
 0x3cd   :  { %7375 = vmatprep.mubr.bf16.mxu0 %v8636_v8  ;;  %8223 = vmatprep.mubr.bf16.mxu1 %v8636_v8 }
 0x3cf   :  { %7350 = vmatpush1.bf16.msra.mxu0 %v11391_v11  ;;  %8198 = vmatpush1.bf16.msra.mxu1 %v11394_v12 }
 0x3d0   :  { %7351 = vmatprep.subr.bf16.mxu0 %v11399_v9  ;;  %8199 = vmatprep.subr.bf16.mxu1 %v11402_v10 }
 0x3d3   :  { %7352 = vmatpush1.bf16.msra.mxu0 %v11397_v13  ;;  %8200 = vmatpush1.bf16.msra.mxu1 %v11400_v14 }
 0x3d4   :  { %7353 = vmatprep.subr.bf16.mxu0 %v11405_v15  ;;  %8201 = vmatprep.subr.bf16.mxu1 %v11408_v16 }
 0x3d7   :  { %7354 = vmatpush1.bf16.msra.mxu0 %v11403_v19  ;;  %8202 = vmatpush1.bf16.msra.mxu1 %v11406_v17 }
 0x3d8   :  { %7355 = vmatprep.subr.bf16.mxu0 %v11411_v18  ;;  %8203 = vmatprep.subr.bf16.mxu1 %v11414_v20 }
 0x3db   :  { %7356 = vmatpush1.bf16.msra.mxu0 %v11409_v21  ;;  %8204 = vmatpush1.bf16.msra.mxu1 %v11412_v22 }
 0x3dc   :  { %7357 = vmatprep.subr.bf16.mxu0 %v11417_v23  ;;  %8205 = vmatprep.subr.bf16.mxu1 %v11420_v24 }
 0x3df   :  { %7358 = vmatpush1.bf16.msra.mxu0 %v11415_v26  ;;  %8206 = vmatpush1.bf16.msra.mxu1 %v11418_v25 }
 0x3e0   :  { %7359 = vmatprep.subr.bf16.mxu0 %v11423_v27  ;;  %8207 = vmatprep.subr.bf16.mxu1 %v11426_v28 }
 0x3e3   :  { %7360 = vmatpush1.bf16.msra.mxu0 %v11421_v29  ;;  %8208 = vmatpush1.bf16.msra.mxu1 %v11424_v30 }
 0x3e4   :  { %7361 = vmatprep.subr.bf16.mxu0 %v11429_v31  ;;  %8209 = vmatprep.subr.bf16.mxu1 %v11432_v32 }
 0x3e7   :  { %7362 = vmatpush1.bf16.msra.mxu0 %v11427_v34  ;;  %8210 = vmatpush1.bf16.msra.mxu1 %v11430_v36 }
 0x3e8   :  { %7363 = vmatprep.subr.bf16.mxu0 %v11435_v33  ;;  %8211 = vmatprep.subr.bf16.mxu1 %v11438_v35 }
 0x3eb   :  { %7364 = vmatpush1.bf16.msra.mxu0 %v11433_v37  ;;  %8212 = vmatpush1.bf16.msra.mxu1 %v11436_v38 }
 0x3ec   :  { %7365 = vmatprep.subr.bf16.mxu0 %v11441_v39  ;;  %8213 = vmatprep.subr.bf16.mxu1 %v11444_v40 }
 0x3ef   :  { %7366 = vmatpush1.bf16.msra.mxu0 %v11439_v42  ;;  %8214 = vmatpush1.bf16.msra.mxu1 %v11442_v44 }
 0x3f0   :  { %7367 = vmatprep.subr.bf16.mxu0 %v11447_v41  ;;  %8215 = vmatprep.subr.bf16.mxu1 %v11450_v43 }
 0x3f3   :  { %7368 = vmatpush1.bf16.msra.mxu0 %v11445_v45  ;;  %8216 = vmatpush1.bf16.msra.mxu1 %v11448_v46 }
 0x3f4   :  { %7369 = vmatprep.subr.bf16.mxu0 %v11453_v47  ;;  %8217 = vmatprep.subr.bf16.mxu1 %v11456_v48 }
 0x3f7   :  { %7370 = vmatpush1.bf16.msra.mxu0 %v11451_v51  ;;  %8218 = vmatpush1.bf16.msra.mxu1 %v11454_v52 }
 0x3f8   :  { %7371 = vmatprep.subr.bf16.mxu0 %v11459_v49  ;;  %8219 = vmatprep.subr.bf16.mxu1 %v11462_v50 }
 0x3fb   :  { %7372 = vmatpush1.bf16.msra.mxu0 %v11457_v53  ;;  %8220 = vmatpush1.bf16.msra.mxu1 %v11460_v54 }
 0x3fc   :  { %7373 = vmatprep.subr.bf16.mxu0 %v11465_v55  ;;  %8221 = vmatprep.subr.bf16.mxu1 %v11468_v56 }
 0x3ff   :  { %7374 = vmatpush1.bf16.msra.mxu0 %v11463_v59  ;;  %8222 = vmatpush1.bf16.msra.mxu1 %v11466_v60 }
 0x402   :  { %7376 = vmatmul.mubr.bf16.vlgmr.msra.gmra.mrb[0].mxu0 %v8635_v61  ;;  %8224 = vmatmul.mubr.bf16.vlgmr.msra.gmra.mrb[0].mxu1 %v8635_v61 }
 0x403   :  { %7385 = vmatprep.mubr.bf16.mxu0 %v8668_v62  ;;  %8233 = vmatprep.mubr.bf16.mxu1 %v8668_v62 }
 0x40a   :  { %7386 = vmatmul.mubr.bf16.gmra.mrb[4].mxu0 %v8667_v63  ;;  %8234 = vmatmul.mubr.bf16.gmra.mrb[4].mxu1 %v8667_v63 }
 0x4d5   :  { %v7377_v0 = vpop.f32.mrb[0].mxu0  ;;  %v8225_v3 = vpop.f32.mrb[0].mxu1 }
 0x4d6   :  { %v14899_v2 = vpop.f32.mrb[1].mxu0  ;;  %v14901_v5 = vpop.f32.mrb[1].mxu1 }
 0x4d7   :  { %v7381_v6 = vpop.f32.mrb[2].mxu0  ;;  %v8229_v7 = vpop.f32.mrb[2].mxu1 }
 0x4d8   :  { %v8244_v8 = vadd.f32 %v7381_v6, %v7377_v0  ;;  %v8262_v4 = vadd.f32 %v8229_v7, %v8225_v3  ;;  %v14903_v1 = vpop.f32.mrb[3].mxu0  ;;  %v14905_v11 = vpop.f32.mrb[3].mxu1 }
 0x4d9   :  { %v8253_v12 = vadd.f32 %v14903_v1, %v14899_v2  ;;  %v8271_v9 = vadd.f32 %v14905_v11, %v14901_v5 }
 0x4dd   :  { %v7387_v10 = vpop.f32.mrb[4].mxu0  ;;  %v8235_v13 = vpop.f32.mrb[4].mxu1 }
 0x4de   :  { %v8245_v14 = vadd.f32 %v8244_v8, %v7387_v10  ;;  %v8263_v15 = vadd.f32 %v8262_v4, %v8235_v13  ;;  %v7389_v16 = vpop.f32.mrb[5].mxu0  ;;  %v14911_v19 = vpop.f32.mrb[5].mxu1 }
 0x4df   :  { %v8254_v17 = vadd.f32 %v8253_v12, %v7389_v16  ;;  %v8272_v18 = vadd.f32 %v8271_v9, %v14911_v19  ;;  %v7391_v20 = vpop.f32.mrb[6].mxu0  ;;  %v8239_v21 = vpop.f32.mrb[6].mxu1 }
 0x4e0   :  { %v8246_v22 = vadd.f32 %v8245_v14, %v7391_v20  ;;  %v8264_v23 = vadd.f32 %v8263_v15, %v8239_v21  ;;  %v7393_v24 = vpop.f32.mrb[7].mxu0  ;;  %v8241_v26 = vpop.f32.mrb[7].mxu1 }
 0x4e1   :  { %v8255_v25 = vadd.f32 %v8254_v17, %v7393_v24  ;;  %v8273_v27 = vadd.f32 %v8272_v18, %v8241_v26 }
 0x4e2   :  { %v8247_v28 = vrot.slane %v8246_v22, 4  ;;  %v8265_v29 = vrot.slane %v8264_v23, 4 }
 0x4e3   :  { %v8256_v30 = vrot.slane %v8255_v25, 4  ;;  %v8274_v31 = vrot.slane %v8273_v27, 4 }
 0x4e4   :  { %v8248_v32 = vadd.f32 %v8247_v28, %v8246_v22  ;;  %v8266_v34 = vadd.f32 %v8265_v29, %v8264_v23 }
 0x4e5   :  { %v8257_v36 = vadd.f32 %v8256_v30, %v8255_v25  ;;  %v8275_v33 = vadd.f32 %v8274_v31, %v8273_v27 }
 0x4e6   :  { %v8249_v35 = vrot.slane %v8248_v32, 2  ;;  %v8267_v37 = vrot.slane %v8266_v34, 2 }
 0x4e7   :  { %v8258_v38 = vrot.slane %v8257_v36, 2  ;;  %v8276_v39 = vrot.slane %v8275_v33, 2 }
 0x4e8   :  { %v8250_v40 = vadd.f32 %v8249_v35, %v8248_v32  ;;  %v8268_v42 = vadd.f32 %v8267_v37, %v8266_v34 }
 0x4e9   :  { %v8259_v44 = vadd.f32 %v8258_v38, %v8257_v36  ;;  %v8277_v41 = vadd.f32 %v8276_v39, %v8275_v33 }
 0x4ea   :  { %v8251_v43 = vrot.slane %v8250_v40, 1  ;;  %v8269_v45 = vrot.slane %v8268_v42, 1 }
 0x4eb   :  { %v8260_v46 = vrot.slane %v8259_v44, 1  ;;  %v8278_v47 = vrot.slane %v8277_v41, 1 }
 0x4ec   :  { %v8252_v48 = vadd.f32 %v8251_v43, %v8250_v40  ;;  %v8270_v51 = vadd.f32 %v8269_v45, %v8268_v42 }
 0x4ed   :  { %v8261_v52 = vadd.f32 %v8260_v46, %v8259_v44  ;;  %v8279_v49 = vadd.f32 %v8278_v47, %v8277_v41 }
 0x4ee   :  { %v8281_v50 = vmul.f32 0.03125, %v8252_v48  ;;  %v8283_v53 = vmul.f32 0.03125, %v8270_v51 }
 0x4ef   :  { %v8282_v54 = vmul.f32 0.03125, %v8261_v52  ;;  %v8284_v55 = vmul.f32 0.03125, %v8279_v49 }
 0x4f0   :  { %v14914_v56 = vsub.f32 %v7377_v0, %v8281_v50  ;;  %v14916_v59 = vsub.f32 %v7381_v6, %v8281_v50  ;;  %v14918_v60 = vsub.f32 %v7387_v10, %v8281_v50  ;;  %v14920_v57 = vsub.f32 %v7391_v20, %v8281_v50 }
 0x4f1   :  { %v14922_v58 = vsub.f32 %v8225_v3, %v8283_v53  ;;  %v14924_v61 = vsub.f32 %v8229_v7, %v8283_v53  ;;  %v14926_v62 = vsub.f32 %v8235_v13, %v8283_v53  ;;  %v14928_v63 = vsub.f32 %v8239_v21, %v8283_v53 }
 0x4f2   :  { %v8301_v8 = vmul.f32 %v14914_v56, %v14914_v56  ;;  %v8305_v0 = vmul.f32 %v14916_v59, %v14916_v59  ;;  %v8309_v6 = vmul.f32 %v14918_v60, %v14918_v60  ;;  %v8313_v4 = vmul.f32 %v14920_v57, %v14920_v57 }
 0x4f3   :  { %v8303_v3 = vmul.f32 %v14922_v58, %v14922_v58  ;;  %v8307_v7 = vmul.f32 %v14924_v61, %v14924_v61  ;;  %v8311_v12 = vmul.f32 %v14926_v62, %v14926_v62  ;;  %v14945_v10 = vsub.f32 %v14899_v2, %v8282_v54 }
 0x4f4   :  { %v8317_v9 = vadd.f32 %v8305_v0, %v8301_v8  ;;  %v14948_v13 = vsub.f32 %v14903_v1, %v8282_v54  ;;  %v14950_v14 = vsub.f32 %v7389_v16, %v8282_v54  ;;  %v14952_v17 = vsub.f32 %v7393_v24, %v8282_v54 }
 0x4f5   :  { %v8335_v15 = vadd.f32 %v8307_v7, %v8303_v3  ;;  %v14955_v18 = vsub.f32 %v14901_v5, %v8284_v55  ;;  %v14958_v20 = vsub.f32 %v14905_v11, %v8284_v55  ;;  %v8315_v22 = vmul.f32 %v14928_v63, %v14928_v63 }
 0x4f6   :  { %v8318_v21 = vadd.f32 %v8317_v9, %v8309_v6  ;;  %v8302_v2 = vmul.f32 %v14945_v10, %v14945_v10  ;;  %v8306_v1 = vmul.f32 %v14948_v13, %v14948_v13  ;;  %v8310_v23 = vmul.f32 %v14950_v14, %v14950_v14 }
 0x4f7   :  { %v8336_v16 = vadd.f32 %v8335_v15, %v8311_v12  ;;  %v14969_v5 = vsub.f32 %v14911_v19, %v8284_v55  ;;  %v14971_v24 = vsub.f32 %v8241_v26, %v8284_v55  ;;  %v8304_v27 = vmul.f32 %v14955_v18, %v14955_v18 }
 0x4f8   :  { %v8319_v11 = vadd.f32 %v8318_v21, %v8313_v4  ;;  %v8326_v25 = vadd.f32 %v8306_v1, %v8302_v2  ;;  %v8308_v28 = vmul.f32 %v14958_v20, %v14958_v20  ;;  %v8314_v30 = vmul.f32 %v14952_v17, %v14952_v17 }
 0x4f9   :  { %v8337_v29 = vadd.f32 %v8336_v16, %v8315_v22  ;;  %v8312_v19 = vmul.f32 %v14969_v5, %v14969_v5  ;;  %v8316_v35 = vmul.f32 %v14971_v24, %v14971_v24  ;;  %v8383_v54 = vlaneseq  ;;  %v8381_v16 = vld [vmem:[%s15144_s2] sm:$0xf] }
 0x4fa   :  { %v8320_v31 = vrot.slane %v8319_v11, 4  ;;  %v8327_v32 = vadd.f32 %v8326_v25, %v8310_v23  ;;  %v8344_v34 = vadd.f32 %v8308_v28, %v8304_v27  ;;  %v8419_v25 = vld [vmem:[%s15145_s3] sm:$0xf] }
 0x4fb   :  { %v8338_v26 = vrot.slane %v8337_v29, 4  ;;  %v14984_v9 = vshrl.u32 %v8383_v54, 7 }
 0x4fc   :  { %v8321_v36 = vadd.f32 %v8320_v31, %v8319_v11  ;;  %v8328_v33 = vadd.f32 %v8327_v32, %v8314_v30  ;;  %v8345_v37 = vadd.f32 %v8344_v34, %v8312_v19  ;;  %v14999_v30 = vld [vmem:[%s15146_s4] sm:$0xff]  ;;  %v15004_v31 = vld [vmem:[%s15146_s4 + $0x8] sm:$0xff] }
 0x4fd   :  { %v8339_v38 = vadd.f32 %v8338_v26, %v8337_v29  ;;  %v8385_v23 = vsub.s32 0, %v14984_v9  ;;  %v8393_v11 = vsub.s32 2, %v14984_v9  ;;  %v8389_v27 = vsub.s32 1, %v14984_v9  ;;  %v15011_v26 = vld [vmem:[%s15146_s4 + $0x10] sm:$0xff] }
 0x4fe   :  { %v8322_v39 = vrot.slane %v8321_v36, 2  ;;  %v8329_v40 = vrot.slane %v8328_v33, 4  ;;  %v8346_v42 = vadd.f32 %v8345_v37, %v8316_v35  ;;  %v8397_v29 = vsub.s32 3, %v14984_v9 }
 0x4ff   :  { %v8340_v44 = vrot.slane %v8339_v38, 2  ;;  %v8386_v32 = vrot.slane %v8381_v16, %v8385_v23  ;;  %v15006_v19 = vrot.slane %v8419_v25, %v8385_v23  ;;  %v8394_v34 = vrot.slane %v8381_v16, %v8393_v11 }
 0x500   :  { %v8323_v41 = vadd.f32 %v8322_v39, %v8321_v36  ;;  %v8330_v43 = vadd.f32 %v8329_v40, %v8328_v33  ;;  %v8347_v45 = vrot.slane %v8346_v42, 4  ;;  %v15016_v36 = vld [vmem:[%s15146_s4 + $0x18] sm:$0xff]  ;;  %v15018_v33 = vrot.slane %v8419_v25, %v8393_v11 }
 0x501   :  { %v8341_v46 = vadd.f32 %v8340_v44, %v8339_v38  ;;  %v15020_v35 = vrot.slane %v8381_v16, %v8389_v27  ;;  %v15022_v37 = vrot.slane %v8419_v25, %v8389_v27  ;;  %v15024_v38 = vrot.slane %v8381_v16, %v8397_v29 }
 0x502   :  { %v8324_v47 = vrot.slane %v8323_v41, 1  ;;  %v8331_v48 = vrot.slane %v8330_v43, 2  ;;  %v8348_v51 = vadd.f32 %v8347_v45, %v8346_v42  ;;  %v15026_v39 = vrot.slane %v8419_v25, %v8397_v29 }
 0x503   :  { %v8342_v52 = vrot.slane %v8341_v46, 1  ;;  %v8509_v40 = vunpack.c.l.bf16 %v14999_v30  ;;  %v8510_v42 = vunpack.c.h.bf16 %v14999_v30  ;;  %v8511_v44 = vunpack.c.l.bf16 %v15004_v31 }
 0x504   :  { %v8325_v49 = vadd.f32 %v8324_v47, %v8323_v41  ;;  %v8332_v50 = vadd.f32 %v8331_v48, %v8330_v43  ;;  %v8349_v53 = vrot.slane %v8348_v51, 2  ;;  %v8512_v43 = vunpack.c.h.bf16 %v15004_v31 }
 0x505   :  { %v8343_v55 = vadd.f32 %v8342_v52, %v8341_v46  ;;  %v8513_v45 = vunpack.c.l.bf16 %v15011_v26  ;;  %v8514_v46 = vunpack.c.h.bf16 %v15011_v26  ;;  %v8515_v47 = vunpack.c.l.bf16 %v15016_v36 }
 0x506   :  { %v8353_v8 = vmul.f32 0.03125, %v8325_v49  ;;  %v8333_v0 = vrot.slane %v8332_v50, 1  ;;  %v8350_v6 = vadd.f32 %v8349_v53, %v8348_v51 }
 0x507   :  { %v8355_v4 = vmul.f32 0.03125, %v8343_v55 }
 0x508   :  { %v8357_v3 = vadd.f32 1e-05, %v8353_v8  ;;  %v8334_v7 = vadd.f32 %v8333_v0, %v8332_v50  ;;  %v8351_v12 = vrot.slane %v8350_v6, 1 }
 0x509   :  { %v8359_v15 = vadd.f32 1e-05, %v8355_v4 }
 0x50a   :  { %11469 = vrsqrt.f32 %v8357_v3  ;;  %v8354_v21 = vmul.f32 0.03125, %v8334_v7  ;;  %v8352_v22 = vadd.f32 %v8351_v12, %v8350_v6  ;;  %v8516_v7 = vunpack.c.h.bf16 %v15016_v36 }
 0x50b   :  { %11471 = vrsqrt.f32 %v8359_v15 }
 0x50c   :  { %v8358_v2 = vadd.f32 1e-05, %v8354_v21  ;;  %v8356_v1 = vmul.f32 0.03125, %v8352_v22 }
 0x50e   :  { %11473 = vrsqrt.f32 %v8358_v2  ;;  %v8360_v28 = vadd.f32 1e-05, %v8356_v1 }
 0x510   :  { %11475 = vrsqrt.f32 %v8360_v28 }
 0x514   :  { %v11470_v41 = vpop.eup %11469 }
 0x515   :  { %v11472_v48 = vpop.eup %11471  ;;  %v8369_v51 = vmul.f32 %v11470_v41, %v14916_v59  ;;  %v8373_v52 = vmul.f32 %v11470_v41, %v14918_v60  ;;  %v8377_v49 = vmul.f32 %v11470_v41, %v14920_v57  ;;  %v8365_v50 = vmul.f32 %v11470_v41, %v14914_v56 }
 0x516   :  { %v8379_v53 = vmul.f32 %v11472_v48, %v14928_v63  ;;  %v8375_v55 = vmul.f32 %v11472_v48, %v14926_v62  ;;  %v8367_v8 = vmul.f32 %v11472_v48, %v14922_v58  ;;  %v8371_v0 = vmul.f32 %v11472_v48, %v14924_v61 }
 0x517   :  { %v8415_v6 = vmul.f32 %v8386_v32, %v8377_v49  ;;  %v8411_v4 = vmul.f32 %v8386_v32, %v8373_v52  ;;  %v8403_v3 = vmul.f32 %v8386_v32, %v8365_v50  ;;  %v15044_v57 = vmul.f32 %v8386_v32, %v8369_v51 }
 0x518   :  { %v11474_v59 = vpop.eup %11473  ;;  %v8417_v12 = vmul.f32 %v8394_v34, %v8379_v53  ;;  %v8413_v60 = vmul.f32 %v8394_v34, %v8375_v55  ;;  %v8405_v15 = vmul.f32 %v8394_v34, %v8367_v8  ;;  %v15051_v62 = vmul.f32 %v8394_v34, %v8371_v0 }
 0x519   :  { %v8366_v56 = vmul.f32 %v11474_v59, %v14945_v10  ;;  %v15048_v63 = vmul.f32 %v11474_v59, %v14948_v13  ;;  %v8374_v58 = vmul.f32 %v11474_v59, %v14950_v14  ;;  %v15056_v21 = vadd.f32 %v15006_v19, %v8415_v6 }
 0x51a   :  { %v15053_v61 = vpop.eup %11475  ;;  %v8378_v22 = vmul.f32 %v11474_v59, %v14952_v17  ;;  %v8449_v2 = vadd.f32 %v15006_v19, %v8411_v4  ;;  %v8451_v1 = vadd.f32 %v15018_v33, %v8413_v60  ;;  %v15062_v10 = vadd.f32 %v15018_v33, %v8417_v12 }
 0x51b   :  { %v8380_v13 = vmul.f32 %v15053_v61, %v14971_v24  ;;  %v8376_v14 = vmul.f32 %v15053_v61, %v14969_v5  ;;  %v8412_v16 = vmul.f32 %v15020_v35, %v8374_v58  ;;  %v8368_v5 = vmul.f32 %v15053_v61, %v14955_v18 }
 0x51c   :  { %v8416_v23 = vmul.f32 %v15020_v35, %v8378_v22  ;;  %vm8465_vm0 = vcmp.gt.f32.partialorder %v8449_v2, 0.0  ;;  %vm8467_vm1 = vcmp.gt.f32.partialorder %v8451_v1, 0.0  ;;  %v8481_v17 = vmul.f32 0.2, %v8449_v2 }
 0x51d   :  { %v8418_v11 = vmul.f32 %v15024_v38, %v8380_v13  ;;  %v8414_v25 = vmul.f32 %v15024_v38, %v8376_v14  ;;  %v8450_v27 = vadd.f32 %v15022_v37, %v8412_v16  ;;  %v8483_v28 = vmul.f32 0.2, %v8451_v1 }
 0x51e   :  { %v8454_v29 = vadd.f32 %v15022_v37, %v8416_v23  ;;  %v8497_v24 = vsel %vm8465_vm0, %v8449_v2, %v8481_v17  ;;  %v8404_v32 = vmul.f32 %v15020_v35, %v8366_v56  ;;  %v8485_v34 = vmul.f32 0.2, %v15056_v21 }
 0x51f   :  { %v8452_v41 = vadd.f32 %v15026_v39, %v8414_v25  ;;  %vm8466_vm2 = vcmp.gt.f32.partialorder %v8450_v27, 0.0  ;;  %v8482_v48 = vmul.f32 0.2, %v8450_v27  ;;  %v8456_v51 = vadd.f32 %v15026_v39, %v8418_v11 }
 0x520   :  { %v8499_v52 = vsel %vm8467_vm1, %v8451_v1, %v8483_v28  ;;  %v8525_v49 = vmul.f32 %v8509_v40, %v8497_v24  ;;  %v8406_v50 = vmul.f32 %v15024_v38, %v8368_v5  ;;  %v8486_v53 = vmul.f32 0.2, %v8454_v29 }
 0x521   :  { %vm8468_vm3 = vcmp.gt.f32.partialorder %v8452_v41, 0.0  ;;  %v8484_v55 = vmul.f32 0.2, %v8452_v41  ;;  %v8498_v18 = vsel %vm8466_vm2, %v8450_v27, %v8482_v48  ;;  %v8441_v0 = vadd.f32 %v15006_v19, %v8403_v3 }
 0x522   :  { %v8526_v8 = vmul.f32 %v8510_v42, %v8498_v18  ;;  %v8442_v6 = vadd.f32 %v15022_v37, %v8404_v32  ;;  %v8443_v4 = vadd.f32 %v15018_v33, %v8405_v15  ;;  %v8527_v12 = vmul.f32 %v8511_v44, %v8499_v52 }
 0x523   :  { %v8500_v59 = vsel %vm8468_vm3, %v8452_v41, %v8484_v55  ;;  %v8444_v60 = vadd.f32 %v15026_v39, %v8406_v50  ;;  %vm8469_vm4 = vcmp.gt.f32.partialorder %v15056_v21, 0.0  ;;  %vm8457_vm5 = vcmp.gt.f32.partialorder %v8441_v0, 0.0 }
 0x524   :  { %v8543_v56 = vadd.f32 %v8526_v8, %v8525_v49  ;;  %vm8458_vm6 = vcmp.gt.f32.partialorder %v8442_v6, 0.0  ;;  %vm8470_vm7 = vcmp.gt.f32.partialorder %v8454_v29, 0.0  ;;  %vm8459_vm8 = vcmp.gt.f32.partialorder %v8443_v4, 0.0 }
 0x525   :  { %vm8460_vm9 = vcmp.gt.f32.partialorder %v8444_v60, 0.0  ;;  %v8473_v58 = vmul.f32 0.2, %v8441_v0  ;;  %v8474_v3 = vmul.f32 0.2, %v8442_v6  ;;  %v8528_v22 = vmul.f32 %v8512_v43, %v8500_v59 }
 0x526   :  { %v8544_v15 = vadd.f32 %v8543_v56, %v8527_v12  ;;  %v8475_v2 = vmul.f32 0.2, %v8443_v4  ;;  %v8476_v1 = vmul.f32 0.2, %v8444_v60  ;;  %vm8471_vm10 = vcmp.gt.f32.partialorder %v15062_v10, 0.0 }
 0x527   :  { %v8489_v13 = vsel %vm8457_vm5, %v8441_v0, %v8473_v58  ;;  %v8490_v14 = vsel %vm8458_vm6, %v8442_v6, %v8474_v3  ;;  %v8487_v16 = vmul.f32 0.2, %v15062_v10  ;;  %vm8472_vm11 = vcmp.gt.f32.partialorder %v8456_v51, 0.0 }
 0x528   :  { %v8545_v23 = vadd.f32 %v8544_v15, %v8528_v22  ;;  %v8491_v17 = vsel %vm8459_vm8, %v8443_v4, %v8475_v2  ;;  %v8492_v11 = vsel %vm8460_vm9, %v8444_v60, %v8476_v1  ;;  %v8517_v25 = vmul.f32 %v8509_v40, %v8489_v13 }
 0x529   :  { %v8518_v27 = vmul.f32 %v8510_v42, %v8490_v14  ;;  %v8519_v28 = vmul.f32 %v8511_v44, %v8491_v17  ;;  %v8488_v24 = vmul.f32 0.2, %v8456_v51  ;;  %v8501_v5 = vsel %vm8469_vm4, %v15056_v21, %v8485_v34 }
 0x52a   :  { %8546 = vadd.xlane.f32.xlu1 %v8545_v23  ;;  %v8502_v32 = vsel %vm8470_vm7, %v8454_v29, %v8486_v53  ;;  %v8503_v41 = vsel %vm8471_vm10, %v15062_v10, %v8487_v16  ;;  %v8372_v40 = vmul.f32 %v15053_v61, %v14958_v20  ;;  %v8520_v30 = vmul.f32 %v8512_v43, %v8492_v11 }
 0x52b   :  { %v8533_v42 = vadd.f32 %v8518_v27, %v8517_v25  ;;  %v8529_v44 = vmul.f32 %v8513_v45, %v8501_v5  ;;  %v8530_v48 = vmul.f32 %v8514_v46, %v8502_v32  ;;  %v8504_v52 = vsel %vm8472_vm11, %v8456_v51, %v8488_v24 }
 0x52c   :  { %v8531_v21 = vmul.f32 %v8515_v47, %v8503_v41  ;;  %v8408_v10 = vmul.f32 %v15020_v35, %v15048_v63  ;;  %v8410_v29 = vmul.f32 %v15024_v38, %v8372_v40  ;;  %v8445_v31 = vadd.f32 %v15006_v19, %v15044_v57 }
 0x52d   :  { %v8534_v20 = vadd.f32 %v8533_v42, %v8519_v28  ;;  %v8548_v61 = vadd.f32 %v8530_v48, %v8529_v44  ;;  %v8447_v43 = vadd.f32 %v15018_v33, %v15051_v62  ;;  %v8532_v50 = vmul.f32 %v8516_v7, %v8504_v52 }
 0x52e   :  { %v8446_v34 = vadd.f32 %v15022_v37, %v8408_v10  ;;  %v8448_v51 = vadd.f32 %v15026_v39, %v8410_v29  ;;  %vm8461_vm12 = vcmp.gt.f32.partialorder %v8445_v31, 0.0  ;;  %v8477_v35 = vmul.f32 0.2, %v8445_v31 }
 0x52f   :  { %v8535_v49 = vadd.f32 %v8534_v20, %v8520_v30  ;;  %v8549_v53 = vadd.f32 %v8548_v61, %v8531_v21  ;;  %vm8463_vm14 = vcmp.gt.f32.partialorder %v8447_v43, 0.0  ;;  %v8479_v19 = vmul.f32 0.2, %v8447_v43 }
 0x530   :  { %vm8462_vm13 = vcmp.gt.f32.partialorder %v8446_v34, 0.0  ;;  %v8478_v38 = vmul.f32 0.2, %v8446_v34  ;;  %vm8464_vm15 = vcmp.gt.f32.partialorder %v8448_v51, 0.0  ;;  %v8480_v57 = vmul.f32 0.2, %v8448_v51 }
 0x531   :  { %8536 = vadd.xlane.f32.xlu0 %v8535_v49  ;;  %v8550_v63 = vadd.f32 %v8549_v53, %v8532_v50  ;;  %v8493_v33 = vsel %vm8461_vm12, %v8445_v31, %v8477_v35  ;;  %v8495_v37 = vsel %vm8463_vm14, %v8447_v43, %v8479_v19  ;;  %v8558_v12 = vand.u32 127, %v8383_v54 }
 0x532   :  { %v8494_v62 = vsel %vm8462_vm13, %v8446_v34, %v8478_v38  ;;  %v8521_v39 = vmul.f32 %v8513_v45, %v8493_v33  ;;  %v8496_v18 = vsel %vm8464_vm15, %v8448_v51, %v8480_v57  ;;  %v8523_v8 = vmul.f32 %v8515_v47, %v8495_v37 }
 0x533   :  { %8551 = vadd.xlane.f32.xlu1 %v8550_v63  ;;  %v8522_v55 = vmul.f32 %v8514_v46, %v8494_v62  ;;  %v8524_v6 = vmul.f32 %v8516_v7, %v8496_v18  ;;  %v8563_v56 = vadd.s32 4294967288, %v8558_v12  ;;  %v8561_v46 = vsub.s32 %v8558_v12, %v14984_v9 }
 0x534   :  { %vm8568_vm0 = vcmask 130112   ;;  %vm8579_vm1 = vcmask 1041409   ;;  %vm8582_vm2 = vcmask 123904   ;;  %vm8599_vm3 = vcmask 1024  }
 0x535   :  { %v8538_v0 = vadd.f32 %v8522_v55, %v8521_v39  ;;  %v8566_v45 = vsub.s32 %v8563_v56, %v14984_v9 }
 0x537   :  { %v8539_v4 = vadd.f32 %v8538_v0, %v8523_v8 }
 0x539   :  { %v8540_v59 = vadd.f32 %v8539_v4, %v8524_v6 }
 0x53b   :  { %8541 = vadd.xlane.f32.xlu0 %v8540_v59 }
 0x5b7   :  { %v8547_v60 = vpop.xlane.xlu1 %8546 }
 0x5b8   :  { %v8573_v47 = vrot.slane %v8547_v60, %v8561_v46 }
 0x5be   :  { %v8537_v58 = vpop.xlane.xlu0 %8536 }
 0x5bf   :  { %v8562_v15 = vrot.slane %v8537_v58, %v8561_v46 }
 0x5c0   :  { %v8552_v26 = vpop.xlane.xlu1 %8551 }
 0x5c1   :  { %v8577_v3 = vrot.slane %v8552_v26, %v8566_v45 }
 0x5c3   :  { %v8578_v7 = vsel %vm8568_vm0, %v8577_v3, %v8573_v47 }
 0x5c8   :  { %v8542_v22 = vpop.xlane.xlu0 %8541 }
 0x5c9   :  { %v8567_v36 = vrot.slane %v8542_v22, %v8566_v45 }
 0x5cb   :  { %v8569_v2 = vsel %vm8568_vm0, %v8567_v36, %v8562_v15 }
 0x5cc   :  { %v8580_v1 = vsel %vm8579_vm1, %v8578_v7, %v8569_v2 }
 0x5cd   :  { %v8583_v54 = vsel %vm8582_vm2, %v8580_v1, 0.0 }
 0x5ce   :  { %8584 = vadd.xlane.f32.xlu0 %v8583_v54 }
 0x65b   :  { %v8585_v13 = vpop.xlane.xlu0 %8584 }
 0x65c   :  { %v8587_v14 = vsub.f32 0.0, %v8585_v13  ;;  %v8593_v16 = vmul.f32 1.442695, %v8585_v13  ;;  %vm8586_vm4 = vcmp.ge.f32.partialorder %v8585_v13, 0.0 }
 0x65e   :  { %v8588_v23 = vmul.f32 1.442695, %v8587_v14  ;;  %11477 = vpow2.f32 %v8593_v16 }
 0x660   :  { %11479 = vpow2.f32 %v8588_v23 }
 0x668   :  { %v11478_v9 = vpop.eup %11477 }
 0x669   :  { %v8595_v17 = vadd.f32 1.0, %v11478_v9 }
 0x66a   :  { %v11480_v11 = vpop.eup %11479 }
 0x66b   :  { %v8590_v25 = vadd.f32 1.0, %v11480_v11  ;;  %11481 = vrcp.f32 %v8595_v17 }
 0x66d   :  { %11483 = vrcp.f32 %v8590_v25 }
 0x675   :  { %v11482_v27 = vpop.eup %11481 }
 0x676   :  { %v8597_v28 = vmul.f32 %v11482_v27, %v11478_v9 }
 0x677   :  { %v11484_v24 = vpop.eup %11483 }
 0x678   :  { %v8598_v5 = vsel %vm8586_vm4, %v11484_v24, %v8597_v28 }
 0x679   :  { %8600 = vst.msk [vmem:[%s15147_s5] sm:$0x3] %vm8599_vm3, %v8598_v5 }

</bundles_post_ra>
